<compile_context>
chip_gen: v7x
topology: tpu7x:2x2x1
jax: 0.10.0
libtpu: 0.0.40
codegen_flags: <defaults>
</compile_context>

<pallas_src>
import jax
import jax.numpy as jnp
from jax.experimental import pallas as pl
from jax.experimental.pallas import tpu as pltpu


def _round_up(x, m):
    return ((x + m - 1) // m) * m


def _choose_row_tile(n_rows, tm_max=4096, min_tiles=2):
    """Row tile: multiple of 8, <= tm_max, >= min_tiles grid steps if possible."""
    if n_rows <= 8:
        return n_rows
    tm = min(tm_max, _round_up(n_rows, 8))
    if -(-n_rows // tm) < min_tiles:
        tm = max(8, _round_up(-(-n_rows // min_tiles), 8))
    return tm


# ---------------------------------------------------------------------------
# Kernel 1: shffleconv (1x1, 2C->2C, bias) on cat(z1, z2) fused with the
# channel split.  No concat / strided-slice HBM passes.
# ---------------------------------------------------------------------------
def shuffle_split(z1_rows, z2_rows, w, b, *, tm_max=4096):
    R, C = z1_rows.shape
    dt = z1_rows.dtype
    # Pre-split the tiny (2C,2C) weight / (2C,) bias so the kernel needs no
    # lane slicing:  out1 = z1@w11 + z2@w21 + b1 ;  out2 = z1@w12 + z2@w22 + b2
    w11, w12 = w[:C, :C], w[:C, C:]
    w21, w22 = w[C:, :C], w[C:, C:]
    b1, b2 = b[:C].reshape(1, C), b[C:].reshape(1, C)
    tm = _choose_row_tile(R, tm_max)

    def kernel(z1_ref, z2_ref, w11_ref, w12_ref, w21_ref, w22_ref,
               b1_ref, b2_ref, o1_ref, o2_ref):
        a = z1_ref[...].astype(jnp.float32)
        c = z2_ref[...].astype(jnp.float32)
        o1 = (jnp.dot(a, w11_ref[...].astype(jnp.float32),
                      preferred_element_type=jnp.float32)
              + jnp.dot(c, w21_ref[...].astype(jnp.float32),
                        preferred_element_type=jnp.float32)
              + b1_ref[...].astype(jnp.float32))
        o2 = (jnp.dot(a, w12_ref[...].astype(jnp.float32),
                      preferred_element_type=jnp.float32)
              + jnp.dot(c, w22_ref[...].astype(jnp.float32),
                        preferred_element_type=jnp.float32)
              + b2_ref[...].astype(jnp.float32))
        o1_ref[...] = o1.astype(o1_ref.dtype)
        o2_ref[...] = o2.astype(o2_ref.dtype)

    row = lambda i: (i, 0)
    full = lambda i: (0, 0)
    in_specs = [pl.BlockSpec((tm, C), row), pl.BlockSpec((tm, C), row),
                pl.BlockSpec((C, C), full), pl.BlockSpec((C, C), full),
                pl.BlockSpec((C, C), full), pl.BlockSpec((C, C), full),
                pl.BlockSpec((1, C), full), pl.BlockSpec((1, C), full)]
    out_specs = [pl.BlockSpec((tm, C), row), pl.BlockSpec((tm, C), row)]

    return pl.pallas_call(
        kernel,
        out_shape=(jax.ShapeDtypeStruct((R, C), dt),
                   jax.ShapeDtypeStruct((R, C), dt)),
        grid_spec=pltpu.PrefetchScalarGridSpec(
            num_scalar_prefetch=0,
            grid=(pl.cdiv(R, tm),),
            in_specs=in_specs,
            out_specs=out_specs),
        compiler_params=pltpu.CompilerParams(
            dimension_semantics=("parallel",)),
    )(z1_rows, z2_rows, w11, w12, w21, w22, b1, b2)


# ---------------------------------------------------------------------------
# Kernel 2/3: one whole InvertedResidualBlock fused in a single pallas_call.
#   expand 1x1 + ReLU6  ->  depthwise 3x3 (reflect-padded) + ReLU6
#   ->  1x1 projection(s)  ->  fused epilogue (residual / exp-scale).
# The input is reflect(1)-padded NHWC (W additionally zero-padded to a
# multiple of 8); since expand+ReLU6 is pointwise it commutes with the pad.
# ---------------------------------------------------------------------------
def fused_irb(x_pad, spatial_hw, w1, wd, w2_list, *, extras=(), epilogue,
              out_channels, out_dtype=None):
    B, Hp, Wpad, Cin = x_pad.shape
    H, W = spatial_hw
    assert Hp == H + 2 and Wpad >= W + 2
    hidden = w1.shape[1]
    n_proj = len(w2_list)
    n_extras = len(extras)
    out_dtype = out_dtype or x_pad.dtype

    def kernel(*refs):
        xp_ref, w1_ref, wd_ref = refs[0], refs[1], refs[2]
        w2_refs = refs[3:3 + n_proj]
        extra_refs = refs[3 + n_proj:3 + n_proj + n_extras]
        o_ref = refs[-1]

        xp = xp_ref[0].astype(jnp.float32)                  # (Hp, Wpad, Cin)
        # --- expand 1x1 + ReLU6 on the padded tile (pointwise) ---
        hp = jnp.dot(xp.reshape(Hp * Wpad, Cin),
                     w1_ref[...].astype(jnp.float32),
                     preferred_element_type=jnp.float32)
        hp = jnp.clip(hp, 0.0, 6.0).reshape(Hp, Wpad, hidden)
        # --- depthwise 3x3 + ReLU6: 9-tap stencil on the VMEM-resident tile ---
        wd_v = wd_ref[...].astype(jnp.float32)              # (9, hidden)
        acc = hp[0:H, 0:W, :] * wd_v[0:1, :]
        for k in range(1, 9):
            dy, dx = divmod(k, 3)
            acc = acc + hp[dy:dy + H, dx:dx + W, :] * wd_v[k:k + 1, :]
        acc = jnp.clip(acc, 0.0, 6.0).reshape(H * W, hidden)
        # --- 1x1 projection(s) + fused epilogue ---
        ys = [jnp.dot(acc, w2_ref[...].astype(jnp.float32),
                      preferred_element_type=jnp.float32).reshape(H, W, -1)
              for w2_ref in w2_refs]
        ex = [e_ref[0].astype(jnp.float32) for e_ref in extra_refs]
        o_ref[0] = epilogue(*ys, *ex).astype(o_ref.dtype)

    in_specs = [pl.BlockSpec((1, Hp, Wpad, Cin), lambda bb: (bb, 0, 0, 0)),
                pl.BlockSpec((Cin, hidden), lambda bb: (0, 0)),
                pl.BlockSpec((9, hidden), lambda bb: (0, 0))]
    args = [x_pad, w1, wd]
    for w2 in w2_list:
        in_specs.append(pl.BlockSpec(w2.shape, lambda bb: (0, 0)))
        args.append(w2)
    for e in extras:
        in_specs.append(pl.BlockSpec((1, H, W, e.shape[-1]),
                                     lambda bb: (bb, 0, 0, 0)))
        args.append(e)

    return pl.pallas_call(
        kernel,
        out_shape=jax.ShapeDtypeStruct((B, H, W, out_channels), out_dtype),
        grid_spec=pltpu.PrefetchScalarGridSpec(
            num_scalar_prefetch=0,
            grid=(B,),
            in_specs=in_specs,
            out_specs=pl.BlockSpec((1, H, W, out_channels),
                                   lambda bb: (bb, 0, 0, 0))),
        compiler_params=pltpu.CompilerParams(
            dimension_semantics=("parallel",)),
    )(*args)


def _reflect_pad_nhwc(x):
    """Reflect(1)-pad H and W, then zero-pad W to a multiple of 8 (the zero
    columns are never read by the stencil)."""
    B, H, W, C = x.shape
    xp = jnp.pad(x, ((0, 0), (1, 1), (1, 1), (0, 0)), mode="reflect")
    w_extra = _round_up(W + 2, 8) - (W + 2)
    if w_extra:
        xp = jnp.pad(xp, ((0, 0), (0, 0), (0, w_extra), (0, 0)))
    return xp


# ---------------------------------------------------------------------------
# DetailNode forward.  z1, z2: NCHW (B, 32, H, W) as in the PyTorch module.
# ---------------------------------------------------------------------------
def detail_node(z1, z2, params):
    B, C, H, W = z1.shape
    if W % 8 != 0:
        raise ValueError("W must be a multiple of 8")  # TODO(synk): pad W case
    z1 = jnp.transpose(z1, (0, 2, 3, 1))               # NHWC
    z2 = jnp.transpose(z2, (0, 2, 3, 1))
    R = B * H * W
    dt = z1.dtype

    # kernel 1: shffleconv + channel split
    z1r, z2r = shuffle_split(z1.reshape(R, C), z2.reshape(R, C),
                             params["sh_w"], params["sh_b"])
    z1r = z1r.reshape(B, H, W, C)
    z2r = z2r.reshape(B, H, W, C)

    # kernel 2: z2n = z2r + theta_phi(z1r)   (fully fused IRB + residual add)
    z2n = fused_irb(_reflect_pad_nhwc(z1r), (H, W),
                    params["phi_w1"], params["phi_wd"], [params["phi_w2"]],
                    extras=(z2r,),
                    epilogue=lambda y, res: res + y,
                    out_channels=C, out_dtype=dt)

    # kernel 3: z1n = z1r * exp(theta_rho(z2n)) + theta_eta(z2n)
    # rho|eta merged: 128-wide hidden (full lanes), two projections, fused exp.
    hid = params["rho_w1"].shape[1]
    zeros = jnp.zeros((hid, C), params["rho_w2"].dtype)
    re_w1 = jnp.concatenate([params["rho_w1"], params["eta_w1"]], axis=1)   # (C, 2*hid)
    re_wd = jnp.concatenate([params["rho_wd"], params["eta_wd"]], axis=1)   # (9, 2*hid)
    re_w2_rho = jnp.concatenate([params["rho_w2"], zeros], axis=0)          # (2*hid, C)
    re_w2_eta = jnp.concatenate([zeros, params["eta_w2"]], axis=0)          # (2*hid, C)
    z1n = fused_irb(_reflect_pad_nhwc(z2n), (H, W),
                    re_w1, re_wd, [re_w2_rho, re_w2_eta],
                    extras=(z1r,),
                    epilogue=lambda y_rho, y_eta, a: a * jnp.exp(y_rho) + y_eta,
                    out_channels=C, out_dtype=dt)

    return (jnp.transpose(z1n, (0, 3, 1, 2)),
            jnp.transpose(z2n, (0, 3, 1, 2)))


# ---------------------------------------------------------------------------
# Pure-JAX (NHWC) reference for verification.
# ---------------------------------------------------------------------------
def _ref_pw(x, w, b=None):
    y = jnp.einsum("bhwc,cd->bhwd", x, w, precision=jax.lax.Precision.HIGHEST)
    return y if b is None else y + b


def _ref_dw(x, w9):
    B, H, W, C = x.shape
    xp = jnp.pad(x, ((0, 0), (1, 1), (1, 1), (0, 0)), mode="reflect")
    acc = jnp.zeros_like(x)
    for dy in range(3):
        for dx in range(3):
            acc = acc + xp[:, dy:dy + H, dx:dx + W, :] * w9[dy * 3 + dx]
    return acc


def _ref_irb(x, w1, wd, w2):
    h = jnp.clip(_ref_pw(x, w1), 0.0, 6.0)
    h = jnp.clip(_ref_dw(h, wd), 0.0, 6.0)
    return _ref_pw(h, w2)


def _ref_detail_node(z1, z2, p):
    C = z1.shape[-1]
    x = _ref_pw(jnp.concatenate([z1, z2], axis=-1), p["sh_w"], p["sh_b"])
    z1, z2 = x[..., :C], x[..., C:]
    z2 = z2 + _ref_irb(z1, p["phi_w1"], p["phi_wd"], p["phi_w2"])
    z1 = (z1 * jnp.exp(_ref_irb(z2, p["rho_w1"], p["rho_wd"], p["rho_w2"]))
          + _ref_irb(z2, p["eta_w1"], p["eta_wd"], p["eta_w2"]))
    return z1, z2


if __name__ == "__main__":
    key = jax.random.PRNGKey(0)
    B, C, H, W = 2, 32, 16, 16
    hidden = 2 * C
    keys = jax.random.split(key, 16)

    z1 = jax.random.normal(keys[0], (B, C, H, W), jnp.float32)
    z2 = jax.random.normal(keys[1], (B, C, H, W), jnp.float32)

    def nrm(k, shape, scale=0.1):
        return scale * jax.random.normal(k, shape, jnp.float32)

    params = {
        "sh_w": nrm(keys[2], (2 * C, 2 * C)),   # shffleconv 1x1, 64->64 (Cin,Cout)
        "sh_b": nrm(keys[3], (2 * C,)),
    }
    for i, name in enumerate(["phi", "rho", "eta"]):
        params[f"{name}_w1"] = nrm(keys[4 + 3 * i], (C, hidden))     # 32->64
        params[f"{name}_wd"] = nrm(keys[5 + 3 * i], (9, hidden))     # dw 3x3 taps
        params[f"{name}_w2"] = nrm(keys[6 + 3 * i], (hidden, C))     # 64->32

    fwd = jax.jit(detail_node)
    z1o, z2o = jax.block_until_ready(fwd(z1, z2, params))

    # pure-JAX reference (NHWC), compared in NCHW
    z1n = jnp.transpose(z1, (0, 2, 3, 1))
    z2n = jnp.transpose(z2, (0, 2, 3, 1))
    r1, r2 = _ref_detail_node(z1n, z2n, params)
    r1 = jnp.transpose(r1, (0, 3, 1, 2))
    r2 = jnp.transpose(r2, (0, 3, 1, 2))

    # 1e-2 tolerance covers default- vs HIGHEST-precision MXU matmul paths.
    assert jnp.allclose(z1o, r1, atol=1e-2, rtol=1e-2), float(jnp.max(jnp.abs(z1o - r1)))
    assert jnp.allclose(z2o, r2, atol=1e-2, rtol=1e-2), float(jnp.max(jnp.abs(z2o - r2)))
    print("KERNEL_OK")
</pallas_src>

<mosaic_0001>
module attributes {stable_mosaic.version = 11 : i64} {
  func.func @kernel(%arg0: i32, %arg1: memref<256x32xf32, #tpu.memory_space<vmem>>, %arg2: memref<256x32xf32, #tpu.memory_space<vmem>>, %arg3: memref<32x32xf32, #tpu.memory_space<vmem>>, %arg4: memref<32x32xf32, #tpu.memory_space<vmem>>, %arg5: memref<32x32xf32, #tpu.memory_space<vmem>>, %arg6: memref<32x32xf32, #tpu.memory_space<vmem>>, %arg7: memref<1x32xf32, #tpu.memory_space<vmem>>, %arg8: memref<1x32xf32, #tpu.memory_space<vmem>>, %arg9: memref<256x32xf32, #tpu.memory_space<vmem>>, %arg10: memref<256x32xf32, #tpu.memory_space<vmem>>) attributes {dimension_semantics = [#tpu.dimension_semantics<parallel>], iteration_bounds = array<i64: 2>, scalar_prefetch = 0 : i64, scratch_operands = 0 : i64, tpu.core_type = #tpu.core_type<tc>, window_params = [{transform_indices = @transform_0, window_bounds = array<i64: 256, 32>}, {transform_indices = @transform_1, window_bounds = array<i64: 256, 32>}, {pipeline_mode = #tpu.pipeline_mode<synchronous>, transform_indices = @transform_2, window_bounds = array<i64: 32, 32>}, {pipeline_mode = #tpu.pipeline_mode<synchronous>, transform_indices = @transform_3, window_bounds = array<i64: 32, 32>}, {pipeline_mode = #tpu.pipeline_mode<synchronous>, transform_indices = @transform_4, window_bounds = array<i64: 32, 32>}, {pipeline_mode = #tpu.pipeline_mode<synchronous>, transform_indices = @transform_5, window_bounds = array<i64: 32, 32>}, {pipeline_mode = #tpu.pipeline_mode<synchronous>, transform_indices = @transform_6, window_bounds = array<i64: 1, 32>}, {pipeline_mode = #tpu.pipeline_mode<synchronous>, transform_indices = @transform_7, window_bounds = array<i64: 1, 32>}, {transform_indices = @transform_8, window_bounds = array<i64: 256, 32>}, {transform_indices = @transform_9, window_bounds = array<i64: 256, 32>}]} {
    %c0 = arith.constant 0 : index
    %c0_0 = arith.constant 0 : index
    %0 = vector.load %arg1[%c0, %c0_0] : memref<256x32xf32, #tpu.memory_space<vmem>>, vector<256x32xf32>
    %c0_1 = arith.constant 0 : index
    %c0_2 = arith.constant 0 : index
    %1 = vector.load %arg2[%c0_1, %c0_2] : memref<256x32xf32, #tpu.memory_space<vmem>>, vector<256x32xf32>
    %c0_3 = arith.constant 0 : index
    %c0_4 = arith.constant 0 : index
    %2 = vector.load %arg3[%c0_3, %c0_4] : memref<32x32xf32, #tpu.memory_space<vmem>>, vector<32x32xf32>
    %cst = arith.constant dense<0.000000e+00> : vector<256x32xf32>
    %3 = tpu.matmul %0, %2, %cst {dimension_numbers = #tpu.dot_dimension_numbers<[1], [0], [0], [1], [0, 0, 1, 1], [], []>} : vector<256x32xf32>, vector<32x32xf32>, vector<256x32xf32> -> vector<256x32xf32>
    %c0_5 = arith.constant 0 : index
    %c0_6 = arith.constant 0 : index
    %4 = vector.load %arg5[%c0_5, %c0_6] : memref<32x32xf32, #tpu.memory_space<vmem>>, vector<32x32xf32>
    %cst_7 = arith.constant dense<0.000000e+00> : vector<256x32xf32>
    %5 = tpu.matmul %1, %4, %cst_7 {dimension_numbers = #tpu.dot_dimension_numbers<[1], [0], [0], [1], [0, 0, 1, 1], [], []>} : vector<256x32xf32>, vector<32x32xf32>, vector<256x32xf32> -> vector<256x32xf32>
    %6 = arith.addf %3, %5 : vector<256x32xf32>
    %c0_8 = arith.constant 0 : index
    %c0_9 = arith.constant 0 : index
    %7 = vector.load %arg7[%c0_8, %c0_9] : memref<1x32xf32, #tpu.memory_space<vmem>>, vector<1x32xf32>
    %8 = vector.broadcast %7 : vector<1x32xf32> to vector<256x32xf32>
    %9 = arith.addf %6, %8 : vector<256x32xf32>
    %c0_10 = arith.constant 0 : index
    %c0_11 = arith.constant 0 : index
    %10 = vector.load %arg4[%c0_10, %c0_11] : memref<32x32xf32, #tpu.memory_space<vmem>>, vector<32x32xf32>
    %cst_12 = arith.constant dense<0.000000e+00> : vector<256x32xf32>
    %11 = tpu.matmul %0, %10, %cst_12 {dimension_numbers = #tpu.dot_dimension_numbers<[1], [0], [0], [1], [0, 0, 1, 1], [], []>} : vector<256x32xf32>, vector<32x32xf32>, vector<256x32xf32> -> vector<256x32xf32>
    %c0_13 = arith.constant 0 : index
    %c0_14 = arith.constant 0 : index
    %12 = vector.load %arg6[%c0_13, %c0_14] : memref<32x32xf32, #tpu.memory_space<vmem>>, vector<32x32xf32>
    %cst_15 = arith.constant dense<0.000000e+00> : vector<256x32xf32>
    %13 = tpu.matmul %1, %12, %cst_15 {dimension_numbers = #tpu.dot_dimension_numbers<[1], [0], [0], [1], [0, 0, 1, 1], [], []>} : vector<256x32xf32>, vector<32x32xf32>, vector<256x32xf32> -> vector<256x32xf32>
    %14 = arith.addf %11, %13 : vector<256x32xf32>
    %c0_16 = arith.constant 0 : index
    %c0_17 = arith.constant 0 : index
    %15 = vector.load %arg8[%c0_16, %c0_17] : memref<1x32xf32, #tpu.memory_space<vmem>>, vector<1x32xf32>
    %16 = vector.broadcast %15 : vector<1x32xf32> to vector<256x32xf32>
    %17 = arith.addf %14, %16 : vector<256x32xf32>
    %c0_18 = arith.constant 0 : index
    %c0_19 = arith.constant 0 : index
    %18 = vector.load %arg9[%c0_18, %c0_19] : memref<256x32xf32, #tpu.memory_space<vmem>>, vector<256x32xf32>
    tpu.vector_store %arg9[%c0_18, %c0_19], %9 {strides = array<i32>} : memref<256x32xf32, #tpu.memory_space<vmem>>, vector<256x32xf32>,
    %c0_20 = arith.constant 0 : index
    %c0_21 = arith.constant 0 : index
    %19 = vector.load %arg10[%c0_20, %c0_21] : memref<256x32xf32, #tpu.memory_space<vmem>>, vector<256x32xf32>
    tpu.vector_store %arg10[%c0_20, %c0_21], %17 {strides = array<i32>} : memref<256x32xf32, #tpu.memory_space<vmem>>, vector<256x32xf32>,
    return
  }
  func.func @transform_0(%arg0: i32) -> (i32, i32) {
    %c0_i32 = arith.constant 0 : i32
    %c0_i32_0 = arith.constant 0 : i32
    return %arg0, %c0_i32 : i32, i32
  }
  func.func @transform_1(%arg0: i32) -> (i32, i32) {
    %c0_i32 = arith.constant 0 : i32
    %c0_i32_0 = arith.constant 0 : i32
    return %arg0, %c0_i32 : i32, i32
  }
  func.func @transform_2(%arg0: i32) -> (i32, i32) {
    %c0_i32 = arith.constant 0 : i32
    %c0_i32_0 = arith.constant 0 : i32
    %c0_i32_1 = arith.constant 0 : i32
    return %c0_i32, %c0_i32_0 : i32, i32
  }
  func.func @transform_3(%arg0: i32) -> (i32, i32) {
    %c0_i32 = arith.constant 0 : i32
    %c0_i32_0 = arith.constant 0 : i32
    %c0_i32_1 = arith.constant 0 : i32
    return %c0_i32, %c0_i32_0 : i32, i32
  }
  func.func @transform_4(%arg0: i32) -> (i32, i32) {
    %c0_i32 = arith.constant 0 : i32
    %c0_i32_0 = arith.constant 0 : i32
    %c0_i32_1 = arith.constant 0 : i32
    return %c0_i32, %c0_i32_0 : i32, i32
  }
  func.func @transform_5(%arg0: i32) -> (i32, i32) {
    %c0_i32 = arith.constant 0 : i32
    %c0_i32_0 = arith.constant 0 : i32
    %c0_i32_1 = arith.constant 0 : i32
    return %c0_i32, %c0_i32_0 : i32, i32
  }
  func.func @transform_6(%arg0: i32) -> (i32, i32) {
    %c0_i32 = arith.constant 0 : i32
    %c0_i32_0 = arith.constant 0 : i32
    %c0_i32_1 = arith.constant 0 : i32
    return %c0_i32, %c0_i32_0 : i32, i32
  }
  func.func @transform_7(%arg0: i32) -> (i32, i32) {
    %c0_i32 = arith.constant 0 : i32
    %c0_i32_0 = arith.constant 0 : i32
    %c0_i32_1 = arith.constant 0 : i32
    return %c0_i32, %c0_i32_0 : i32, i32
  }
  func.func @transform_8(%arg0: i32) -> (i32, i32) {
    %c0_i32 = arith.constant 0 : i32
    %c0_i32_0 = arith.constant 0 : i32
    return %arg0, %c0_i32 : i32, i32
  }
  func.func @transform_9(%arg0: i32) -> (i32, i32) {
    %c0_i32 = arith.constant 0 : i32
    %c0_i32_0 = arith.constant 0 : i32
    return %arg0, %c0_i32 : i32, i32
  }
}

module attributes {stable_mosaic.version = 11 : i64} {
  func.func @kernel(%arg0: i32, %arg1: memref<1x18x24x32xf32, #tpu.memory_space<vmem>>, %arg2: memref<32x64xf32, #tpu.memory_space<vmem>>, %arg3: memref<9x64xf32, #tpu.memory_space<vmem>>, %arg4: memref<64x32xf32, #tpu.memory_space<vmem>>, %arg5: memref<1x16x16x32xf32, #tpu.memory_space<vmem>>, %arg6: memref<1x16x16x32xf32, #tpu.memory_space<vmem>>) attributes {dimension_semantics = [#tpu.dimension_semantics<parallel>], iteration_bounds = array<i64: 2>, scalar_prefetch = 0 : i64, scratch_operands = 0 : i64, tpu.core_type = #tpu.core_type<tc>, window_params = [{transform_indices = @transform_0, window_bounds = array<i64: 1, 18, 24, 32>}, {pipeline_mode = #tpu.pipeline_mode<synchronous>, transform_indices = @transform_1, window_bounds = array<i64: 32, 64>}, {pipeline_mode = #tpu.pipeline_mode<synchronous>, transform_indices = @transform_2, window_bounds = array<i64: 9, 64>}, {pipeline_mode = #tpu.pipeline_mode<synchronous>, transform_indices = @transform_3, window_bounds = array<i64: 64, 32>}, {transform_indices = @transform_4, window_bounds = array<i64: 1, 16, 16, 32>}, {transform_indices = @transform_5, window_bounds = array<i64: 1, 16, 16, 32>}]} {
    %c0 = arith.constant 0 : index
    %c0_0 = arith.constant 0 : index
    %c0_1 = arith.constant 0 : index
    %c0_2 = arith.constant 0 : index
    %0 = vector.load %arg1[%c0, %c0_0, %c0_1, %c0_2] : memref<1x18x24x32xf32, #tpu.memory_space<vmem>>, vector<1x18x24x32xf32>
    %1 = vector.shape_cast %0 : vector<1x18x24x32xf32> to vector<18x24x32xf32>
    %2 = vector.shape_cast %1 : vector<18x24x32xf32> to vector<432x32xf32>
    %c0_3 = arith.constant 0 : index
    %c0_4 = arith.constant 0 : index
    %3 = vector.load %arg2[%c0_3, %c0_4] : memref<32x64xf32, #tpu.memory_space<vmem>>, vector<32x64xf32>
    %cst = arith.constant dense<0.000000e+00> : vector<432x64xf32>
    %4 = tpu.matmul %2, %3, %cst {dimension_numbers = #tpu.dot_dimension_numbers<[1], [0], [0], [1], [0, 0, 1, 1], [], []>} : vector<432x32xf32>, vector<32x64xf32>, vector<432x64xf32> -> vector<432x64xf32>
    %cst_5 = arith.constant 0.000000e+00 : f32
    %cst_6 = arith.constant 6.000000e+00 : f32
    %5 = vector.broadcast %cst_5 : f32 to vector<432x64xf32>
    %6 = arith.maximumf %5, %4 : vector<432x64xf32>
    %7 = vector.broadcast %cst_6 : f32 to vector<432x64xf32>
    %8 = arith.minimumf %7, %6 : vector<432x64xf32>
    %9 = vector.shape_cast %8 : vector<432x64xf32> to vector<18x24x64xf32>
    %c0_7 = arith.constant 0 : index
    %c0_8 = arith.constant 0 : index
    %10 = vector.load %arg3[%c0_7, %c0_8] : memref<9x64xf32, #tpu.memory_space<vmem>>, vector<9x64xf32>
    %11 = vector.extract_strided_slice %9 {offsets = [0, 0, 0], sizes = [16, 16, 64], strides = [1, 1, 1]} : vector<18x24x64xf32> to vector<16x16x64xf32>
    %12 = vector.extract_strided_slice %10 {offsets = [0, 0], sizes = [1, 64], strides = [1, 1]} : vector<9x64xf32> to vector<1x64xf32>
    %13 = vector.shape_cast %12 : vector<1x64xf32> to vector<1x1x64xf32>
    %14 = vector.broadcast %13 : vector<1x1x64xf32> to vector<16x16x64xf32>
    %15 = arith.mulf %11, %14 : vector<16x16x64xf32>
    %16 = vector.extract_strided_slice %9 {offsets = [0, 1, 0], sizes = [16, 16, 64], strides = [1, 1, 1]} : vector<18x24x64xf32> to vector<16x16x64xf32>
    %17 = vector.extract_strided_slice %10 {offsets = [1, 0], sizes = [1, 64], strides = [1, 1]} : vector<9x64xf32> to vector<1x64xf32>
    %18 = vector.shape_cast %17 : vector<1x64xf32> to vector<1x1x64xf32>
    %19 = vector.broadcast %18 : vector<1x1x64xf32> to vector<16x16x64xf32>
    %20 = arith.mulf %16, %19 : vector<16x16x64xf32>
    %21 = arith.addf %15, %20 : vector<16x16x64xf32>
    %22 = vector.extract_strided_slice %9 {offsets = [0, 2, 0], sizes = [16, 16, 64], strides = [1, 1, 1]} : vector<18x24x64xf32> to vector<16x16x64xf32>
    %23 = vector.extract_strided_slice %10 {offsets = [2, 0], sizes = [1, 64], strides = [1, 1]} : vector<9x64xf32> to vector<1x64xf32>
    %24 = vector.shape_cast %23 : vector<1x64xf32> to vector<1x1x64xf32>
    %25 = vector.broadcast %24 : vector<1x1x64xf32> to vector<16x16x64xf32>
    %26 = arith.mulf %22, %25 : vector<16x16x64xf32>
    %27 = arith.addf %21, %26 : vector<16x16x64xf32>
    %28 = vector.extract_strided_slice %9 {offsets = [1, 0, 0], sizes = [16, 16, 64], strides = [1, 1, 1]} : vector<18x24x64xf32> to vector<16x16x64xf32>
    %29 = vector.extract_strided_slice %10 {offsets = [3, 0], sizes = [1, 64], strides = [1, 1]} : vector<9x64xf32> to vector<1x64xf32>
    %30 = vector.shape_cast %29 : vector<1x64xf32> to vector<1x1x64xf32>
    %31 = vector.broadcast %30 : vector<1x1x64xf32> to vector<16x16x64xf32>
    %32 = arith.mulf %28, %31 : vector<16x16x64xf32>
    %33 = arith.addf %27, %32 : vector<16x16x64xf32>
    %34 = vector.extract_strided_slice %9 {offsets = [1, 1, 0], sizes = [16, 16, 64], strides = [1, 1, 1]} : vector<18x24x64xf32> to vector<16x16x64xf32>
    %35 = vector.extract_strided_slice %10 {offsets = [4, 0], sizes = [1, 64], strides = [1, 1]} : vector<9x64xf32> to vector<1x64xf32>
    %36 = vector.shape_cast %35 : vector<1x64xf32> to vector<1x1x64xf32>
    %37 = vector.broadcast %36 : vector<1x1x64xf32> to vector<16x16x64xf32>
    %38 = arith.mulf %34, %37 : vector<16x16x64xf32>
    %39 = arith.addf %33, %38 : vector<16x16x64xf32>
    %40 = vector.extract_strided_slice %9 {offsets = [1, 2, 0], sizes = [16, 16, 64], strides = [1, 1, 1]} : vector<18x24x64xf32> to vector<16x16x64xf32>
    %41 = vector.extract_strided_slice %10 {offsets = [5, 0], sizes = [1, 64], strides = [1, 1]} : vector<9x64xf32> to vector<1x64xf32>
    %42 = vector.shape_cast %41 : vector<1x64xf32> to vector<1x1x64xf32>
    %43 = vector.broadcast %42 : vector<1x1x64xf32> to vector<16x16x64xf32>
    %44 = arith.mulf %40, %43 : vector<16x16x64xf32>
    %45 = arith.addf %39, %44 : vector<16x16x64xf32>
    %46 = vector.extract_strided_slice %9 {offsets = [2, 0, 0], sizes = [16, 16, 64], strides = [1, 1, 1]} : vector<18x24x64xf32> to vector<16x16x64xf32>
    %47 = vector.extract_strided_slice %10 {offsets = [6, 0], sizes = [1, 64], strides = [1, 1]} : vector<9x64xf32> to vector<1x64xf32>
    %48 = vector.shape_cast %47 : vector<1x64xf32> to vector<1x1x64xf32>
    %49 = vector.broadcast %48 : vector<1x1x64xf32> to vector<16x16x64xf32>
    %50 = arith.mulf %46, %49 : vector<16x16x64xf32>
    %51 = arith.addf %45, %50 : vector<16x16x64xf32>
    %52 = vector.extract_strided_slice %9 {offsets = [2, 1, 0], sizes = [16, 16, 64], strides = [1, 1, 1]} : vector<18x24x64xf32> to vector<16x16x64xf32>
    %53 = vector.extract_strided_slice %10 {offsets = [7, 0], sizes = [1, 64], strides = [1, 1]} : vector<9x64xf32> to vector<1x64xf32>
    %54 = vector.shape_cast %53 : vector<1x64xf32> to vector<1x1x64xf32>
    %55 = vector.broadcast %54 : vector<1x1x64xf32> to vector<16x16x64xf32>
    %56 = arith.mulf %52, %55 : vector<16x16x64xf32>
    %57 = arith.addf %51, %56 : vector<16x16x64xf32>
    %58 = vector.extract_strided_slice %9 {offsets = [2, 2, 0], sizes = [16, 16, 64], strides = [1, 1, 1]} : vector<18x24x64xf32> to vector<16x16x64xf32>
    %59 = vector.extract_strided_slice %10 {offsets = [8, 0], sizes = [1, 64], strides = [1, 1]} : vector<9x64xf32> to vector<1x64xf32>
    %60 = vector.shape_cast %59 : vector<1x64xf32> to vector<1x1x64xf32>
    %61 = vector.broadcast %60 : vector<1x1x64xf32> to vector<16x16x64xf32>
    %62 = arith.mulf %58, %61 : vector<16x16x64xf32>
    %63 = arith.addf %57, %62 : vector<16x16x64xf32>
    %cst_9 = arith.constant 0.000000e+00 : f32
    %cst_10 = arith.constant 6.000000e+00 : f32
    %64 = vector.broadcast %cst_9 : f32 to vector<16x16x64xf32>
    %65 = arith.maximumf %64, %63 : vector<16x16x64xf32>
    %66 = vector.broadcast %cst_10 : f32 to vector<16x16x64xf32>
    %67 = arith.minimumf %66, %65 : vector<16x16x64xf32>
    %68 = vector.shape_cast %67 : vector<16x16x64xf32> to vector<256x64xf32>
    %c0_11 = arith.constant 0 : index
    %c0_12 = arith.constant 0 : index
    %69 = vector.load %arg4[%c0_11, %c0_12] : memref<64x32xf32, #tpu.memory_space<vmem>>, vector<64x32xf32>
    %cst_13 = arith.constant dense<0.000000e+00> : vector<256x32xf32>
    %70 = tpu.matmul %68, %69, %cst_13 {dimension_numbers = #tpu.dot_dimension_numbers<[1], [0], [0], [1], [0, 0, 1, 1], [], []>} : vector<256x64xf32>, vector<64x32xf32>, vector<256x32xf32> -> vector<256x32xf32>
    %71 = vector.shape_cast %70 : vector<256x32xf32> to vector<16x16x32xf32>
    %c0_14 = arith.constant 0 : index
    %c0_15 = arith.constant 0 : index
    %c0_16 = arith.constant 0 : index
    %c0_17 = arith.constant 0 : index
    %72 = vector.load %arg5[%c0_14, %c0_15, %c0_16, %c0_17] : memref<1x16x16x32xf32, #tpu.memory_space<vmem>>, vector<1x16x16x32xf32>
    %73 = vector.shape_cast %72 : vector<1x16x16x32xf32> to vector<16x16x32xf32>
    %74 = arith.addf %73, %71 : vector<16x16x32xf32>
    %c0_18 = arith.constant 0 : index
    %c0_19 = arith.constant 0 : index
    %c0_20 = arith.constant 0 : index
    %c0_21 = arith.constant 0 : index
    %75 = vector.load %arg6[%c0_18, %c0_19, %c0_20, %c0_21] : memref<1x16x16x32xf32, #tpu.memory_space<vmem>>, vector<1x16x16x32xf32>
    %76 = vector.shape_cast %75 : vector<1x16x16x32xf32> to vector<16x16x32xf32>
    %77 = vector.shape_cast %74 : vector<16x16x32xf32> to vector<1x16x16x32xf32>
    tpu.vector_store %arg6[%c0_18, %c0_19, %c0_20, %c0_21], %77 {strides = array<i32>} : memref<1x16x16x32xf32, #tpu.memory_space<vmem>>, vector<1x16x16x32xf32>,
    return
  }
  func.func @transform_0(%arg0: i32) -> (i32, i32, i32, i32) {
    %c0_i32 = arith.constant 0 : i32
    %c0_i32_0 = arith.constant 0 : i32
    %c0_i32_1 = arith.constant 0 : i32
    %c0_i32_2 = arith.constant 0 : i32
    return %arg0, %c0_i32, %c0_i32_0, %c0_i32_1 : i32, i32, i32, i32
  }
  func.func @transform_1(%arg0: i32) -> (i32, i32) {
    %c0_i32 = arith.constant 0 : i32
    %c0_i32_0 = arith.constant 0 : i32
    %c0_i32_1 = arith.constant 0 : i32
    return %c0_i32, %c0_i32_0 : i32, i32
  }
  func.func @transform_2(%arg0: i32) -> (i32, i32) {
    %c0_i32 = arith.constant 0 : i32
    %c0_i32_0 = arith.constant 0 : i32
    %c0_i32_1 = arith.constant 0 : i32
    return %c0_i32, %c0_i32_0 : i32, i32
  }
  func.func @transform_3(%arg0: i32) -> (i32, i32) {
    %c0_i32 = arith.constant 0 : i32
    %c0_i32_0 = arith.constant 0 : i32
    %c0_i32_1 = arith.constant 0 : i32
    return %c0_i32, %c0_i32_0 : i32, i32
  }
  func.func @transform_4(%arg0: i32) -> (i32, i32, i32, i32) {
    %c0_i32 = arith.constant 0 : i32
    %c0_i32_0 = arith.constant 0 : i32
    %c0_i32_1 = arith.constant 0 : i32
    %c0_i32_2 = arith.constant 0 : i32
    return %arg0, %c0_i32, %c0_i32_0, %c0_i32_1 : i32, i32, i32, i32
  }
  func.func @transform_5(%arg0: i32) -> (i32, i32, i32, i32) {
    %c0_i32 = arith.constant 0 : i32
    %c0_i32_0 = arith.constant 0 : i32
    %c0_i32_1 = arith.constant 0 : i32
    %c0_i32_2 = arith.constant 0 : i32
    return %arg0, %c0_i32, %c0_i32_0, %c0_i32_1 : i32, i32, i32, i32
  }
}

module attributes {stable_mosaic.version = 11 : i64} {
  func.func @kernel(%arg0: i32, %arg1: memref<1x18x24x32xf32, #tpu.memory_space<vmem>>, %arg2: memref<32x128xf32, #tpu.memory_space<vmem>>, %arg3: memref<9x128xf32, #tpu.memory_space<vmem>>, %arg4: memref<128x32xf32, #tpu.memory_space<vmem>>, %arg5: memref<128x32xf32, #tpu.memory_space<vmem>>, %arg6: memref<1x16x16x32xf32, #tpu.memory_space<vmem>>, %arg7: memref<1x16x16x32xf32, #tpu.memory_space<vmem>>) attributes {dimension_semantics = [#tpu.dimension_semantics<parallel>], iteration_bounds = array<i64: 2>, scalar_prefetch = 0 : i64, scratch_operands = 0 : i64, tpu.core_type = #tpu.core_type<tc>, window_params = [{transform_indices = @transform_0, window_bounds = array<i64: 1, 18, 24, 32>}, {pipeline_mode = #tpu.pipeline_mode<synchronous>, transform_indices = @transform_1, window_bounds = array<i64: 32, 128>}, {pipeline_mode = #tpu.pipeline_mode<synchronous>, transform_indices = @transform_2, window_bounds = array<i64: 9, 128>}, {pipeline_mode = #tpu.pipeline_mode<synchronous>, transform_indices = @transform_3, window_bounds = array<i64: 128, 32>}, {pipeline_mode = #tpu.pipeline_mode<synchronous>, transform_indices = @transform_4, window_bounds = array<i64: 128, 32>}, {transform_indices = @transform_5, window_bounds = array<i64: 1, 16, 16, 32>}, {transform_indices = @transform_6, window_bounds = array<i64: 1, 16, 16, 32>}]} {
    %c0 = arith.constant 0 : index
    %c0_0 = arith.constant 0 : index
    %c0_1 = arith.constant 0 : index
    %c0_2 = arith.constant 0 : index
    %0 = vector.load %arg1[%c0, %c0_0, %c0_1, %c0_2] : memref<1x18x24x32xf32, #tpu.memory_space<vmem>>, vector<1x18x24x32xf32>
    %1 = vector.shape_cast %0 : vector<1x18x24x32xf32> to vector<18x24x32xf32>
    %2 = vector.shape_cast %1 : vector<18x24x32xf32> to vector<432x32xf32>
    %c0_3 = arith.constant 0 : index
    %c0_4 = arith.constant 0 : index
    %3 = vector.load %arg2[%c0_3, %c0_4] : memref<32x128xf32, #tpu.memory_space<vmem>>, vector<32x128xf32>
    %cst = arith.constant dense<0.000000e+00> : vector<432x128xf32>
    %4 = tpu.matmul %2, %3, %cst {dimension_numbers = #tpu.dot_dimension_numbers<[1], [0], [0], [1], [0, 0, 1, 1], [], []>} : vector<432x32xf32>, vector<32x128xf32>, vector<432x128xf32> -> vector<432x128xf32>
    %cst_5 = arith.constant 0.000000e+00 : f32
    %cst_6 = arith.constant 6.000000e+00 : f32
    %5 = vector.broadcast %cst_5 : f32 to vector<432x128xf32>
    %6 = arith.maximumf %5, %4 : vector<432x128xf32>
    %7 = vector.broadcast %cst_6 : f32 to vector<432x128xf32>
    %8 = arith.minimumf %7, %6 : vector<432x128xf32>
    %9 = vector.shape_cast %8 : vector<432x128xf32> to vector<18x24x128xf32>
    %c0_7 = arith.constant 0 : index
    %c0_8 = arith.constant 0 : index
    %10 = vector.load %arg3[%c0_7, %c0_8] : memref<9x128xf32, #tpu.memory_space<vmem>>, vector<9x128xf32>
    %11 = vector.extract_strided_slice %9 {offsets = [0, 0, 0], sizes = [16, 16, 128], strides = [1, 1, 1]} : vector<18x24x128xf32> to vector<16x16x128xf32>
    %12 = vector.extract_strided_slice %10 {offsets = [0, 0], sizes = [1, 128], strides = [1, 1]} : vector<9x128xf32> to vector<1x128xf32>
    %13 = vector.shape_cast %12 : vector<1x128xf32> to vector<1x1x128xf32>
    %14 = vector.broadcast %13 : vector<1x1x128xf32> to vector<16x16x128xf32>
    %15 = arith.mulf %11, %14 : vector<16x16x128xf32>
    %16 = vector.extract_strided_slice %9 {offsets = [0, 1, 0], sizes = [16, 16, 128], strides = [1, 1, 1]} : vector<18x24x128xf32> to vector<16x16x128xf32>
    %17 = vector.extract_strided_slice %10 {offsets = [1, 0], sizes = [1, 128], strides = [1, 1]} : vector<9x128xf32> to vector<1x128xf32>
    %18 = vector.shape_cast %17 : vector<1x128xf32> to vector<1x1x128xf32>
    %19 = vector.broadcast %18 : vector<1x1x128xf32> to vector<16x16x128xf32>
    %20 = arith.mulf %16, %19 : vector<16x16x128xf32>
    %21 = arith.addf %15, %20 : vector<16x16x128xf32>
    %22 = vector.extract_strided_slice %9 {offsets = [0, 2, 0], sizes = [16, 16, 128], strides = [1, 1, 1]} : vector<18x24x128xf32> to vector<16x16x128xf32>
    %23 = vector.extract_strided_slice %10 {offsets = [2, 0], sizes = [1, 128], strides = [1, 1]} : vector<9x128xf32> to vector<1x128xf32>
    %24 = vector.shape_cast %23 : vector<1x128xf32> to vector<1x1x128xf32>
    %25 = vector.broadcast %24 : vector<1x1x128xf32> to vector<16x16x128xf32>
    %26 = arith.mulf %22, %25 : vector<16x16x128xf32>
    %27 = arith.addf %21, %26 : vector<16x16x128xf32>
    %28 = vector.extract_strided_slice %9 {offsets = [1, 0, 0], sizes = [16, 16, 128], strides = [1, 1, 1]} : vector<18x24x128xf32> to vector<16x16x128xf32>
    %29 = vector.extract_strided_slice %10 {offsets = [3, 0], sizes = [1, 128], strides = [1, 1]} : vector<9x128xf32> to vector<1x128xf32>
    %30 = vector.shape_cast %29 : vector<1x128xf32> to vector<1x1x128xf32>
    %31 = vector.broadcast %30 : vector<1x1x128xf32> to vector<16x16x128xf32>
    %32 = arith.mulf %28, %31 : vector<16x16x128xf32>
    %33 = arith.addf %27, %32 : vector<16x16x128xf32>
    %34 = vector.extract_strided_slice %9 {offsets = [1, 1, 0], sizes = [16, 16, 128], strides = [1, 1, 1]} : vector<18x24x128xf32> to vector<16x16x128xf32>
    %35 = vector.extract_strided_slice %10 {offsets = [4, 0], sizes = [1, 128], strides = [1, 1]} : vector<9x128xf32> to vector<1x128xf32>
    %36 = vector.shape_cast %35 : vector<1x128xf32> to vector<1x1x128xf32>
    %37 = vector.broadcast %36 : vector<1x1x128xf32> to vector<16x16x128xf32>
    %38 = arith.mulf %34, %37 : vector<16x16x128xf32>
    %39 = arith.addf %33, %38 : vector<16x16x128xf32>
    %40 = vector.extract_strided_slice %9 {offsets = [1, 2, 0], sizes = [16, 16, 128], strides = [1, 1, 1]} : vector<18x24x128xf32> to vector<16x16x128xf32>
    %41 = vector.extract_strided_slice %10 {offsets = [5, 0], sizes = [1, 128], strides = [1, 1]} : vector<9x128xf32> to vector<1x128xf32>
    %42 = vector.shape_cast %41 : vector<1x128xf32> to vector<1x1x128xf32>
    %43 = vector.broadcast %42 : vector<1x1x128xf32> to vector<16x16x128xf32>
    %44 = arith.mulf %40, %43 : vector<16x16x128xf32>
    %45 = arith.addf %39, %44 : vector<16x16x128xf32>
    %46 = vector.extract_strided_slice %9 {offsets = [2, 0, 0], sizes = [16, 16, 128], strides = [1, 1, 1]} : vector<18x24x128xf32> to vector<16x16x128xf32>
    %47 = vector.extract_strided_slice %10 {offsets = [6, 0], sizes = [1, 128], strides = [1, 1]} : vector<9x128xf32> to vector<1x128xf32>
    %48 = vector.shape_cast %47 : vector<1x128xf32> to vector<1x1x128xf32>
    %49 = vector.broadcast %48 : vector<1x1x128xf32> to vector<16x16x128xf32>
    %50 = arith.mulf %46, %49 : vector<16x16x128xf32>
    %51 = arith.addf %45, %50 : vector<16x16x128xf32>
    %52 = vector.extract_strided_slice %9 {offsets = [2, 1, 0], sizes = [16, 16, 128], strides = [1, 1, 1]} : vector<18x24x128xf32> to vector<16x16x128xf32>
    %53 = vector.extract_strided_slice %10 {offsets = [7, 0], sizes = [1, 128], strides = [1, 1]} : vector<9x128xf32> to vector<1x128xf32>
    %54 = vector.shape_cast %53 : vector<1x128xf32> to vector<1x1x128xf32>
    %55 = vector.broadcast %54 : vector<1x1x128xf32> to vector<16x16x128xf32>
    %56 = arith.mulf %52, %55 : vector<16x16x128xf32>
    %57 = arith.addf %51, %56 : vector<16x16x128xf32>
    %58 = vector.extract_strided_slice %9 {offsets = [2, 2, 0], sizes = [16, 16, 128], strides = [1, 1, 1]} : vector<18x24x128xf32> to vector<16x16x128xf32>
    %59 = vector.extract_strided_slice %10 {offsets = [8, 0], sizes = [1, 128], strides = [1, 1]} : vector<9x128xf32> to vector<1x128xf32>
    %60 = vector.shape_cast %59 : vector<1x128xf32> to vector<1x1x128xf32>
    %61 = vector.broadcast %60 : vector<1x1x128xf32> to vector<16x16x128xf32>
    %62 = arith.mulf %58, %61 : vector<16x16x128xf32>
    %63 = arith.addf %57, %62 : vector<16x16x128xf32>
    %cst_9 = arith.constant 0.000000e+00 : f32
    %cst_10 = arith.constant 6.000000e+00 : f32
    %64 = vector.broadcast %cst_9 : f32 to vector<16x16x128xf32>
    %65 = arith.maximumf %64, %63 : vector<16x16x128xf32>
    %66 = vector.broadcast %cst_10 : f32 to vector<16x16x128xf32>
    %67 = arith.minimumf %66, %65 : vector<16x16x128xf32>
    %68 = vector.shape_cast %67 : vector<16x16x128xf32> to vector<256x128xf32>
    %c0_11 = arith.constant 0 : index
    %c0_12 = arith.constant 0 : index
    %69 = vector.load %arg4[%c0_11, %c0_12] : memref<128x32xf32, #tpu.memory_space<vmem>>, vector<128x32xf32>
    %cst_13 = arith.constant dense<0.000000e+00> : vector<256x32xf32>
    %70 = tpu.matmul %68, %69, %cst_13 {dimension_numbers = #tpu.dot_dimension_numbers<[1], [0], [0], [1], [0, 0, 1, 1], [], []>} : vector<256x128xf32>, vector<128x32xf32>, vector<256x32xf32> -> vector<256x32xf32>
    %71 = vector.shape_cast %70 : vector<256x32xf32> to vector<16x16x32xf32>
    %c0_14 = arith.constant 0 : index
    %c0_15 = arith.constant 0 : index
    %72 = vector.load %arg5[%c0_14, %c0_15] : memref<128x32xf32, #tpu.memory_space<vmem>>, vector<128x32xf32>
    %cst_16 = arith.constant dense<0.000000e+00> : vector<256x32xf32>
    %73 = tpu.matmul %68, %72, %cst_16 {dimension_numbers = #tpu.dot_dimension_numbers<[1], [0], [0], [1], [0, 0, 1, 1], [], []>} : vector<256x128xf32>, vector<128x32xf32>, vector<256x32xf32> -> vector<256x32xf32>
    %74 = vector.shape_cast %73 : vector<256x32xf32> to vector<16x16x32xf32>
    %c0_17 = arith.constant 0 : index
    %c0_18 = arith.constant 0 : index
    %c0_19 = arith.constant 0 : index
    %c0_20 = arith.constant 0 : index
    %75 = vector.load %arg6[%c0_17, %c0_18, %c0_19, %c0_20] : memref<1x16x16x32xf32, #tpu.memory_space<vmem>>, vector<1x16x16x32xf32>
    %76 = vector.shape_cast %75 : vector<1x16x16x32xf32> to vector<16x16x32xf32>
    %77 = math.exp %71 : vector<16x16x32xf32>
    %78 = arith.mulf %76, %77 : vector<16x16x32xf32>
    %79 = arith.addf %78, %74 : vector<16x16x32xf32>
    %c0_21 = arith.constant 0 : index
    %c0_22 = arith.constant 0 : index
    %c0_23 = arith.constant 0 : index
    %c0_24 = arith.constant 0 : index
    %80 = vector.load %arg7[%c0_21, %c0_22, %c0_23, %c0_24] : memref<1x16x16x32xf32, #tpu.memory_space<vmem>>, vector<1x16x16x32xf32>
    %81 = vector.shape_cast %80 : vector<1x16x16x32xf32> to vector<16x16x32xf32>
    %82 = vector.shape_cast %79 : vector<16x16x32xf32> to vector<1x16x16x32xf32>
    tpu.vector_store %arg7[%c0_21, %c0_22, %c0_23, %c0_24], %82 {strides = array<i32>} : memref<1x16x16x32xf32, #tpu.memory_space<vmem>>, vector<1x16x16x32xf32>,
    return
  }
  func.func @transform_0(%arg0: i32) -> (i32, i32, i32, i32) {
    %c0_i32 = arith.constant 0 : i32
    %c0_i32_0 = arith.constant 0 : i32
    %c0_i32_1 = arith.constant 0 : i32
    %c0_i32_2 = arith.constant 0 : i32
    return %arg0, %c0_i32, %c0_i32_0, %c0_i32_1 : i32, i32, i32, i32
  }
  func.func @transform_1(%arg0: i32) -> (i32, i32) {
    %c0_i32 = arith.constant 0 : i32
    %c0_i32_0 = arith.constant 0 : i32
    %c0_i32_1 = arith.constant 0 : i32
    return %c0_i32, %c0_i32_0 : i32, i32
  }
  func.func @transform_2(%arg0: i32) -> (i32, i32) {
    %c0_i32 = arith.constant 0 : i32
    %c0_i32_0 = arith.constant 0 : i32
    %c0_i32_1 = arith.constant 0 : i32
    return %c0_i32, %c0_i32_0 : i32, i32
  }
  func.func @transform_3(%arg0: i32) -> (i32, i32) {
    %c0_i32 = arith.constant 0 : i32
    %c0_i32_0 = arith.constant 0 : i32
    %c0_i32_1 = arith.constant 0 : i32
    return %c0_i32, %c0_i32_0 : i32, i32
  }
  func.func @transform_4(%arg0: i32) -> (i32, i32) {
    %c0_i32 = arith.constant 0 : i32
    %c0_i32_0 = arith.constant 0 : i32
    %c0_i32_1 = arith.constant 0 : i32
    return %c0_i32, %c0_i32_0 : i32, i32
  }
  func.func @transform_5(%arg0: i32) -> (i32, i32, i32, i32) {
    %c0_i32 = arith.constant 0 : i32
    %c0_i32_0 = arith.constant 0 : i32
    %c0_i32_1 = arith.constant 0 : i32
    %c0_i32_2 = arith.constant 0 : i32
    return %arg0, %c0_i32, %c0_i32_0, %c0_i32_1 : i32, i32, i32, i32
  }
  func.func @transform_6(%arg0: i32) -> (i32, i32, i32, i32) {
    %c0_i32 = arith.constant 0 : i32
    %c0_i32_0 = arith.constant 0 : i32
    %c0_i32_1 = arith.constant 0 : i32
    %c0_i32_2 = arith.constant 0 : i32
    return %arg0, %c0_i32, %c0_i32_0, %c0_i32_1 : i32, i32, i32, i32
  }
}

</mosaic_0001>

<bundles_post_ra>
// kernel: detail_node.3
= control target key start
LH: loop header
LB: loop body
LE: loop exit
PB: predicated region body
PF: predicated region fallthrough
CT: control target
= control target key end

     0   :  { %15 = vsyncpa [#allocation3], 0  ;;  %s3284_s0 = inlined_call_operand.hbm [shape: f32[512,32], index: 0, kind: input, shape index: {}]   ;;  %s3285_s1 = inlined_call_operand.hbm [shape: f32[512,32], index: 1, kind: input, shape index: {}]   ;;  %s3286_s2 = inlined_call_operand.vmem [shape: f32[32,32], index: 2, kind: input, shape index: {}]   ;;  %s3287_s3 = inlined_call_operand.vmem [shape: f32[32,32], index: 3, kind: input, shape index: {}]   ;;  %s3288_s4 = inlined_call_operand.vmem [shape: f32[32,32], index: 4, kind: input, shape index: {}]   ;;  %s3289_s5 = inlined_call_operand.vmem [shape: f32[32,32], index: 5, kind: input, shape index: {}]   ;;  %s3290_s6 = inlined_call_operand.vmem [shape: f32[1,32], index: 6, kind: input, shape index: {}]   ;;  %s3291_s7 = inlined_call_operand.vmem [shape: f32[1,32], index: 7, kind: input, shape index: {}]   ;;  %s3292_s8 = inlined_call_operand.vmem [shape: f32[512,32], index: 8, kind: output, shape index: {0}]   ;;  %s3293_s9 = inlined_call_operand.vmem [shape: f32[512,32], index: 9, kind: output, shape index: {1}]  }
   0x1   :  { %17 = vsyncpa [#allocation3 + $0x1], 0 }
   0x2   :  { %18 = vsyncpa [#allocation5], 0 }
   0x3   :  { %20 = vsyncpa [#allocation5 + $0x1], 0  ;;  %s2664_s30 = smov 0   ;;  %s2666_s10 = smov 0  }
   0x4   :  { %s2668_s11 = smov 0   ;;  %s2670_s12 = smov 0  }
   0x5 LB: > { %s3294_s13 = sadd.s32 4294967295, %s2608_s12   ;;  %s2684_s14 = sadd.s32 1, %s2608_s12   ;;  %s2608_s12 = sphi %s2670_s12, %s3307_s12   ;;  %s2604_s11 = sphi %s2668_s11, %s3306_s11   ;;  %s2600_s10 = sphi %s2666_s10, %s3305_s10   ;;  %s2596_s30 = sphi %s2664_s30, %s3304_s30  }
   0x6   : > { %s30_s15 = ssub.s32 %s2608_s12, %s2684_s14  ;;  %s33_s16 = sadd.s32 1, %s2604_s11 }
   0x7   : > { %p31_p0 = scmp.eq.s32.totalorder %s30_s15, 0  ;;  %p40_p1 = scmp.ne.s32.totalorder %s2604_s11, %s2600_s10 }
   0x8   : > { %p41_p2 = scmp.eq.s32.totalorder %s2608_s12, 0  ;;  %p46_p3 = scmp.ne.s32.totalorder %s2600_s10, %s2596_s30 }
   0x9   : > { %s2694_s17 = scalar_select %p31_p0, %s2604_s11, %s33_s16  }
   0xa   : > { %p42_p4 = por %p41_p2, %p40_p1  ;;  %p47_p5 = scmp.eq.s32.totalorder %s3294_s13, 0 }
   0xb   : > { %p2475_p6 = scmp.lt.s32.totalorder %s2608_s12, 2  ;;  %s2704_s19 = sand.u32 1, %s2604_s11  }
   0xc   : > { %p2699_p7 = por %p47_p5, %p46_p3  ;;  %s1853_s20 = sshll.u32 %s2704_s19, 8 }
   0xd   : > { %s1998_s21 = sshll.u32 %s2608_s12, 12  ;;  %s296_s25 = scalar_lea.vmem [#allocation2], %s1853_s20 }
   0xe   : > { %s3297_s18 = scalar_select %p2699_p7, 1, 0 }
   0xf   : > { %s2713_s24 = scalar_lea.hbm %s3284_s0, %s1998_s21  ;;  %s303_s26 = sshll.u32 %s296_s25, 4  ;;  %s2717_s26 = int_to_ptr.vmem [resolvable:$true] %s303_s26 }
  0x10   : > { %p2719_p8 = pnand %p2475_p6, %p42_p4  ;;  %s293_s28 = scalar_lea.sflag [#allocation3], %s2704_s19 }
  0x11   : > { %s2510_s29 = scalar_lea.hbm %s2713_s24, 4096  ;;  %s2515_s16 = scalar_lea.hbm %s3284_s0, 8192 }
  0x12   : > { %p2511_p10 = scmp.ne.s32.totalorder %s2713_s24, %s2510_s29  ;;  %p2512_p11 = pneg %p2719_p8 }
  0x13   : > { %p2516_p0 = scmp.lt.u32.totalorder %s2713_s24, %s3284_s0  ;;  %p2517_p1 = scmp.lt.u32.totalorder %s2515_s16, %s2510_s29 }
  0x14   : > { %p2513_p12 = pnand %p2512_p11, %p2511_p10  ;;  %p2519_p3 = scmp.lt.u32.totalorder %s2510_s29, %s2713_s24 }
  0x15   : > { %p2518_p2 = por %p2517_p1, %p2516_p0 }
  0x16   : > { %p2514_p13 = pneg %p2513_p12 }
  0x17   : > { %p2520_p4 = por %p2519_p3, %p2518_p2 }
  0x19   : > { %p2521_p5 = pnand %p2520_p4, %p2514_p13 }
  0x1b   : > { %2524 = shalt.err (!%p2521_p5)
}
  0x1c   : > { %s2525_s25 = scalar_lea.vmem %s2717_s26, 4096  ;;  %s2610_s30 = smov [#allocation2]  }
  0x1d   : > { %p2526_p6 = scmp.ne.s32.totalorder %s2717_s26, %s2525_s25  ;;  %s2530_s15 = sshll.u32 %s2610_s30, 4  ;;  %s2531_s15 = int_to_ptr.vmem [resolvable:$false] %s2530_s15 }
  0x1e   : > { %s2532_s22 = scalar_lea.vmem %s2531_s15, 8192  ;;  %p2533_p9 = scmp.lt.s32.totalorder %s2717_s26, %s2531_s15 }
  0x1f   : > { %p2528_p10 = pnand %p2526_p6, %p2512_p11  ;;  %p2534_p0 = scmp.lt.s32.totalorder %s2532_s22, %s2525_s25 }
  0x21   : > { %p2529_p12 = pneg %p2528_p10  ;;  %p2535_p1 = por %p2534_p0, %p2533_p9 }
  0x23   : > { %p2536_p2 = pnand %p2535_p1, %p2529_p12 }
  0x25   : > { %2539 = shalt.err (!%p2536_p2)
}
  0x26   : > { %s3295_s29 = smov 128   ;;  %s2612_s16 = smov 8  }
  0x27   : > { %2471 = dma.hbm_to_vmem [thread:$0]  (!%p2719_p8), %s2713_s24, 4096, %s2717_s26, %s293_s28, %s3295_s29, %s3295_s29, %s2612_s16  }
  0x28   : > { %p332_p9 = scmp.lt.s32.totalorder %s2608_s12, 3  ;;  %s2761_s30 = scalar_lea.hbm %s3285_s1, %s1998_s21 }
  0x29   : > { %p3299_p13 = scmp.ge.s32.totalorder %s2608_s12, 1  ;;  %s317_s22 = scalar_lea.vmem [#allocation4], %s1853_s20 }
  0x2a   : > { %s324_s13 = sshll.u32 %s317_s22, 4  ;;  %s314_s24 = scalar_lea.sflag [#allocation5], %s2704_s19  ;;  %s2771_s13 = int_to_ptr.vmem [resolvable:$true] %s324_s13 }
  0x2b   : > { %p2765_p3 = pnand %p3299_p13, %p332_p9  ;;  %s2540_s26 = scalar_lea.hbm %s2761_s30, 4096 }
  0x2c   : > { %p2541_p4 = scmp.ne.s32.totalorder %s2761_s30, %s2540_s26  ;;  %s2545_s23 = scalar_lea.hbm %s3285_s1, 8192 }
  0x2d   : > { %p2546_p10 = scmp.lt.u32.totalorder %s2761_s30, %s3285_s1  ;;  %p2547_p12 = scmp.lt.u32.totalorder %s2545_s23, %s2540_s26 }
  0x2e   : > { %p2543_p5 = pnand %p2541_p4, %p2512_p11  ;;  %p2549_p1 = scmp.lt.u32.totalorder %s2540_s26, %s2761_s30 }
  0x2f   : > { %p2548_p0 = por %p2547_p12, %p2546_p10 }
  0x30   : > { %p2544_p6 = pneg %p2543_p5 }
  0x31   : > { %p2550_p2 = por %p2549_p1, %p2548_p0 }
  0x33   : > { %p2551_p9 = pnand %p2550_p2, %p2544_p6 }
  0x35   : > { %2554 = shalt.err (!%p2551_p9)
}
  0x36   : > { %s2555_s20 = scalar_lea.vmem %s2771_s13, 4096  ;;  %s2613_s22 = smov [#allocation4]  }
  0x37   : > { %p2556_p13 = scmp.ne.s32.totalorder %s2771_s13, %s2555_s20  ;;  %s2560_s21 = sshll.u32 %s2613_s22, 4  ;;  %s2561_s21 = int_to_ptr.vmem [resolvable:$false] %s2560_s21 }
  0x38   : > { %s2562_s29 = scalar_lea.vmem %s2561_s21, 8192  ;;  %p2563_p7 = scmp.lt.s32.totalorder %s2771_s13, %s2561_s21 }
  0x39   : > { %p2558_p4 = pnand %p2556_p13, %p2512_p11  ;;  %p2564_p10 = scmp.lt.s32.totalorder %s2562_s29, %s2555_s20 }
  0x3b   : > { %p2559_p5 = pneg %p2558_p4  ;;  %p2565_p12 = por %p2564_p10, %p2563_p7 }
  0x3d   : > { %p2566_p0 = pnand %p2565_p12, %p2559_p5 }
  0x3f   : > { %2569 = shalt.err (!%p2566_p0)
}
  0x40   : > { %s3301_s26 = smov 128   ;;  %336 = sbr.rel (%p2765_p3) target bundleno = 426 (0x1aa), region = 52 }
  0x41   : > { %2474 = dma.hbm_to_vmem [thread:$0]  (!%p2719_p8), %s2761_s30, 4096, %s2771_s13, %s314_s24, %s3301_s26, %s3301_s26, %s2612_s16  }
  0x42   : > { %s338_s28 = sand.u32 (!%p2765_p3), 1, %s2600_s10   ;;  %p3302_p7 = scmp.ne.s32.totalorder (!%p2765_p3), %s3297_s18, 0 }
  0x43   : > { %s1860_s23 = sshll.u32 (!%p2765_p3), %s338_s28, 8  ;;  %s339_s25 = scalar_lea.sflag (!%p2765_p3), [#allocation3], %s338_s28 }
  0x44   : > { %s2805_s20 = scalar_lea.vmem (!%p2765_p3), [#allocation2], %s1860_s23 }
  0x47   : > { %2587 = dma.done.wait (%p3302_p7), %s339_s25, 4096  }
  0x48   : > { %2589 = vsyncadd (%p3302_p7), %s339_s25, 4294963200  ;;  %s348_s19 = scalar_lea.sflag [#allocation5], %s338_s28  ;;  %s2811_s27 = scalar_lea.vmem [#allocation4], %s1860_s23 }
  0x49   : > { %2591 = dma.done.wait (%p3302_p7), %s348_s19, 4096  }
  0x4a   : > { %2593 = vsyncadd (%p3302_p7), %s348_s19, 4294963200  ;;  %v478_v0 = vld [vmem:[%s3288_s4] sm:$0xff]  ;;  %v479_v1 = vld [vmem:[%s3288_s4 + $0x8] sm:$0xff]  ;;  %vm482_vm0 = vcmask 261120  }
  0x4b   : > { %v1168_v2 = vld [vmem:[%s3289_s5] sm:$0xff]  ;;  %v2368_v3 = vpack.c.bf16 %v479_v1, %v478_v0  ;;  %v1169_v4 = vld [vmem:[%s3289_s5 + $0x8] sm:$0xff]  ;;  %v480_v5 = vld [vmem:[%s3288_s4 + $0x10] sm:$0xff] }
  0x4c   : > { %v481_v6 = vld [vmem:[%s3288_s4 + $0x18] sm:$0xff]  ;;  %v2384_v7 = vpack.c.bf16 %v1169_v4, %v1168_v2  ;;  %v1170_v9 = vld [vmem:[%s3289_s5 + $0x10] sm:$0xff]  ;;  %v442_v11 = vld [vmem:[%s2811_s27] sm:$0xff] }
  0x4d   : > { %v2372_v8 = vpack.c.bf16 %v481_v6, %v480_v5  ;;  %v1171_v10 = vld [vmem:[%s3289_s5 + $0x18] sm:$0xff]  ;;  %2369 = vmatprep.subr.bf16.mxu0 %v2368_v3  ;;  %2152 = vmatprep.mubr.msk.f32.mxu0 %vm482_vm0, %v442_v11  ;;  %v474_v13 = vld [vmem:[%s3286_s2] sm:$0xff]  ;;  %v475_v14 = vld [vmem:[%s3286_s2 + $0x8] sm:$0xff] }
  0x4e   : > { %v2388_v12 = vpack.c.bf16 %v1171_v10, %v1170_v9  ;;  %2385 = vmatprep.subr.bf16.mxu1 %v2384_v7  ;;  %2371 = vmatpush3.bf16.msra.mxu0 %v2368_v3  ;;  %v1164_v15 = vld [vmem:[%s3287_s3] sm:$0xff]  ;;  %v1165_v16 = vld [vmem:[%s3287_s3 + $0x8] sm:$0xff]  ;;  %v2376_v17 = vpack.c.bf16 %v475_v14, %v474_v13  ;;  %v444_v20 = vld [vmem:[%s2811_s27 + $0x10] sm:$0xff] }
  0x4f   : > { %2387 = vmatpush3.bf16.msra.mxu1 %v2384_v7  ;;  %2373 = vmatprep.subr.bf16.mxu0 %v2372_v8  ;;  %v2392_v18 = vpack.c.bf16 %v1165_v16, %v1164_v15  ;;  %v443_v19 = vld [vmem:[%s2811_s27 + $0x8] sm:$0xff]  ;;  %v476_v21 = vld [vmem:[%s3286_s2 + $0x10] sm:$0xff]  ;;  %v477_v22 = vld [vmem:[%s3286_s2 + $0x18] sm:$0xff] }
  0x50   : > { %2389 = vmatprep.subr.bf16.mxu1 %v2388_v12  ;;  %2264 = vmatprep.mubr.msk.f32.mxu1 %vm482_vm0, %v442_v11  ;;  %v1166_v23 = vld [vmem:[%s3287_s3 + $0x10] sm:$0xff]  ;;  %v2380_v24 = vpack.c.bf16 %v477_v22, %v476_v21  ;;  %v1167_v25 = vld [vmem:[%s3287_s3 + $0x18] sm:$0xff]  ;;  %v446_v28 = vld [vmem:[%s2811_s27 + $0x20] sm:$0xff] }
  0x51   : > { %v445_v26 = vld [vmem:[%s2811_s27 + $0x18] sm:$0xff]  ;;  %v2396_v27 = vpack.c.bf16 %v1167_v25, %v1166_v23  ;;  %v447_v29 = vld [vmem:[%s2811_s27 + $0x28] sm:$0xff]  ;;  %v448_v30 = vld [vmem:[%s2811_s27 + $0x30] sm:$0xff] }
  0x52   : > { %2375 = vmatpush3.bf16.msra.mxu0 %v2372_v8  ;;  %v449_v31 = vld [vmem:[%s2811_s27 + $0x38] sm:$0xff]  ;;  %v450_v32 = vld [vmem:[%s2811_s27 + $0x40] sm:$0xff]  ;;  %v451_v33 = vld [vmem:[%s2811_s27 + $0x48] sm:$0xff] }
  0x53   : > { %2391 = vmatpush3.bf16.msra.mxu1 %v2388_v12  ;;  %2377 = vmatprep.subr.bf16.mxu0 %v2376_v17  ;;  %v452_v34 = vld [vmem:[%s2811_s27 + $0x50] sm:$0xff]  ;;  %v453_v35 = vld [vmem:[%s2811_s27 + $0x58] sm:$0xff]  ;;  %v454_v36 = vld [vmem:[%s2811_s27 + $0x60] sm:$0xff] }
  0x54   : > { %2393 = vmatprep.subr.bf16.mxu1 %v2392_v18  ;;  %v455_v37 = vld [vmem:[%s2811_s27 + $0x68] sm:$0xff]  ;;  %v456_v38 = vld [vmem:[%s2811_s27 + $0x70] sm:$0xff]  ;;  %v457_v39 = vld [vmem:[%s2811_s27 + $0x78] sm:$0xff] }
  0x55   : > { %2153 = vmatmul.mubr.msk.f32.vlgmr.msra.gmra.mrb[0].mxu0 %vm482_vm0, %v443_v19  ;;  %v458_v40 = vld [vmem:[%s2811_s27 + $0x80] sm:$0xff]  ;;  %v459_v41 = vld [vmem:[%s2811_s27 + $0x88] sm:$0xff]  ;;  %v460_v42 = vld [vmem:[%s2811_s27 + $0x90] sm:$0xff] }
  0x56   : > { %2265 = vmatmul.mubr.msk.f32.vlgmr.msra.gmra.mrb[0].mxu1 %vm482_vm0, %v443_v19  ;;  %2379 = vmatpush3.bf16.msra.mxu0 %v2376_v17  ;;  %v461_v43 = vld [vmem:[%s2811_s27 + $0x98] sm:$0xff]  ;;  %v462_v44 = vld [vmem:[%s2811_s27 + $0xa0] sm:$0xff]  ;;  %v463_v45 = vld [vmem:[%s2811_s27 + $0xa8] sm:$0xff] }
  0x57   : > { %2395 = vmatpush3.bf16.msra.mxu1 %v2392_v18  ;;  %2155 = vmatprep.mubr.msk.f32.mxu0 %vm482_vm0, %v444_v20  ;;  %v464_v46 = vld [vmem:[%s2811_s27 + $0xb0] sm:$0xff]  ;;  %v465_v47 = vld [vmem:[%s2811_s27 + $0xb8] sm:$0xff]  ;;  %v466_v48 = vld [vmem:[%s2811_s27 + $0xc0] sm:$0xff] }
  0x58   : > { %2267 = vmatprep.mubr.msk.f32.mxu1 %vm482_vm0, %v444_v20  ;;  %2381 = vmatprep.subr.bf16.mxu0 %v2380_v24  ;;  %v467_v49 = vld [vmem:[%s2811_s27 + $0xc8] sm:$0xff]  ;;  %v468_v50 = vld [vmem:[%s2811_s27 + $0xd0] sm:$0xff]  ;;  %v469_v51 = vld [vmem:[%s2811_s27 + $0xd8] sm:$0xff] }
  0x59   : > { %2156 = vmatmul.mubr.msk.f32.gmra.mrb[2].mxu0 %vm482_vm0, %v445_v26  ;;  %2397 = vmatprep.subr.bf16.mxu1 %v2396_v27  ;;  %v470_v52 = vld [vmem:[%s2811_s27 + $0xe0] sm:$0xff]  ;;  %v471_v53 = vld [vmem:[%s2811_s27 + $0xe8] sm:$0xff]  ;;  %v472_v54 = vld [vmem:[%s2811_s27 + $0xf0] sm:$0xff] }
  0x5a   : > { %2268 = vmatmul.mubr.msk.f32.gmra.mrb[2].mxu1 %vm482_vm0, %v445_v26  ;;  %2158 = vmatprep.mubr.msk.f32.mxu0 %vm482_vm0, %v446_v28  ;;  %v473_v55 = vld [vmem:[%s2811_s27 + $0xf8] sm:$0xff]  ;;  %v410_v56 = vld [vmem:[%s2805_s20] sm:$0xff]  ;;  %v411_v57 = vld [vmem:[%s2805_s20 + $0x8] sm:$0xff]  ;;  %s3303_s27 = sadd.s32 4294967295, %s2608_s12  }
  0x5b   : > { %2270 = vmatprep.mubr.msk.f32.mxu1 %vm482_vm0, %v446_v28  ;;  %2383 = vmatpush3.bf16.msra.mxu0 %v2380_v24  ;;  %v412_v58 = vld [vmem:[%s2805_s20 + $0x10] sm:$0xff]  ;;  %v413_v59 = vld [vmem:[%s2805_s20 + $0x18] sm:$0xff]  ;;  %v414_v60 = vld [vmem:[%s2805_s20 + $0x20] sm:$0xff]  ;;  %s1862_s24 = sshll.u32 %s3303_s27, 5 }
  0x5c   : > { %2399 = vmatpush3.bf16.msra.mxu1 %v2396_v27  ;;  %v415_v61 = vld [vmem:[%s2805_s20 + $0x28] sm:$0xff]  ;;  %v416_v62 = vld [vmem:[%s2805_s20 + $0x30] sm:$0xff]  ;;  %v417_v63 = vld [vmem:[%s2805_s20 + $0x38] sm:$0xff]  ;;  %p399_p8 = scmp.lt.s32.totalorder %s1862_s24, 63 }
  0x5d   : > { %2159 = vmatmul.mubr.msk.f32.gmra.mrb[4].mxu0 %vm482_vm0, %v447_v29  ;;  %v418_v0 = vld [vmem:[%s2805_s20 + $0x40] sm:$0xff]  ;;  %v419_v1 = vld [vmem:[%s2805_s20 + $0x48] sm:$0xff]  ;;  %v420_v2 = vld [vmem:[%s2805_s20 + $0x50] sm:$0xff] }
  0x5e   : > { %2271 = vmatmul.mubr.msk.f32.gmra.mrb[4].mxu1 %vm482_vm0, %v447_v29  ;;  %2161 = vmatprep.mubr.msk.f32.mxu0 %vm482_vm0, %v448_v30  ;;  %v421_v3 = vld [vmem:[%s2805_s20 + $0x58] sm:$0xff]  ;;  %v422_v4 = vld [vmem:[%s2805_s20 + $0x60] sm:$0xff]  ;;  %v423_v5 = vld [vmem:[%s2805_s20 + $0x68] sm:$0xff]  ;;  %s3309_s24 = smov (!%p399_p8, %s1862_s24), 63 }
  0x5f   : > { %2273 = vmatprep.mubr.msk.f32.mxu1 %vm482_vm0, %v448_v30  ;;  %v424_v6 = vld [vmem:[%s2805_s20 + $0x70] sm:$0xff]  ;;  %v425_v7 = vld [vmem:[%s2805_s20 + $0x78] sm:$0xff]  ;;  %v426_v8 = vld [vmem:[%s2805_s20 + $0x80] sm:$0xff]  ;;  %s1863_s22 = sshll.u32 %s3309_s24, 3 }
  0x60   : > { %v427_v9 = vld [vmem:[%s2805_s20 + $0x88] sm:$0xff]  ;;  %v428_v10 = vld [vmem:[%s2805_s20 + $0x90] sm:$0xff]  ;;  %v429_v11 = vld [vmem:[%s2805_s20 + $0x98] sm:$0xff]  ;;  %s3072_s23 = scalar_lea.vmem %s3292_s8, %s1863_s22  ;;  %s3078_s19 = scalar_lea.vmem %s3293_s9, %s1863_s22 }
  0x61   : > { %2162 = vmatmul.mubr.msk.f32.gmra.mrb[6].mxu0 %vm482_vm0, %v449_v31  ;;  %v430_v12 = vld [vmem:[%s2805_s20 + $0xa0] sm:$0xff]  ;;  %v431_v13 = vld [vmem:[%s2805_s20 + $0xa8] sm:$0xff]  ;;  %v432_v14 = vld [vmem:[%s2805_s20 + $0xb0] sm:$0xff] }
  0x62   : > { %2274 = vmatmul.mubr.msk.f32.gmra.mrb[6].mxu1 %vm482_vm0, %v449_v31  ;;  %2164 = vmatprep.mubr.msk.f32.mxu0 %vm482_vm0, %v450_v32  ;;  %v433_v15 = vld [vmem:[%s2805_s20 + $0xb8] sm:$0xff]  ;;  %v434_v16 = vld [vmem:[%s2805_s20 + $0xc0] sm:$0xff]  ;;  %v435_v17 = vld [vmem:[%s2805_s20 + $0xc8] sm:$0xff] }
  0x63   : > { %2276 = vmatprep.mubr.msk.f32.mxu1 %vm482_vm0, %v450_v32  ;;  %v436_v18 = vld [vmem:[%s2805_s20 + $0xd0] sm:$0xff]  ;;  %v437_v19 = vld [vmem:[%s2805_s20 + $0xd8] sm:$0xff]  ;;  %v438_v20 = vld [vmem:[%s2805_s20 + $0xe0] sm:$0xff] }
  0x64   : > { %v439_v21 = vld [vmem:[%s2805_s20 + $0xe8] sm:$0xff]  ;;  %v440_v22 = vld [vmem:[%s2805_s20 + $0xf0] sm:$0xff]  ;;  %v441_v23 = vld [vmem:[%s2805_s20 + $0xf8] sm:$0xff] }
  0x65   : > { %2165 = vmatmul.mubr.msk.f32.gmra.mrb[8].mxu0 %vm482_vm0, %v451_v33  ;;  %v3062_v24 = vld [vmem:[%s3290_s6] ss:$0 sm:$0xff] }
  0x66   : > { %2277 = vmatmul.mubr.msk.f32.gmra.mrb[8].mxu1 %vm482_vm0, %v451_v33  ;;  %2167 = vmatprep.mubr.msk.f32.mxu0 %vm482_vm0, %v452_v34  ;;  %v3067_v25 = vld [vmem:[%s3291_s7] ss:$0 sm:$0xff] }
  0x67   : > { %2279 = vmatprep.mubr.msk.f32.mxu1 %vm482_vm0, %v452_v34 }
  0x69   : > { %2168 = vmatmul.mubr.msk.f32.gmra.mrb[10].mxu0 %vm482_vm0, %v453_v35 }
  0x6a   : > { %2280 = vmatmul.mubr.msk.f32.gmra.mrb[10].mxu1 %vm482_vm0, %v453_v35  ;;  %2170 = vmatprep.mubr.msk.f32.mxu0 %vm482_vm0, %v454_v36 }
  0x6b   : > { %2282 = vmatprep.mubr.msk.f32.mxu1 %vm482_vm0, %v454_v36 }
  0x6d   : > { %2171 = vmatmul.mubr.msk.f32.gmra.mrb[12].mxu0 %vm482_vm0, %v455_v37 }
  0x6e   : > { %2283 = vmatmul.mubr.msk.f32.gmra.mrb[12].mxu1 %vm482_vm0, %v455_v37  ;;  %2173 = vmatprep.mubr.msk.f32.mxu0 %vm482_vm0, %v456_v38 }
  0x6f   : > { %2285 = vmatprep.mubr.msk.f32.mxu1 %vm482_vm0, %v456_v38 }
  0x71   : > { %2174 = vmatmul.mubr.msk.f32.gmra.mrb[14].mxu0 %vm482_vm0, %v457_v39 }
  0x72   : > { %2286 = vmatmul.mubr.msk.f32.gmra.mrb[14].mxu1 %vm482_vm0, %v457_v39  ;;  %2176 = vmatprep.mubr.msk.f32.mxu0 %vm482_vm0, %v458_v40 }
  0x73   : > { %2288 = vmatprep.mubr.msk.f32.mxu1 %vm482_vm0, %v458_v40 }
  0x75   : > { %2177 = vmatmul.mubr.msk.f32.gmra.mrb[16].mxu0 %vm482_vm0, %v459_v41 }
  0x76   : > { %2289 = vmatmul.mubr.msk.f32.gmra.mrb[16].mxu1 %vm482_vm0, %v459_v41  ;;  %2179 = vmatprep.mubr.msk.f32.mxu0 %vm482_vm0, %v460_v42 }
  0x77   : > { %2291 = vmatprep.mubr.msk.f32.mxu1 %vm482_vm0, %v460_v42 }
  0x79   : > { %2180 = vmatmul.mubr.msk.f32.gmra.mrb[18].mxu0 %vm482_vm0, %v461_v43 }
  0x7a   : > { %2292 = vmatmul.mubr.msk.f32.gmra.mrb[18].mxu1 %vm482_vm0, %v461_v43  ;;  %2182 = vmatprep.mubr.msk.f32.mxu0 %vm482_vm0, %v462_v44 }
  0x7b   : > { %2294 = vmatprep.mubr.msk.f32.mxu1 %vm482_vm0, %v462_v44 }
  0x7d   : > { %2183 = vmatmul.mubr.msk.f32.gmra.mrb[20].mxu0 %vm482_vm0, %v463_v45 }
  0x7e   : > { %2295 = vmatmul.mubr.msk.f32.gmra.mrb[20].mxu1 %vm482_vm0, %v463_v45  ;;  %2185 = vmatprep.mubr.msk.f32.mxu0 %vm482_vm0, %v464_v46 }
  0x7f   : > { %2297 = vmatprep.mubr.msk.f32.mxu1 %vm482_vm0, %v464_v46 }
  0x81   : > { %2186 = vmatmul.mubr.msk.f32.gmra.mrb[22].mxu0 %vm482_vm0, %v465_v47 }
  0x82   : > { %2298 = vmatmul.mubr.msk.f32.gmra.mrb[22].mxu1 %vm482_vm0, %v465_v47  ;;  %2188 = vmatprep.mubr.msk.f32.mxu0 %vm482_vm0, %v466_v48 }
  0x83   : > { %2300 = vmatprep.mubr.msk.f32.mxu1 %vm482_vm0, %v466_v48 }
  0x85   : > { %2189 = vmatmul.mubr.msk.f32.gmra.mrb[24].mxu0 %vm482_vm0, %v467_v49 }
  0x86   : > { %2301 = vmatmul.mubr.msk.f32.gmra.mrb[24].mxu1 %vm482_vm0, %v467_v49  ;;  %2191 = vmatprep.mubr.msk.f32.mxu0 %vm482_vm0, %v468_v50 }
  0x87   : > { %2303 = vmatprep.mubr.msk.f32.mxu1 %vm482_vm0, %v468_v50 }
  0x89   : > { %2192 = vmatmul.mubr.msk.f32.gmra.mrb[26].mxu0 %vm482_vm0, %v469_v51 }
  0x8a   : > { %2304 = vmatmul.mubr.msk.f32.gmra.mrb[26].mxu1 %vm482_vm0, %v469_v51  ;;  %2194 = vmatprep.mubr.msk.f32.mxu0 %vm482_vm0, %v470_v52 }
  0x8b   : > { %2306 = vmatprep.mubr.msk.f32.mxu1 %vm482_vm0, %v470_v52 }
  0x8d   : > { %2195 = vmatmul.mubr.msk.f32.gmra.mrb[28].mxu0 %vm482_vm0, %v471_v53 }
  0x8e   : > { %2307 = vmatmul.mubr.msk.f32.gmra.mrb[28].mxu1 %vm482_vm0, %v471_v53  ;;  %2197 = vmatprep.mubr.msk.f32.mxu0 %vm482_vm0, %v472_v54 }
  0x8f   : > { %2309 = vmatprep.mubr.msk.f32.mxu1 %vm482_vm0, %v472_v54 }
  0x91   : > { %2198 = vmatmul.mubr.msk.f32.gmra.mrb[30].mxu0 %vm482_vm0, %v473_v55 }
  0x92   : > { %2310 = vmatmul.mubr.msk.f32.gmra.mrb[30].mxu1 %vm482_vm0, %v473_v55  ;;  %2208 = vmatprep.mubr.msk.f32.mxu0 %vm482_vm0, %v410_v56 }
  0x93   : > { %2320 = vmatprep.mubr.msk.f32.mxu1 %vm482_vm0, %v410_v56 }
  0x95   : > { %2209 = vmatmul.mubr.msk.f32.vlgmr.msra.gmra.mrb[0].mxu0 %vm482_vm0, %v411_v57 }
  0x96   : > { %2321 = vmatmul.mubr.msk.f32.vlgmr.msra.gmra.mrb[0].mxu1 %vm482_vm0, %v411_v57  ;;  %2211 = vmatprep.mubr.msk.f32.mxu0 %vm482_vm0, %v412_v58 }
  0x97   : > { %2323 = vmatprep.mubr.msk.f32.mxu1 %vm482_vm0, %v412_v58 }
  0x99   : > { %2212 = vmatmul.mubr.msk.f32.gmra.mrb[2].mxu0 %vm482_vm0, %v413_v59 }
  0x9a   : > { %2324 = vmatmul.mubr.msk.f32.gmra.mrb[2].mxu1 %vm482_vm0, %v413_v59  ;;  %2214 = vmatprep.mubr.msk.f32.mxu0 %vm482_vm0, %v414_v60 }
  0x9b   : > { %2326 = vmatprep.mubr.msk.f32.mxu1 %vm482_vm0, %v414_v60 }
  0x9d   : > { %2215 = vmatmul.mubr.msk.f32.gmra.mrb[4].mxu0 %vm482_vm0, %v415_v61 }
  0x9e   : > { %2327 = vmatmul.mubr.msk.f32.gmra.mrb[4].mxu1 %vm482_vm0, %v415_v61  ;;  %2217 = vmatprep.mubr.msk.f32.mxu0 %vm482_vm0, %v416_v62 }
  0x9f   : > { %2329 = vmatprep.mubr.msk.f32.mxu1 %vm482_vm0, %v416_v62 }
  0xa1   : > { %2218 = vmatmul.mubr.msk.f32.gmra.mrb[6].mxu0 %vm482_vm0, %v417_v63 }
  0xa2   : > { %2330 = vmatmul.mubr.msk.f32.gmra.mrb[6].mxu1 %vm482_vm0, %v417_v63  ;;  %2220 = vmatprep.mubr.msk.f32.mxu0 %vm482_vm0, %v418_v0 }
  0xa3   : > { %2332 = vmatprep.mubr.msk.f32.mxu1 %vm482_vm0, %v418_v0 }
  0xa5   : > { %2221 = vmatmul.mubr.msk.f32.gmra.mrb[8].mxu0 %vm482_vm0, %v419_v1 }
  0xa6   : > { %2333 = vmatmul.mubr.msk.f32.gmra.mrb[8].mxu1 %vm482_vm0, %v419_v1  ;;  %2223 = vmatprep.mubr.msk.f32.mxu0 %vm482_vm0, %v420_v2 }
  0xa7   : > { %2335 = vmatprep.mubr.msk.f32.mxu1 %vm482_vm0, %v420_v2 }
  0xa9   : > { %2224 = vmatmul.mubr.msk.f32.gmra.mrb[10].mxu0 %vm482_vm0, %v421_v3 }
  0xaa   : > { %2336 = vmatmul.mubr.msk.f32.gmra.mrb[10].mxu1 %vm482_vm0, %v421_v3  ;;  %2226 = vmatprep.mubr.msk.f32.mxu0 %vm482_vm0, %v422_v4 }
  0xab   : > { %2338 = vmatprep.mubr.msk.f32.mxu1 %vm482_vm0, %v422_v4 }
  0xad   : > { %2227 = vmatmul.mubr.msk.f32.gmra.mrb[12].mxu0 %vm482_vm0, %v423_v5 }
  0xae   : > { %2339 = vmatmul.mubr.msk.f32.gmra.mrb[12].mxu1 %vm482_vm0, %v423_v5  ;;  %2229 = vmatprep.mubr.msk.f32.mxu0 %vm482_vm0, %v424_v6 }
  0xaf   : > { %2341 = vmatprep.mubr.msk.f32.mxu1 %vm482_vm0, %v424_v6 }
  0xb1   : > { %2230 = vmatmul.mubr.msk.f32.gmra.mrb[14].mxu0 %vm482_vm0, %v425_v7 }
  0xb2   : > { %2342 = vmatmul.mubr.msk.f32.gmra.mrb[14].mxu1 %vm482_vm0, %v425_v7  ;;  %2232 = vmatprep.mubr.msk.f32.mxu0 %vm482_vm0, %v426_v8 }
  0xb3   : > { %2344 = vmatprep.mubr.msk.f32.mxu1 %vm482_vm0, %v426_v8 }
  0xb5   : > { %2233 = vmatmul.mubr.msk.f32.gmra.mrb[16].mxu0 %vm482_vm0, %v427_v9 }
  0xb6   : > { %2345 = vmatmul.mubr.msk.f32.gmra.mrb[16].mxu1 %vm482_vm0, %v427_v9  ;;  %2235 = vmatprep.mubr.msk.f32.mxu0 %vm482_vm0, %v428_v10 }
  0xb7   : > { %2347 = vmatprep.mubr.msk.f32.mxu1 %vm482_vm0, %v428_v10 }
  0xb9   : > { %2236 = vmatmul.mubr.msk.f32.gmra.mrb[18].mxu0 %vm482_vm0, %v429_v11 }
  0xba   : > { %2348 = vmatmul.mubr.msk.f32.gmra.mrb[18].mxu1 %vm482_vm0, %v429_v11  ;;  %2238 = vmatprep.mubr.msk.f32.mxu0 %vm482_vm0, %v430_v12 }
  0xbb   : > { %2350 = vmatprep.mubr.msk.f32.mxu1 %vm482_vm0, %v430_v12 }
  0xbd   : > { %2239 = vmatmul.mubr.msk.f32.gmra.mrb[20].mxu0 %vm482_vm0, %v431_v13 }
  0xbe   : > { %2351 = vmatmul.mubr.msk.f32.gmra.mrb[20].mxu1 %vm482_vm0, %v431_v13  ;;  %2241 = vmatprep.mubr.msk.f32.mxu0 %vm482_vm0, %v432_v14 }
  0xbf   : > { %2353 = vmatprep.mubr.msk.f32.mxu1 %vm482_vm0, %v432_v14 }
  0xc1   : > { %2242 = vmatmul.mubr.msk.f32.gmra.mrb[22].mxu0 %vm482_vm0, %v433_v15 }
  0xc2   : > { %2354 = vmatmul.mubr.msk.f32.gmra.mrb[22].mxu1 %vm482_vm0, %v433_v15  ;;  %2244 = vmatprep.mubr.msk.f32.mxu0 %vm482_vm0, %v434_v16 }
  0xc3   : > { %2356 = vmatprep.mubr.msk.f32.mxu1 %vm482_vm0, %v434_v16 }
  0xc5   : > { %2245 = vmatmul.mubr.msk.f32.gmra.mrb[24].mxu0 %vm482_vm0, %v435_v17 }
  0xc6   : > { %2357 = vmatmul.mubr.msk.f32.gmra.mrb[24].mxu1 %vm482_vm0, %v435_v17  ;;  %2247 = vmatprep.mubr.msk.f32.mxu0 %vm482_vm0, %v436_v18 }
  0xc7   : > { %2359 = vmatprep.mubr.msk.f32.mxu1 %vm482_vm0, %v436_v18 }
  0xc9   : > { %2248 = vmatmul.mubr.msk.f32.gmra.mrb[26].mxu0 %vm482_vm0, %v437_v19 }
  0xca   : > { %2360 = vmatmul.mubr.msk.f32.gmra.mrb[26].mxu1 %vm482_vm0, %v437_v19  ;;  %2250 = vmatprep.mubr.msk.f32.mxu0 %vm482_vm0, %v438_v20 }
  0xcb   : > { %2362 = vmatprep.mubr.msk.f32.mxu1 %vm482_vm0, %v438_v20 }
  0xcd   : > { %2251 = vmatmul.mubr.msk.f32.gmra.mrb[28].mxu0 %vm482_vm0, %v439_v21 }
  0xce   : > { %2363 = vmatmul.mubr.msk.f32.gmra.mrb[28].mxu1 %vm482_vm0, %v439_v21  ;;  %2253 = vmatprep.mubr.msk.f32.mxu0 %vm482_vm0, %v440_v22 }
  0xcf   : > { %2365 = vmatprep.mubr.msk.f32.mxu1 %vm482_vm0, %v440_v22 }
  0xd1   : > { %2254 = vmatmul.mubr.msk.f32.gmra.mrb[30].mxu0 %vm482_vm0, %v441_v23 }
  0xd2   : > { %2366 = vmatmul.mubr.msk.f32.gmra.mrb[30].mxu1 %vm482_vm0, %v441_v23 }
 0x168   : > { %v2210_v26 = vpop.f32.mrb[0].mxu0 }
 0x169   : > { %v1133_v27 = vadd.f32 %v2210_v26, %v3062_v24  ;;  %v2322_v28 = vpop.f32.mrb[0].mxu1  ;;  %v966_v29 = vpop.f32.mrb[1].mxu0 }
 0x16a   : > { %v1630_v30 = vadd.f32 %v2322_v28, %v3067_v25  ;;  %v1132_v31 = vadd.f32 %v3062_v24, %v966_v29  ;;  %v1463_v32 = vpop.f32.mrb[1].mxu1 }
 0x16b   : > { %1662 = vst.msk [vmem:[%s3072_s23 + $0x8] sm:$0xff] %vm482_vm0, %v1133_v27  ;;  %v1629_v33 = vadd.f32 %v3067_v25, %v1463_v32 }
 0x16c   : > { %1694 = vst.msk [vmem:[%s3078_s19 + $0x8] sm:$0xff] %vm482_vm0, %v1630_v30  ;;  %1661 = vst.msk [vmem:[%s3072_s23] sm:$0xff] %vm482_vm0, %v1132_v31  ;;  %v2213_v34 = vpop.f32.mrb[2].mxu0 }
 0x16d   : > { %1693 = vst.msk [vmem:[%s3078_s19] sm:$0xff] %vm482_vm0, %v1629_v33  ;;  %v1135_v35 = vadd.f32 %v2213_v34, %v3062_v24  ;;  %v2325_v36 = vpop.f32.mrb[2].mxu1  ;;  %v976_v37 = vpop.f32.mrb[3].mxu0 }
 0x16e   : > { %v1632_v38 = vadd.f32 %v2325_v36, %v3067_v25  ;;  %v1134_v39 = vadd.f32 %v3062_v24, %v976_v37  ;;  %v1473_v40 = vpop.f32.mrb[3].mxu1 }
 0x16f   : > { %1664 = vst.msk [vmem:[%s3072_s23 + $0x18] sm:$0xff] %vm482_vm0, %v1135_v35  ;;  %v1631_v41 = vadd.f32 %v3067_v25, %v1473_v40 }
 0x170   : > { %1696 = vst.msk [vmem:[%s3078_s19 + $0x18] sm:$0xff] %vm482_vm0, %v1632_v38  ;;  %1663 = vst.msk [vmem:[%s3072_s23 + $0x10] sm:$0xff] %vm482_vm0, %v1134_v39  ;;  %v2216_v42 = vpop.f32.mrb[4].mxu0 }
 0x171   : > { %1695 = vst.msk [vmem:[%s3078_s19 + $0x10] sm:$0xff] %vm482_vm0, %v1631_v41  ;;  %v1137_v43 = vadd.f32 %v2216_v42, %v3062_v24  ;;  %v2328_v44 = vpop.f32.mrb[4].mxu1  ;;  %v986_v45 = vpop.f32.mrb[5].mxu0 }
 0x172   : > { %v1634_v46 = vadd.f32 %v2328_v44, %v3067_v25  ;;  %v1136_v47 = vadd.f32 %v3062_v24, %v986_v45  ;;  %v1483_v48 = vpop.f32.mrb[5].mxu1 }
 0x173   : > { %1666 = vst.msk [vmem:[%s3072_s23 + $0x28] sm:$0xff] %vm482_vm0, %v1137_v43  ;;  %v1633_v49 = vadd.f32 %v3067_v25, %v1483_v48 }
 0x174   : > { %1698 = vst.msk [vmem:[%s3078_s19 + $0x28] sm:$0xff] %vm482_vm0, %v1634_v46  ;;  %1665 = vst.msk [vmem:[%s3072_s23 + $0x20] sm:$0xff] %vm482_vm0, %v1136_v47  ;;  %v2219_v50 = vpop.f32.mrb[6].mxu0 }
 0x175   : > { %1697 = vst.msk [vmem:[%s3078_s19 + $0x20] sm:$0xff] %vm482_vm0, %v1633_v49  ;;  %v1139_v51 = vadd.f32 %v2219_v50, %v3062_v24  ;;  %v2331_v52 = vpop.f32.mrb[6].mxu1  ;;  %v996_v53 = vpop.f32.mrb[7].mxu0 }
 0x176   : > { %v1636_v54 = vadd.f32 %v2331_v52, %v3067_v25  ;;  %v1138_v55 = vadd.f32 %v3062_v24, %v996_v53  ;;  %v1493_v56 = vpop.f32.mrb[7].mxu1 }
 0x177   : > { %1668 = vst.msk [vmem:[%s3072_s23 + $0x38] sm:$0xff] %vm482_vm0, %v1139_v51  ;;  %v1635_v57 = vadd.f32 %v3067_v25, %v1493_v56 }
 0x178   : > { %1700 = vst.msk [vmem:[%s3078_s19 + $0x38] sm:$0xff] %vm482_vm0, %v1636_v54  ;;  %1667 = vst.msk [vmem:[%s3072_s23 + $0x30] sm:$0xff] %vm482_vm0, %v1138_v55  ;;  %v2222_v58 = vpop.f32.mrb[8].mxu0 }
 0x179   : > { %1699 = vst.msk [vmem:[%s3078_s19 + $0x30] sm:$0xff] %vm482_vm0, %v1635_v57  ;;  %v1141_v59 = vadd.f32 %v2222_v58, %v3062_v24  ;;  %v2334_v60 = vpop.f32.mrb[8].mxu1  ;;  %v1006_v61 = vpop.f32.mrb[9].mxu0 }
 0x17a   : > { %v1638_v62 = vadd.f32 %v2334_v60, %v3067_v25  ;;  %v1140_v63 = vadd.f32 %v3062_v24, %v1006_v61  ;;  %v1503_v0 = vpop.f32.mrb[9].mxu1 }
 0x17b   : > { %1670 = vst.msk [vmem:[%s3072_s23 + $0x48] sm:$0xff] %vm482_vm0, %v1141_v59  ;;  %v1637_v1 = vadd.f32 %v3067_v25, %v1503_v0 }
 0x17c   : > { %1702 = vst.msk [vmem:[%s3078_s19 + $0x48] sm:$0xff] %vm482_vm0, %v1638_v62  ;;  %1669 = vst.msk [vmem:[%s3072_s23 + $0x40] sm:$0xff] %vm482_vm0, %v1140_v63  ;;  %v2225_v2 = vpop.f32.mrb[10].mxu0 }
 0x17d   : > { %1701 = vst.msk [vmem:[%s3078_s19 + $0x40] sm:$0xff] %vm482_vm0, %v1637_v1  ;;  %v1143_v3 = vadd.f32 %v2225_v2, %v3062_v24  ;;  %v2337_v4 = vpop.f32.mrb[10].mxu1  ;;  %v1016_v5 = vpop.f32.mrb[11].mxu0 }
 0x17e   : > { %v1640_v6 = vadd.f32 %v2337_v4, %v3067_v25  ;;  %v1142_v7 = vadd.f32 %v3062_v24, %v1016_v5  ;;  %v1513_v8 = vpop.f32.mrb[11].mxu1 }
 0x17f   : > { %1672 = vst.msk [vmem:[%s3072_s23 + $0x58] sm:$0xff] %vm482_vm0, %v1143_v3  ;;  %v1639_v9 = vadd.f32 %v3067_v25, %v1513_v8 }
 0x180   : > { %1704 = vst.msk [vmem:[%s3078_s19 + $0x58] sm:$0xff] %vm482_vm0, %v1640_v6  ;;  %1671 = vst.msk [vmem:[%s3072_s23 + $0x50] sm:$0xff] %vm482_vm0, %v1142_v7  ;;  %v2228_v10 = vpop.f32.mrb[12].mxu0 }
 0x181   : > { %1703 = vst.msk [vmem:[%s3078_s19 + $0x50] sm:$0xff] %vm482_vm0, %v1639_v9  ;;  %v1145_v11 = vadd.f32 %v2228_v10, %v3062_v24  ;;  %v2340_v12 = vpop.f32.mrb[12].mxu1  ;;  %v1026_v13 = vpop.f32.mrb[13].mxu0 }
 0x182   : > { %v1642_v14 = vadd.f32 %v2340_v12, %v3067_v25  ;;  %v1144_v15 = vadd.f32 %v3062_v24, %v1026_v13  ;;  %v1523_v16 = vpop.f32.mrb[13].mxu1 }
 0x183   : > { %1674 = vst.msk [vmem:[%s3072_s23 + $0x68] sm:$0xff] %vm482_vm0, %v1145_v11  ;;  %v1641_v17 = vadd.f32 %v3067_v25, %v1523_v16 }
 0x184   : > { %1706 = vst.msk [vmem:[%s3078_s19 + $0x68] sm:$0xff] %vm482_vm0, %v1642_v14  ;;  %1673 = vst.msk [vmem:[%s3072_s23 + $0x60] sm:$0xff] %vm482_vm0, %v1144_v15  ;;  %v2231_v18 = vpop.f32.mrb[14].mxu0 }
 0x185   : > { %1705 = vst.msk [vmem:[%s3078_s19 + $0x60] sm:$0xff] %vm482_vm0, %v1641_v17  ;;  %v1147_v19 = vadd.f32 %v2231_v18, %v3062_v24  ;;  %v2343_v20 = vpop.f32.mrb[14].mxu1  ;;  %v1036_v21 = vpop.f32.mrb[15].mxu0 }
 0x186   : > { %v1644_v22 = vadd.f32 %v2343_v20, %v3067_v25  ;;  %v1146_v23 = vadd.f32 %v3062_v24, %v1036_v21  ;;  %v1533_v26 = vpop.f32.mrb[15].mxu1 }
 0x187   : > { %1676 = vst.msk [vmem:[%s3072_s23 + $0x78] sm:$0xff] %vm482_vm0, %v1147_v19  ;;  %v1643_v27 = vadd.f32 %v3067_v25, %v1533_v26 }
 0x188   : > { %1708 = vst.msk [vmem:[%s3078_s19 + $0x78] sm:$0xff] %vm482_vm0, %v1644_v22  ;;  %1675 = vst.msk [vmem:[%s3072_s23 + $0x70] sm:$0xff] %vm482_vm0, %v1146_v23  ;;  %v2234_v28 = vpop.f32.mrb[16].mxu0 }
 0x189   : > { %1707 = vst.msk [vmem:[%s3078_s19 + $0x70] sm:$0xff] %vm482_vm0, %v1643_v27  ;;  %v1149_v29 = vadd.f32 %v2234_v28, %v3062_v24  ;;  %v2346_v30 = vpop.f32.mrb[16].mxu1  ;;  %v1046_v31 = vpop.f32.mrb[17].mxu0 }
 0x18a   : > { %v1646_v32 = vadd.f32 %v2346_v30, %v3067_v25  ;;  %v1148_v33 = vadd.f32 %v3062_v24, %v1046_v31  ;;  %v1543_v34 = vpop.f32.mrb[17].mxu1 }
 0x18b   : > { %1678 = vst.msk [vmem:[%s3072_s23 + $0x88] sm:$0xff] %vm482_vm0, %v1149_v29  ;;  %v1645_v35 = vadd.f32 %v3067_v25, %v1543_v34 }
 0x18c   : > { %1710 = vst.msk [vmem:[%s3078_s19 + $0x88] sm:$0xff] %vm482_vm0, %v1646_v32  ;;  %1677 = vst.msk [vmem:[%s3072_s23 + $0x80] sm:$0xff] %vm482_vm0, %v1148_v33  ;;  %v2237_v36 = vpop.f32.mrb[18].mxu0 }
 0x18d   : > { %1709 = vst.msk [vmem:[%s3078_s19 + $0x80] sm:$0xff] %vm482_vm0, %v1645_v35  ;;  %v1151_v37 = vadd.f32 %v2237_v36, %v3062_v24  ;;  %v2349_v38 = vpop.f32.mrb[18].mxu1  ;;  %v1056_v39 = vpop.f32.mrb[19].mxu0 }
 0x18e   : > { %v1648_v40 = vadd.f32 %v2349_v38, %v3067_v25  ;;  %v1150_v41 = vadd.f32 %v3062_v24, %v1056_v39  ;;  %v1553_v42 = vpop.f32.mrb[19].mxu1 }
 0x18f   : > { %1680 = vst.msk [vmem:[%s3072_s23 + $0x98] sm:$0xff] %vm482_vm0, %v1151_v37  ;;  %v1647_v43 = vadd.f32 %v3067_v25, %v1553_v42 }
 0x190   : > { %1712 = vst.msk [vmem:[%s3078_s19 + $0x98] sm:$0xff] %vm482_vm0, %v1648_v40  ;;  %1679 = vst.msk [vmem:[%s3072_s23 + $0x90] sm:$0xff] %vm482_vm0, %v1150_v41  ;;  %v2240_v44 = vpop.f32.mrb[20].mxu0 }
 0x191   : > { %1711 = vst.msk [vmem:[%s3078_s19 + $0x90] sm:$0xff] %vm482_vm0, %v1647_v43  ;;  %v1153_v45 = vadd.f32 %v2240_v44, %v3062_v24  ;;  %v2352_v46 = vpop.f32.mrb[20].mxu1  ;;  %v1066_v47 = vpop.f32.mrb[21].mxu0 }
 0x192   : > { %v1650_v48 = vadd.f32 %v2352_v46, %v3067_v25  ;;  %v1152_v49 = vadd.f32 %v3062_v24, %v1066_v47  ;;  %v1563_v50 = vpop.f32.mrb[21].mxu1 }
 0x193   : > { %1682 = vst.msk [vmem:[%s3072_s23 + $0xa8] sm:$0xff] %vm482_vm0, %v1153_v45  ;;  %v1649_v51 = vadd.f32 %v3067_v25, %v1563_v50 }
 0x194   : > { %1714 = vst.msk [vmem:[%s3078_s19 + $0xa8] sm:$0xff] %vm482_vm0, %v1650_v48  ;;  %1681 = vst.msk [vmem:[%s3072_s23 + $0xa0] sm:$0xff] %vm482_vm0, %v1152_v49  ;;  %v2243_v52 = vpop.f32.mrb[22].mxu0 }
 0x195   : > { %1713 = vst.msk [vmem:[%s3078_s19 + $0xa0] sm:$0xff] %vm482_vm0, %v1649_v51  ;;  %v1155_v53 = vadd.f32 %v2243_v52, %v3062_v24  ;;  %v2355_v54 = vpop.f32.mrb[22].mxu1  ;;  %v1076_v55 = vpop.f32.mrb[23].mxu0 }
 0x196   : > { %v1652_v56 = vadd.f32 %v2355_v54, %v3067_v25  ;;  %v1154_v57 = vadd.f32 %v3062_v24, %v1076_v55  ;;  %v1573_v58 = vpop.f32.mrb[23].mxu1 }
 0x197   : > { %1684 = vst.msk [vmem:[%s3072_s23 + $0xb8] sm:$0xff] %vm482_vm0, %v1155_v53  ;;  %v1651_v59 = vadd.f32 %v3067_v25, %v1573_v58 }
 0x198   : > { %1716 = vst.msk [vmem:[%s3078_s19 + $0xb8] sm:$0xff] %vm482_vm0, %v1652_v56  ;;  %1683 = vst.msk [vmem:[%s3072_s23 + $0xb0] sm:$0xff] %vm482_vm0, %v1154_v57  ;;  %v2246_v60 = vpop.f32.mrb[24].mxu0 }
 0x199   : > { %1715 = vst.msk [vmem:[%s3078_s19 + $0xb0] sm:$0xff] %vm482_vm0, %v1651_v59  ;;  %v1157_v61 = vadd.f32 %v2246_v60, %v3062_v24  ;;  %v2358_v62 = vpop.f32.mrb[24].mxu1  ;;  %v1086_v63 = vpop.f32.mrb[25].mxu0 }
 0x19a   : > { %v1654_v0 = vadd.f32 %v2358_v62, %v3067_v25  ;;  %v1156_v1 = vadd.f32 %v3062_v24, %v1086_v63  ;;  %v1583_v2 = vpop.f32.mrb[25].mxu1 }
 0x19b   : > { %1686 = vst.msk [vmem:[%s3072_s23 + $0xc8] sm:$0xff] %vm482_vm0, %v1157_v61  ;;  %v1653_v3 = vadd.f32 %v3067_v25, %v1583_v2 }
 0x19c   : > { %1718 = vst.msk [vmem:[%s3078_s19 + $0xc8] sm:$0xff] %vm482_vm0, %v1654_v0  ;;  %1685 = vst.msk [vmem:[%s3072_s23 + $0xc0] sm:$0xff] %vm482_vm0, %v1156_v1  ;;  %v2249_v4 = vpop.f32.mrb[26].mxu0 }
 0x19d   : > { %1717 = vst.msk [vmem:[%s3078_s19 + $0xc0] sm:$0xff] %vm482_vm0, %v1653_v3  ;;  %v1159_v5 = vadd.f32 %v2249_v4, %v3062_v24  ;;  %v2361_v6 = vpop.f32.mrb[26].mxu1  ;;  %v1096_v7 = vpop.f32.mrb[27].mxu0 }
 0x19e   : > { %v1656_v8 = vadd.f32 %v2361_v6, %v3067_v25  ;;  %v1158_v9 = vadd.f32 %v3062_v24, %v1096_v7  ;;  %v1593_v10 = vpop.f32.mrb[27].mxu1 }
 0x19f   : > { %1688 = vst.msk [vmem:[%s3072_s23 + $0xd8] sm:$0xff] %vm482_vm0, %v1159_v5  ;;  %v1655_v11 = vadd.f32 %v3067_v25, %v1593_v10 }
 0x1a0   : > { %1720 = vst.msk [vmem:[%s3078_s19 + $0xd8] sm:$0xff] %vm482_vm0, %v1656_v8  ;;  %1687 = vst.msk [vmem:[%s3072_s23 + $0xd0] sm:$0xff] %vm482_vm0, %v1158_v9  ;;  %v2252_v12 = vpop.f32.mrb[28].mxu0 }
 0x1a1   : > { %1719 = vst.msk [vmem:[%s3078_s19 + $0xd0] sm:$0xff] %vm482_vm0, %v1655_v11  ;;  %v1161_v13 = vadd.f32 %v2252_v12, %v3062_v24  ;;  %v2364_v14 = vpop.f32.mrb[28].mxu1  ;;  %v1106_v15 = vpop.f32.mrb[29].mxu0 }
 0x1a2   : > { %v1658_v16 = vadd.f32 %v2364_v14, %v3067_v25  ;;  %v1160_v17 = vadd.f32 %v3062_v24, %v1106_v15  ;;  %v1603_v18 = vpop.f32.mrb[29].mxu1 }
 0x1a3   : > { %1690 = vst.msk [vmem:[%s3072_s23 + $0xe8] sm:$0xff] %vm482_vm0, %v1161_v13  ;;  %v1657_v19 = vadd.f32 %v3067_v25, %v1603_v18 }
 0x1a4   : > { %1722 = vst.msk [vmem:[%s3078_s19 + $0xe8] sm:$0xff] %vm482_vm0, %v1658_v16  ;;  %1689 = vst.msk [vmem:[%s3072_s23 + $0xe0] sm:$0xff] %vm482_vm0, %v1160_v17  ;;  %v2255_v20 = vpop.f32.mrb[30].mxu0 }
 0x1a5   : > { %1721 = vst.msk [vmem:[%s3078_s19 + $0xe0] sm:$0xff] %vm482_vm0, %v1657_v19  ;;  %v1163_v21 = vadd.f32 %v2255_v20, %v3062_v24  ;;  %v2367_v22 = vpop.f32.mrb[30].mxu1  ;;  %v1116_v23 = vpop.f32.mrb[31].mxu0 }
 0x1a6   : > { %v1660_v26 = vadd.f32 %v2367_v22, %v3067_v25  ;;  %v1162_v27 = vadd.f32 %v3062_v24, %v1116_v23  ;;  %v1613_v28 = vpop.f32.mrb[31].mxu1 }
 0x1a7   : > { %1692 = vst.msk [vmem:[%s3072_s23 + $0xf8] sm:$0xff] %vm482_vm0, %v1163_v21  ;;  %v1659_v29 = vadd.f32 %v3067_v25, %v1613_v28 }
 0x1a8   : > { %1724 = vst.msk [vmem:[%s3078_s19 + $0xf8] sm:$0xff] %vm482_vm0, %v1660_v26  ;;  %1691 = vst.msk [vmem:[%s3072_s23 + $0xf0] sm:$0xff] %vm482_vm0, %v1162_v27 }
 0x1a9   : > { %1723 = vst.msk [vmem:[%s3078_s19 + $0xf0] sm:$0xff] %vm482_vm0, %v1659_v29 }
 0x1aa PF: > { %p23_p11 = scmp.ge.s32.totalorder %s2684_s14, 4   ;;  %s3304_s30 = smov %s2600_s10 }
 0x1ab   : > { %s3305_s10 = smov %s2604_s11  ;;  %s3306_s11 = smov %s2694_s17 }
 0x1ac   : > { %s3307_s12 = smov %s2684_s14  ;;  %25 = sbr.rel (!%p23_p11) target bundleno = 5 (0x5), region = 117 }
 0x1b3   :  { %1764 = vsyncpa [#allocation3], 1 }
 0x1b4   :  { %1766 = vsyncpa [#allocation3 + $0x1], 1 }
 0x1b5   :  { %1767 = vsyncpa [#allocation5], 1 }
 0x1b6   :  { %1769 = vsyncpa [#allocation5 + $0x1], 1 }

// kernel: detail_node.4
= control target key start
LH: loop header
LB: loop body
LE: loop exit
PB: predicated region body
PF: predicated region fallthrough
CT: control target
= control target key end

     0   :  { %s3535_s18 = smov 0   ;;  %s5432_s0 = inlined_call_operand.vmem [shape: f32[2,18,24,32], index: 0, kind: input, shape index: {}]   ;;  %s5433_s1 = inlined_call_operand.vmem [shape: f32[32,64], index: 1, kind: input, shape index: {}]   ;;  %s5434_s2 = inlined_call_operand.vmem [shape: f32[9,64], index: 2, kind: input, shape index: {}]   ;;  %s5435_s3 = inlined_call_operand.vmem [shape: f32[64,32], index: 3, kind: input, shape index: {}]   ;;  %s5436_s4 = inlined_call_operand.vmem [shape: f32[2,16,16,32], index: 4, kind: input, shape index: {}]   ;;  %s5437_s5 = inlined_call_operand.vmem [shape: f32[2,16,16,32], index: 5, kind: output, shape index: {}]  }
   0x1 LB: > { %s3106_s19 = sadd.s32 4294967295, %s3503_s18   ;;  %p3110_p0 = scmp.ge.s32.totalorder %s3503_s18, 1  ;;  %s3503_s18 = sphi %s3535_s18, %s15_s18  }
   0x2   : > { %p197_p1 = scmp.lt.s32.totalorder %s3503_s18, 3 }
   0x4   : > { %p198_p2 = pnand %p3110_p0, %p197_p1 }
   0x6   : > { %201 = sbr.rel (%p198_p2) target bundleno = 799 (0x31f), region = 40 }
   0xd   : > { %v299_v0 = vld [vmem:[%s5433_s1] sm:$0xff]  ;;  %v300_v1 = vld [vmem:[%s5433_s1 + $0x8] sm:$0xff]  ;;  %v301_v2 = vld [vmem:[%s5433_s1 + $0x10] sm:$0xff]  ;;  %p230_p3 = scmp.lt.s32.totalorder %s3106_s19, 1  ;;  %vm303_vm0 = vcmask 261120   ;;  %vm1047_vm1 = vcmask 1046528  }
   0xe   : > { %v3458_v3 = vpack.c.bf16 %v300_v1, %v299_v0  ;;  %v302_v4 = vld [vmem:[%s5433_s1 + $0x18] sm:$0xff]  ;;  %v2613_v60 = vld [vmem:[%s5435_s3] sm:$0xff]  ;;  %v2614_v61 = vld [vmem:[%s5435_s3 + $0x8] sm:$0xff]  ;;  %vm1292_vm2 = vcmask 1045504   ;;  %vm2621_vm3 = vcmask 523264  }
   0xf   : > { %v3462_v5 = vpack.c.bf16 %v302_v4, %v301_v2  ;;  %s5685_s19 = smov (!%p230_p3, %s3106_s19), 1  ;;  %v3466_v62 = vpack.c.bf16 %v2614_v61, %v2613_v60  ;;  %v2615_v63 = vld [vmem:[%s5435_s3 + $0x10] sm:$0xff]  ;;  %v2616_v0 = vld [vmem:[%s5435_s3 + $0x18] sm:$0xff]  ;;  %v2617_v2 = vld [vmem:[%s5435_s3 + $0x20] sm:$0xff] }
  0x10   : > { %3459 = vmatprep.subr.bf16.mxu0 %v3458_v3  ;;  %3482 = vmatprep.subr.bf16.mxu1 %v3458_v3  ;;  %s3486_s28 = smul.u32 432, %s5685_s19  ;;  %v3470_v1 = vpack.c.bf16 %v2616_v0, %v2615_v63  ;;  %s3205_s8 = sshll.u32 %s5685_s19, 8 }
  0x11   : > { %3461 = vmatpush3.bf16.msra.mxu0 %v3458_v3  ;;  %3484 = vmatpush3.bf16.msra.mxu1 %v3458_v3  ;;  %v2618_v3 = vld [vmem:[%s5435_s3 + $0x28] sm:$0xff]  ;;  %s5276_s11 = scalar_lea.vmem %s5436_s4, %s3205_s8  ;;  %s5315_s14 = scalar_lea.vmem %s5437_s5, %s3205_s8 }
  0x12   : > { %3463 = vmatprep.subr.bf16.mxu0 %v3462_v5  ;;  %3483 = vmatprep.subr.bf16.mxu1 %v3462_v5  ;;  %s3561_s6 = scalar_lea.vmem %s5432_s0, %s3486_s28  ;;  %v3474_v4 = vpack.c.bf16 %v2618_v3, %v2617_v2 }
  0x13   : > { %v245_v6 = vld [vmem:[%s3561_s6] sm:$0xff]  ;;  %v246_v7 = vld [vmem:[%s3561_s6 + $0x8] sm:$0xff]  ;;  %v247_v8 = vld [vmem:[%s3561_s6 + $0x10] sm:$0xff] }
  0x14   : > { %3313 = vmatprep.mubr.msk.f32.mxu0 %vm303_vm0, %v245_v6  ;;  %v248_v9 = vld [vmem:[%s3561_s6 + $0x18] sm:$0xff]  ;;  %v249_v10 = vld [vmem:[%s3561_s6 + $0x20] sm:$0xff]  ;;  %v250_v11 = vld [vmem:[%s3561_s6 + $0x28] sm:$0xff] }
  0x15   : > { %3465 = vmatpush3.bf16.msra.mxu0 %v3462_v5  ;;  %3485 = vmatpush3.bf16.msra.mxu1 %v3462_v5  ;;  %v251_v12 = vld [vmem:[%s3561_s6 + $0x30] sm:$0xff]  ;;  %v289_v13 = vld [vmem:[%s3561_s6 + $0x160] sm:$0xff]  ;;  %v252_v14 = vld [vmem:[%s3561_s6 + $0x38] sm:$0xff] }
  0x16   : > { %3379 = vmatprep.mubr.msk.f32.mxu1 %vm303_vm0, %v289_v13  ;;  %v290_v15 = vld [vmem:[%s3561_s6 + $0x168] sm:$0xff]  ;;  %v253_v16 = vld [vmem:[%s3561_s6 + $0x40] sm:$0xff]  ;;  %v291_v17 = vld [vmem:[%s3561_s6 + $0x170] sm:$0xff]  ;;  %3467 = vmatprep.subr.bf16.mxu1 %v3466_v62 }
  0x17   : > { %v292_v18 = vld [vmem:[%s3561_s6 + $0x178] sm:$0xff]  ;;  %v293_v19 = vld [vmem:[%s3561_s6 + $0x180] sm:$0xff]  ;;  %v254_v20 = vld [vmem:[%s3561_s6 + $0x48] sm:$0xff] }
  0x18   : > { %3314 = vmatmul.mubr.msk.f32.vlgmr.msra.gmra.mrb[0].mxu0 %vm303_vm0, %v246_v7  ;;  %3380 = vmatmul.mubr.msk.f32.vlgmr.msra.gmra.mrb[0].mxu1 %vm303_vm0, %v290_v15  ;;  %v255_v21 = vld [vmem:[%s3561_s6 + $0x50] sm:$0xff]  ;;  %v294_v22 = vld [vmem:[%s3561_s6 + $0x188] sm:$0xff]  ;;  %v256_v24 = vld [vmem:[%s3561_s6 + $0x58] sm:$0xff] }
  0x19   : > { %3316 = vmatprep.mubr.msk.f32.mxu0 %vm303_vm0, %v247_v8  ;;  %3382 = vmatprep.mubr.msk.f32.mxu1 %vm303_vm0, %v291_v17  ;;  %v295_v23 = vld [vmem:[%s3561_s6 + $0x190] sm:$0xff]  ;;  %v257_v25 = vld [vmem:[%s3561_s6 + $0x60] sm:$0xff]  ;;  %v296_v26 = vld [vmem:[%s3561_s6 + $0x198] sm:$0xff]  ;;  %v911_v8 = vlaneseq }
  0x1a   : > { %v297_v27 = vld [vmem:[%s3561_s6 + $0x1a0] sm:$0xff]  ;;  %v258_v28 = vld [vmem:[%s3561_s6 + $0x68] sm:$0xff]  ;;  %v259_v29 = vld [vmem:[%s3561_s6 + $0x70] sm:$0xff]  ;;  %3469 = vmatpush3.bf16.msra.mxu1 %v3466_v62 }
  0x1b   : > { %v298_v30 = vld [vmem:[%s3561_s6 + $0x1a8] sm:$0xff]  ;;  %v260_v31 = vld [vmem:[%s3561_s6 + $0x78] sm:$0xff]  ;;  %v261_v32 = vld [vmem:[%s3561_s6 + $0x80] sm:$0xff]  ;;  %3471 = vmatprep.subr.bf16.mxu1 %v3470_v1 }
  0x1c   : > { %3317 = vmatmul.mubr.msk.f32.gmra.mrb[2].mxu0 %vm303_vm0, %v248_v9  ;;  %3383 = vmatmul.mubr.msk.f32.gmra.mrb[2].mxu1 %vm303_vm0, %v292_v18  ;;  %v262_v33 = vld [vmem:[%s3561_s6 + $0x88] sm:$0xff]  ;;  %v263_v34 = vld [vmem:[%s3561_s6 + $0x90] sm:$0xff]  ;;  %v264_v35 = vld [vmem:[%s3561_s6 + $0x98] sm:$0xff]  ;;  %v912_v9 = vshrl.u32 %v911_v8, 7 }
  0x1d   : > { %3319 = vmatprep.mubr.msk.f32.mxu0 %vm303_vm0, %v249_v10  ;;  %3385 = vmatprep.mubr.msk.f32.mxu1 %vm303_vm0, %v293_v19  ;;  %v265_v36 = vld [vmem:[%s3561_s6 + $0xa0] sm:$0xff]  ;;  %v266_v37 = vld [vmem:[%s3561_s6 + $0xa8] sm:$0xff]  ;;  %v267_v38 = vld [vmem:[%s3561_s6 + $0xb0] sm:$0xff] }
  0x1e   : > { %v268_v39 = vld [vmem:[%s3561_s6 + $0xb8] sm:$0xff]  ;;  %v269_v40 = vld [vmem:[%s3561_s6 + $0xc0] sm:$0xff]  ;;  %v270_v41 = vld [vmem:[%s3561_s6 + $0xc8] sm:$0xff]  ;;  %3473 = vmatpush3.bf16.msra.mxu1 %v3470_v1  ;;  %v949_v10 = vsub.s32 1, %v912_v9  ;;  %v913_v13 = vsub.s32 0, %v912_v9  ;;  %v1439_v15 = vsub.s32 3, %v912_v9 }
  0x1f   : > { %v271_v42 = vld [vmem:[%s3561_s6 + $0xd0] sm:$0xff]  ;;  %v272_v43 = vld [vmem:[%s3561_s6 + $0xd8] sm:$0xff]  ;;  %v273_v44 = vld [vmem:[%s3561_s6 + $0xe0] sm:$0xff]  ;;  %3475 = vmatprep.subr.bf16.mxu1 %v3474_v4  ;;  %v1751_v17 = vsub.s32 5, %v912_v9 }
  0x20   : > { %3320 = vmatmul.mubr.msk.f32.gmra.mrb[4].mxu0 %vm303_vm0, %v250_v11  ;;  %3386 = vmatmul.mubr.msk.f32.gmra.mrb[4].mxu1 %vm303_vm0, %v294_v22  ;;  %v274_v45 = vld [vmem:[%s3561_s6 + $0xe8] sm:$0xff]  ;;  %v275_v46 = vld [vmem:[%s3561_s6 + $0xf0] sm:$0xff]  ;;  %v276_v47 = vld [vmem:[%s3561_s6 + $0xf8] sm:$0xff]  ;;  %v1194_v11 = vsub.s32 2, %v912_v9 }
  0x21   : > { %3322 = vmatprep.mubr.msk.f32.mxu0 %vm303_vm0, %v251_v12  ;;  %3388 = vmatprep.mubr.msk.f32.mxu1 %vm303_vm0, %v295_v23  ;;  %v277_v48 = vld [vmem:[%s3561_s6 + $0x100] sm:$0xff]  ;;  %v278_v49 = vld [vmem:[%s3561_s6 + $0x108] sm:$0xff]  ;;  %v279_v50 = vld [vmem:[%s3561_s6 + $0x110] sm:$0xff]  ;;  %v2063_v23 = vsub.s32 7, %v912_v9 }
  0x22   : > { %v280_v51 = vld [vmem:[%s3561_s6 + $0x118] sm:$0xff]  ;;  %v281_v52 = vld [vmem:[%s3561_s6 + $0x120] sm:$0xff]  ;;  %v282_v53 = vld [vmem:[%s3561_s6 + $0x128] sm:$0xff]  ;;  %3477 = vmatpush3.bf16.msra.mxu1 %v3474_v4 }
  0x23   : > { %v283_v54 = vld [vmem:[%s3561_s6 + $0x130] sm:$0xff]  ;;  %v284_v55 = vld [vmem:[%s3561_s6 + $0x138] sm:$0xff]  ;;  %v285_v56 = vld [vmem:[%s3561_s6 + $0x140] sm:$0xff] }
  0x24   : > { %3323 = vmatmul.mubr.msk.f32.gmra.mrb[6].mxu0 %vm303_vm0, %v252_v14  ;;  %3389 = vmatmul.mubr.msk.f32.gmra.mrb[6].mxu1 %vm303_vm0, %v296_v26  ;;  %v286_v57 = vld [vmem:[%s3561_s6 + $0x148] sm:$0xff]  ;;  %v287_v58 = vld [vmem:[%s3561_s6 + $0x150] sm:$0xff]  ;;  %v288_v59 = vld [vmem:[%s3561_s6 + $0x158] sm:$0xff]  ;;  %v1995_v26 = vsub.s32 6, %v912_v9 }
  0x25   : > { %3325 = vmatprep.mubr.msk.f32.mxu0 %vm303_vm0, %v253_v16  ;;  %3391 = vmatprep.mubr.msk.f32.mxu1 %vm303_vm0, %v297_v27  ;;  %v2619_v5 = vld [vmem:[%s5435_s3 + $0x30] sm:$0xff]  ;;  %v2620_v6 = vld [vmem:[%s5435_s3 + $0x38] sm:$0xff]  ;;  %v909_v12 = vld [vmem:[%s5434_s2] sm:$0xff]  ;;  %v1507_v16 = vsub.s32 4, %v912_v9 }
  0x26   : > { %v3478_v7 = vpack.c.bf16 %v2620_v6, %v2619_v5  ;;  %v3698_v19 = vrot.slane %v909_v12, %v949_v10 }
  0x28   : > { %3326 = vmatmul.mubr.msk.f32.gmra.mrb[8].mxu0 %vm303_vm0, %v254_v20  ;;  %3392 = vmatmul.mubr.msk.f32.gmra.mrb[8].mxu1 %vm303_vm0, %v298_v30  ;;  %v3700_v20 = vrot.slane %v909_v12, %v1194_v11  ;;  %v3706_v30 = vrot.slane %v909_v12, %v1507_v16 }
  0x29   : > { %3328 = vmatprep.mubr.msk.f32.mxu0 %vm303_vm0, %v255_v21  ;;  %3479 = vmatprep.subr.bf16.mxu1 %v3478_v7 }
  0x2a   : > { %3481 = vmatpush3.bf16.msra.mxu1 %v3478_v7 }
  0x2c   : > { %3329 = vmatmul.mubr.msk.f32.gmra.mrb[10].mxu0 %vm303_vm0, %v256_v24 }
  0x2d   : > { %3331 = vmatprep.mubr.msk.f32.mxu0 %vm303_vm0, %v257_v25  ;;  %v3702_v25 = vrot.slane %v909_v12, %v913_v13 }
  0x30   : > { %3332 = vmatmul.mubr.msk.f32.gmra.mrb[12].mxu0 %vm303_vm0, %v258_v28 }
  0x31   : > { %3334 = vmatprep.mubr.msk.f32.mxu0 %vm303_vm0, %v259_v29  ;;  %v3704_v29 = vrot.slane %v909_v12, %v1439_v15 }
  0x34   : > { %3335 = vmatmul.mubr.msk.f32.gmra.mrb[14].mxu0 %vm303_vm0, %v260_v31  ;;  %v3708_v31 = vrot.slane %v909_v12, %v1751_v17 }
  0x35   : > { %3337 = vmatprep.mubr.msk.f32.mxu0 %vm303_vm0, %v261_v32 }
  0x38   : > { %3338 = vmatmul.mubr.msk.f32.gmra.mrb[16].mxu0 %vm303_vm0, %v262_v33 }
  0x39   : > { %3340 = vmatprep.mubr.msk.f32.mxu0 %vm303_vm0, %v263_v34 }
  0x3c   : > { %3341 = vmatmul.mubr.msk.f32.gmra.mrb[18].mxu0 %vm303_vm0, %v264_v35 }
  0x3d   : > { %3343 = vmatprep.mubr.msk.f32.mxu0 %vm303_vm0, %v265_v36 }
  0x40   : > { %3344 = vmatmul.mubr.msk.f32.gmra.mrb[20].mxu0 %vm303_vm0, %v266_v37 }
  0x41   : > { %3346 = vmatprep.mubr.msk.f32.mxu0 %vm303_vm0, %v267_v38 }
  0x44   : > { %3347 = vmatmul.mubr.msk.f32.gmra.mrb[22].mxu0 %vm303_vm0, %v268_v39  ;;  %v3714_v39 = vrot.slane %v909_v12, %v2063_v23 }
  0x45   : > { %3349 = vmatprep.mubr.msk.f32.mxu0 %vm303_vm0, %v269_v40 }
  0x48   : > { %3350 = vmatmul.mubr.msk.f32.gmra.mrb[24].mxu0 %vm303_vm0, %v270_v41 }
  0x49   : > { %3352 = vmatprep.mubr.msk.f32.mxu0 %vm303_vm0, %v271_v42 }
  0x4c   : > { %3353 = vmatmul.mubr.msk.f32.gmra.mrb[26].mxu0 %vm303_vm0, %v272_v43  ;;  %v3716_v43 = vrot.slane %v909_v12, %v1995_v26 }
  0x4d   : > { %3355 = vmatprep.mubr.msk.f32.mxu0 %vm303_vm0, %v273_v44 }
  0x50   : > { %3356 = vmatmul.mubr.msk.f32.gmra.mrb[28].mxu0 %vm303_vm0, %v274_v45 }
  0x51   : > { %3358 = vmatprep.mubr.msk.f32.mxu0 %vm303_vm0, %v275_v46 }
  0x54   : > { %3359 = vmatmul.mubr.msk.f32.gmra.mrb[30].mxu0 %vm303_vm0, %v276_v47 }
  0x55   : > { %3361 = vmatprep.mubr.msk.f32.mxu0 %vm303_vm0, %v277_v48 }
  0x58   : > { %3362 = vmatmul.mubr.msk.f32.gmra.mrb[32].mxu0 %vm303_vm0, %v278_v49 }
  0x59   : > { %3364 = vmatprep.mubr.msk.f32.mxu0 %vm303_vm0, %v279_v50 }
  0x5c   : > { %3365 = vmatmul.mubr.msk.f32.gmra.mrb[34].mxu0 %vm303_vm0, %v280_v51 }
  0x5d   : > { %3367 = vmatprep.mubr.msk.f32.mxu0 %vm303_vm0, %v281_v52 }
  0x60   : > { %3368 = vmatmul.mubr.msk.f32.gmra.mrb[36].mxu0 %vm303_vm0, %v282_v53 }
  0x61   : > { %3370 = vmatprep.mubr.msk.f32.mxu0 %vm303_vm0, %v283_v54 }
  0x64   : > { %3371 = vmatmul.mubr.msk.f32.gmra.mrb[38].mxu0 %vm303_vm0, %v284_v55 }
  0x65   : > { %3373 = vmatprep.mubr.msk.f32.mxu0 %vm303_vm0, %v285_v56 }
  0x68   : > { %3374 = vmatmul.mubr.msk.f32.gmra.mrb[40].mxu0 %vm303_vm0, %v286_v57 }
  0x69   : > { %3376 = vmatprep.mubr.msk.f32.mxu0 %vm303_vm0, %v287_v58 }
  0x6c   : > { %3377 = vmatmul.mubr.msk.f32.gmra.mrb[42].mxu0 %vm303_vm0, %v288_v59 }
  0xeb   : > { %v3315_v14 = vpop.f32.mrb[0].mxu0 }
  0xec   : > { %v802_v18 = vmax.f32 %v3315_v14, 0.0  ;;  %v532_v21 = vpop.f32.mrb[1].mxu0 }
  0xed   : > { %v801_v22 = vmax.f32 %v532_v21, 0.0 }
  0xee   : > { %v856_v24 = vmin.f32 %v802_v18, 6.0 }
  0xef   : > { %v855_v27 = vmin.f32 %v801_v22, 6.0  ;;  %v3318_v28 = vpop.f32.mrb[2].mxu0 }
  0xf0   : > { %v952_v32 = vmul.f32 %v3698_v19, %v856_v24  ;;  %v1197_v33 = vmul.f32 %v3700_v20, %v856_v24  ;;  %v804_v34 = vmax.f32 %v3318_v28, 0.0  ;;  %v542_v35 = vpop.f32.mrb[3].mxu0  ;;  %v916_v44 = vmul.f32 %v3702_v25, %v856_v24 }
  0xf1   : > { %v951_v36 = vmul.f32 %v3698_v19, %v855_v27  ;;  %v1196_v37 = vmul.f32 %v3700_v20, %v855_v27  ;;  %v803_v38 = vmax.f32 %v542_v35, 0.0  ;;  %v915_v49 = vmul.f32 %v3702_v25, %v855_v27 }
  0xf2   : > { %v1049_v40 = vrot.slane %v952_v32, 1  ;;  %v1294_v41 = vrot.slane %v1197_v33, 2  ;;  %v858_v42 = vmin.f32 %v804_v34, 6.0 }
  0xf3   : > { %v1048_v45 = vrot.slane %v951_v36, 1  ;;  %v1293_v46 = vrot.slane %v1196_v37, 2  ;;  %v857_v47 = vmin.f32 %v803_v38, 6.0  ;;  %v3321_v48 = vpop.f32.mrb[4].mxu0 }
  0xf4   : > { %v3721_v50 = vmul.f32 %v3702_v25, %v858_v42  ;;  %v3724_v51 = vmul.f32 %v3698_v19, %v858_v42  ;;  %v3727_v52 = vmul.f32 %v3700_v20, %v858_v42  ;;  %v552_v53 = vpop.f32.mrb[5].mxu0  ;;  %v3732_v56 = vmul.f32 %v3706_v30, %v858_v42 }
  0xf5   : > { %v1050_v54 = vsel %vm1047_vm1, %v1048_v45, %v1049_v40  ;;  %v1295_v55 = vsel %vm1292_vm2, %v1293_v46, %v1294_v41  ;;  %v3735_v57 = vmul.f32 %v3708_v31, %v858_v42  ;;  %v1441_v60 = vmul.f32 %v3704_v29, %v858_v42 }
  0xf6   : > { %v1160_v58 = vadd.f32 %v1050_v54, %v915_v49  ;;  %v953_v61 = vmul.f32 %v3698_v19, %v857_v47  ;;  %v1605_v63 = vrot.slane %v3732_v56, 1  ;;  %v1198_v0 = vmul.f32 %v3700_v20, %v857_v47 }
  0xf7   : > { %v806_v1 = vmax.f32 %v3321_v48, 0.0  ;;  %v3324_v2 = vpop.f32.mrb[6].mxu0  ;;  %v805_v5 = vmax.f32 %v552_v53, 0.0  ;;  %v1849_v8 = vrot.slane %v3735_v57, 2 }
  0xf8   : > { %v1405_v3 = vadd.f32 %v1295_v55, %v1160_v58  ;;  %v1051_v4 = vrot.slane %v953_v61, 1  ;;  %v808_v6 = vmax.f32 %v3324_v2, 0.0  ;;  %v562_v7 = vpop.f32.mrb[7].mxu0  ;;  %v1296_v9 = vrot.slane %v1198_v0, 2 }
  0xf9   : > { %v860_v10 = vmin.f32 %v806_v1, 6.0  ;;  %v807_v11 = vmax.f32 %v562_v7, 0.0  ;;  %v859_v13 = vmin.f32 %v805_v5, 6.0 }
  0xfa   : > { %v1052_v12 = vsel %vm1047_vm1, %v1049_v40, %v1051_v4  ;;  %v3745_v14 = vmin.f32 %v808_v6, 6.0  ;;  %v3747_v15 = vadd.f32 %v1441_v60, %v1405_v3  ;;  %v1297_v17 = vsel %vm1292_vm2, %v1294_v41, %v1296_v9 }
  0xfb   : > { %v1161_v16 = vadd.f32 %v1052_v12, %v916_v44  ;;  %v956_v18 = vmul.f32 %v3698_v19, %v860_v10  ;;  %v3752_v21 = vmul.f32 %v3700_v20, %v860_v10  ;;  %v3327_v22 = vpop.f32.mrb[8].mxu0  ;;  %v1511_v23 = vmul.f32 %v3706_v30, %v860_v10 }
  0xfc   : > { %v1755_v24 = vmul.f32 %v3708_v31, %v860_v10  ;;  %v918_v26 = vmul.f32 %v3702_v25, %v859_v13  ;;  %v3758_v27 = vmul.f32 %v3698_v19, %v859_v13  ;;  %v572_v28 = vpop.f32.mrb[9].mxu0  ;;  %v3762_v35 = vmul.f32 %v3700_v20, %v859_v13  ;;  %v3792_v10 = vld [vmem:[%s5434_s2 + $0x8] ss:$0 sm:$0xff] }
  0xfd   : > { %v1406_v32 = vadd.f32 %v1297_v17, %v1161_v16  ;;  %v1056_v33 = vrot.slane %v956_v18, 1  ;;  %v1608_v36 = vrot.slane %v1511_v23, 1  ;;  %v1442_v40 = vmul.f32 %v3704_v29, %v859_v13 }
  0xfe   : > { %v1852_v37 = vrot.slane %v1755_v24, 2  ;;  %v5438_v38 = vrot.slane %v3758_v27, 1  ;;  %v1510_v42 = vmul.f32 %v3706_v30, %v859_v13  ;;  %v1754_v44 = vmul.f32 %v3708_v31, %v859_v13 }
  0xff   : > { %v3769_v45 = vmin.f32 %v807_v11, 6.0  ;;  %v3330_v46 = vpop.f32.mrb[10].mxu0  ;;  %v1474_v48 = vadd.f32 %v1442_v40, %v1406_v32  ;;  %v810_v49 = vmax.f32 %v3327_v22, 0.0  ;;  %v809_v53 = vmax.f32 %v572_v28, 0.0 }
 0x100   : > { %v1057_v47 = vsel %vm1047_vm1, %v5438_v38, %v1056_v33  ;;  %v582_v54 = vpop.f32.mrb[11].mxu0  ;;  %v1606_v56 = vrot.slane %v1510_v42, 1  ;;  %v1850_v58 = vrot.slane %v1754_v44, 2  ;;  %v812_v60 = vmax.f32 %v3330_v46, 0.0 }
 0x101   : > { %v3774_v55 = vadd.f32 %v1057_v47, %v918_v26  ;;  %v3776_v61 = vmin.f32 %v810_v49, 6.0  ;;  %v863_v0 = vmin.f32 %v809_v53, 6.0  ;;  %v811_v1 = vmax.f32 %v582_v54, 0.0 }
 0x102   : > { %v1997_v2 = vmul.f32 %v3716_v43, %v3769_v45  ;;  %v1609_v3 = vsel %vm1047_vm1, %v1606_v56, %v1608_v36  ;;  %v3782_v4 = vsel %vm1292_vm2, %v1850_v58, %v1852_v37  ;;  %v3784_v5 = vmin.f32 %v812_v60, 6.0 }
 0x103   : > { %v3333_v6 = vpop.f32.mrb[12].mxu0  ;;  %v1607_v7 = vsel %vm1047_vm1, %v1605_v63, %v1606_v56  ;;  %v3787_v9 = vadd.f32 %v1609_v3, %v1474_v48  ;;  %v3795_v11 = vmul.f32 %v3698_v19, %v863_v0  ;;  %v3798_v12 = vmul.f32 %v3700_v20, %v863_v0 }
 0x104   : > { %v3801_v13 = vmul.f32 %v3706_v30, %v863_v0  ;;  %v592_v16 = vpop.f32.mrb[13].mxu0  ;;  %v3804_v17 = vmul.f32 %v3708_v31, %v863_v0  ;;  %v3807_v63 = vmul.f32 %v3714_v39, %v863_v0  ;;  %v3810_v18 = vmul.f32 %v3792_v10, %v863_v0 }
 0x105   : > { %v3814_v22 = vmul.f32 %v3698_v19, %v3784_v5  ;;  %v3821_v28 = vmul.f32 %v3700_v20, %v3784_v5  ;;  %v3830_v44 = vmul.f32 %v3706_v30, %v3784_v5  ;;  %v3834_v46 = vmul.f32 %v3708_v31, %v3784_v5 }
 0x106   : > { %v2164_v33 = vrot.slane %v3807_v63, 1  ;;  %v3836_v47 = vmin.f32 %v811_v1, 6.0  ;;  %v814_v49 = vmax.f32 %v3333_v6, 0.0  ;;  %v813_v53 = vmax.f32 %v592_v16, 0.0 }
 0x107   : > { %v3336_v40 = vpop.f32.mrb[14].mxu0  ;;  %v1717_v3 = vadd.f32 %v1607_v7, %v3747_v15  ;;  %v1851_v63 = vsel %vm1292_vm2, %v1849_v8, %v1850_v58  ;;  %v2065_v0 = vmul.f32 %v3714_v39, %v3769_v45  ;;  %v2066_v57 = vmul.f32 %v3714_v39, %v3745_v14 }
 0x108   : > { %v602_v48 = vpop.f32.mrb[15].mxu0  ;;  %v816_v54 = vmax.f32 %v3336_v40, 0.0  ;;  %v3844_v42 = vmin.f32 %v814_v49, 6.0  ;;  %v3846_v37 = vmin.f32 %v813_v53, 6.0  ;;  %v2310_v24 = vmul.f32 %v3792_v10, %v3745_v14 }
 0x109   : > { %v815_v56 = vmax.f32 %v602_v48, 0.0  ;;  %v1961_v60 = vadd.f32 %v1851_v63, %v1717_v3  ;;  %v2162_v63 = vrot.slane %v2066_v57, 1  ;;  %v2309_v3 = vmul.f32 %v3792_v10, %v3769_v45 }
 0x10a   : > { %v3848_v1 = vmin.f32 %v816_v54, 6.0  ;;  %v2406_v59 = vrot.slane %v2310_v24, 2  ;;  %v5504_v62 = vrot.slane %v3810_v18, 2  ;;  %v5506_v24 = vrot.slane %v3724_v51, 1 }
 0x10b   : > { %v3850_v6 = vmin.f32 %v815_v56, 6.0  ;;  %v3339_v16 = vpop.f32.mrb[16].mxu0  ;;  %v2029_v54 = vadd.f32 %v1997_v2, %v1961_v60  ;;  %v2161_v56 = vrot.slane %v2065_v0, 1  ;;  %v2405_v57 = vrot.slane %v2309_v3, 2 }
 0x10c   : > { %v818_v40 = vmax.f32 %v3339_v16, 0.0  ;;  %v612_v48 = vpop.f32.mrb[17].mxu0  ;;  %v1998_v16 = vmul.f32 %v3716_v43, %v3745_v14  ;;  %v5510_v18 = vrot.slane %v3727_v52, 2  ;;  %v1512_v51 = vmul.f32 %v3706_v30, %v3769_v45 }
 0x10d   : > { %v3858_v8 = vmul.f32 %v3698_v19, %v3850_v6  ;;  %v3862_v15 = vmul.f32 %v3700_v20, %v3850_v6  ;;  %v3866_v58 = vmul.f32 %v3706_v30, %v3850_v6  ;;  %v3870_v7 = vmul.f32 %v3708_v31, %v3850_v6 }
 0x10e   : > { %v3872_v49 = vmin.f32 %v818_v40, 6.0  ;;  %v817_v53 = vmax.f32 %v612_v48, 0.0  ;;  %v2163_v41 = vsel %vm1047_vm1, %v2161_v56, %v2162_v63  ;;  %v2407_v34 = vsel %vm1292_vm2, %v2405_v57, %v2406_v59 }
 0x10f   : > { %5497 = vst [vmem:[#allocation2_spill] sm:$0xff] %v3858_v8  ;;  %5498 = vst [vmem:[#allocation3_spill] sm:$0xff] %v3862_v15  ;;  %v3342_v23 = vpop.f32.mrb[18].mxu0  ;;  %v2273_v36 = vadd.f32 %v2163_v41, %v2029_v54  ;;  %v1962_v15 = vadd.f32 %v3782_v4, %v3787_v9  ;;  %v2409_v56 = vsel %vm1292_vm2, %v2406_v59, %v5504_v62  ;;  %v5511_v8 = vrot.slane %v3752_v21, 2 }
 0x110   : > { %5499 = vst [vmem:[#allocation4_spill] sm:$0xff] %v3872_v49  ;;  %v3880_v32 = vmul.f32 %v3698_v19, %v3872_v49  ;;  %v3884_v40 = vmul.f32 %v3700_v20, %v3872_v49  ;;  %v3888_v2 = vmul.f32 %v3706_v30, %v3872_v49  ;;  %v3892_v60 = vmul.f32 %v3708_v31, %v3872_v49  ;;  %v622_v0 = vpop.f32.mrb[19].mxu0 }
 0x111   : > { %v3894_v48 = vmin.f32 %v817_v53, 6.0  ;;  %v2165_v53 = vsel %vm1047_vm1, %v2162_v63, %v2164_v33  ;;  %v5505_v33 = vrot.slane %v3758_v27, 1  ;;  %v2517_v54 = vadd.f32 %v2407_v34, %v2273_v36 }
 0x112   : > { %5500 = vst [vmem:[#allocation5_spill] sm:$0xff] %v3880_v32  ;;  %5501 = vst [vmem:[#allocation6_spill] sm:$0xff] %v3884_v40  ;;  %v820_v32 = vmax.f32 %v3342_v23, 0.0  ;;  %v819_v40 = vmax.f32 %v622_v0, 0.0  ;;  %v2030_v4 = vadd.f32 %v1998_v16, %v1962_v15  ;;  %v5509_v63 = vrot.slane %v3762_v35, 2 }
 0x113   : > { %5502 = vst [vmem:[#allocation7_spill] sm:$0xff] %v3888_v2  ;;  %5503 = vst [vmem:[#allocation8_spill] sm:$0xff] %v3892_v60  ;;  %v3345_v38 = vpop.f32.mrb[20].mxu0  ;;  %v1055_v41 = vsel %vm1047_vm1, %v5506_v24, %v5505_v33  ;;  %v1443_v62 = vmul.f32 %v3704_v29, %v3769_v45  ;;  %v2549_v34 = vmax.f32 %v2517_v54, 0.0  ;;  %v1610_v16 = vrot.slane %v1512_v51, 1 }
 0x114   : > { %v632_v26 = vpop.f32.mrb[21].mxu0  ;;  %v3919_v9 = vmin.f32 %v820_v32, 6.0  ;;  %v1162_v23 = vadd.f32 %v1055_v41, %v3721_v50  ;;  %v3922_v3 = vmin.f32 %v819_v40, 6.0  ;;  %v1300_v59 = vsel %vm1292_vm2, %v5510_v18, %v5509_v63 }
 0x115   : > { %v2274_v32 = vadd.f32 %v2165_v53, %v2030_v4  ;;  %v1513_v50 = vmul.f32 %v3706_v30, %v3745_v14  ;;  %v1756_v52 = vmul.f32 %v3708_v31, %v3769_v45  ;;  %v1757_v40 = vmul.f32 %v3708_v31, %v3745_v14 }
 0x116   : > { %5507 = vst [vmem:[#allocation9_spill] sm:$0xff] %v3919_v9  ;;  %5508 = vst [vmem:[#allocation10_spill] sm:$0xff] %v3922_v3  ;;  %v1407_v36 = vadd.f32 %v1300_v59, %v1162_v23  ;;  %v1999_v0 = vmul.f32 %v3716_v43, %v3776_v61  ;;  %v2581_v57 = vmin.f32 %v2549_v34, 6.0  ;;  %v2068_v4 = vmul.f32 %v3714_v39, %v3776_v61 }
 0x117   : > { %v3933_v27 = vpop.f32.mrb[22].mxu0  ;;  %v2518_v33 = vadd.f32 %v2409_v56, %v2274_v32  ;;  %v1611_v53 = vrot.slane %v1513_v50, 1  ;;  %v1854_v41 = vrot.slane %v1756_v52, 2  ;;  %v1855_v54 = vrot.slane %v1757_v40, 2 }
 0x118   : > { %v3937_v15 = vpop.f32.mrb[23].mxu0  ;;  %v1475_v24 = vadd.f32 %v1443_v62, %v1407_v36  ;;  %v2069_v23 = vmul.f32 %v3714_v39, %v3836_v47  ;;  %3410 = vmatprep.mubr.msk.f32.mxu1 %vm2621_vm3, %v2581_v57  ;;  %v2312_v56 = vmul.f32 %v3792_v10, %v3776_v61  ;;  %v2313_v62 = vmul.f32 %v3792_v10, %v3836_v47 }
 0x119   : > { %v2550_v18 = vmax.f32 %v2518_v33, 0.0  ;;  %v1612_v59 = vsel %vm1047_vm1, %v1610_v16, %v1611_v53  ;;  %v1856_v32 = vsel %vm1292_vm2, %v1854_v41, %v1855_v54  ;;  %v2166_v36 = vrot.slane %v2068_v4, 1 }
 0x11a   : > { %v1719_v34 = vadd.f32 %v1612_v59, %v1475_v24  ;;  %v2167_v50 = vrot.slane %v2069_v23, 1  ;;  %v2410_v40 = vrot.slane %v2312_v56, 2  ;;  %v2411_v60 = vrot.slane %v2313_v62, 2  ;;  %v4005_v56 = vpop.f32.mrb[0].mxu1 }
 0x11b   : > { %v3949_v63 = vpop.f32.mrb[24].mxu0  ;;  %v2582_v52 = vmin.f32 %v2550_v18, 6.0  ;;  %v822_v57 = vmax.f32 %v3345_v38, 0.0  ;;  %v821_v2 = vmax.f32 %v632_v26, 0.0  ;;  %v5512_v9 = vrot.slane %v3762_v35, 2  ;;  %5517 = vst [vmem:[#allocation13_spill] sm:$0xff] %v4005_v56 }
 0x11c   : > { %v3957_v51 = vpop.f32.mrb[25].mxu0  ;;  %v1963_v33 = vadd.f32 %v1856_v32, %v1719_v34  ;;  %v2168_v16 = vsel %vm1047_vm1, %v2166_v36, %v2167_v50  ;;  %v2412_v24 = vsel %vm1292_vm2, %v2410_v40, %v2411_v60  ;;  %v1444_v4 = vmul.f32 %v3704_v29, %v3745_v14 }
 0x11d   : > { %v1302_v3 = vsel %vm1292_vm2, %v5512_v9, %v5511_v8  ;;  %3411 = vmatmul.mubr.msk.f32.vlgmr.msra.gmra.mrb[10].mxu1 %vm2621_vm3, %v2582_v52  ;;  %v3970_v41 = vmin.f32 %v822_v57, 6.0  ;;  %v3977_v23 = vmin.f32 %v821_v2, 6.0  ;;  %v5513_v35 = vrot.slane %v3801_v13, 1 }
 0x11e   : > { %v1408_v38 = vadd.f32 %v1302_v3, %v3774_v55  ;;  %v2031_v21 = vadd.f32 %v1999_v0, %v1963_v33  ;;  %v5514_v9 = vrot.slane %v3804_v17, 2  ;;  %v2000_v55 = vmul.f32 %v3716_v43, %v3836_v47  ;;  %v4067_v33 = vpop.f32.mrb[1].mxu1 }
 0x11f   : > { %v3966_v49 = vpop.f32.mrb[26].mxu0  ;;  %v1614_v8 = vsel %vm1047_vm1, %v1611_v53, %v5513_v35  ;;  %v2070_v3 = vmul.f32 %v3714_v39, %v3784_v5  ;;  %v2314_v0 = vmul.f32 %v3792_v10, %v3784_v5  ;;  %v3993_v13 = vmul.f32 %v3698_v19, %v3977_v23  ;;  %5523 = vst [vmem:[#allocation19_spill] sm:$0xff] %v4067_v33 }
 0x120   : > { %v3975_v26 = vpop.f32.mrb[27].mxu0  ;;  %v1858_v18 = vsel %vm1292_vm2, %v1855_v54, %v5514_v9  ;;  %v1476_v59 = vadd.f32 %v1444_v4, %v1408_v38  ;;  %v2275_v2 = vadd.f32 %v2168_v16, %v2031_v21  ;;  %v3997_v17 = vmul.f32 %v3700_v20, %v3977_v23 }
 0x121   : > { %5515 = vst [vmem:[#allocation11_spill] sm:$0xff] %v3993_v13  ;;  %v4001_v53 = vmul.f32 %v3706_v30, %v3977_v23  ;;  %v4009_v5 = vmul.f32 %v3708_v31, %v3977_v23  ;;  %v2169_v34 = vrot.slane %v2070_v3, 1  ;;  %v2413_v32 = vrot.slane %v2314_v0, 2 }
 0x122   : > { %5516 = vst [vmem:[#allocation12_spill] sm:$0xff] %v3997_v17  ;;  %v1720_v62 = vadd.f32 %v1614_v8, %v1476_v59  ;;  %v2519_v52 = vadd.f32 %v2412_v24, %v2275_v2  ;;  %v824_v8 = vmax.f32 %v3933_v27, 0.0  ;;  %v823_v9 = vmax.f32 %v3937_v15, 0.0 }
 0x123   : > { %v4003_v54 = vpop.f32.mrb[28].mxu0  ;;  %v2170_v4 = vsel %vm1047_vm1, %v2167_v50, %v2169_v34  ;;  %v2414_v21 = vsel %vm1292_vm2, %v2411_v60, %v2413_v32  ;;  %v919_v24 = vmul.f32 %v3702_v25, %v3769_v45  ;;  %v957_v0 = vmul.f32 %v3698_v19, %v3769_v45 }
 0x124   : > { %v4011_v36 = vpop.f32.mrb[29].mxu0  ;;  %v1964_v38 = vadd.f32 %v1858_v18, %v1720_v62  ;;  %v2551_v35 = vmax.f32 %v2519_v52, 0.0  ;;  %v958_v18 = vmul.f32 %v3698_v19, %v3745_v14  ;;  %v1202_v60 = vmul.f32 %v3700_v20, %v3769_v45 }
 0x125   : > { %v4033_v2 = vmin.f32 %v824_v8, 6.0  ;;  %v4035_v15 = vmin.f32 %v823_v9, 6.0  ;;  %v1203_v62 = vmul.f32 %v3700_v20, %v3745_v14  ;;  %v1058_v34 = vrot.slane %v957_v0, 1 }
 0x126   : > { %v2032_v3 = vadd.f32 %v2000_v55, %v1964_v38  ;;  %v2583_v27 = vmin.f32 %v2551_v35, 6.0  ;;  %v1059_v32 = vrot.slane %v958_v18, 1  ;;  %v1303_v52 = vrot.slane %v1202_v60, 2 }
 0x127   : > { %v4023_v59 = vpop.f32.mrb[30].mxu0  ;;  %5518 = vst [vmem:[#allocation14_spill] sm:$0xff] %v4033_v2  ;;  %v4042_v38 = vmul.f32 %v3698_v19, %v4033_v2  ;;  %v4046_v45 = vmul.f32 %v3700_v20, %v4033_v2  ;;  %v4050_v35 = vmul.f32 %v3706_v30, %v4033_v2  ;;  %v1304_v0 = vrot.slane %v1203_v62, 2 }
 0x128   : > { %v4031_v50 = vpop.f32.mrb[31].mxu0  ;;  %v2276_v55 = vadd.f32 %v2170_v4, %v2032_v3  ;;  %3413 = vmatprep.mubr.msk.f32.mxu1 %vm2621_vm3, %v2583_v27  ;;  %v4054_v4 = vmul.f32 %v3708_v31, %v4033_v2  ;;  %v1060_v3 = vsel %vm1047_vm1, %v1058_v34, %v1059_v32  ;;  %v1445_v18 = vmul.f32 %v3704_v29, %v3776_v61  ;;  %v4072_v34 = vpop.f32.mrb[2].mxu1 }
 0x129   : > { %5519 = vst [vmem:[#allocation15_spill] sm:$0xff] %v4042_v38  ;;  %5520 = vst [vmem:[#allocation16_spill] sm:$0xff] %v4046_v45  ;;  %v1515_v62 = vmul.f32 %v3706_v30, %v3776_v61  ;;  %v1516_v27 = vmul.f32 %v3706_v30, %v3836_v47  ;;  %v1759_v57 = vmul.f32 %v3708_v31, %v3776_v61 }
 0x12a   : > { %5521 = vst [vmem:[#allocation17_spill] sm:$0xff] %v4050_v35  ;;  %5522 = vst [vmem:[#allocation18_spill] sm:$0xff] %v4054_v4  ;;  %v2520_v9 = vadd.f32 %v2414_v21, %v2276_v55  ;;  %v1164_v21 = vadd.f32 %v1060_v3, %v919_v24  ;;  %v1305_v55 = vsel %vm1292_vm2, %v1303_v52, %v1304_v0  ;;  %v4084_v52 = vpop.f32.mrb[3].mxu1 }
 0x12b   : > { %v4056_v8 = vpop.f32.mrb[32].mxu0  ;;  %5524 = vst [vmem:[#allocation20_spill] sm:$0xff] %v4072_v34  ;;  %v1760_v16 = vmul.f32 %v3708_v31, %v3836_v47  ;;  %5526 = vst [vmem:[#allocation22_spill] sm:$0xff] %v4084_v52  ;;  %v1615_v33 = vrot.slane %v1515_v62, 1  ;;  %v2071_v34 = vmul.f32 %v3714_v39, %v3846_v37  ;;  %v1616_v38 = vrot.slane %v1516_v27, 1 }
 0x12c   : > { %v4061_v60 = vpop.f32.mrb[33].mxu0  ;;  %v2552_v56 = vmax.f32 %v2520_v9, 0.0  ;;  %v2001_v9 = vmul.f32 %v3716_v43, %v3846_v37  ;;  %v1409_v40 = vadd.f32 %v1305_v55, %v1164_v21  ;;  %v1859_v4 = vrot.slane %v1759_v57, 2 }
 0x12d   : > { %v1860_v35 = vrot.slane %v1760_v16, 2  ;;  %v2072_v17 = vmul.f32 %v3714_v39, %v3844_v42  ;;  %v2316_v21 = vmul.f32 %v3792_v10, %v3844_v42  ;;  %v1617_v55 = vsel %vm1047_vm1, %v1615_v33, %v1616_v38 }
 0x12e   : > { %v2584_v3 = vmin.f32 %v2552_v56, 6.0  ;;  %v1477_v13 = vadd.f32 %v1445_v18, %v1409_v40  ;;  %v2315_v56 = vmul.f32 %v3792_v10, %v3846_v37  ;;  %v920_v57 = vmul.f32 %v3702_v25, %v3745_v14 }
 0x12f   : > { %v4082_v24 = vpop.f32.mrb[34].mxu0  ;;  %v1861_v62 = vsel %vm1292_vm2, %v1859_v4, %v1860_v35  ;;  %v2172_v27 = vrot.slane %v2072_v17, 1  ;;  %v2416_v40 = vrot.slane %v2316_v21, 2  ;;  %v5529_v18 = vrot.slane %v3795_v11, 1 }
 0x130   : > { %5525 = vst [vmem:[#allocation21_spill] sm:$0xff] %v4082_v24  ;;  %v4088_v45 = vpop.f32.mrb[35].mxu0  ;;  %3414 = vmatmul.mubr.msk.f32.gmra.mrb[12].mxu1 %vm2621_vm3, %v2584_v3  ;;  %v2171_v24 = vrot.slane %v2071_v34, 1  ;;  %v1721_v52 = vadd.f32 %v1617_v55, %v1477_v13  ;;  %v2415_v3 = vrot.slane %v2315_v56, 2  ;;  %v5530_v4 = vrot.slane %v3798_v12, 2 }
 0x131   : > { %5527 = vst [vmem:[#allocation23_spill] sm:$0xff] %v4088_v45  ;;  %v1062_v34 = vsel %vm1047_vm1, %v1059_v32, %v5529_v18  ;;  %v1446_v14 = vmul.f32 %v3704_v29, %v3836_v47  ;;  %v5531_v56 = vrot.slane %v3830_v44, 1  ;;  %v5532_v32 = vrot.slane %v3834_v46, 2 }
 0x132   : > { %v2173_v2 = vsel %vm1047_vm1, %v2171_v24, %v2172_v27  ;;  %v1165_v33 = vadd.f32 %v1062_v34, %v920_v57  ;;  %v1307_v17 = vsel %vm1292_vm2, %v1304_v0, %v5530_v4  ;;  %v2417_v13 = vsel %vm1292_vm2, %v2415_v3, %v2416_v40 }
 0x133   : > { %v4101_v16 = vpop.f32.mrb[36].mxu0  ;;  %v1619_v11 = vsel %vm1047_vm1, %v1616_v38, %v5531_v56  ;;  %v1863_v21 = vsel %vm1292_vm2, %v1860_v35, %v5532_v32  ;;  %v2002_v12 = vmul.f32 %v3716_v43, %v3844_v42  ;;  %v2073_v0 = vmul.f32 %v3714_v39, %v3850_v6 }
 0x134   : > { %5528 = vst [vmem:[#allocation24_spill] sm:$0xff] %v4101_v16  ;;  %v4106_v45 = vpop.f32.mrb[37].mxu0  ;;  %v1965_v16 = vadd.f32 %v1861_v62, %v1721_v52  ;;  %v1410_v24 = vadd.f32 %v1307_v17, %v1165_v33  ;;  %v2317_v52 = vmul.f32 %v3792_v10, %v3850_v6  ;;  %v826_v44 = vmax.f32 %v3949_v63, 0.0 }
 0x135   : > { %v825_v38 = vmax.f32 %v3957_v51, 0.0  ;;  %v921_v46 = vmul.f32 %v3702_v25, %v3776_v61  ;;  %v2174_v3 = vrot.slane %v2073_v0, 1  ;;  %v960_v34 = vmul.f32 %v3698_v19, %v3776_v61 }
 0x136   : > { %v2033_v62 = vadd.f32 %v2001_v9, %v1965_v16  ;;  %v1478_v57 = vadd.f32 %v1446_v14, %v1410_v24  ;;  %v2418_v18 = vrot.slane %v2317_v52, 2  ;;  %v4137_v6 = vmin.f32 %v826_v44, 6.0 }
 0x137   : > { %v4127_v55 = vpop.f32.mrb[38].mxu0  ;;  %v4139_v4 = vmin.f32 %v825_v38, 6.0  ;;  %v961_v63 = vmul.f32 %v3698_v19, %v3836_v47  ;;  %v2175_v9 = vsel %vm1047_vm1, %v2172_v27, %v2174_v3  ;;  %v1063_v17 = vrot.slane %v960_v34, 1 }
 0x138   : > { %v4133_v35 = vpop.f32.mrb[39].mxu0  ;;  %v2277_v33 = vadd.f32 %v2173_v2, %v2033_v62  ;;  %v1722_v51 = vadd.f32 %v1619_v11, %v1478_v57  ;;  %v2419_v16 = vsel %vm1292_vm2, %v2416_v40, %v2418_v18  ;;  %v1205_v2 = vmul.f32 %v3700_v20, %v3776_v61 }
 0x139   : > { %v1064_v32 = vrot.slane %v961_v63, 1  ;;  %v1206_v24 = vmul.f32 %v3700_v20, %v3836_v47  ;;  %v1447_v11 = vmul.f32 %v3704_v29, %v3846_v37  ;;  %v1518_v27 = vmul.f32 %v3706_v30, %v3846_v37 }
 0x13a   : > { %v2521_v56 = vadd.f32 %v2417_v13, %v2277_v33  ;;  %v1966_v52 = vadd.f32 %v1863_v21, %v1722_v51  ;;  %v1519_v40 = vmul.f32 %v3706_v30, %v3844_v42  ;;  %v1308_v44 = vrot.slane %v1205_v2, 2 }
 0x13b   : > { %v4145_v14 = vpop.f32.mrb[40].mxu0  ;;  %v1065_v62 = vsel %vm1047_vm1, %v1063_v17, %v1064_v32  ;;  %v1309_v61 = vrot.slane %v1206_v24, 2  ;;  %v1620_v3 = vrot.slane %v1518_v27, 1  ;;  %v1762_v33 = vmul.f32 %v3708_v31, %v3846_v37 }
 0x13c   : > { %v4151_v0 = vpop.f32.mrb[41].mxu0  ;;  %v2553_v13 = vmax.f32 %v2521_v56, 0.0  ;;  %v2034_v38 = vadd.f32 %v2002_v12, %v1966_v52  ;;  %v1166_v57 = vadd.f32 %v1065_v62, %v921_v46  ;;  %v1621_v18 = vrot.slane %v1519_v40, 1 }
 0x13d   : > { %5533 = vst [vmem:[#allocation25_spill] sm:$0xff] %v4151_v0  ;;  %v1310_v21 = vsel %vm1292_vm2, %v1308_v44, %v1309_v61  ;;  %v1763_v63 = vmul.f32 %v3708_v31, %v3844_v42  ;;  %v2003_v17 = vmul.f32 %v3716_v43, %v3848_v1  ;;  %v1864_v12 = vrot.slane %v1762_v33, 2 }
 0x13e   : > { %v2585_v34 = vmin.f32 %v2553_v13, 6.0  ;;  %v2278_v51 = vadd.f32 %v2175_v9, %v2034_v38  ;;  %v1411_v0 = vadd.f32 %v1310_v21, %v1166_v57  ;;  %v1622_v56 = vsel %vm1047_vm1, %v1620_v3, %v1621_v18 }
 0x13f   : > { %v1865_v46 = vrot.slane %v1763_v63, 2  ;;  %v2074_v2 = vmul.f32 %v3714_v39, %v3848_v1  ;;  %v2075_v24 = vmul.f32 %v3714_v39, %v3894_v48  ;;  %v2318_v9 = vmul.f32 %v3792_v10, %v3848_v1  ;;  %v4185_v63 = vpop.f32.mrb[42].mxu0 }
 0x140   : > { %3416 = vmatprep.mubr.msk.f32.mxu1 %vm2621_vm3, %v2585_v34  ;;  %v2522_v52 = vadd.f32 %v2419_v16, %v2278_v51  ;;  %v1479_v27 = vadd.f32 %v1447_v11, %v1411_v0  ;;  %v2319_v40 = vmul.f32 %v3792_v10, %v3894_v48  ;;  %v828_v38 = vmax.f32 %v3966_v49, 0.0  ;;  %5534 = vst [vmem:[#allocation26_spill] sm:$0xff] %v4185_v63  ;;  %v4187_v51 = vpop.f32.mrb[4].mxu1 }
 0x141   : > { %v1866_v13 = vsel %vm1292_vm2, %v1864_v12, %v1865_v46  ;;  %v2176_v62 = vrot.slane %v2074_v2, 1  ;;  %v2177_v44 = vrot.slane %v2075_v24, 1  ;;  %v2420_v34 = vrot.slane %v2318_v9, 2  ;;  %5535 = vst [vmem:[#allocation27_spill] sm:$0xff] %v4187_v51 }
 0x142   : > { %v2554_v57 = vmax.f32 %v2522_v52, 0.0  ;;  %v1723_v3 = vadd.f32 %v1622_v56, %v1479_v27  ;;  %v2421_v21 = vrot.slane %v2319_v40, 2  ;;  %v4180_v16 = vmin.f32 %v828_v38, 6.0  ;;  %v4193_v52 = vpop.f32.mrb[43].mxu0  ;;  %v4195_v27 = vpop.f32.mrb[5].mxu1 }
 0x143   : > { %v2178_v33 = vsel %vm1047_vm1, %v2176_v62, %v2177_v44  ;;  %v827_v0 = vmax.f32 %v3975_v26, 0.0  ;;  %v922_v11 = vmul.f32 %v3702_v25, %v3836_v47  ;;  %v5536_v56 = vrot.slane %v3814_v22, 1  ;;  %5537 = vst [vmem:[#allocation28_spill] sm:$0xff] %v4193_v52  ;;  %5538 = vst [vmem:[#allocation29_spill] sm:$0xff] %v4195_v27 }
 0x144   : > { %v2586_v12 = vmin.f32 %v2554_v57, 6.0  ;;  %v1967_v2 = vadd.f32 %v1866_v13, %v1723_v3  ;;  %v2422_v49 = vsel %vm1292_vm2, %v2420_v34, %v2421_v21  ;;  %v5539_v47 = vrot.slane %v3821_v28, 2 }
 0x145   : > { %v1067_v24 = vsel %vm1047_vm1, %v1064_v32, %v5536_v56  ;;  %v4197_v26 = vmin.f32 %v827_v0, 6.0  ;;  %v1448_v13 = vmul.f32 %v3704_v29, %v3844_v42  ;;  %v5540_v22 = vrot.slane %v3866_v58, 1 }
 0x146   : > { %v1167_v9 = vadd.f32 %v1067_v24, %v922_v11  ;;  %v1312_v40 = vsel %vm1292_vm2, %v1309_v61, %v5539_v47  ;;  %3417 = vmatmul.mubr.msk.f32.gmra.mrb[14].mxu1 %vm2621_vm3, %v2586_v12  ;;  %v2035_v62 = vadd.f32 %v2003_v17, %v1967_v2  ;;  %v5541_v38 = vrot.slane %v3870_v7, 2 }
 0x147   : > { %v1624_v32 = vsel %vm1047_vm1, %v1621_v18, %v5540_v22  ;;  %v2004_v3 = vmul.f32 %v3716_v43, %v3894_v48  ;;  %v4215_v28 = vmul.f32 %v3698_v19, %v4197_v26  ;;  %v4219_v61 = vmul.f32 %v3700_v20, %v4197_v26 }
 0x148   : > { %v1868_v57 = vsel %vm1292_vm2, %v1865_v46, %v5541_v38  ;;  %v4223_v58 = vmul.f32 %v3706_v30, %v4197_v26  ;;  %v4227_v7 = vmul.f32 %v3708_v31, %v4197_v26  ;;  %v2279_v18 = vadd.f32 %v2178_v33, %v2035_v62  ;;  %v5542_v46 = vld [vmem:[#allocation4_spill] sm:$0xff] }
 0x149   : > { %v1412_v17 = vadd.f32 %v1312_v40, %v1167_v9  ;;  %v2076_v34 = vmul.f32 %v3714_v39, %v5542_v46  ;;  %v2320_v0 = vmul.f32 %v3792_v10, %v5542_v46  ;;  %v830_v33 = vmax.f32 %v4003_v54, 0.0 }
 0x14a   : > { %v2523_v24 = vadd.f32 %v2422_v49, %v2279_v18  ;;  %v829_v9 = vmax.f32 %v4011_v36, 0.0  ;;  %v923_v40 = vmul.f32 %v3702_v25, %v3846_v37  ;;  %v963_v62 = vmul.f32 %v3698_v19, %v3846_v37 }
 0x14b   : > { %v1480_v47 = vadd.f32 %v1448_v13, %v1412_v17  ;;  %v2179_v22 = vrot.slane %v2076_v34, 1  ;;  %v2423_v38 = vrot.slane %v2320_v0, 2  ;;  %v4245_v49 = vmin.f32 %v830_v33, 6.0 }
 0x14c   : > { %v2555_v46 = vmax.f32 %v2523_v24, 0.0  ;;  %v4247_v13 = vmin.f32 %v829_v9, 6.0  ;;  %v964_v54 = vmul.f32 %v3698_v19, %v3844_v42  ;;  %v1068_v36 = vrot.slane %v963_v62, 1 }
 0x14d   : > { %v1724_v12 = vadd.f32 %v1624_v32, %v1480_v47  ;;  %v2180_v11 = vsel %vm1047_vm1, %v2177_v44, %v2179_v22  ;;  %v2424_v56 = vsel %vm1292_vm2, %v2421_v21, %v2423_v38  ;;  %v1208_v34 = vmul.f32 %v3700_v20, %v3846_v37  ;;  %v4272_v22 = vpop.f32.mrb[6].mxu1 }
 0x14e   : > { %v2587_v18 = vmin.f32 %v2555_v46, 6.0  ;;  %v1209_v32 = vmul.f32 %v3700_v20, %v3844_v42  ;;  %v4257_v44 = vmul.f32 %v3698_v19, %v4245_v49  ;;  %v4261_v21 = vmul.f32 %v3700_v20, %v4245_v49  ;;  %5546 = vst [vmem:[#allocation32_spill] sm:$0xff] %v4272_v22 }
 0x14f   : > { %v1968_v17 = vadd.f32 %v1868_v57, %v1724_v12  ;;  %v4265_v0 = vmul.f32 %v3706_v30, %v4245_v49  ;;  %v4269_v57 = vmul.f32 %v3708_v31, %v4245_v49  ;;  %v1069_v12 = vrot.slane %v964_v54, 1  ;;  %v4282_v54 = vpop.f32.mrb[7].mxu1 }
 0x150   : > { %5543 = vst [vmem:[#allocation4_spill] sm:$0xff] %v4257_v44  ;;  %5544 = vst [vmem:[#allocation30_spill] sm:$0xff] %v4261_v21  ;;  %3419 = vmatprep.mubr.msk.f32.mxu1 %vm2621_vm3, %v2587_v18  ;;  %v1313_v24 = vrot.slane %v1208_v34, 2  ;;  %v1314_v47 = vrot.slane %v1209_v32, 2  ;;  %v1522_v34 = vmul.f32 %v3706_v30, %v3894_v48  ;;  %v1765_v32 = vmul.f32 %v3708_v31, %v3848_v1  ;;  %v5549_v44 = vld [vmem:[#allocation9_spill] sm:$0xff] }
 0x151   : > { %5545 = vst [vmem:[#allocation31_spill] sm:$0xff] %v4269_v57  ;;  %v2036_v37 = vadd.f32 %v2004_v3, %v1968_v17  ;;  %v1070_v2 = vsel %vm1047_vm1, %v1068_v36, %v1069_v12  ;;  %v1449_v3 = vmul.f32 %v3704_v29, %v3848_v1  ;;  %5547 = vst [vmem:[#allocation33_spill] sm:$0xff] %v4282_v54  ;;  %v5552_v57 = vld [vmem:[#allocation3_spill] sm:$0xff] }
 0x152   : > { %v1315_v27 = vsel %vm1292_vm2, %v1313_v24, %v1314_v47  ;;  %v1168_v18 = vadd.f32 %v1070_v2, %v923_v40  ;;  %v1521_v17 = vmul.f32 %v3706_v30, %v3848_v1  ;;  %v1766_v36 = vmul.f32 %v3708_v31, %v3894_v48 }
 0x153   : > { %v2280_v46 = vadd.f32 %v2180_v11, %v2036_v37  ;;  %v5548_v37 = vld [vmem:[#allocation10_spill] sm:$0xff]  ;;  %v1626_v38 = vrot.slane %v1522_v34, 1  ;;  %v1869_v62 = vrot.slane %v1765_v32, 2  ;;  %v2078_v54 = vmul.f32 %v3714_v39, %v5549_v44 }
 0x154   : > { %v2005_v24 = vmul.f32 %v3716_v43, %v5548_v37  ;;  %v2077_v33 = vmul.f32 %v3714_v39, %v5548_v37  ;;  %v1413_v2 = vadd.f32 %v1315_v27, %v1168_v18  ;;  %v1625_v40 = vrot.slane %v1521_v17, 1 }
 0x155   : > { %v2524_v11 = vadd.f32 %v2424_v56, %v2280_v46  ;;  %v1870_v21 = vrot.slane %v1766_v36, 2  ;;  %v2321_v51 = vmul.f32 %v3792_v10, %v5548_v37  ;;  %v2322_v52 = vmul.f32 %v3792_v10, %v5549_v44 }
 0x156   : > { %v2181_v22 = vrot.slane %v2077_v33, 1  ;;  %v1481_v56 = vadd.f32 %v1449_v3, %v1413_v2  ;;  %v1627_v46 = vsel %vm1047_vm1, %v1625_v40, %v1626_v38  ;;  %v2182_v18 = vrot.slane %v2078_v54, 1  ;;  %v5550_v33 = vld [vmem:[#allocation2_spill] sm:$0xff] }
 0x157   : > { %v2556_v9 = vmax.f32 %v2524_v11, 0.0  ;;  %v1871_v27 = vsel %vm1292_vm2, %v1869_v62, %v1870_v21  ;;  %v924_v17 = vmul.f32 %v3702_v25, %v3844_v42  ;;  %v2425_v32 = vrot.slane %v2321_v51, 2 }
 0x158   : > { %v1725_v34 = vadd.f32 %v1627_v46, %v1481_v56  ;;  %v2426_v11 = vrot.slane %v2322_v52, 2  ;;  %v5551_v3 = vrot.slane %v5550_v33, 1  ;;  %v2183_v2 = vsel %vm1047_vm1, %v2181_v22, %v2182_v18  ;;  %v5554_v52 = vld [vmem:[#allocation7_spill] sm:$0xff] }
 0x159   : > { %v2588_v63 = vmin.f32 %v2556_v9, 6.0  ;;  %v5553_v9 = vrot.slane %v5552_v57, 2  ;;  %v1450_v54 = vmul.f32 %v3704_v29, %v3894_v48  ;;  %v5555_v56 = vrot.slane %v5554_v52, 1 }
 0x15a   : > { %v1072_v36 = vsel %vm1047_vm1, %v1069_v12, %v5551_v3  ;;  %v1969_v42 = vadd.f32 %v1871_v27, %v1725_v34  ;;  %v2427_v51 = vsel %vm1292_vm2, %v2425_v32, %v2426_v11  ;;  %v5556_v12 = vld [vmem:[#allocation8_spill] sm:$0xff]  ;;  %v2006_v57 = vmul.f32 %v3716_v43, %v5549_v44 }
 0x15b   : > { %3420 = vmatmul.mubr.msk.f32.gmra.mrb[16].mxu1 %vm2621_vm3, %v2588_v63  ;;  %v1169_v40 = vadd.f32 %v1072_v36, %v924_v17  ;;  %v1317_v62 = vsel %vm1292_vm2, %v1314_v47, %v5553_v9  ;;  %v1629_v46 = vsel %vm1047_vm1, %v1626_v38, %v5555_v56  ;;  %v5557_v33 = vrot.slane %v5556_v12, 2 }
 0x15c   : > { %v2079_v47 = vmul.f32 %v3714_v39, %v3977_v23  ;;  %v2323_v27 = vmul.f32 %v3792_v10, %v3977_v23  ;;  %v2037_v17 = vadd.f32 %v2005_v24, %v1969_v42  ;;  %v832_v34 = vmax.f32 %v4023_v59, 0.0 }
 0x15d   : > { %v1873_v63 = vsel %vm1292_vm2, %v1870_v21, %v5557_v33  ;;  %v1414_v22 = vadd.f32 %v1317_v62, %v1169_v40  ;;  %v831_v32 = vmax.f32 %v4031_v50, 0.0  ;;  %v925_v38 = vmul.f32 %v3702_v25, %v3848_v1 }
 0x15e   : > { %v2184_v21 = vrot.slane %v2079_v47, 1  ;;  %v2428_v36 = vrot.slane %v2323_v27, 2  ;;  %v966_v40 = vmul.f32 %v3698_v19, %v3848_v1  ;;  %v2281_v9 = vadd.f32 %v2183_v2, %v2037_v17 }
 0x15f   : > { %v1482_v3 = vadd.f32 %v1450_v54, %v1414_v22  ;;  %v4335_v62 = vmin.f32 %v832_v34, 6.0  ;;  %v4337_v52 = vmin.f32 %v831_v32, 6.0  ;;  %v967_v23 = vmul.f32 %v3698_v19, %v3894_v48 }
 0x160   : > { %v2185_v50 = vsel %vm1047_vm1, %v2182_v18, %v2184_v21  ;;  %v2429_v24 = vsel %vm1292_vm2, %v2426_v11, %v2428_v36  ;;  %v1073_v42 = vrot.slane %v966_v40, 1  ;;  %v2525_v54 = vadd.f32 %v2427_v51, %v2281_v9  ;;  %v4353_v11 = vpop.f32.mrb[8].mxu1 }
 0x161   : > { %v1726_v59 = vadd.f32 %v1629_v46, %v1482_v3  ;;  %v1074_v56 = vrot.slane %v967_v23, 1  ;;  %v1211_v12 = vmul.f32 %v3700_v20, %v3848_v1  ;;  %v1212_v2 = vmul.f32 %v3700_v20, %v3894_v48  ;;  %v4356_v17 = vpop.f32.mrb[9].mxu1 }
 0x162   : > { %v1451_v22 = vmul.f32 %v3704_v29, %v5548_v37  ;;  %v1524_v46 = vmul.f32 %v3706_v30, %v5548_v37  ;;  %v1525_v18 = vmul.f32 %v3706_v30, %v5549_v44  ;;  %v2557_v51 = vmax.f32 %v2525_v54, 0.0 }
 0x163   : > { %v1970_v33 = vadd.f32 %v1873_v63, %v1726_v59  ;;  %v1075_v47 = vsel %vm1047_vm1, %v1073_v42, %v1074_v56  ;;  %v1318_v27 = vrot.slane %v1211_v12, 2  ;;  %v1319_v1 = vrot.slane %v1212_v2, 2 }
 0x164   : > { %v1170_v63 = vadd.f32 %v1075_v47, %v925_v38  ;;  %v1630_v32 = vrot.slane %v1524_v46, 1  ;;  %v1631_v3 = vrot.slane %v1525_v18, 1  ;;  %v2589_v21 = vmin.f32 %v2557_v51, 6.0 }
 0x165   : > { %v2038_v34 = vadd.f32 %v2006_v57, %v1970_v33  ;;  %v1320_v36 = vsel %vm1292_vm2, %v1318_v27, %v1319_v1  ;;  %v1768_v40 = vmul.f32 %v3708_v31, %v5548_v37  ;;  %v1769_v9 = vmul.f32 %v3708_v31, %v5549_v44 }
 0x166   : > { %v1415_v59 = vadd.f32 %v1320_v36, %v1170_v63  ;;  %v1632_v42 = vsel %vm1047_vm1, %v1630_v32, %v1631_v3  ;;  %v2007_v54 = vmul.f32 %v3716_v43, %v3970_v41  ;;  %3422 = vmatprep.mubr.msk.f32.mxu1 %vm2621_vm3, %v2589_v21  ;;  %v2080_v12 = vmul.f32 %v3714_v39, %v3970_v41 }
 0x167   : > { %v2282_v23 = vadd.f32 %v2185_v50, %v2038_v34  ;;  %v1874_v57 = vrot.slane %v1768_v40, 2  ;;  %v1875_v38 = vrot.slane %v1769_v9, 2  ;;  %v2081_v2 = vmul.f32 %v3714_v39, %v4035_v15 }
 0x168   : > { %v1483_v46 = vadd.f32 %v1451_v22, %v1415_v59  ;;  %v2324_v50 = vmul.f32 %v3792_v10, %v3970_v41  ;;  %v2325_v18 = vmul.f32 %v3792_v10, %v4035_v15  ;;  %v2186_v47 = vrot.slane %v2080_v12, 1  ;;  %v5558_v12 = vld [vmem:[#allocation5_spill] sm:$0xff] }
 0x169   : > { %v2526_v33 = vadd.f32 %v2429_v24, %v2282_v23  ;;  %v1876_v51 = vsel %vm1292_vm2, %v1874_v57, %v1875_v38  ;;  %v2187_v27 = vrot.slane %v2081_v2, 1  ;;  %v834_v34 = vmax.f32 %v4056_v8, 0.0 }
 0x16a   : > { %v1727_v32 = vadd.f32 %v1632_v42, %v1483_v46  ;;  %v2430_v21 = vrot.slane %v2324_v50, 2  ;;  %v2431_v36 = vrot.slane %v2325_v18, 2  ;;  %v833_v22 = vmax.f32 %v4061_v60, 0.0  ;;  %v5560_v46 = vld [vmem:[#allocation6_spill] sm:$0xff] }
 0x16b   : > { %v2558_v63 = vmax.f32 %v2526_v33, 0.0  ;;  %v2188_v40 = vsel %vm1047_vm1, %v2186_v47, %v2187_v27  ;;  %v4378_v24 = vmin.f32 %v834_v34, 6.0  ;;  %v926_v9 = vmul.f32 %v3702_v25, %v3894_v48 }
 0x16c   : > { %v1971_v59 = vadd.f32 %v1876_v51, %v1727_v32  ;;  %v2432_v57 = vsel %vm1292_vm2, %v2430_v21, %v2431_v36  ;;  %v5559_v2 = vrot.slane %v5558_v12, 1  ;;  %v4387_v42 = vmin.f32 %v833_v22, 6.0 }
 0x16d   : > { %v2590_v23 = vmin.f32 %v2558_v63, 6.0  ;;  %v5561_v50 = vrot.slane %v5560_v46, 2  ;;  %v1452_v60 = vmul.f32 %v3704_v29, %v5549_v44  ;;  %v5562_v51 = vrot.slane %v4001_v53, 1 }
 0x16e   : > { %v1077_v8 = vsel %vm1047_vm1, %v1074_v56, %v5559_v2  ;;  %v2039_v48 = vadd.f32 %v2007_v54, %v1971_v59  ;;  %v5563_v34 = vrot.slane %v4009_v5, 2  ;;  %v2008_v63 = vmul.f32 %v3716_v43, %v4035_v15 }
 0x16f   : > { %v1171_v33 = vadd.f32 %v1077_v8, %v926_v9  ;;  %v1322_v18 = vsel %vm1292_vm2, %v1319_v1, %v5561_v50  ;;  %3423 = vmatmul.mubr.msk.f32.gmra.mrb[18].mxu1 %vm2621_vm3, %v2590_v23  ;;  %v1634_v47 = vsel %vm1047_vm1, %v1631_v3, %v5562_v51  ;;  %v4405_v1 = vmul.f32 %v3698_v19, %v4387_v42 }
 0x170   : > { %v1878_v56 = vsel %vm1292_vm2, %v1875_v38, %v5563_v34  ;;  %v4409_v32 = vmul.f32 %v3700_v20, %v4387_v42  ;;  %v4413_v53 = vmul.f32 %v3706_v30, %v4387_v42  ;;  %v4417_v5 = vmul.f32 %v3708_v31, %v4387_v42  ;;  %v5565_v38 = vld [vmem:[#allocation14_spill] sm:$0xff] }
 0x171   : > { %v2283_v3 = vadd.f32 %v2188_v40, %v2039_v48  ;;  %v1416_v54 = vadd.f32 %v1322_v18, %v1171_v33  ;;  %v2082_v21 = vmul.f32 %v3714_v39, %v5565_v38  ;;  %v2326_v22 = vmul.f32 %v3792_v10, %v5565_v38  ;;  %v5566_v40 = vld [vmem:[#allocation21_spill] sm:$0xff]  ;;  %v5567_v18 = vld [vmem:[#allocation23_spill] sm:$0xff] }
 0x172   : > { %5564 = vst [vmem:[#allocation10_spill] sm:$0xff] %v4409_v32  ;;  %v836_v33 = vmax.f32 %v5566_v40, 0.0  ;;  %v835_v48 = vmax.f32 %v5567_v18, 0.0  ;;  %v927_v51 = vmul.f32 %v3702_v25, %v5548_v37  ;;  %v969_v10 = vmul.f32 %v3698_v19, %v5548_v37  ;;  %v5574_v32 = vld [vmem:[#allocation12_spill] sm:$0xff] }
 0x173   : > { %v2527_v2 = vadd.f32 %v2432_v57, %v2283_v3  ;;  %v1484_v8 = vadd.f32 %v1452_v60, %v1416_v54  ;;  %v2189_v46 = vrot.slane %v2082_v21, 1  ;;  %v2433_v50 = vrot.slane %v2326_v22, 2 }
 0x174   : > { %v4435_v57 = vmin.f32 %v836_v33, 6.0  ;;  %v4437_v60 = vmin.f32 %v835_v48, 6.0  ;;  %v970_v3 = vmul.f32 %v3698_v19, %v5549_v44  ;;  %v1078_v54 = vrot.slane %v969_v10, 1 }
 0x175   : > { %v2559_v34 = vmax.f32 %v2527_v2, 0.0  ;;  %v1728_v38 = vadd.f32 %v1634_v47, %v1484_v8  ;;  %v2190_v23 = vsel %vm1047_vm1, %v2187_v27, %v2189_v46  ;;  %v2434_v9 = vsel %vm1292_vm2, %v2431_v36, %v2433_v50 }
 0x176   : > { %v1214_v40 = vmul.f32 %v3700_v20, %v5548_v37  ;;  %v1215_v47 = vmul.f32 %v3700_v20, %v5549_v44  ;;  %v4447_v27 = vmul.f32 %v3698_v19, %v4435_v57  ;;  %v4451_v36 = vmul.f32 %v3700_v20, %v4435_v57 }
 0x177   : > { %v2591_v21 = vmin.f32 %v2559_v34, 6.0  ;;  %v1972_v22 = vadd.f32 %v1878_v56, %v1728_v38  ;;  %v4455_v2 = vmul.f32 %v3706_v30, %v4435_v57  ;;  %v4459_v56 = vmul.f32 %v3708_v31, %v4435_v57 }
 0x178   : > { %5568 = vst [vmem:[#allocation9_spill] sm:$0xff] %v4447_v27  ;;  %5569 = vst [vmem:[#allocation2_spill] sm:$0xff] %v4451_v36  ;;  %v1079_v8 = vrot.slane %v970_v3, 1  ;;  %v1323_v46 = vrot.slane %v1214_v40, 2  ;;  %v1324_v50 = vrot.slane %v1215_v47, 2  ;;  %v1527_v3 = vmul.f32 %v3706_v30, %v3970_v41 }
 0x179   : > { %5570 = vst [vmem:[#allocation3_spill] sm:$0xff] %v4455_v2  ;;  %5571 = vst [vmem:[#allocation7_spill] sm:$0xff] %v4459_v56  ;;  %3425 = vmatprep.mubr.msk.f32.mxu1 %vm2621_vm3, %v2591_v21  ;;  %v2040_v37 = vadd.f32 %v2008_v63, %v1972_v22  ;;  %v1453_v21 = vmul.f32 %v3704_v29, %v3970_v41  ;;  %v1528_v22 = vmul.f32 %v3706_v30, %v4035_v15  ;;  %v4488_v36 = vld [vmem:[%s5434_s2 + $0x8] ss:$0 sm:$0xff] }
 0x17a   : > { %v1080_v38 = vsel %vm1047_vm1, %v1078_v54, %v1079_v8  ;;  %v1325_v12 = vsel %vm1292_vm2, %v1323_v46, %v1324_v50  ;;  %v1771_v40 = vmul.f32 %v3708_v31, %v3970_v41  ;;  %v2009_v54 = vmul.f32 %v3716_v43, %v4139_v4 }
 0x17b   : > { %v2284_v34 = vadd.f32 %v2190_v23, %v2040_v37  ;;  %v1172_v63 = vadd.f32 %v1080_v38, %v927_v51  ;;  %v1772_v23 = vmul.f32 %v3708_v31, %v4035_v15  ;;  %v2083_v37 = vmul.f32 %v3714_v39, %v4139_v4 }
 0x17c   : > { %v1635_v46 = vrot.slane %v1527_v3, 1  ;;  %v1636_v38 = vrot.slane %v1528_v22, 1  ;;  %v1879_v18 = vrot.slane %v1771_v40, 2  ;;  %v2084_v48 = vmul.f32 %v3714_v39, %v4137_v6 }
 0x17d   : > { %v2528_v47 = vadd.f32 %v2434_v9, %v2284_v34  ;;  %v1417_v51 = vadd.f32 %v1325_v12, %v1172_v63  ;;  %v1880_v10 = vrot.slane %v1772_v23, 2  ;;  %v2191_v59 = vrot.slane %v2083_v37, 1 }
 0x17e   : > { %v1637_v34 = vsel %vm1047_vm1, %v1635_v46, %v1636_v38  ;;  %v2327_v12 = vmul.f32 %v4488_v36, %v4139_v4  ;;  %v2328_v63 = vmul.f32 %v4488_v36, %v4137_v6  ;;  %v2192_v40 = vrot.slane %v2084_v48, 1 }
 0x17f   : > { %v2560_v33 = vmax.f32 %v2528_v47, 0.0  ;;  %v1485_v9 = vadd.f32 %v1453_v21, %v1417_v51  ;;  %v1881_v22 = vsel %vm1292_vm2, %v1879_v18, %v1880_v10  ;;  %v928_v21 = vmul.f32 %v3702_v25, %v5549_v44  ;;  %v5572_v51 = vld [vmem:[#allocation11_spill] sm:$0xff] }
 0x180   : > { %v2435_v23 = vrot.slane %v2327_v12, 2  ;;  %v2436_v37 = vrot.slane %v2328_v63, 2  ;;  %v5573_v46 = vrot.slane %v5572_v51, 1  ;;  %v2193_v56 = vsel %vm1047_vm1, %v2191_v59, %v2192_v40 }
 0x181   : > { %v2592_v3 = vmin.f32 %v2560_v33, 6.0  ;;  %v1729_v47 = vadd.f32 %v1637_v34, %v1485_v9  ;;  %v5575_v33 = vrot.slane %v5574_v32, 2  ;;  %v1454_v48 = vmul.f32 %v3704_v29, %v4035_v15  ;;  %v5576_v34 = vld [vmem:[#allocation17_spill] sm:$0xff] }
 0x182   : > { %v1082_v27 = vsel %vm1047_vm1, %v1079_v8, %v5573_v46  ;;  %v2437_v9 = vsel %vm1292_vm2, %v2435_v23, %v2436_v37  ;;  %v5577_v12 = vrot.slane %v5576_v34, 1  ;;  %v5578_v8 = vld [vmem:[#allocation18_spill] sm:$0xff]  ;;  %v2010_v32 = vmul.f32 %v3716_v43, %v4137_v6 }
 0x183   : > { %3426 = vmatmul.mubr.msk.f32.gmra.mrb[20].mxu1 %vm2621_vm3, %v2592_v3  ;;  %v1173_v2 = vadd.f32 %v1082_v27, %v928_v21  ;;  %v1327_v18 = vsel %vm1292_vm2, %v1324_v50, %v5575_v33  ;;  %v1973_v44 = vadd.f32 %v1881_v22, %v1729_v47  ;;  %v5579_v51 = vrot.slane %v5578_v8, 2  ;;  %v5580_v21 = vld [vmem:[#allocation24_spill] sm:$0xff] }
 0x184   : > { %v1639_v63 = vsel %vm1047_vm1, %v1636_v38, %v5577_v12  ;;  %v2085_v27 = vmul.f32 %v3714_v39, %v4197_v26  ;;  %v2329_v50 = vmul.f32 %v4488_v36, %v4197_v26  ;;  %v838_v47 = vmax.f32 %v5580_v21, 0.0 }
 0x185   : > { %v1883_v3 = vsel %vm1292_vm2, %v1880_v10, %v5579_v51  ;;  %v1418_v59 = vadd.f32 %v1327_v18, %v1173_v2  ;;  %v2041_v22 = vadd.f32 %v2009_v54, %v1973_v44  ;;  %v837_v23 = vmax.f32 %v4106_v45, 0.0 }
 0x186   : > { %v929_v38 = vmul.f32 %v3702_v25, %v3970_v41  ;;  %v2194_v10 = vrot.slane %v2085_v27, 1  ;;  %v2438_v2 = vrot.slane %v2329_v50, 2  ;;  %v972_v33 = vmul.f32 %v3698_v19, %v3970_v41 }
 0x187   : > { %v1486_v46 = vadd.f32 %v1454_v48, %v1418_v59  ;;  %v2285_v18 = vadd.f32 %v2193_v56, %v2041_v22  ;;  %v4526_v34 = vmin.f32 %v838_v47, 6.0  ;;  %v4528_v12 = vmin.f32 %v837_v23, 6.0 }
 0x188   : > { %v973_v26 = vmul.f32 %v3698_v19, %v4035_v15  ;;  %v2195_v45 = vsel %vm1047_vm1, %v2192_v40, %v2194_v10  ;;  %v2439_v44 = vsel %vm1292_vm2, %v2436_v37, %v2438_v2  ;;  %v1083_v8 = vrot.slane %v972_v33, 1 }
 0x189   : > { %v1730_v54 = vadd.f32 %v1639_v63, %v1486_v46  ;;  %v2529_v48 = vadd.f32 %v2437_v9, %v2285_v18  ;;  %v1217_v59 = vmul.f32 %v3700_v20, %v3970_v41  ;;  %v1218_v56 = vmul.f32 %v3700_v20, %v4035_v15 }
 0x18a   : > { %v1084_v51 = vrot.slane %v973_v26, 1  ;;  %v1455_v50 = vmul.f32 %v3704_v29, %v4139_v4  ;;  %v1530_v63 = vmul.f32 %v3706_v30, %v4139_v4  ;;  %v1531_v40 = vmul.f32 %v3706_v30, %v4137_v6 }
 0x18b   : > { %v1974_v27 = vadd.f32 %v1883_v3, %v1730_v54  ;;  %v2561_v37 = vmax.f32 %v2529_v48, 0.0  ;;  %v1328_v22 = vrot.slane %v1217_v59, 2  ;;  %v1329_v21 = vrot.slane %v1218_v56, 2 }
 0x18c   : > { %v1085_v9 = vsel %vm1047_vm1, %v1083_v8, %v1084_v51  ;;  %v1640_v23 = vrot.slane %v1530_v63, 1  ;;  %v1641_v46 = vrot.slane %v1531_v40, 1  ;;  %v1774_v2 = vmul.f32 %v3708_v31, %v4139_v4 }
 0x18d   : > { %v2042_v47 = vadd.f32 %v2010_v32, %v1974_v27  ;;  %v1174_v41 = vadd.f32 %v1085_v9, %v929_v38  ;;  %v2593_v10 = vmin.f32 %v2561_v37, 6.0  ;;  %v1330_v3 = vsel %vm1292_vm2, %v1328_v22, %v1329_v21 }
 0x18e   : > { %v1775_v33 = vmul.f32 %v3708_v31, %v4137_v6  ;;  %v1642_v54 = vsel %vm1047_vm1, %v1640_v23, %v1641_v46  ;;  %v2011_v8 = vmul.f32 %v3716_v43, %v4180_v16  ;;  %v1884_v32 = vrot.slane %v1774_v2, 2  ;;  %v5581_v2 = vld [vmem:[#allocation13_spill] sm:$0xff] }
 0x18f   : > { %v2286_v18 = vadd.f32 %v2195_v45, %v2042_v47  ;;  %v1419_v26 = vadd.f32 %v1330_v3, %v1174_v41  ;;  %3428 = vmatprep.mubr.msk.f32.mxu1 %vm2621_vm3, %v2593_v10  ;;  %v2086_v48 = vmul.f32 %v3714_v39, %v4180_v16  ;;  %v2087_v59 = vmul.f32 %v3714_v39, %v4247_v13 }
 0x190   : > { %v1885_v38 = vrot.slane %v1775_v33, 2  ;;  %v2330_v45 = vmul.f32 %v4488_v36, %v4180_v16  ;;  %v2331_v63 = vmul.f32 %v4488_v36, %v4247_v13  ;;  %v840_v22 = vmax.f32 %v4127_v55, 0.0 }
 0x191   : > { %v2530_v56 = vadd.f32 %v2439_v44, %v2286_v18  ;;  %v1487_v27 = vadd.f32 %v1455_v50, %v1419_v26  ;;  %v2196_v37 = vrot.slane %v2086_v48, 1  ;;  %v2197_v9 = vrot.slane %v2087_v59, 1  ;;  %v5583_v59 = vld [vmem:[#allocation15_spill] sm:$0xff] }
 0x192   : > { %v1886_v40 = vsel %vm1292_vm2, %v1884_v32, %v1885_v38  ;;  %v2440_v23 = vrot.slane %v2330_v45, 2  ;;  %v2441_v10 = vrot.slane %v2331_v63, 2  ;;  %v4565_v44 = vmin.f32 %v840_v22, 6.0  ;;  %v5585_v45 = vld [vmem:[#allocation16_spill] sm:$0xff] }
 0x193   : > { %v2562_v47 = vmax.f32 %v2530_v56, 0.0  ;;  %v1731_v41 = vadd.f32 %v1642_v54, %v1487_v27  ;;  %v2198_v3 = vsel %vm1047_vm1, %v2196_v37, %v2197_v9  ;;  %v839_v50 = vmax.f32 %v4133_v35, 0.0 }
 0x194   : > { %v846_v33 = vmax.f32 %v5581_v2, 0.0  ;;  %v2442_v32 = vsel %vm1292_vm2, %v2440_v23, %v2441_v10  ;;  %v930_v48 = vmul.f32 %v3702_v25, %v4035_v15  ;;  %v5584_v56 = vrot.slane %v5583_v59, 1 }
 0x195   : > { %v2594_v18 = vmin.f32 %v2562_v47, 6.0  ;;  %v1975_v26 = vadd.f32 %v1886_v40, %v1731_v41  ;;  %v4572_v55 = vmin.f32 %v839_v50, 6.0  ;;  %v5586_v63 = vrot.slane %v5585_v45, 2  ;;  %v5593_v45 = vld [vmem:[#allocation20_spill] sm:$0xff] }
 0x196   : > { %v4574_v54 = vmin.f32 %v846_v33, 6.0  ;;  %v1087_v27 = vsel %vm1047_vm1, %v1084_v51, %v5584_v56  ;;  %v1456_v22 = vmul.f32 %v3704_v29, %v4137_v6  ;;  %v5587_v15 = vrot.slane %v4223_v58, 1 }
 0x197   : > { %v1332_v35 = vsel %vm1292_vm2, %v1329_v21, %v5586_v63  ;;  %3429 = vmatmul.mubr.msk.f32.gmra.mrb[22].mxu1 %vm2621_vm3, %v2594_v18  ;;  %v2043_v40 = vadd.f32 %v2011_v8, %v1975_v26  ;;  %v1175_v37 = vadd.f32 %v1087_v27, %v930_v48  ;;  %v4590_v41 = vmul.f32 %v3698_v19, %v4572_v55 }
 0x198   : > { %5582 = vst [vmem:[#allocation8_spill] sm:$0xff] %v4574_v54  ;;  %v1644_v47 = vsel %vm1047_vm1, %v1641_v46, %v5587_v15  ;;  %v4594_v51 = vmul.f32 %v3700_v20, %v4572_v55  ;;  %v4598_v21 = vmul.f32 %v3706_v30, %v4572_v55  ;;  %v4602_v8 = vmul.f32 %v3708_v31, %v4572_v55 }
 0x199   : > { %5588 = vst [vmem:[#allocation5_spill] sm:$0xff] %v4590_v41  ;;  %v2287_v23 = vadd.f32 %v2198_v3, %v2043_v40  ;;  %v1420_v58 = vadd.f32 %v1332_v35, %v1175_v37  ;;  %v5591_v46 = vrot.slane %v4227_v7, 2  ;;  %v2012_v2 = vmul.f32 %v3716_v43, %v4247_v13  ;;  %v5594_v40 = vld [vmem:[#allocation22_spill] sm:$0xff] }
 0x19a   : > { %5589 = vst [vmem:[#allocation6_spill] sm:$0xff] %v4594_v51  ;;  %5590 = vst [vmem:[#allocation14_spill] sm:$0xff] %v4602_v8  ;;  %v2088_v3 = vmul.f32 %v3714_v39, %v4245_v49  ;;  %v2332_v7 = vmul.f32 %v4488_v36, %v4245_v49  ;;  %v848_v63 = vmax.f32 %v5593_v45, 0.0  ;;  %v842_v35 = vmax.f32 %v4145_v14, 0.0 }
 0x19b   : > { %v1888_v50 = vsel %vm1292_vm2, %v1885_v38, %v5591_v46  ;;  %v2531_v59 = vadd.f32 %v2442_v32, %v2287_v23  ;;  %v1488_v56 = vadd.f32 %v1456_v22, %v1420_v58  ;;  %v5592_v38 = vld [vmem:[#allocation19_spill] sm:$0xff]  ;;  %v847_v37 = vmax.f32 %v5594_v40, 0.0 }
 0x19c   : > { %v845_v27 = vmax.f32 %v5592_v38, 0.0  ;;  %v2199_v18 = vrot.slane %v2088_v3, 1  ;;  %v2443_v33 = vrot.slane %v2332_v7, 2  ;;  %v4623_v22 = vmin.f32 %v848_v63, 6.0 }
 0x19d   : > { %v2563_v15 = vmax.f32 %v2531_v59, 0.0  ;;  %v1732_v46 = vadd.f32 %v1644_v47, %v1488_v56  ;;  %v4625_v23 = vmin.f32 %v842_v35, 6.0  ;;  %v4627_v58 = vmin.f32 %v847_v37, 6.0  ;;  %v5608_v37 = vld [vmem:[#allocation25_spill] sm:$0xff] }
 0x19e   : > { %v4621_v32 = vmin.f32 %v845_v27, 6.0  ;;  %5596 = vst [vmem:[#allocation23_spill] sm:$0xff] %v4623_v22  ;;  %v2200_v45 = vsel %vm1047_vm1, %v2197_v9, %v2199_v18  ;;  %v2444_v14 = vsel %vm1292_vm2, %v2441_v10, %v2443_v33  ;;  %v4650_v10 = vmul.f32 %v3698_v19, %v4623_v22 }
 0x19f   : > { %5597 = vst [vmem:[#allocation11_spill] sm:$0xff] %v4625_v23  ;;  %v2595_v49 = vmin.f32 %v2563_v15, 6.0  ;;  %v1976_v38 = vadd.f32 %v1888_v50, %v1732_v46  ;;  %v4654_v50 = vmul.f32 %v3700_v20, %v4623_v22  ;;  %v4658_v33 = vmul.f32 %v3706_v30, %v4623_v22 }
 0x1a0   : > { %5595 = vst [vmem:[#allocation21_spill] sm:$0xff] %v4621_v32  ;;  %v4633_v59 = vmul.f32 %v3698_v19, %v4621_v32  ;;  %v4637_v47 = vmul.f32 %v3700_v20, %v4621_v32  ;;  %v4641_v56 = vmul.f32 %v3706_v30, %v4621_v32  ;;  %v4645_v3 = vmul.f32 %v3708_v31, %v4621_v32 }
 0x1a1   : > { %3431 = vmatprep.mubr.msk.f32.mxu1 %vm2621_vm3, %v2595_v49  ;;  %v2044_v9 = vadd.f32 %v2012_v2, %v1976_v38  ;;  %5602 = vst [vmem:[#allocation13_spill] sm:$0xff] %v4658_v33  ;;  %v4669_v15 = vmul.f32 %v3708_v31, %v4623_v22  ;;  %v4673_v46 = vmul.f32 %v3698_v19, %v4625_v23  ;;  %v841_v7 = vmax.f32 %v5608_v37, 0.0 }
 0x1a2   : > { %5598 = vst [vmem:[#allocation12_spill] sm:$0xff] %v4633_v59  ;;  %5599 = vst [vmem:[#allocation17_spill] sm:$0xff] %v4637_v47  ;;  %v4677_v49 = vmul.f32 %v3700_v20, %v4625_v23  ;;  %v4681_v38 = vmul.f32 %v3706_v30, %v4625_v23  ;;  %v931_v18 = vmul.f32 %v3702_v25, %v4139_v4 }
 0x1a3   : > { %5600 = vst [vmem:[#allocation18_spill] sm:$0xff] %v4641_v56  ;;  %5601 = vst [vmem:[#allocation24_spill] sm:$0xff] %v4645_v3  ;;  %v2288_v63 = vadd.f32 %v2200_v45, %v2044_v9  ;;  %v4685_v9 = vmul.f32 %v3708_v31, %v4625_v23  ;;  %v975_v35 = vmul.f32 %v3698_v19, %v4139_v4 }
 0x1a4   : > { %5603 = vst [vmem:[#allocation15_spill] sm:$0xff] %v4669_v15  ;;  %5604 = vst [vmem:[#allocation16_spill] sm:$0xff] %v4673_v46  ;;  %v976_v37 = vmul.f32 %v3698_v19, %v4137_v6  ;;  %v1220_v2 = vmul.f32 %v3700_v20, %v4139_v4  ;;  %v1221_v27 = vmul.f32 %v3700_v20, %v4137_v6 }
 0x1a5   : > { %5605 = vst [vmem:[#allocation19_spill] sm:$0xff] %v4677_v49  ;;  %5606 = vst [vmem:[#allocation20_spill] sm:$0xff] %v4681_v38  ;;  %v2532_v45 = vadd.f32 %v2444_v14, %v2288_v63  ;;  %v4695_v63 = vmin.f32 %v841_v7, 6.0  ;;  %v1457_v48 = vmul.f32 %v3704_v29, %v4180_v16  ;;  %v1088_v26 = vrot.slane %v975_v35, 1 }
 0x1a6   : > { %5607 = vst [vmem:[#allocation22_spill] sm:$0xff] %v4685_v9  ;;  %v1533_v7 = vmul.f32 %v3706_v30, %v4180_v16  ;;  %v1534_v14 = vmul.f32 %v3706_v30, %v4247_v13  ;;  %v1089_v15 = vrot.slane %v976_v37, 1  ;;  %v1333_v33 = vrot.slane %v1220_v2, 2 }
 0x1a7   : > { %v2564_v40 = vmax.f32 %v2532_v45, 0.0  ;;  %v1334_v47 = vrot.slane %v1221_v27, 2  ;;  %v1777_v4 = vmul.f32 %v3708_v31, %v4180_v16  ;;  %v2013_v35 = vmul.f32 %v3716_v43, %v4337_v52 }
 0x1a8   : > { %v1645_v59 = vrot.slane %v1533_v7, 1  ;;  %v1646_v22 = vrot.slane %v1534_v14, 1  ;;  %v1090_v3 = vsel %vm1047_vm1, %v1088_v26, %v1089_v15  ;;  %v2089_v27 = vmul.f32 %v3714_v39, %v4337_v52 }
 0x1a9   : > { %v2596_v45 = vmin.f32 %v2564_v40, 6.0  ;;  %v1778_v40 = vmul.f32 %v3708_v31, %v4247_v13  ;;  %v1335_v56 = vsel %vm1292_vm2, %v1333_v33, %v1334_v47  ;;  %v1889_v37 = vrot.slane %v1777_v4, 2 }
 0x1aa   : > { %v1176_v2 = vadd.f32 %v1090_v3, %v931_v18  ;;  %v1647_v49 = vsel %vm1047_vm1, %v1645_v59, %v1646_v22  ;;  %v2090_v14 = vmul.f32 %v3714_v39, %v4335_v62  ;;  %v2201_v7 = vrot.slane %v2089_v27, 1 }
 0x1ab   : > { %3432 = vmatmul.mubr.msk.f32.gmra.mrb[24].mxu1 %vm2621_vm3, %v2596_v45  ;;  %v1890_v45 = vrot.slane %v1778_v40, 2  ;;  %v2333_v46 = vmul.f32 %v4488_v36, %v4337_v52  ;;  %v2334_v26 = vmul.f32 %v4488_v36, %v4335_v62  ;;  %v932_v33 = vmul.f32 %v3702_v25, %v4137_v6 }
 0x1ac   : > { %v1421_v4 = vadd.f32 %v1335_v56, %v1176_v2  ;;  %v2202_v3 = vrot.slane %v2090_v14, 1  ;;  %v5609_v59 = vrot.slane %v4215_v28, 1  ;;  %v5610_v38 = vrot.slane %v4219_v61, 2 }
 0x1ad   : > { %v1891_v32 = vsel %vm1292_vm2, %v1889_v37, %v1890_v45  ;;  %v2445_v40 = vrot.slane %v2333_v46, 2  ;;  %v2446_v9 = vrot.slane %v2334_v26, 2  ;;  %v1458_v6 = vmul.f32 %v3704_v29, %v4247_v13  ;;  %v5612_v46 = vld [vmem:[#allocation31_spill] sm:$0xff]  ;;  %v5615_v26 = vld [vmem:[#allocation28_spill] sm:$0xff] }
 0x1ae   : > { %v1092_v18 = vsel %vm1047_vm1, %v1089_v15, %v5609_v59  ;;  %v1337_v51 = vsel %vm1292_vm2, %v1334_v47, %v5610_v38  ;;  %v1489_v41 = vadd.f32 %v1457_v48, %v1421_v4  ;;  %v2203_v23 = vsel %vm1047_vm1, %v2201_v7, %v2202_v3  ;;  %v5617_v59 = vld [vmem:[#allocation29_spill] sm:$0xff] }
 0x1af   : > { %v1177_v27 = vadd.f32 %v1092_v18, %v932_v33  ;;  %v5611_v56 = vrot.slane %v4265_v0, 1  ;;  %v2447_v28 = vsel %vm1292_vm2, %v2445_v40, %v2446_v9  ;;  %v5613_v2 = vrot.slane %v5612_v46, 2  ;;  %v5614_v0 = vld [vmem:[#allocation26_spill] sm:$0xff] }
 0x1b0   : > { %v2014_v61 = vmul.f32 %v3716_v43, %v4335_v62  ;;  %v1733_v48 = vadd.f32 %v1647_v49, %v1489_v41  ;;  %v2091_v47 = vmul.f32 %v3714_v39, %v4387_v42  ;;  %v2335_v38 = vmul.f32 %v4488_v36, %v4387_v42 }
 0x1b1   : > { %v1649_v37 = vsel %vm1047_vm1, %v1646_v22, %v5611_v56  ;;  %v1422_v15 = vadd.f32 %v1337_v51, %v1177_v27  ;;  %v1893_v14 = vsel %vm1292_vm2, %v1890_v45, %v5613_v2  ;;  %v844_v7 = vmax.f32 %v5614_v0, 0.0  ;;  %v5616_v51 = vld [vmem:[#allocation27_spill] sm:$0xff] }
 0x1b2   : > { %v843_v33 = vmax.f32 %v5615_v26, 0.0  ;;  %v850_v4 = vmax.f32 %v5616_v51, 0.0  ;;  %v849_v18 = vmax.f32 %v5617_v59, 0.0  ;;  %v1977_v45 = vadd.f32 %v1891_v32, %v1733_v48 }
 0x1b3   : > { %v1490_v22 = vadd.f32 %v1458_v6, %v1422_v15  ;;  %v2204_v40 = vrot.slane %v2091_v47, 1  ;;  %v2448_v27 = vrot.slane %v2335_v38, 2  ;;  %v4758_v56 = vmin.f32 %v844_v7, 6.0 }
 0x1b4   : > { %v4760_v49 = vmin.f32 %v843_v33, 6.0  ;;  %v4762_v46 = vmin.f32 %v850_v4, 6.0  ;;  %v4764_v42 = vmin.f32 %v849_v18, 6.0  ;;  %v2045_v2 = vadd.f32 %v2013_v35, %v1977_v45 }
 0x1b5   : > { %5618 = vst [vmem:[#allocation25_spill] sm:$0xff] %v4758_v56  ;;  %v1734_v41 = vadd.f32 %v1649_v37, %v1490_v22  ;;  %v2205_v6 = vsel %vm1047_vm1, %v2202_v3, %v2204_v40  ;;  %v2449_v15 = vsel %vm1292_vm2, %v2446_v9, %v2448_v27  ;;  %v933_v0 = vmul.f32 %v3702_v25, %v4180_v16 }
 0x1b6   : > { %5619 = vst [vmem:[#allocation31_spill] sm:$0xff] %v4760_v49  ;;  %5620 = vst [vmem:[#allocation26_spill] sm:$0xff] %v4764_v42  ;;  %v978_v48 = vmul.f32 %v3698_v19, %v4180_v16  ;;  %v4774_v37 = vmul.f32 %v3698_v19, %v4247_v13  ;;  %v1223_v47 = vmul.f32 %v3700_v20, %v4180_v16 }
 0x1b7   : > { %v1978_v32 = vadd.f32 %v1893_v14, %v1734_v41  ;;  %v2289_v38 = vadd.f32 %v2203_v23, %v2045_v2  ;;  %v4780_v35 = vmul.f32 %v3700_v20, %v4247_v13  ;;  %v1459_v9 = vmul.f32 %v3704_v29, %v4337_v52 }
 0x1b8   : > { %v1536_v3 = vmul.f32 %v3706_v30, %v4337_v52  ;;  %v1093_v7 = vrot.slane %v978_v48, 1  ;;  %v5488_v22 = vrot.slane %v4774_v37, 1  ;;  %v1338_v26 = vrot.slane %v1223_v47, 2 }
 0x1b9   : > { %v2046_v14 = vadd.f32 %v2014_v61, %v1978_v32  ;;  %v2533_v33 = vadd.f32 %v2447_v28, %v2289_v38  ;;  %v5487_v51 = vrot.slane %v4780_v35, 2  ;;  %v4790_v16 = vmul.f32 %v3706_v30, %v4335_v62 }
 0x1ba   : > { %v1650_v23 = vrot.slane %v1536_v3, 1  ;;  %v1095_v59 = vsel %vm1047_vm1, %v1093_v7, %v5488_v22  ;;  %v1780_v61 = vmul.f32 %v3708_v31, %v4337_v52  ;;  %v4799_v18 = vmul.f32 %v3708_v31, %v4335_v62 }
 0x1bb   : > { %v2290_v4 = vadd.f32 %v2205_v6, %v2046_v14  ;;  %v2565_v28 = vmax.f32 %v2533_v33, 0.0  ;;  %v1178_v45 = vadd.f32 %v1095_v59, %v933_v0  ;;  %v1340_v40 = vsel %vm1292_vm2, %v1338_v26, %v5487_v51 }
 0x1bc   : > { %v5485_v27 = vrot.slane %v4790_v16, 1  ;;  %v1894_v2 = vrot.slane %v1780_v61, 2  ;;  %v5483_v6 = vrot.slane %v4799_v18, 2  ;;  %v2015_v32 = vmul.f32 %v3716_v43, %v4378_v24 }
 0x1bd   : > { %v2534_v41 = vadd.f32 %v2449_v15, %v2290_v4  ;;  %v2597_v48 = vmin.f32 %v2565_v28, 6.0  ;;  %v1423_v47 = vadd.f32 %v1340_v40, %v1178_v45  ;;  %v2092_v0 = vmul.f32 %v3714_v39, %v4378_v24  ;;  %v5621_v4 = vld [vmem:[#allocation32_spill] sm:$0xff] }
 0x1be   : > { %v1652_v38 = vsel %vm1047_vm1, %v1650_v23, %v5485_v27  ;;  %v1896_v15 = vsel %vm1292_vm2, %v1894_v2, %v5483_v6  ;;  %v4818_v14 = vmul.f32 %v3714_v39, %v4437_v60  ;;  %v2336_v7 = vmul.f32 %v4488_v36, %v4378_v24 }
 0x1bf   : > { %v2566_v3 = vmax.f32 %v2534_v41, 0.0  ;;  %3434 = vmatprep.mubr.msk.f32.mxu1 %vm2621_vm3, %v2597_v48  ;;  %v1491_v26 = vadd.f32 %v1459_v9, %v1423_v47  ;;  %v2206_v33 = vrot.slane %v2092_v0, 1  ;;  %v4825_v23 = vmul.f32 %v4488_v36, %v4437_v60 }
 0x1c0   : > { %v852_v59 = vmax.f32 %v5621_v4, 0.0  ;;  %v5484_v28 = vrot.slane %v4818_v14, 1  ;;  %v2450_v45 = vrot.slane %v2336_v7, 2  ;;  %v945_v40 = vmul.f32 %v3702_v25, %v4574_v54 }
 0x1c1   : > { %v2598_v61 = vmin.f32 %v2566_v3, 6.0  ;;  %v1735_v41 = vadd.f32 %v1652_v38, %v1491_v26  ;;  %v5486_v2 = vrot.slane %v4825_v23, 2  ;;  %v996_v9 = vmul.f32 %v3698_v19, %v4574_v54 }
 0x1c2   : > { %v906_v6 = vmin.f32 %v852_v59, 6.0  ;;  %v2208_v48 = vsel %vm1047_vm1, %v2206_v33, %v5484_v28  ;;  %v4840_v47 = vmul.f32 %v3698_v19, %v4627_v58  ;;  %v1241_v0 = vmul.f32 %v3700_v20, %v4574_v54 }
 0x1c3   : > { %3435 = vmatmul.mubr.msk.f32.gmra.mrb[26].mxu1 %vm2621_vm3, %v2598_v61  ;;  %v4846_v38 = vmul.f32 %v3700_v20, %v4627_v58  ;;  %v1979_v3 = vadd.f32 %v1896_v15, %v1735_v41  ;;  %v2452_v7 = vsel %vm1292_vm2, %v2450_v45, %v5486_v2  ;;  %v1123_v26 = vrot.slane %v996_v9, 1 }
 0x1c4   : > { %v1471_v33 = vmul.f32 %v3704_v29, %v4764_v42  ;;  %v1124_v4 = vrot.slane %v4840_v47, 1  ;;  %v1368_v59 = vrot.slane %v1241_v0, 2  ;;  %v1554_v28 = vmul.f32 %v3706_v30, %v4764_v42 }
 0x1c5   : > { %v5496_v61 = vrot.slane %v4846_v38, 2  ;;  %v2047_v27 = vadd.f32 %v2015_v32, %v1979_v3  ;;  %v4859_v15 = vmul.f32 %v3706_v30, %v4762_v46  ;;  %v1798_v45 = vmul.f32 %v3708_v31, %v4764_v42 }
 0x1c6   : > { %v4865_v41 = vmul.f32 %v3708_v31, %v4762_v46  ;;  %v1125_v9 = vsel %vm1047_vm1, %v1123_v26, %v1124_v4  ;;  %v1680_v0 = vrot.slane %v1554_v28, 1  ;;  %v2027_v32 = vmul.f32 %v3716_v43, %v906_v6  ;;  %v5622_v26 = vld [vmem:[#allocation33_spill] sm:$0xff] }
 0x1c7   : > { %v1370_v47 = vsel %vm1292_vm2, %v1368_v59, %v5496_v61  ;;  %v2291_v3 = vadd.f32 %v2208_v48, %v2047_v27  ;;  %v1190_v2 = vadd.f32 %v1125_v9, %v945_v40  ;;  %v1681_v51 = vrot.slane %v4859_v15, 1 }
 0x1c8   : > { %v1924_v22 = vrot.slane %v1798_v45, 2  ;;  %v1925_v42 = vrot.slane %v4865_v41, 2  ;;  %v4875_v54 = vmul.f32 %v3714_v39, %v906_v6  ;;  %v4878_v56 = vmul.f32 %v4488_v36, %v906_v6  ;;  %v5623_v6 = vld [vmem:[#allocation4_spill] sm:$0xff] }
 0x1c9   : > { %v851_v49 = vmax.f32 %v5622_v26, 0.0  ;;  %v2535_v8 = vadd.f32 %v2452_v7, %v2291_v3  ;;  %v1435_v59 = vadd.f32 %v1370_v47, %v1190_v2  ;;  %v1682_v28 = vsel %vm1047_vm1, %v1680_v0, %v1681_v51  ;;  %v5626_v7 = vld [vmem:[#allocation30_spill] sm:$0xff] }
 0x1ca   : > { %v934_v27 = vmul.f32 %v3702_v25, %v4247_v13  ;;  %v1926_v40 = vsel %vm1292_vm2, %v1924_v22, %v1925_v42  ;;  %v2236_v48 = vrot.slane %v4875_v54, 1  ;;  %v5624_v61 = vrot.slane %v5623_v6, 1 }
 0x1cb   : > { %v905_v45 = vmin.f32 %v851_v49, 6.0  ;;  %v2567_v41 = vmax.f32 %v2535_v8, 0.0  ;;  %v1503_v9 = vadd.f32 %v1471_v33, %v1435_v59  ;;  %v5625_v26 = vrot.slane %v4774_v37, 1 }
 0x1cc   : > { %v5627_v47 = vrot.slane %v5626_v7, 2  ;;  %v5628_v0 = vrot.slane %v4780_v35, 2  ;;  %v5629_v15 = vrot.slane %v4413_v53, 1  ;;  %v854_v53 = vmax.f32 %v4353_v11, 0.0 }
 0x1cd   : > { %v1097_v2 = vsel %vm1047_vm1, %v5625_v26, %v5624_v61  ;;  %v1556_v22 = vmul.f32 %v3706_v30, %v905_v45  ;;  %v1800_v3 = vmul.f32 %v3708_v31, %v905_v45  ;;  %v4900_v49 = vmul.f32 %v3714_v39, %v905_v45 }
 0x1ce   : > { %v1342_v13 = vsel %vm1292_vm2, %v5628_v0, %v5627_v47  ;;  %v4903_v8 = vmul.f32 %v4488_v36, %v905_v45  ;;  %v2599_v33 = vmin.f32 %v2567_v41, 6.0  ;;  %v1747_v37 = vadd.f32 %v1682_v28, %v1503_v9 }
 0x1cf   : > { %v1179_v59 = vadd.f32 %v1097_v2, %v934_v27  ;;  %v1460_v61 = vmul.f32 %v3704_v29, %v4335_v62  ;;  %v1683_v6 = vrot.slane %v1556_v22, 1  ;;  %v1927_v35 = vrot.slane %v1800_v3, 2 }
 0x1d0   : > { %v2234_v26 = vrot.slane %v4900_v49, 1  ;;  %v2478_v7 = vrot.slane %v4903_v8, 2  ;;  %3437 = vmatprep.mubr.msk.f32.mxu1 %vm2621_vm3, %v2599_v33  ;;  %v1991_v47 = vadd.f32 %v1926_v40, %v1747_v37  ;;  %v5630_v45 = vrot.slane %v4790_v16, 1  ;;  %v2948_v49 = vld [vmem:[%s5276_s11 + $0x28] sm:$0xff] }
 0x1d1   : > { %v1424_v0 = vadd.f32 %v1342_v13, %v1179_v59  ;;  %v5631_v27 = vrot.slane %v4417_v5, 2  ;;  %v5632_v41 = vrot.slane %v4799_v18, 2  ;;  %v2016_v2 = vmul.f32 %v3716_v43, %v4437_v60 }
 0x1d2   : > { %v1654_v28 = vsel %vm1047_vm1, %v5630_v45, %v5629_v15  ;;  %v2094_v22 = vmul.f32 %v3714_v39, %v4435_v57  ;;  %v2338_v40 = vmul.f32 %v4488_v36, %v4435_v57  ;;  %v4927_v16 = vadd.f32 %v2027_v32, %v1991_v47 }
 0x1d3   : > { %v1898_v9 = vsel %vm1292_vm2, %v5632_v41, %v5631_v27  ;;  %v1492_v15 = vadd.f32 %v1460_v61, %v1424_v0  ;;  %v853_v5 = vmax.f32 %v4356_v17, 0.0  ;;  %v946_v18 = vmul.f32 %v3702_v25, %v4627_v58 }
 0x1d4   : > { %v2209_v13 = vrot.slane %v2094_v22, 1  ;;  %v2453_v3 = vrot.slane %v2338_v40, 2  ;;  %v908_v33 = vmin.f32 %v854_v53, 6.0  ;;  %v5633_v37 = vrot.slane %v4650_v10, 1 }
 0x1d5   : > { %v1736_v45 = vadd.f32 %v1654_v28, %v1492_v15  ;;  %v907_v27 = vmin.f32 %v853_v5, 6.0  ;;  %v5634_v11 = vrot.slane %v4654_v50, 2  ;;  %v5635_v32 = vrot.slane %v4846_v38, 2 }
 0x1d6   : > { %v1127_v59 = vsel %vm1047_vm1, %v1124_v4, %v5633_v37  ;;  %v5636_v17 = vrot.slane %v4818_v14, 1  ;;  %v5637_v0 = vrot.slane %v4825_v23, 2  ;;  %v2112_v10 = vmul.f32 %v3714_v39, %v908_v33 }
 0x1d7   : > { %v1191_v57 = vadd.f32 %v1127_v59, %v946_v18  ;;  %v1372_v61 = vsel %vm1292_vm2, %v5635_v32, %v5634_v11  ;;  %v4948_v4 = vmul.f32 %v4488_v36, %v908_v33  ;;  %v1980_v28 = vadd.f32 %v1898_v9, %v1736_v45 }
 0x1d8   : > { %v2210_v47 = vsel %vm1047_vm1, %v5636_v17, %v2209_v13  ;;  %v2454_v41 = vsel %vm1292_vm2, %v5637_v0, %v2453_v3  ;;  %v1472_v50 = vmul.f32 %v3704_v29, %v4762_v46  ;;  %v1684_v38 = vsel %vm1047_vm1, %v1681_v51, %v1683_v6 }
 0x1d9   : > { %v1436_v22 = vadd.f32 %v1372_v61, %v1191_v57  ;;  %v2239_v40 = vrot.slane %v2112_v10, 1  ;;  %v2483_v14 = vrot.slane %v4948_v4, 2  ;;  %v1928_v53 = vsel %vm1292_vm2, %v1925_v42, %v1927_v35 }
 0x1da   : > { %v2028_v23 = vmul.f32 %v3716_v43, %v907_v27  ;;  %v2048_v15 = vadd.f32 %v2016_v2, %v1980_v28  ;;  %v2111_v18 = vmul.f32 %v3714_v39, %v907_v27  ;;  %v4958_v13 = vmul.f32 %v4488_v36, %v907_v27 }
 0x1db   : > { %v1504_v5 = vadd.f32 %v1472_v50, %v1436_v22  ;;  %v935_v9 = vmul.f32 %v3702_v25, %v4337_v52  ;;  %v981_v51 = vmul.f32 %v3698_v19, %v4337_v52  ;;  %v982_v6 = vmul.f32 %v3698_v19, %v4335_v62 }
 0x1dc   : > { %v1226_v42 = vmul.f32 %v3700_v20, %v4337_v52  ;;  %v2292_v35 = vadd.f32 %v2210_v47, %v2048_v15  ;;  %v2237_v3 = vrot.slane %v2111_v18, 1  ;;  %v2481_v33 = vrot.slane %v4958_v13, 2 }
 0x1dd   : > { %v1748_v2 = vadd.f32 %v1684_v38, %v1504_v5  ;;  %v1098_v37 = vrot.slane %v981_v51, 1  ;;  %v1099_v59 = vrot.slane %v982_v6, 1  ;;  %v1227_v45 = vmul.f32 %v3700_v20, %v4335_v62 }
 0x1de   : > { %v1343_v27 = vrot.slane %v1226_v42, 2  ;;  %v2536_v57 = vadd.f32 %v2454_v41, %v2292_v35  ;;  %v4974_v32 = vsel %vm1047_vm1, %v2236_v48, %v2237_v3  ;;  %v2240_v52 = vsel %vm1047_vm1, %v2237_v3, %v2239_v40 }
 0x1df   : > { %v1992_v11 = vadd.f32 %v1928_v53, %v1748_v2  ;;  %v1100_v61 = vsel %vm1047_vm1, %v1098_v37, %v1099_v59  ;;  %v1344_v17 = vrot.slane %v1227_v45, 2  ;;  %v1461_v47 = vmul.f32 %v3704_v29, %v4378_v24 }
 0x1e0   : > { %v1539_v0 = vmul.f32 %v3706_v30, %v4378_v24  ;;  %v2568_v10 = vmax.f32 %v2536_v57, 0.0  ;;  %v1180_v41 = vadd.f32 %v1100_v61, %v935_v9  ;;  %v1540_v54 = vmul.f32 %v3706_v30, %v4437_v60 }
 0x1e1   : > { %v2060_v28 = vadd.f32 %v2028_v23, %v1992_v11  ;;  %v1345_v48 = vsel %vm1292_vm2, %v1343_v27, %v1344_v17  ;;  %v1783_v50 = vmul.f32 %v3708_v31, %v4378_v24  ;;  %v1784_v38 = vmul.f32 %v3708_v31, %v4437_v60 }
 0x1e2   : > { %v1655_v22 = vrot.slane %v1539_v0, 1  ;;  %v2600_v40 = vmin.f32 %v2568_v10, 6.0  ;;  %v1425_v15 = vadd.f32 %v1345_v48, %v1180_v41  ;;  %v1656_v5 = vrot.slane %v1540_v54, 1 }
 0x1e3   : > { %v4989_v53 = vadd.f32 %v2240_v52, %v2060_v28  ;;  %v1899_v18 = vrot.slane %v1783_v50, 2  ;;  %v1900_v23 = vrot.slane %v1784_v38, 2  ;;  %v2017_v9 = vmul.f32 %v3716_v43, %v4528_v12  ;;  %v5639_v28 = vld [vmem:[#allocation10_spill] sm:$0xff] }
 0x1e4   : > { %v2095_v51 = vmul.f32 %v3714_v39, %v4528_v12  ;;  %3438 = vmatmul.mubr.msk.f32.gmra.mrb[28].mxu1 %vm2621_vm3, %v2600_v40  ;;  %v1493_v6 = vadd.f32 %v1461_v47, %v1425_v15  ;;  %v1657_v42 = vsel %vm1047_vm1, %v1655_v22, %v1656_v5  ;;  %v2096_v35 = vmul.f32 %v3714_v39, %v4526_v34  ;;  %v5643_v15 = vld [vmem:[#allocation7_spill] sm:$0xff] }
 0x1e5   : > { %v2339_v2 = vmul.f32 %v4488_v36, %v4528_v12  ;;  %v1901_v3 = vsel %vm1292_vm2, %v1899_v18, %v1900_v23  ;;  %v2340_v45 = vmul.f32 %v4488_v36, %v4526_v34  ;;  %v936_v27 = vmul.f32 %v3702_v25, %v4335_v62  ;;  %v5641_v62 = vld [vmem:[#allocation3_spill] sm:$0xff] }
 0x1e6   : > { %v2211_v37 = vrot.slane %v2095_v51, 1  ;;  %v1737_v57 = vadd.f32 %v1657_v42, %v1493_v6  ;;  %v2212_v11 = vrot.slane %v2096_v35, 1  ;;  %v5638_v61 = vrot.slane %v4405_v1, 1 }
 0x1e7   : > { %v2455_v52 = vrot.slane %v2339_v2, 2  ;;  %v2456_v0 = vrot.slane %v2340_v45, 2  ;;  %v5640_v41 = vrot.slane %v5639_v28, 2  ;;  %v1462_v48 = vmul.f32 %v3704_v29, %v4437_v60 }
 0x1e8   : > { %v1102_v47 = vsel %vm1047_vm1, %v1099_v59, %v5638_v61  ;;  %v1981_v22 = vadd.f32 %v1901_v3, %v1737_v57  ;;  %v2213_v50 = vsel %vm1047_vm1, %v2211_v37, %v2212_v11  ;;  %v5642_v38 = vrot.slane %v5641_v62, 1 }
 0x1e9   : > { %v1181_v10 = vadd.f32 %v1102_v47, %v936_v27  ;;  %v1347_v54 = vsel %vm1292_vm2, %v1344_v17, %v5640_v41  ;;  %v5644_v1 = vrot.slane %v5643_v15, 2  ;;  %v2457_v18 = vsel %vm1292_vm2, %v2455_v52, %v2456_v0 }
 0x1ea   : > { %v1659_v40 = vsel %vm1047_vm1, %v1656_v5, %v5642_v38  ;;  %v2018_v17 = vmul.f32 %v3716_v43, %v4526_v34  ;;  %v2097_v6 = vmul.f32 %v3714_v39, %v4572_v55  ;;  %v2049_v42 = vadd.f32 %v2017_v9, %v1981_v22 }
 0x1eb   : > { %v1903_v59 = vsel %vm1292_vm2, %v1900_v23, %v5644_v1  ;;  %v1426_v51 = vadd.f32 %v1347_v54, %v1181_v10  ;;  %v2341_v35 = vmul.f32 %v4488_v36, %v4572_v55  ;;  %v937_v5 = vmul.f32 %v3702_v25, %v4378_v24 }
 0x1ec   : > { %v984_v2 = vmul.f32 %v3698_v19, %v4378_v24  ;;  %v2214_v3 = vrot.slane %v2097_v6, 1  ;;  %v985_v37 = vmul.f32 %v3698_v19, %v4437_v60  ;;  %v1229_v45 = vmul.f32 %v3700_v20, %v4378_v24 }
 0x1ed   : > { %v1494_v23 = vadd.f32 %v1462_v48, %v1426_v51  ;;  %v2293_v27 = vadd.f32 %v2213_v50, %v2049_v42  ;;  %v2458_v57 = vrot.slane %v2341_v35, 2  ;;  %v1230_v55 = vmul.f32 %v3700_v20, %v4437_v60 }
 0x1ee   : > { %v1103_v9 = vrot.slane %v984_v2, 1  ;;  %v2215_v61 = vsel %vm1047_vm1, %v2212_v11, %v2214_v3  ;;  %v1104_v47 = vrot.slane %v985_v37, 1  ;;  %v1348_v10 = vrot.slane %v1229_v45, 2 }
 0x1ef   : > { %v1738_v52 = vadd.f32 %v1659_v40, %v1494_v23  ;;  %v2537_v28 = vadd.f32 %v2457_v18, %v2293_v27  ;;  %v2459_v41 = vsel %vm1292_vm2, %v2456_v0, %v2458_v57  ;;  %v1349_v54 = vrot.slane %v1230_v55, 2 }
 0x1f0   : > { %v1463_v48 = vmul.f32 %v3704_v29, %v4528_v12  ;;  %v1105_v24 = vsel %vm1047_vm1, %v1103_v9, %v1104_v47  ;;  %v1542_v50 = vmul.f32 %v3706_v30, %v4528_v12  ;;  %v1543_v62 = vmul.f32 %v3706_v30, %v4526_v34  ;;  %v5054_v2 = vpop.f32.mrb[10].mxu1 }
 0x1f1   : > { %v1982_v22 = vadd.f32 %v1903_v59, %v1738_v52  ;;  %v2569_v38 = vmax.f32 %v2537_v28, 0.0  ;;  %v1182_v11 = vadd.f32 %v1105_v24, %v937_v5  ;;  %v1350_v40 = vsel %vm1292_vm2, %v1348_v10, %v1349_v54  ;;  %v5059_v37 = vpop.f32.mrb[11].mxu1 }
 0x1f2   : > { %v1786_v0 = vmul.f32 %v3708_v31, %v4528_v12  ;;  %v1660_v1 = vrot.slane %v1542_v50, 1  ;;  %v1661_v18 = vrot.slane %v1543_v62, 1  ;;  %v1787_v59 = vmul.f32 %v3708_v31, %v4526_v34  ;;  %v5645_v62 = vld [vmem:[#allocation9_spill] sm:$0xff] }
 0x1f3   : > { %v2050_v15 = vadd.f32 %v2018_v17, %v1982_v22  ;;  %v2601_v51 = vmin.f32 %v2569_v38, 6.0  ;;  %v1427_v6 = vadd.f32 %v1350_v40, %v1182_v11  ;;  %v2019_v35 = vmul.f32 %v3716_v43, %v4565_v44  ;;  %v5647_v40 = vld [vmem:[#allocation2_spill] sm:$0xff] }
 0x1f4   : > { %v1904_v42 = vrot.slane %v1786_v0, 2  ;;  %v1662_v23 = vsel %vm1047_vm1, %v1660_v1, %v1661_v18  ;;  %v1905_v3 = vrot.slane %v1787_v59, 2  ;;  %v2098_v17 = vmul.f32 %v3714_v39, %v4565_v44 }
 0x1f5   : > { %v2294_v5 = vadd.f32 %v2215_v61, %v2050_v15  ;;  %3440 = vmatprep.mubr.msk.f32.mxu1 %vm2621_vm3, %v2601_v51  ;;  %v1495_v45 = vadd.f32 %v1463_v48, %v1427_v6  ;;  %v2099_v27 = vmul.f32 %v3714_v39, %v4695_v63  ;;  %v2342_v57 = vmul.f32 %v4488_v36, %v4565_v44 }
 0x1f6   : > { %v2343_v9 = vmul.f32 %v4488_v36, %v4695_v63  ;;  %v1906_v52 = vsel %vm1292_vm2, %v1904_v42, %v1905_v3  ;;  %v2216_v61 = vrot.slane %v2098_v17, 1  ;;  %v938_v10 = vmul.f32 %v3702_v25, %v4437_v60 }
 0x1f7   : > { %v2538_v55 = vadd.f32 %v2459_v41, %v2294_v5  ;;  %v1739_v28 = vadd.f32 %v1662_v23, %v1495_v45  ;;  %v2217_v22 = vrot.slane %v2099_v27, 1  ;;  %v2460_v24 = vrot.slane %v2342_v57, 2  ;;  %v5650_v23 = vld [vmem:[#allocation14_spill] sm:$0xff]  ;;  %v5652_v57 = vld [vmem:[#allocation11_spill] sm:$0xff] }
 0x1f8   : > { %v2461_v48 = vrot.slane %v2343_v9, 2  ;;  %v5646_v38 = vrot.slane %v5645_v62, 1  ;;  %v5648_v0 = vrot.slane %v5647_v40, 2  ;;  %v1464_v41 = vmul.f32 %v3704_v29, %v4526_v34 }
 0x1f9   : > { %v2570_v50 = vmax.f32 %v2538_v55, 0.0  ;;  %v1983_v1 = vadd.f32 %v1906_v52, %v1739_v28  ;;  %v2218_v59 = vsel %vm1047_vm1, %v2216_v61, %v2217_v22  ;;  %v5649_v42 = vrot.slane %v4598_v21, 1 }
 0x1fa   : > { %v1107_v11 = vsel %vm1047_vm1, %v1104_v47, %v5646_v38  ;;  %v1352_v15 = vsel %vm1292_vm2, %v1349_v54, %v5648_v0  ;;  %v2462_v60 = vsel %vm1292_vm2, %v2460_v24, %v2461_v48  ;;  %v5651_v47 = vrot.slane %v5650_v23, 2 }
 0x1fb   : > { %v1183_v51 = vadd.f32 %v1107_v11, %v938_v10  ;;  %v2602_v6 = vmin.f32 %v2570_v50, 6.0  ;;  %v1664_v5 = vsel %vm1047_vm1, %v1661_v18, %v5649_v42  ;;  %v2020_v54 = vmul.f32 %v3716_v43, %v4695_v63 }
 0x1fc   : > { %v1908_v17 = vsel %vm1292_vm2, %v1905_v3, %v5651_v47  ;;  %v2051_v45 = vadd.f32 %v2019_v35, %v1983_v1  ;;  %v2100_v9 = vmul.f32 %v3714_v39, %v5652_v57  ;;  %v2344_v55 = vmul.f32 %v4488_v36, %v5652_v57 }
 0x1fd   : > { %v1428_v27 = vadd.f32 %v1352_v15, %v1183_v51  ;;  %3441 = vmatmul.mubr.msk.f32.gmra.mrb[30].mxu1 %vm2621_vm3, %v2602_v6  ;;  %v939_v21 = vmul.f32 %v3702_v25, %v4528_v12  ;;  %v987_v18 = vmul.f32 %v3698_v19, %v4528_v12  ;;  %v988_v3 = vmul.f32 %v3698_v19, %v4526_v34 }
 0x1fe   : > { %v1232_v35 = vmul.f32 %v3700_v20, %v4528_v12  ;;  %v2295_v52 = vadd.f32 %v2218_v59, %v2051_v45  ;;  %v2219_v10 = vrot.slane %v2100_v9, 1  ;;  %v2463_v28 = vrot.slane %v2344_v55, 2 }
 0x1ff   : > { %v1496_v61 = vadd.f32 %v1464_v41, %v1428_v27  ;;  %v1108_v24 = vrot.slane %v987_v18, 1  ;;  %v1109_v36 = vrot.slane %v988_v3, 1  ;;  %v1233_v50 = vmul.f32 %v3700_v20, %v4526_v34 }
 0x200   : > { %v1353_v62 = vrot.slane %v1232_v35, 2  ;;  %v2539_v38 = vadd.f32 %v2462_v60, %v2295_v52  ;;  %v2220_v40 = vsel %vm1047_vm1, %v2217_v22, %v2219_v10  ;;  %v2464_v0 = vsel %vm1292_vm2, %v2461_v48, %v2463_v28  ;;  %v5654_v52 = vld [vmem:[#allocation25_spill] sm:$0xff] }
 0x201   : > { %v1740_v11 = vadd.f32 %v1664_v5, %v1496_v61  ;;  %v1110_v15 = vsel %vm1047_vm1, %v1108_v24, %v1109_v36  ;;  %v1354_v1 = vrot.slane %v1233_v50, 2  ;;  %v1465_v12 = vmul.f32 %v3704_v29, %v4565_v44  ;;  %v5132_v24 = vld [vmem:[%s5434_s2 + $0x8] ss:$0 sm:$0xff] }
 0x202   : > { %v1545_v41 = vmul.f32 %v3706_v30, %v4565_v44  ;;  %v2571_v59 = vmax.f32 %v2539_v38, 0.0  ;;  %v1184_v6 = vadd.f32 %v1110_v15, %v939_v21  ;;  %v1546_v60 = vmul.f32 %v3706_v30, %v4695_v63 }
 0x203   : > { %v1984_v51 = vadd.f32 %v1908_v17, %v1740_v11  ;;  %v1355_v42 = vsel %vm1292_vm2, %v1353_v62, %v1354_v1  ;;  %v1789_v48 = vmul.f32 %v3708_v31, %v4565_v44  ;;  %v1790_v5 = vmul.f32 %v3708_v31, %v4695_v63  ;;  %v5653_v17 = vld [vmem:[#allocation31_spill] sm:$0xff] }
 0x204   : > { %v1665_v22 = vrot.slane %v1545_v41, 1  ;;  %v2603_v23 = vmin.f32 %v2571_v59, 6.0  ;;  %v1429_v45 = vadd.f32 %v1355_v42, %v1184_v6  ;;  %v1666_v27 = vrot.slane %v1546_v60, 1  ;;  %v5657_v42 = vld [vmem:[#allocation6_spill] sm:$0xff] }
 0x205   : > { %v2052_v47 = vadd.f32 %v2020_v54, %v1984_v51  ;;  %v1909_v57 = vrot.slane %v1789_v48, 2  ;;  %v1910_v9 = vrot.slane %v1790_v5, 2  ;;  %v2021_v55 = vmul.f32 %v3716_v43, %v5653_v17  ;;  %v5126_v54 = vpop.f32.mrb[12].mxu1  ;;  %v5655_v51 = vld [vmem:[#allocation5_spill] sm:$0xff] }
 0x206   : > { %v2101_v21 = vmul.f32 %v3714_v39, %v5653_v17  ;;  %3443 = vmatprep.mubr.msk.f32.mxu1 %vm2621_vm3, %v2603_v23  ;;  %v1497_v3 = vadd.f32 %v1465_v12, %v1429_v45  ;;  %v1667_v35 = vsel %vm1047_vm1, %v1665_v22, %v1666_v27  ;;  %v2102_v61 = vmul.f32 %v3714_v39, %v5654_v52  ;;  %v5138_v38 = vpop.f32.mrb[13].mxu1 }
 0x207   : > { %v2296_v18 = vadd.f32 %v2220_v40, %v2052_v47  ;;  %v1911_v10 = vsel %vm1292_vm2, %v1909_v57, %v1910_v9  ;;  %v2345_v50 = vmul.f32 %v5132_v24, %v5653_v17  ;;  %v2346_v62 = vmul.f32 %v5132_v24, %v5654_v52  ;;  %v5659_v57 = vld [vmem:[#allocation20_spill] sm:$0xff] }
 0x208   : > { %v2221_v28 = vrot.slane %v2101_v21, 1  ;;  %v1741_v40 = vadd.f32 %v1667_v35, %v1497_v3  ;;  %v2222_v15 = vrot.slane %v2102_v61, 1  ;;  %v940_v12 = vmul.f32 %v3702_v25, %v4526_v34  ;;  %v5661_v3 = vld [vmem:[#allocation22_spill] sm:$0xff] }
 0x209   : > { %v2540_v11 = vadd.f32 %v2464_v0, %v2296_v18  ;;  %v2465_v41 = vrot.slane %v2345_v50, 2  ;;  %v2466_v59 = vrot.slane %v2346_v62, 2  ;;  %v5656_v6 = vrot.slane %v5655_v51, 1 }
 0x20a   : > { %v5658_v22 = vrot.slane %v5657_v42, 2  ;;  %v1985_v23 = vadd.f32 %v1911_v10, %v1741_v40  ;;  %v2223_v47 = vsel %vm1047_vm1, %v2221_v28, %v2222_v15  ;;  %v1466_v34 = vmul.f32 %v3704_v29, %v4695_v63  ;;  %v5663_v28 = vld [vmem:[#allocation21_spill] sm:$0xff] }
 0x20b   : > { %v1112_v60 = vsel %vm1047_vm1, %v1109_v36, %v5656_v6  ;;  %v2572_v5 = vmax.f32 %v2540_v11, 0.0  ;;  %v2467_v45 = vsel %vm1292_vm2, %v2465_v41, %v2466_v59  ;;  %v5660_v21 = vrot.slane %v5659_v57, 1 }
 0x20c   : > { %v1357_v48 = vsel %vm1292_vm2, %v1354_v1, %v5658_v22  ;;  %v1185_v0 = vadd.f32 %v1112_v60, %v940_v12  ;;  %v5662_v36 = vrot.slane %v5661_v3, 2  ;;  %v2053_v1 = vadd.f32 %v2021_v55, %v1985_v23 }
 0x20d   : > { %v1669_v18 = vsel %vm1047_vm1, %v1666_v27, %v5660_v21  ;;  %v2604_v61 = vmin.f32 %v2572_v5, 6.0  ;;  %v2022_v10 = vmul.f32 %v3716_v43, %v5654_v52  ;;  %v2103_v62 = vmul.f32 %v3714_v39, %v5663_v28 }
 0x20e   : > { %v1913_v35 = vsel %vm1292_vm2, %v1910_v9, %v5662_v36  ;;  %v1430_v50 = vadd.f32 %v1357_v48, %v1185_v0  ;;  %v2347_v11 = vmul.f32 %v5132_v24, %v5663_v28  ;;  %v941_v40 = vmul.f32 %v3702_v25, %v4565_v44 }
 0x20f   : > { %v990_v27 = vmul.f32 %v3698_v19, %v4565_v44  ;;  %3444 = vmatmul.mubr.msk.f32.gmra.mrb[32].mxu1 %vm2621_vm3, %v2604_v61  ;;  %v2297_v9 = vadd.f32 %v2223_v47, %v2053_v1  ;;  %v991_v12 = vmul.f32 %v3698_v19, %v4695_v63  ;;  %v1235_v41 = vmul.f32 %v3700_v20, %v4565_v44 }
 0x210   : > { %v1498_v55 = vadd.f32 %v1466_v34, %v1430_v50  ;;  %v2224_v51 = vrot.slane %v2103_v62, 1  ;;  %v2468_v6 = vrot.slane %v2347_v11, 2  ;;  %v1236_v42 = vmul.f32 %v3700_v20, %v4695_v63 }
 0x211   : > { %v1113_v60 = vrot.slane %v990_v27, 1  ;;  %v2541_v22 = vadd.f32 %v2467_v45, %v2297_v9  ;;  %v1114_v5 = vrot.slane %v991_v12, 1  ;;  %v1358_v23 = vrot.slane %v1235_v41, 2  ;;  %v5664_v27 = vld [vmem:[#allocation8_spill] sm:$0xff] }
 0x212   : > { %v1742_v48 = vadd.f32 %v1669_v18, %v1498_v55  ;;  %v2225_v0 = vsel %vm1047_vm1, %v2222_v15, %v2224_v51  ;;  %v2469_v47 = vsel %vm1292_vm2, %v2466_v59, %v2468_v6  ;;  %v1359_v34 = vrot.slane %v1236_v42, 2 }
 0x213   : > { %v1467_v57 = vmul.f32 %v3704_v29, %v5653_v17  ;;  %v2573_v21 = vmax.f32 %v2541_v22, 0.0  ;;  %v1115_v3 = vsel %vm1047_vm1, %v1113_v60, %v1114_v5  ;;  %v1548_v36 = vmul.f32 %v3706_v30, %v5653_v17 }
 0x214   : > { %v1986_v44 = vadd.f32 %v1913_v35, %v1742_v48  ;;  %v1186_v61 = vadd.f32 %v1115_v3, %v941_v40  ;;  %v1360_v45 = vsel %vm1292_vm2, %v1358_v23, %v1359_v34  ;;  %v1549_v18 = vmul.f32 %v3706_v30, %v5654_v52 }
 0x215   : > { %v1792_v15 = vmul.f32 %v3708_v31, %v5653_v17  ;;  %v2605_v59 = vmin.f32 %v2573_v21, 6.0  ;;  %v1670_v50 = vrot.slane %v1548_v36, 1  ;;  %v1793_v35 = vmul.f32 %v3708_v31, %v5654_v52 }
 0x216   : > { %v2054_v1 = vadd.f32 %v2022_v10, %v1986_v44  ;;  %v1431_v28 = vadd.f32 %v1360_v45, %v1186_v61  ;;  %v1671_v62 = vrot.slane %v1549_v18, 1  ;;  %v2023_v40 = vmul.f32 %v3716_v43, %v5664_v27  ;;  %v5665_v61 = vld [vmem:[#allocation16_spill] sm:$0xff] }
 0x217   : > { %v1914_v11 = vrot.slane %v1792_v15, 2  ;;  %3446 = vmatprep.mubr.msk.f32.mxu1 %vm2621_vm3, %v2605_v59  ;;  %v1915_v55 = vrot.slane %v1793_v35, 2  ;;  %v2104_v12 = vmul.f32 %v3714_v39, %v5664_v27  ;;  %v2105_v10 = vmul.f32 %v3714_v39, %v4627_v58  ;;  %v5667_v15 = vld [vmem:[#allocation19_spill] sm:$0xff] }
 0x218   : > { %v2298_v9 = vadd.f32 %v2225_v0, %v2054_v1  ;;  %v1499_v41 = vadd.f32 %v1467_v57, %v1431_v28  ;;  %v1672_v51 = vsel %vm1047_vm1, %v1670_v50, %v1671_v62  ;;  %v2348_v6 = vmul.f32 %v5132_v24, %v5664_v27 }
 0x219   : > { %v2349_v60 = vmul.f32 %v5132_v24, %v4627_v58  ;;  %v1916_v22 = vsel %vm1292_vm2, %v1914_v11, %v1915_v55  ;;  %v2226_v48 = vrot.slane %v2104_v12, 1  ;;  %v2227_v23 = vrot.slane %v2105_v10, 1  ;;  %v5671_v10 = vld [vmem:[#allocation24_spill] sm:$0xff] }
 0x21a   : > { %v2542_v42 = vadd.f32 %v2469_v47, %v2298_v9  ;;  %v1743_v0 = vadd.f32 %v1672_v51, %v1499_v41  ;;  %v2470_v21 = vrot.slane %v2348_v6, 2  ;;  %v942_v3 = vmul.f32 %v3702_v25, %v4695_v63  ;;  %v5669_v63 = vld [vmem:[#allocation18_spill] sm:$0xff] }
 0x21b   : > { %v2471_v44 = vrot.slane %v2349_v60, 2  ;;  %v2228_v36 = vsel %vm1047_vm1, %v2226_v48, %v2227_v23  ;;  %v5666_v45 = vrot.slane %v5665_v61, 1  ;;  %v5668_v59 = vrot.slane %v5667_v15, 2  ;;  %v5673_v60 = vld [vmem:[#allocation23_spill] sm:$0xff]  ;;  %v5226_v48 = vpop.f32.mrb[14].mxu1 }
 0x21c   : > { %v2574_v57 = vmax.f32 %v2542_v42, 0.0  ;;  %v1987_v1 = vadd.f32 %v1916_v22, %v1743_v0  ;;  %v1468_v28 = vmul.f32 %v3704_v29, %v5654_v52  ;;  %v5670_v9 = vrot.slane %v5669_v63, 1 }
 0x21d   : > { %v1117_v18 = vsel %vm1047_vm1, %v1114_v5, %v5666_v45  ;;  %v1362_v47 = vsel %vm1292_vm2, %v1359_v34, %v5668_v59  ;;  %v2472_v50 = vsel %vm1292_vm2, %v2470_v21, %v2471_v44  ;;  %v5672_v41 = vrot.slane %v5671_v10, 2  ;;  %v5237_v21 = vpop.f32.mrb[15].mxu1 }
 0x21e   : > { %v1187_v35 = vadd.f32 %v1117_v18, %v942_v3  ;;  %v2606_v11 = vmin.f32 %v2574_v57, 6.0  ;;  %v1674_v12 = vsel %vm1047_vm1, %v1671_v62, %v5670_v9  ;;  %v2024_v51 = vmul.f32 %v3716_v43, %v4627_v58 }
 0x21f   : > { %v1918_v5 = vsel %vm1292_vm2, %v1915_v55, %v5672_v41  ;;  %v2055_v34 = vadd.f32 %v2023_v40, %v1987_v1  ;;  %v2106_v42 = vmul.f32 %v3714_v39, %v5673_v60  ;;  %v2350_v22 = vmul.f32 %v5132_v24, %v5673_v60 }
 0x220   : > { %v1432_v6 = vadd.f32 %v1362_v47, %v1187_v35  ;;  %3447 = vmatmul.mubr.msk.f32.gmra.mrb[34].mxu1 %vm2621_vm3, %v2606_v11  ;;  %v943_v62 = vmul.f32 %v3702_v25, %v5653_v17  ;;  %v993_v55 = vmul.f32 %v3698_v19, %v5653_v17  ;;  %v994_v40 = vmul.f32 %v3698_v19, %v5654_v52 }
 0x221   : > { %v1238_v0 = vmul.f32 %v3700_v20, %v5653_v17  ;;  %v2299_v3 = vadd.f32 %v2228_v36, %v2055_v34  ;;  %v2229_v61 = vrot.slane %v2106_v42, 1  ;;  %v2473_v45 = vrot.slane %v2350_v22, 2 }
 0x222   : > { %v1500_v57 = vadd.f32 %v1468_v28, %v1432_v6  ;;  %v1118_v18 = vrot.slane %v993_v55, 1  ;;  %v1119_v15 = vrot.slane %v994_v40, 1  ;;  %v1239_v59 = vmul.f32 %v3700_v20, %v5654_v52 }
 0x223   : > { %v1363_v47 = vrot.slane %v1238_v0, 2  ;;  %v2543_v1 = vadd.f32 %v2472_v50, %v2299_v3  ;;  %v2230_v11 = vsel %vm1047_vm1, %v2227_v23, %v2229_v61  ;;  %v2474_v19 = vsel %vm1292_vm2, %v2471_v44, %v2473_v45 }
 0x224   : > { %v1744_v35 = vadd.f32 %v1674_v12, %v1500_v57  ;;  %v1120_v17 = vsel %vm1047_vm1, %v1118_v18, %v1119_v15  ;;  %v1364_v63 = vrot.slane %v1239_v59, 2  ;;  %v1469_v36 = vmul.f32 %v3704_v29, %v5664_v27 }
 0x225   : > { %v1551_v28 = vmul.f32 %v3706_v30, %v5664_v27  ;;  %v2575_v9 = vmax.f32 %v2543_v1, 0.0  ;;  %v1188_v20 = vadd.f32 %v1120_v17, %v943_v62  ;;  %v1552_v50 = vmul.f32 %v3706_v30, %v4627_v58 }
 0x226   : > { %v1988_v10 = vadd.f32 %v1918_v5, %v1744_v35  ;;  %v1365_v23 = vsel %vm1292_vm2, %v1363_v47, %v1364_v63  ;;  %v1795_v44 = vmul.f32 %v3708_v31, %v5664_v27  ;;  %v1796_v41 = vmul.f32 %v3708_v31, %v4627_v58  ;;  %v5674_v5 = vld [vmem:[#allocation26_spill] sm:$0xff]  ;;  %v5675_v35 = vld [vmem:[#allocation12_spill] sm:$0xff] }
 0x227   : > { %v1675_v12 = vrot.slane %v1551_v28, 1  ;;  %v2607_v34 = vmin.f32 %v2575_v9, 6.0  ;;  %v1433_v60 = vadd.f32 %v1365_v23, %v1188_v20  ;;  %v1676_v42 = vrot.slane %v1552_v50, 1  ;;  %v5679_v20 = vld [vmem:[#allocation13_spill] sm:$0xff] }
 0x228   : > { %v2056_v6 = vadd.f32 %v2024_v51, %v1988_v10  ;;  %v1919_v22 = vrot.slane %v1795_v44, 2  ;;  %v1920_v55 = vrot.slane %v1796_v41, 2  ;;  %v2025_v62 = vmul.f32 %v3716_v43, %v5674_v5  ;;  %v2944_v41 = vld [vmem:[%s5276_s11 + $0x8] sm:$0xff] }
 0x229   : > { %v2107_v30 = vmul.f32 %v3714_v39, %v5674_v5  ;;  %3449 = vmatprep.mubr.msk.f32.mxu1 %vm2621_vm3, %v2607_v34  ;;  %v1501_v40 = vadd.f32 %v1469_v36, %v1433_v60  ;;  %v1677_v31 = vsel %vm1047_vm1, %v1675_v12, %v1676_v42  ;;  %v2108_v51 = vmul.f32 %v3714_v39, %v4762_v46  ;;  %v5681_v12 = vld [vmem:[#allocation15_spill] sm:$0xff] }
 0x22a   : > { %v2300_v27 = vadd.f32 %v2230_v11, %v2056_v6  ;;  %v1921_v0 = vsel %vm1292_vm2, %v1919_v22, %v1920_v55  ;;  %v2351_v57 = vmul.f32 %v5132_v24, %v5674_v5  ;;  %v2352_v61 = vmul.f32 %v5132_v24, %v4762_v46  ;;  %v2943_v22 = vld [vmem:[%s5276_s11] sm:$0xff]  ;;  %v2946_v5 = vld [vmem:[%s5276_s11 + $0x18] sm:$0xff] }
 0x22b   : > { %v2231_v3 = vrot.slane %v2107_v30, 1  ;;  %v1745_v18 = vadd.f32 %v1677_v31, %v1501_v40  ;;  %v2232_v59 = vrot.slane %v2108_v51, 1  ;;  %v944_v47 = vmul.f32 %v3702_v25, %v5654_v52 }
 0x22c   : > { %v2544_v45 = vadd.f32 %v2474_v19, %v2300_v27  ;;  %v2475_v39 = vrot.slane %v2351_v57, 2  ;;  %v2476_v1 = vrot.slane %v2352_v61, 2  ;;  %v5676_v11 = vrot.slane %v5675_v35, 1  ;;  %v5677_v19 = vld [vmem:[#allocation17_spill] sm:$0xff]  ;;  %v2952_v35 = vld [vmem:[%s5276_s11 + $0x48] sm:$0xff] }
 0x22d   : > { %v5678_v17 = vrot.slane %v5677_v19, 2  ;;  %v1989_v52 = vadd.f32 %v1921_v0, %v1745_v18  ;;  %v2233_v28 = vsel %vm1047_vm1, %v2231_v3, %v2232_v59  ;;  %v5680_v50 = vrot.slane %v5679_v20, 1  ;;  %v2949_v0 = vld [vmem:[%s5276_s11 + $0x30] sm:$0xff] }
 0x22e   : > { %v1122_v24 = vsel %vm1047_vm1, %v1119_v15, %v5676_v11  ;;  %v2576_v25 = vmax.f32 %v2544_v45, 0.0  ;;  %v2477_v10 = vsel %vm1292_vm2, %v2475_v39, %v2476_v1  ;;  %v5682_v15 = vrot.slane %v5681_v12, 2  ;;  %v2951_v11 = vld [vmem:[%s5276_s11 + $0x40] sm:$0xff] }
 0x22f   : > { %v1367_v36 = vsel %vm1292_vm2, %v1364_v63, %v5678_v17  ;;  %v1189_v9 = vadd.f32 %v1122_v24, %v944_v47  ;;  %v1679_v23 = vsel %vm1047_vm1, %v1676_v42, %v5680_v50  ;;  %v2057_v34 = vadd.f32 %v2025_v62, %v1989_v52  ;;  %v2953_v52 = vld [vmem:[%s5276_s11 + $0x50] sm:$0xff]  ;;  %v2956_v50 = vld [vmem:[%s5276_s11 + $0x68] sm:$0xff] }
 0x230   : > { %v1923_v44 = vsel %vm1292_vm2, %v1920_v55, %v5682_v15  ;;  %v2608_v63 = vmin.f32 %v2576_v25, 6.0  ;;  %v1470_v60 = vmul.f32 %v3704_v29, %v4627_v58  ;;  %v2235_v30 = vsel %vm1047_vm1, %v2232_v59, %v2234_v26  ;;  %v2945_v58 = vld [vmem:[%s5276_s11 + $0x10] sm:$0xff]  ;;  %v2954_v25 = vld [vmem:[%s5276_s11 + $0x58] sm:$0xff] }
 0x231   : > { %v1434_v6 = vadd.f32 %v1367_v36, %v1189_v9  ;;  %v2479_v42 = vsel %vm1292_vm2, %v2476_v1, %v2478_v7  ;;  %v2303_v55 = vadd.f32 %v4974_v32, %v4927_v16  ;;  %v5683_v62 = vrot.slane %v4878_v56, 2  ;;  %v2947_v16 = vld [vmem:[%s5276_s11 + $0x20] sm:$0xff]  ;;  %v2950_v32 = vld [vmem:[%s5276_s11 + $0x38] sm:$0xff] }
 0x232   : > { %3450 = vmatmul.mubr.msk.f32.gmra.mrb[36].mxu1 %vm2621_vm3, %v2608_v63  ;;  %v2301_v8 = vadd.f32 %v2233_v28, %v2057_v34  ;;  %v2484_v56 = vsel %vm1292_vm2, %v2481_v33, %v2483_v14  ;;  %v2976_v7 = vadd.f32 %v5054_v2, %v2944_v41  ;;  %v2975_v31 = vadd.f32 %v2943_v22, %v5059_v37  ;;  %v3421_v2 = vpop.f32.mrb[16].mxu1  ;;  %v2958_v63 = vld [vmem:[%s5276_s11 + $0x78] sm:$0xff]  ;;  %v2957_v34 = vld [vmem:[%s5276_s11 + $0x70] sm:$0xff] }
 0x233   : > { %v2482_v29 = vsel %vm1292_vm2, %v5683_v62, %v2481_v33  ;;  %v1502_v26 = vadd.f32 %v1470_v60, %v1434_v6  ;;  %v2548_v40 = vadd.f32 %v2484_v56, %v4989_v53  ;;  %v2978_v51 = vadd.f32 %v5126_v54, %v2946_v5  ;;  %v2814_v54 = vpop.f32.mrb[17].mxu1 }
 0x234   : > { %v2547_v27 = vadd.f32 %v2482_v29, %v2303_v55  ;;  %v2545_v4 = vadd.f32 %v2477_v10, %v2301_v8  ;;  %3008 = vst.msk [vmem:[%s5315_s14 + $0x8] sm:$0xff] %vm303_vm0, %v2976_v7  ;;  %v2977_v14 = vadd.f32 %v2945_v58, %v5138_v38  ;;  %v2980_v33 = vadd.f32 %v5226_v48, %v2948_v49  ;;  %v2962_v49 = vld [vmem:[%s5276_s11 + $0x98] sm:$0xff]  ;;  %v2961_v8 = vld [vmem:[%s5276_s11 + $0x90] sm:$0xff] }
 0x235   : > { %v1746_v13 = vadd.f32 %v1679_v23, %v1502_v26  ;;  %3007 = vst.msk [vmem:[%s5315_s14] sm:$0xff] %vm303_vm0, %v2975_v31  ;;  %3010 = vst.msk [vmem:[%s5315_s14 + $0x18] sm:$0xff] %vm303_vm0, %v2978_v51  ;;  %v2979_v53 = vadd.f32 %v2947_v16, %v5237_v21  ;;  %v2982_v37 = vadd.f32 %v3421_v2, %v2950_v32  ;;  %v2580_v47 = vmax.f32 %v2548_v40, 0.0  ;;  %v2955_v23 = vld [vmem:[%s5276_s11 + $0x60] sm:$0xff]  ;;  %v2964_v32 = vld [vmem:[%s5276_s11 + $0xa8] sm:$0xff] }
 0x236   : > { %v2577_v3 = vmax.f32 %v2545_v4, 0.0  ;;  %v2026_v61 = vmul.f32 %v3716_v43, %v4762_v46  ;;  %3009 = vst.msk [vmem:[%s5315_s14 + $0x10] sm:$0xff] %vm303_vm0, %v2977_v14  ;;  %3012 = vst.msk [vmem:[%s5315_s14 + $0x28] sm:$0xff] %vm303_vm0, %v2980_v33  ;;  %v2981_v38 = vadd.f32 %v2949_v0, %v2814_v54  ;;  %v2579_v43 = vmax.f32 %v2547_v27, 0.0  ;;  %v2963_v27 = vld [vmem:[%s5276_s11 + $0xa0] sm:$0xff]  ;;  %v2966_v4 = vld [vmem:[%s5276_s11 + $0xb8] sm:$0xff] }
 0x237   : > { %v1990_v57 = vadd.f32 %v1923_v44, %v1746_v13  ;;  %3011 = vst.msk [vmem:[%s5315_s14 + $0x20] sm:$0xff] %vm303_vm0, %v2979_v53  ;;  %3014 = vst.msk [vmem:[%s5315_s14 + $0x38] sm:$0xff] %vm303_vm0, %v2982_v37  ;;  %v2612_v1 = vmin.f32 %v2580_v47, 6.0  ;;  %v2965_v13 = vld [vmem:[%s5276_s11 + $0xb0] sm:$0xff]  ;;  %v2968_v37 = vld [vmem:[%s5276_s11 + $0xc8] sm:$0xff] }
 0x238   : > { %v2609_v48 = vmin.f32 %v2577_v3, 6.0  ;;  %3013 = vst.msk [vmem:[%s5315_s14 + $0x30] sm:$0xff] %vm303_vm0, %v2981_v38  ;;  %v2611_v39 = vmin.f32 %v2579_v43, 6.0  ;;  %v2967_v54 = vld [vmem:[%s5276_s11 + $0xc0] sm:$0xff] }
 0x239   : > { %v2058_v21 = vadd.f32 %v2026_v61, %v1990_v57  ;;  %v2971_v47 = vld [vmem:[%s5276_s11 + $0xe0] sm:$0xff] }
 0x23a   : > { %3452 = vmatprep.mubr.msk.f32.mxu1 %vm2621_vm3, %v2609_v48  ;;  %v2970_v48 = vld [vmem:[%s5276_s11 + $0xd8] sm:$0xff] }
 0x23b   : > { %v2302_v45 = vadd.f32 %v2235_v30, %v2058_v21  ;;  %v2960_v30 = vld [vmem:[%s5276_s11 + $0x88] sm:$0xff]  ;;  %v2969_v21 = vld [vmem:[%s5276_s11 + $0xd0] sm:$0xff] }
 0x23d   : > { %v2546_v18 = vadd.f32 %v2479_v42, %v2302_v45  ;;  %v2959_v42 = vld [vmem:[%s5276_s11 + $0x80] sm:$0xff] }
 0x23f   : > { %v2578_v46 = vmax.f32 %v2546_v18, 0.0 }
 0x241   : > { %v2610_v59 = vmin.f32 %v2578_v46, 6.0 }
 0x242   : > { %v3424_v24 = vpop.f32.mrb[18].mxu1 }
 0x243   : > { %3453 = vmatmul.mubr.msk.f32.gmra.mrb[38].mxu1 %vm2621_vm3, %v2610_v59  ;;  %v2984_v19 = vadd.f32 %v3424_v24, %v2952_v35  ;;  %v2824_v17 = vpop.f32.mrb[19].mxu1  ;;  %v2972_v59 = vld [vmem:[%s5276_s11 + $0xe8] sm:$0xff]  ;;  %v2974_v24 = vld [vmem:[%s5276_s11 + $0xf8] sm:$0xff] }
 0x244   : > { %3455 = vmatprep.mubr.msk.f32.mxu1 %vm2621_vm3, %v2611_v39  ;;  %v2983_v36 = vadd.f32 %v2951_v11, %v2824_v17 }
 0x245   : > { %3016 = vst.msk [vmem:[%s5315_s14 + $0x48] sm:$0xff] %vm303_vm0, %v2984_v19  ;;  %v2973_v19 = vld [vmem:[%s5276_s11 + $0xf0] sm:$0xff] }
 0x246   : > { %3015 = vst.msk [vmem:[%s5315_s14 + $0x40] sm:$0xff] %vm303_vm0, %v2983_v36 }
 0x247   : > { %3456 = vmatmul.mubr.msk.f32.gmra.mrb[40].mxu1 %vm2621_vm3, %v2612_v1 }
 0x256   : > { %v3427_v28 = vpop.f32.mrb[20].mxu1 }
 0x257   : > { %v2986_v9 = vadd.f32 %v3427_v28, %v2954_v25  ;;  %v2834_v10 = vpop.f32.mrb[21].mxu1 }
 0x258   : > { %v2985_v20 = vadd.f32 %v2953_v52, %v2834_v10 }
 0x259   : > { %3018 = vst.msk [vmem:[%s5315_s14 + $0x58] sm:$0xff] %vm303_vm0, %v2986_v9 }
 0x25a   : > { %3017 = vst.msk [vmem:[%s5315_s14 + $0x50] sm:$0xff] %vm303_vm0, %v2985_v20 }
 0x26a   : > { %v3430_v12 = vpop.f32.mrb[22].mxu1 }
 0x26b   : > { %v2988_v15 = vadd.f32 %v3430_v12, %v2956_v50  ;;  %v2844_v44 = vpop.f32.mrb[23].mxu1 }
 0x26c   : > { %v2987_v41 = vadd.f32 %v2955_v23, %v2844_v44 }
 0x26d   : > { %3020 = vst.msk [vmem:[%s5315_s14 + $0x68] sm:$0xff] %vm303_vm0, %v2988_v15 }
 0x26e   : > { %3019 = vst.msk [vmem:[%s5315_s14 + $0x60] sm:$0xff] %vm303_vm0, %v2987_v41 }
 0x27e   : > { %v3433_v6 = vpop.f32.mrb[24].mxu1 }
 0x27f   : > { %v2990_v60 = vadd.f32 %v3433_v6, %v2958_v63  ;;  %v2854_v22 = vpop.f32.mrb[25].mxu1 }
 0x280   : > { %v2989_v5 = vadd.f32 %v2957_v34, %v2854_v22 }
 0x281   : > { %3022 = vst.msk [vmem:[%s5315_s14 + $0x78] sm:$0xff] %vm303_vm0, %v2990_v60 }
 0x282   : > { %3021 = vst.msk [vmem:[%s5315_s14 + $0x70] sm:$0xff] %vm303_vm0, %v2989_v5 }
 0x296   : > { %v3436_v55 = vpop.f32.mrb[26].mxu1 }
 0x297   : > { %v2992_v62 = vadd.f32 %v3436_v55, %v2960_v30  ;;  %v2864_v29 = vpop.f32.mrb[27].mxu1 }
 0x298   : > { %v2991_v58 = vadd.f32 %v2959_v42, %v2864_v29 }
 0x299   : > { %3024 = vst.msk [vmem:[%s5315_s14 + $0x88] sm:$0xff] %vm303_vm0, %v2992_v62 }
 0x29a   : > { %3023 = vst.msk [vmem:[%s5315_s14 + $0x80] sm:$0xff] %vm303_vm0, %v2991_v58 }
 0x2b7   : > { %v3439_v26 = vpop.f32.mrb[28].mxu1 }
 0x2b8   : > { %v2994_v56 = vadd.f32 %v3439_v26, %v2962_v49  ;;  %v2874_v7 = vpop.f32.mrb[29].mxu1 }
 0x2b9   : > { %v2993_v16 = vadd.f32 %v2961_v8, %v2874_v7 }
 0x2ba   : > { %3026 = vst.msk [vmem:[%s5315_s14 + $0x98] sm:$0xff] %vm303_vm0, %v2994_v56 }
 0x2bb   : > { %3025 = vst.msk [vmem:[%s5315_s14 + $0x90] sm:$0xff] %vm303_vm0, %v2993_v16 }
 0x2d0   : > { %v3442_v40 = vpop.f32.mrb[30].mxu1 }
 0x2d1   : > { %v2996_v31 = vadd.f32 %v3442_v40, %v2964_v32  ;;  %v2884_v51 = vpop.f32.mrb[31].mxu1 }
 0x2d2   : > { %v2995_v0 = vadd.f32 %v2963_v27, %v2884_v51 }
 0x2d3   : > { %3028 = vst.msk [vmem:[%s5315_s14 + $0xa8] sm:$0xff] %vm303_vm0, %v2996_v31 }
 0x2d4   : > { %3027 = vst.msk [vmem:[%s5315_s14 + $0xa0] sm:$0xff] %vm303_vm0, %v2995_v0 }
 0x2e2   : > { %v3445_v14 = vpop.f32.mrb[32].mxu1 }
 0x2e3   : > { %v2998_v33 = vadd.f32 %v3445_v14, %v2966_v4  ;;  %v2894_v2 = vpop.f32.mrb[33].mxu1 }
 0x2e4   : > { %v2997_v53 = vadd.f32 %v2965_v13, %v2894_v2 }
 0x2e5   : > { %3030 = vst.msk [vmem:[%s5315_s14 + $0xb8] sm:$0xff] %vm303_vm0, %v2998_v33 }
 0x2e6   : > { %3029 = vst.msk [vmem:[%s5315_s14 + $0xb0] sm:$0xff] %vm303_vm0, %v2997_v53 }
 0x2f3   : > { %v3448_v3 = vpop.f32.mrb[34].mxu1 }
 0x2f4   : > { %v3000_v57 = vadd.f32 %v3448_v3, %v2968_v37  ;;  %v2904_v61 = vpop.f32.mrb[35].mxu1 }
 0x2f5   : > { %v2999_v38 = vadd.f32 %v2967_v54, %v2904_v61 }
 0x2f6   : > { %3032 = vst.msk [vmem:[%s5315_s14 + $0xc8] sm:$0xff] %vm303_vm0, %v3000_v57 }
 0x2f7   : > { %3031 = vst.msk [vmem:[%s5315_s14 + $0xc0] sm:$0xff] %vm303_vm0, %v2999_v38 }
 0x305   : > { %v3451_v45 = vpop.f32.mrb[36].mxu1 }
 0x306   : > { %v3002_v18 = vadd.f32 %v3451_v45, %v2970_v48  ;;  %v2914_v43 = vpop.f32.mrb[37].mxu1 }
 0x307   : > { %v3001_v46 = vadd.f32 %v2969_v21, %v2914_v43 }
 0x308   : > { %3034 = vst.msk [vmem:[%s5315_s14 + $0xd8] sm:$0xff] %vm303_vm0, %v3002_v18 }
 0x309   : > { %3033 = vst.msk [vmem:[%s5315_s14 + $0xd0] sm:$0xff] %vm303_vm0, %v3001_v46 }
 0x316   : > { %v3454_v39 = vpop.f32.mrb[38].mxu1 }
 0x317   : > { %v3004_v1 = vadd.f32 %v3454_v39, %v2972_v59  ;;  %v2924_v35 = vpop.f32.mrb[39].mxu1 }
 0x318   : > { %v3003_v11 = vadd.f32 %v2971_v47, %v2924_v35 }
 0x319   : > { %3036 = vst.msk [vmem:[%s5315_s14 + $0xe8] sm:$0xff] %vm303_vm0, %v3004_v1 }
 0x31a   : > { %3035 = vst.msk [vmem:[%s5315_s14 + $0xe0] sm:$0xff] %vm303_vm0, %v3003_v11  ;;  %v3457_v17 = vpop.f32.mrb[40].mxu1 }
 0x31b   : > { %v3006_v36 = vadd.f32 %v3457_v17, %v2974_v24  ;;  %v2934_v25 = vpop.f32.mrb[41].mxu1 }
 0x31c   : > { %v3005_v52 = vadd.f32 %v2973_v19, %v2934_v25 }
 0x31d   : > { %3038 = vst.msk [vmem:[%s5315_s14 + $0xf8] sm:$0xff] %vm303_vm0, %v3006_v36 }
 0x31e   : > { %3037 = vst.msk [vmem:[%s5315_s14 + $0xf0] sm:$0xff] %vm303_vm0, %v3005_v52 }
 0x31f PF: > { %s15_s18 = sadd.s32 1, %s3503_s18  }
 0x320   : > { %p12_p4 = scmp.ge.s32.totalorder %s15_s18, 4  }
 0x322   :  { %14 = sbr.rel (!%p12_p4) target bundleno = 1 (0x1), region = 73 }

// kernel: detail_node.5
= control target key start
LH: loop header
LB: loop body
LE: loop exit
PB: predicated region body
PF: predicated region fallthrough
CT: control target
= control target key end

     0   :  { %11 = vsyncpa [#allocation3], 0  ;;  %s6281_s0 = inlined_call_operand.vmem [shape: f32[2,18,24,32], index: 0, kind: input, shape index: {}]   ;;  %s6282_s1 = inlined_call_operand.vmem [shape: f32[32,128], index: 1, kind: input, shape index: {}]   ;;  %s6283_s2 = inlined_call_operand.vmem [shape: f32[9,128], index: 2, kind: input, shape index: {}]   ;;  %s6284_s3 = inlined_call_operand.vmem [shape: f32[128,32], index: 3, kind: input, shape index: {}]   ;;  %s6285_s4 = inlined_call_operand.vmem [shape: f32[128,32], index: 4, kind: input, shape index: {}]   ;;  %s6286_s5 = inlined_call_operand.vmem [shape: f32[2,16,16,32], index: 5, kind: input, shape index: {}]   ;;  %s6287_s6 = inlined_call_operand.hbm [shape: f32[2,16,16,32], index: 6, kind: output, shape index: {}]  }
   0x1   :  { %13 = vsyncpa [#allocation3 + $0x1], 0  ;;  %s4171_s21 = smov 0   ;;  %s4173_s22 = smov 0  }
   0x2   :  { %s4175_s23 = smov 0   ;;  %s4177_s24 = smov 0  }
   0x3 LB: > { %s4192_s25 = sadd.s32 4294967295, %s4131_s24   ;;  %s3400_s26 = sadd.s32 4294967294, %s4131_s24   ;;  %s4131_s24 = sphi %s4177_s24, %s6485_s24   ;;  %s4127_s23 = sphi %s4175_s23, %s6484_s23   ;;  %s4123_s22 = sphi %s4173_s22, %s6483_s22   ;;  %s4119_s21 = sphi %s4171_s21, %s6482_s21  }
   0x4   : > { %s4196_s27 = sadd.s32 1, %s4131_s24   ;;  %s162_s28 = sadd.s32 1, %s4127_s23 }
   0x5   : > { %s159_s29 = ssub.s32 %s4131_s24, %s4196_s27  ;;  %p172_p0 = scmp.ne.s32.totalorder %s4127_s23, %s4123_s22 }
   0x6   : > { %p160_p1 = scmp.eq.s32.totalorder %s159_s29, 0  ;;  %p173_p2 = scmp.eq.s32.totalorder %s4192_s25, 1 }
   0x7   : > { %p178_p3 = scmp.ne.s32.totalorder %s4123_s22, %s4119_s21  ;;  %p179_p4 = scmp.eq.s32.totalorder %s3400_s26, 1 }
   0x8   : > { %s4207_s30 = scalar_select %p160_p1, %s4127_s23, %s162_s28  }
   0x9   : > { %p4209_p5 = por %p173_p2, %p172_p0  ;;  %p4213_p6 = por %p179_p4, %p178_p3 }
   0xa   : > { %p3403_p7 = scmp.ge.s32.totalorder %s4131_s24, 1  ;;  %p225_p8 = scmp.lt.s32.totalorder %s4131_s24, 3 }
   0xc   : > { %p226_p9 = pnand %p3403_p7, %p225_p8 }
   0xe   : > { %229 = sbr.rel (%p226_p9) target bundleno = 884 (0x374), region = 44 }
  0x15   : > { %v324_v0 = vld [vmem:[%s6282_s1] sm:$0xff]  ;;  %v325_v1 = vld [vmem:[%s6282_s1 + $0x8] sm:$0xff]  ;;  %v326_v2 = vld [vmem:[%s6282_s1 + $0x10] sm:$0xff]  ;;  %p260_p10 = scmp.lt.s32.totalorder %s4192_s25, 1  ;;  %vm328_vm0 = vcmask 261120   ;;  %vm1072_vm1 = vcmask 1046528  }
  0x16   : > { %v3873_v3 = vpack.c.bf16 %v325_v1, %v324_v0  ;;  %v327_v4 = vld [vmem:[%s6282_s1 + $0x18] sm:$0xff]  ;;  %v2638_v51 = vld [vmem:[%s6284_s3] sm:$0xff]  ;;  %v2639_v52 = vld [vmem:[%s6284_s3 + $0x8] sm:$0xff]  ;;  %vm1317_vm2 = vcmask 1045504   ;;  %s257_s14 = sand.u32 1, %s4123_s22   ;;  %s3469_s15 = sshll.u32 %s4192_s25, 12 }
  0x17   : > { %v3877_v5 = vpack.c.bf16 %v327_v4, %v326_v2  ;;  %s4233_s17 = scalar_select %p260_p10, %s4192_s25, 1  ;;  %v3881_v53 = vpack.c.bf16 %v2639_v52, %v2638_v51  ;;  %v2640_v56 = vld [vmem:[%s6284_s3 + $0x10] sm:$0xff]  ;;  %v2641_v57 = vld [vmem:[%s6284_s3 + $0x18] sm:$0xff]  ;;  %v2642_v63 = vld [vmem:[%s6284_s3 + $0x20] sm:$0xff] }
  0x18   : > { %3874 = vmatprep.subr.bf16.mxu0 %v3873_v3  ;;  %v3885_v58 = vpack.c.bf16 %v2641_v57, %v2640_v56  ;;  %v2643_v0 = vld [vmem:[%s6284_s3 + $0x28] sm:$0xff]  ;;  %v2644_v4 = vld [vmem:[%s6284_s3 + $0x30] sm:$0xff]  ;;  %s6230_s20 = scalar_lea.hbm %s6287_s6, %s3469_s15  ;;  %s6240_s25 = scalar_lea.sflag [#allocation3], %s257_s14 }
  0x19   : > { %3876 = vmatpush3.bf16.msra.mxu0 %v3873_v3  ;;  %s3961_s18 = smul.u32 432, %s4233_s17  ;;  %3945 = vmatprep.subr.bf16.mxu1 %v3881_v53  ;;  %v3889_v1 = vpack.c.bf16 %v2643_v0, %v2642_v63  ;;  %s3468_s10 = sshll.u32 %s4233_s17, 8 }
  0x1a   : > { %3878 = vmatprep.subr.bf16.mxu0 %v3877_v5  ;;  %3953 = vmatpush3.bf16.msra.mxu1 %v3881_v53  ;;  %s6096_s13 = scalar_lea.vmem %s6286_s5, %s3468_s10  ;;  %s3404_s17 = sshll.u32 %s257_s14, 8 }
  0x1b   : > { %s4239_s26 = scalar_lea.vmem %s6281_s0, %s3961_s18  ;;  %3946 = vmatprep.subr.bf16.mxu1 %v3885_v58  ;;  %s4133_s29 = smov [#allocation2]  }
  0x1c   : > { %v270_v6 = vld [vmem:[%s4239_s26] sm:$0xff]  ;;  %v271_v7 = vld [vmem:[%s4239_s26 + $0x8] sm:$0xff]  ;;  %v272_v8 = vld [vmem:[%s4239_s26 + $0x10] sm:$0xff]  ;;  %s4073_s9 = sshll.u32 %s4133_s29, 4  ;;  %s4074_s9 = int_to_ptr.vmem [resolvable:$false] %s4073_s9 }
  0x1d   : > { %3880 = vmatpush3.bf16.msra.mxu0 %v3877_v5  ;;  %3632 = vmatprep.mubr.msk.f32.mxu0 %vm328_vm0, %v270_v6  ;;  %v273_v9 = vld [vmem:[%s4239_s26 + $0x18] sm:$0xff]  ;;  %v274_v10 = vld [vmem:[%s4239_s26 + $0x20] sm:$0xff]  ;;  %v275_v11 = vld [vmem:[%s4239_s26 + $0x28] sm:$0xff]  ;;  %s4075_s10 = scalar_lea.vmem %s4074_s9, 8192 }
  0x1e   : > { %v276_v12 = vld [vmem:[%s4239_s26 + $0x30] sm:$0xff]  ;;  %v277_v13 = vld [vmem:[%s4239_s26 + $0x38] sm:$0xff]  ;;  %v278_v14 = vld [vmem:[%s4239_s26 + $0x40] sm:$0xff]  ;;  %3882 = vmatprep.subr.bf16.mxu0 %v3881_v53  ;;  %3954 = vmatpush3.bf16.msra.mxu1 %v3885_v58 }
  0x1f   : > { %v279_v15 = vld [vmem:[%s4239_s26 + $0x48] sm:$0xff]  ;;  %v280_v16 = vld [vmem:[%s4239_s26 + $0x50] sm:$0xff]  ;;  %v281_v17 = vld [vmem:[%s4239_s26 + $0x58] sm:$0xff]  ;;  %3947 = vmatprep.subr.bf16.mxu1 %v3889_v1 }
  0x20   : > { %3633 = vmatmul.mubr.msk.f32.vlgmr.msra.gmra.mrb[0].mxu0 %vm328_vm0, %v271_v7  ;;  %v282_v18 = vld [vmem:[%s4239_s26 + $0x60] sm:$0xff]  ;;  %v283_v19 = vld [vmem:[%s4239_s26 + $0x68] sm:$0xff]  ;;  %v284_v20 = vld [vmem:[%s4239_s26 + $0x70] sm:$0xff] }
  0x21   : > { %3635 = vmatprep.mubr.msk.f32.mxu0 %vm328_vm0, %v272_v8  ;;  %v285_v21 = vld [vmem:[%s4239_s26 + $0x78] sm:$0xff]  ;;  %v286_v22 = vld [vmem:[%s4239_s26 + $0x80] sm:$0xff]  ;;  %v287_v23 = vld [vmem:[%s4239_s26 + $0x88] sm:$0xff]  ;;  %3884 = vmatpush3.bf16.msra.mxu0 %v3881_v53 }
  0x22   : > { %v288_v24 = vld [vmem:[%s4239_s26 + $0x90] sm:$0xff]  ;;  %v289_v25 = vld [vmem:[%s4239_s26 + $0x98] sm:$0xff]  ;;  %v290_v26 = vld [vmem:[%s4239_s26 + $0xa0] sm:$0xff]  ;;  %3886 = vmatprep.subr.bf16.mxu0 %v3885_v58  ;;  %3955 = vmatpush3.bf16.msra.mxu1 %v3889_v1 }
  0x23   : > { %v291_v27 = vld [vmem:[%s4239_s26 + $0xa8] sm:$0xff]  ;;  %v292_v28 = vld [vmem:[%s4239_s26 + $0xb0] sm:$0xff]  ;;  %v293_v29 = vld [vmem:[%s4239_s26 + $0xb8] sm:$0xff] }
  0x24   : > { %3636 = vmatmul.mubr.msk.f32.gmra.mrb[2].mxu0 %vm328_vm0, %v273_v9  ;;  %v294_v30 = vld [vmem:[%s4239_s26 + $0xc0] sm:$0xff]  ;;  %v295_v31 = vld [vmem:[%s4239_s26 + $0xc8] sm:$0xff]  ;;  %v296_v32 = vld [vmem:[%s4239_s26 + $0xd0] sm:$0xff] }
  0x25   : > { %3638 = vmatprep.mubr.msk.f32.mxu0 %vm328_vm0, %v274_v10  ;;  %v297_v33 = vld [vmem:[%s4239_s26 + $0xd8] sm:$0xff]  ;;  %v298_v34 = vld [vmem:[%s4239_s26 + $0xe0] sm:$0xff]  ;;  %v299_v35 = vld [vmem:[%s4239_s26 + $0xe8] sm:$0xff]  ;;  %3888 = vmatpush3.bf16.msra.mxu0 %v3885_v58 }
  0x26   : > { %v300_v36 = vld [vmem:[%s4239_s26 + $0xf0] sm:$0xff]  ;;  %v301_v37 = vld [vmem:[%s4239_s26 + $0xf8] sm:$0xff]  ;;  %v302_v38 = vld [vmem:[%s4239_s26 + $0x100] sm:$0xff]  ;;  %3890 = vmatprep.subr.bf16.mxu0 %v3889_v1 }
  0x27   : > { %v303_v39 = vld [vmem:[%s4239_s26 + $0x108] sm:$0xff]  ;;  %v304_v40 = vld [vmem:[%s4239_s26 + $0x110] sm:$0xff]  ;;  %v305_v41 = vld [vmem:[%s4239_s26 + $0x118] sm:$0xff] }
  0x28   : > { %3639 = vmatmul.mubr.msk.f32.gmra.mrb[4].mxu0 %vm328_vm0, %v275_v11  ;;  %v306_v42 = vld [vmem:[%s4239_s26 + $0x120] sm:$0xff]  ;;  %v307_v43 = vld [vmem:[%s4239_s26 + $0x128] sm:$0xff]  ;;  %v308_v44 = vld [vmem:[%s4239_s26 + $0x130] sm:$0xff] }
  0x29   : > { %3641 = vmatprep.mubr.msk.f32.mxu0 %vm328_vm0, %v276_v12  ;;  %v309_v45 = vld [vmem:[%s4239_s26 + $0x138] sm:$0xff]  ;;  %v310_v46 = vld [vmem:[%s4239_s26 + $0x140] sm:$0xff]  ;;  %v311_v47 = vld [vmem:[%s4239_s26 + $0x148] sm:$0xff]  ;;  %3892 = vmatpush3.bf16.msra.mxu0 %v3889_v1 }
  0x2a   : > { %v312_v48 = vld [vmem:[%s4239_s26 + $0x150] sm:$0xff]  ;;  %v313_v49 = vld [vmem:[%s4239_s26 + $0x158] sm:$0xff]  ;;  %v314_v50 = vld [vmem:[%s4239_s26 + $0x160] sm:$0xff] }
  0x2b   : > { %v315_v54 = vld [vmem:[%s4239_s26 + $0x168] sm:$0xff]  ;;  %v316_v55 = vld [vmem:[%s4239_s26 + $0x170] sm:$0xff]  ;;  %v317_v59 = vld [vmem:[%s4239_s26 + $0x178] sm:$0xff] }
  0x2c   : > { %3642 = vmatmul.mubr.msk.f32.gmra.mrb[6].mxu0 %vm328_vm0, %v277_v13  ;;  %v318_v60 = vld [vmem:[%s4239_s26 + $0x180] sm:$0xff]  ;;  %v319_v61 = vld [vmem:[%s4239_s26 + $0x188] sm:$0xff]  ;;  %v320_v62 = vld [vmem:[%s4239_s26 + $0x190] sm:$0xff] }
  0x2d   : > { %3644 = vmatprep.mubr.msk.f32.mxu0 %vm328_vm0, %v278_v14  ;;  %v321_v2 = vld [vmem:[%s4239_s26 + $0x198] sm:$0xff]  ;;  %v322_v3 = vld [vmem:[%s4239_s26 + $0x1a0] sm:$0xff]  ;;  %v323_v7 = vld [vmem:[%s4239_s26 + $0x1a8] sm:$0xff]  ;;  %s6115_s26 = scalar_lea.vmem [#allocation2], %s3404_s17 }
  0x2e   : > { %v2645_v5 = vld [vmem:[%s6284_s3 + $0x38] sm:$0xff]  ;;  %v2646_v8 = vld [vmem:[%s6284_s3 + $0x40] sm:$0xff]  ;;  %v2647_v9 = vld [vmem:[%s6284_s3 + $0x48] sm:$0xff]  ;;  %s3326_s16 = sshll.u32 %s6115_s26, 4  ;;  %s6232_s16 = int_to_ptr.vmem [resolvable:$true] %s3326_s16 }
  0x2f   : > { %v3893_v6 = vpack.c.bf16 %v2645_v5, %v2644_v4  ;;  %v3897_v10 = vpack.c.bf16 %v2647_v9, %v2646_v8  ;;  %v2648_v11 = vld [vmem:[%s6284_s3 + $0x50] sm:$0xff]  ;;  %v2649_v12 = vld [vmem:[%s6284_s3 + $0x58] sm:$0xff]  ;;  %v2650_v14 = vld [vmem:[%s6284_s3 + $0x60] sm:$0xff]  ;;  %s4069_s28 = scalar_lea.vmem %s6232_s16, 4096  ;;  %p4076_p0 = scmp.lt.s32.totalorder %s6232_s16, %s4074_s9 }
  0x30   : > { %3645 = vmatmul.mubr.msk.f32.gmra.mrb[8].mxu0 %vm328_vm0, %v279_v15  ;;  %v3901_v13 = vpack.c.bf16 %v2649_v12, %v2648_v11  ;;  %v2651_v15 = vld [vmem:[%s6284_s3 + $0x68] sm:$0xff]  ;;  %p4070_p11 = scmp.ne.s32.totalorder %s6232_s16, %s4069_s28  ;;  %p4077_p1 = scmp.lt.s32.totalorder %s4075_s10, %s4069_s28 }
  0x31   : > { %3647 = vmatprep.mubr.msk.f32.mxu0 %vm328_vm0, %v280_v16  ;;  %3894 = vmatprep.subr.bf16.mxu0 %v3893_v6  ;;  %v3905_v16 = vpack.c.bf16 %v2651_v15, %v2650_v14 }
  0x32   : > { %3948 = vmatprep.subr.bf16.mxu1 %v3893_v6  ;;  %3896 = vmatpush3.bf16.msra.mxu0 %v3893_v6  ;;  %p4071_p12 = pnand %p4070_p11, %p4209_p5  ;;  %p4078_p2 = por %p4077_p1, %p4076_p0 }
  0x33   : > { %3956 = vmatpush3.bf16.msra.mxu1 %v3893_v6  ;;  %3898 = vmatprep.subr.bf16.mxu0 %v3897_v10 }
  0x34   : > { %3648 = vmatmul.mubr.msk.f32.gmra.mrb[10].mxu0 %vm328_vm0, %v281_v17  ;;  %3949 = vmatprep.subr.bf16.mxu1 %v3897_v10  ;;  %v2652_v17 = vld [vmem:[%s6284_s3 + $0x70] sm:$0xff]  ;;  %p4072_p13 = pneg %p4071_p12 }
  0x35   : > { %3650 = vmatprep.mubr.msk.f32.mxu0 %vm328_vm0, %v282_v18  ;;  %v2653_v18 = vld [vmem:[%s6284_s3 + $0x78] sm:$0xff] }
  0x36   : > { %3900 = vmatpush3.bf16.msra.mxu0 %v3897_v10  ;;  %p4079_p3 = pnand %p4078_p2, %p4072_p13 }
  0x37   : > { %3957 = vmatpush3.bf16.msra.mxu1 %v3897_v10  ;;  %3902 = vmatprep.subr.bf16.mxu0 %v3901_v13 }
  0x38   : > { %3651 = vmatmul.mubr.msk.f32.gmra.mrb[12].mxu0 %vm328_vm0, %v283_v19  ;;  %3950 = vmatprep.subr.bf16.mxu1 %v3901_v13  ;;  %v3909_v19 = vpack.c.bf16 %v2653_v18, %v2652_v17 }
  0x39   : > { %3653 = vmatprep.mubr.msk.f32.mxu0 %vm328_vm0, %v284_v20  ;;  %v936_v20 = vlaneseq }
  0x3a   : > { %3904 = vmatpush3.bf16.msra.mxu0 %v3901_v13 }
  0x3b   : > { %3958 = vmatpush3.bf16.msra.mxu1 %v3901_v13  ;;  %3906 = vmatprep.subr.bf16.mxu0 %v3905_v16 }
  0x3c   : > { %3654 = vmatmul.mubr.msk.f32.gmra.mrb[14].mxu0 %vm328_vm0, %v285_v21  ;;  %3951 = vmatprep.subr.bf16.mxu1 %v3905_v16  ;;  %v937_v21 = vshrl.u32 %v936_v20, 7 }
  0x3d   : > { %3656 = vmatprep.mubr.msk.f32.mxu0 %vm328_vm0, %v286_v22 }
  0x3e   : > { %3908 = vmatpush3.bf16.msra.mxu0 %v3905_v16  ;;  %v974_v22 = vsub.s32 1, %v937_v21 }
  0x3f   : > { %3959 = vmatpush3.bf16.msra.mxu1 %v3905_v16  ;;  %3910 = vmatprep.subr.bf16.mxu0 %v3909_v19 }
  0x40   : > { %3657 = vmatmul.mubr.msk.f32.gmra.mrb[16].mxu0 %vm328_vm0, %v287_v23  ;;  %3952 = vmatprep.subr.bf16.mxu1 %v3909_v19  ;;  %v1219_v23 = vsub.s32 2, %v937_v21 }
  0x41   : > { %3659 = vmatprep.mubr.msk.f32.mxu0 %vm328_vm0, %v288_v24  ;;  %v934_v24 = vld [vmem:[%s6283_s2] sm:$0xff] }
  0x42   : > { %3912 = vmatpush3.bf16.msra.mxu0 %v3909_v19 }
  0x43   : > { %3960 = vmatpush3.bf16.msra.mxu1 %v3909_v19 }
  0x44   : > { %3660 = vmatmul.mubr.msk.f32.gmra.mrb[18].mxu0 %vm328_vm0, %v289_v25  ;;  %v938_v25 = vsub.s32 0, %v937_v21 }
  0x45   : > { %3662 = vmatprep.mubr.msk.f32.mxu0 %vm328_vm0, %v290_v26 }
  0x48   : > { %3663 = vmatmul.mubr.msk.f32.gmra.mrb[20].mxu0 %vm328_vm0, %v291_v27  ;;  %v1532_v27 = vsub.s32 4, %v937_v21 }
  0x49   : > { %3665 = vmatprep.mubr.msk.f32.mxu0 %vm328_vm0, %v292_v28  ;;  %v1776_v28 = vsub.s32 5, %v937_v21 }
  0x4c   : > { %3666 = vmatmul.mubr.msk.f32.gmra.mrb[22].mxu0 %vm328_vm0, %v293_v29 }
  0x4d   : > { %3668 = vmatprep.mubr.msk.f32.mxu0 %vm328_vm0, %v294_v30  ;;  %v4400_v30 = vrot.slane %v934_v24, %v974_v22 }
  0x50   : > { %3669 = vmatmul.mubr.msk.f32.gmra.mrb[24].mxu0 %vm328_vm0, %v295_v31  ;;  %v4402_v31 = vrot.slane %v934_v24, %v1219_v23 }
  0x51   : > { %3671 = vmatprep.mubr.msk.f32.mxu0 %vm328_vm0, %v296_v32 }
  0x54   : > { %3672 = vmatmul.mubr.msk.f32.gmra.mrb[26].mxu0 %vm328_vm0, %v297_v33  ;;  %v1464_v33 = vsub.s32 3, %v937_v21 }
  0x55   : > { %3674 = vmatprep.mubr.msk.f32.mxu0 %vm328_vm0, %v298_v34 }
  0x58   : > { %3675 = vmatmul.mubr.msk.f32.gmra.mrb[28].mxu0 %vm328_vm0, %v299_v35  ;;  %v2088_v35 = vsub.s32 7, %v937_v21 }
  0x59   : > { %3677 = vmatprep.mubr.msk.f32.mxu0 %vm328_vm0, %v300_v36 }
  0x5a   : > { %v4416_v51 = vrot.slane %v934_v24, %v2088_v35 }
  0x5c   : > { %3678 = vmatmul.mubr.msk.f32.gmra.mrb[30].mxu0 %vm328_vm0, %v301_v37  ;;  %v4404_v37 = vrot.slane %v934_v24, %v938_v25 }
  0x5d   : > { %3680 = vmatprep.mubr.msk.f32.mxu0 %vm328_vm0, %v302_v38  ;;  %v2020_v38 = vsub.s32 6, %v937_v21 }
  0x60   : > { %3681 = vmatmul.mubr.msk.f32.gmra.mrb[32].mxu0 %vm328_vm0, %v303_v39 }
  0x61   : > { %3683 = vmatprep.mubr.msk.f32.mxu0 %vm328_vm0, %v304_v40 }
  0x64   : > { %3684 = vmatmul.mubr.msk.f32.gmra.mrb[34].mxu0 %vm328_vm0, %v305_v41  ;;  %v4406_v41 = vrot.slane %v934_v24, %v1532_v27 }
  0x65   : > { %3686 = vmatprep.mubr.msk.f32.mxu0 %vm328_vm0, %v306_v42  ;;  %v4408_v42 = vrot.slane %v934_v24, %v1776_v28 }
  0x68   : > { %3687 = vmatmul.mubr.msk.f32.gmra.mrb[36].mxu0 %vm328_vm0, %v307_v43 }
  0x69   : > { %3689 = vmatprep.mubr.msk.f32.mxu0 %vm328_vm0, %v308_v44 }
  0x6c   : > { %3690 = vmatmul.mubr.msk.f32.gmra.mrb[38].mxu0 %vm328_vm0, %v309_v45 }
  0x6d   : > { %3692 = vmatprep.mubr.msk.f32.mxu0 %vm328_vm0, %v310_v46 }
  0x70   : > { %3693 = vmatmul.mubr.msk.f32.gmra.mrb[40].mxu0 %vm328_vm0, %v311_v47  ;;  %v4412_v47 = vrot.slane %v934_v24, %v1464_v33 }
  0x71   : > { %3695 = vmatprep.mubr.msk.f32.mxu0 %vm328_vm0, %v312_v48 }
  0x74   : > { %3696 = vmatmul.mubr.msk.f32.gmra.mrb[42].mxu0 %vm328_vm0, %v313_v49 }
  0x75   : > { %3698 = vmatprep.mubr.msk.f32.mxu0 %vm328_vm0, %v314_v50 }
  0x78   : > { %3699 = vmatmul.mubr.msk.f32.gmra.mrb[44].mxu0 %vm328_vm0, %v315_v54 }
  0x79   : > { %3701 = vmatprep.mubr.msk.f32.mxu0 %vm328_vm0, %v316_v55  ;;  %v4420_v55 = vrot.slane %v934_v24, %v2020_v38 }
  0x7c   : > { %3702 = vmatmul.mubr.msk.f32.gmra.mrb[46].mxu0 %vm328_vm0, %v317_v59 }
  0x7d   : > { %3704 = vmatprep.mubr.msk.f32.mxu0 %vm328_vm0, %v318_v60 }
  0x80   : > { %3705 = vmatmul.mubr.msk.f32.gmra.mrb[48].mxu0 %vm328_vm0, %v319_v61 }
  0x81   : > { %3707 = vmatprep.mubr.msk.f32.mxu0 %vm328_vm0, %v320_v62 }
  0x84   : > { %3708 = vmatmul.mubr.msk.f32.gmra.mrb[50].mxu0 %vm328_vm0, %v321_v2 }
  0x85   : > { %3710 = vmatprep.mubr.msk.f32.mxu0 %vm328_vm0, %v322_v3 }
  0x88   : > { %3711 = vmatmul.mubr.msk.f32.gmra.mrb[52].mxu0 %vm328_vm0, %v323_v7 }
  0xf3   : > { %v3634_v26 = vpop.f32.mrb[0].mxu0 }
  0xf4   : > { %v827_v29 = vmax.f32 %v3634_v26, 0.0  ;;  %v557_v32 = vpop.f32.mrb[1].mxu0 }
  0xf5   : > { %v826_v34 = vmax.f32 %v557_v32, 0.0 }
  0xf6   : > { %v881_v36 = vmin.f32 %v827_v29, 6.0 }
  0xf7   : > { %v880_v39 = vmin.f32 %v826_v34, 6.0  ;;  %v3637_v40 = vpop.f32.mrb[2].mxu0 }
  0xf8   : > { %v977_v43 = vmul.f32 %v4400_v30, %v881_v36  ;;  %v1222_v44 = vmul.f32 %v4402_v31, %v881_v36  ;;  %v829_v45 = vmax.f32 %v3637_v40, 0.0  ;;  %v567_v46 = vpop.f32.mrb[3].mxu0  ;;  %v941_v56 = vmul.f32 %v4404_v37, %v881_v36 }
  0xf9   : > { %v976_v48 = vmul.f32 %v4400_v30, %v880_v39  ;;  %v1221_v49 = vmul.f32 %v4402_v31, %v880_v39  ;;  %v828_v50 = vmax.f32 %v567_v46, 0.0  ;;  %v940_v61 = vmul.f32 %v4404_v37, %v880_v39 }
  0xfa   : > { %v1074_v52 = vrot.slane %v977_v43, 1  ;;  %v1319_v53 = vrot.slane %v1222_v44, 2  ;;  %v4418_v54 = vmin.f32 %v829_v45, 6.0 }
  0xfb   : > { %v1073_v57 = vrot.slane %v976_v48, 1  ;;  %v1318_v58 = vrot.slane %v1221_v49, 2  ;;  %v882_v59 = vmin.f32 %v828_v50, 6.0  ;;  %v3640_v60 = vpop.f32.mrb[4].mxu0 }
  0xfc   : > { %v4426_v62 = vmul.f32 %v4400_v30, %v4418_v54  ;;  %v4430_v63 = vmul.f32 %v4402_v31, %v4418_v54  ;;  %v831_v0 = vmax.f32 %v3640_v60, 0.0  ;;  %v577_v1 = vpop.f32.mrb[5].mxu0  ;;  %v4438_v7 = vmul.f32 %v4404_v37, %v4418_v54 }
  0xfd   : > { %v1075_v2 = vsel %vm1072_vm1, %v1073_v57, %v1074_v52  ;;  %v1320_v3 = vsel %vm1317_vm2, %v1318_v58, %v1319_v53  ;;  %v978_v4 = vmul.f32 %v4400_v30, %v882_v59  ;;  %v1223_v5 = vmul.f32 %v4402_v31, %v882_v59 }
  0xfe   : > { %v1185_v6 = vadd.f32 %v1075_v2, %v940_v61  ;;  %v1078_v8 = vrot.slane %v4426_v62, 1  ;;  %v885_v9 = vmin.f32 %v831_v0, 6.0  ;;  %v1323_v10 = vrot.slane %v4430_v63, 2 }
  0xff   : > { %v1076_v11 = vrot.slane %v978_v4, 1  ;;  %v1321_v12 = vrot.slane %v1223_v5, 2  ;;  %v830_v13 = vmax.f32 %v577_v1, 0.0  ;;  %v3643_v14 = vpop.f32.mrb[6].mxu0  ;;  %v1466_v27 = vmul.f32 %v4412_v47, %v4418_v54 }
 0x100   : > { %v1430_v15 = vadd.f32 %v1320_v3, %v1185_v6  ;;  %v4443_v16 = vmul.f32 %v4400_v30, %v885_v9  ;;  %v4446_v17 = vmul.f32 %v4402_v31, %v885_v9  ;;  %v4449_v18 = vmul.f32 %v4406_v41, %v885_v9  ;;  %v587_v19 = vpop.f32.mrb[7].mxu0 }
 0x101   : > { %v1077_v20 = vsel %vm1072_vm1, %v1074_v52, %v1076_v11  ;;  %v1322_v21 = vsel %vm1317_vm2, %v1319_v53, %v1321_v12  ;;  %v4454_v22 = vmul.f32 %v4408_v42, %v885_v9  ;;  %v884_v23 = vmin.f32 %v830_v13, 6.0 }
 0x102   : > { %v1186_v24 = vadd.f32 %v1077_v20, %v941_v56  ;;  %v1081_v25 = vrot.slane %v4443_v16, 1  ;;  %v1633_v28 = vrot.slane %v4449_v18, 1  ;;  %v833_v38 = vmax.f32 %v3643_v14, 0.0 }
 0x103   : > { %v1877_v29 = vrot.slane %v4454_v22, 2  ;;  %v4463_v32 = vmul.f32 %v4400_v30, %v884_v23  ;;  %v4466_v33 = vmul.f32 %v4402_v31, %v884_v23  ;;  %v3646_v34 = vpop.f32.mrb[8].mxu0  ;;  %v1467_v36 = vmul.f32 %v4412_v47, %v884_v23 }
 0x104   : > { %v1431_v35 = vadd.f32 %v1322_v21, %v1186_v24  ;;  %v832_v39 = vmax.f32 %v587_v19, 0.0  ;;  %v597_v40 = vpop.f32.mrb[9].mxu0  ;;  %v4470_v43 = vmul.f32 %v4404_v37, %v884_v23  ;;  %v835_v45 = vmax.f32 %v3646_v34, 0.0  ;;  %v4515_v34 = vld [vmem:[%s6283_s2 + $0x8] ss:$0 sm:$0xff] }
 0x105   : > { %v1079_v44 = vrot.slane %v4463_v32, 1  ;;  %v834_v46 = vmax.f32 %v597_v40, 0.0  ;;  %v6288_v48 = vrot.slane %v4466_v33, 2  ;;  %v1498_v52 = vadd.f32 %v1466_v27, %v1430_v15 }
 0x106   : > { %v1499_v49 = vadd.f32 %v1467_v36, %v1431_v35  ;;  %v4474_v50 = vmin.f32 %v832_v39, 6.0  ;;  %v4476_v53 = vmin.f32 %v833_v38, 6.0  ;;  %v1534_v58 = vmul.f32 %v4406_v41, %v4418_v54 }
 0x107   : > { %v4478_v56 = vmin.f32 %v834_v46, 6.0  ;;  %v3649_v57 = vpop.f32.mrb[10].mxu0  ;;  %v1535_v59 = vmul.f32 %v4406_v41, %v884_v23  ;;  %v4483_v60 = vmin.f32 %v835_v45, 6.0  ;;  %v1778_v1 = vmul.f32 %v4408_v42, %v4418_v54 }
 0x108   : > { %v837_v61 = vmax.f32 %v3649_v57, 0.0  ;;  %v607_v0 = vpop.f32.mrb[11].mxu0  ;;  %v1779_v2 = vmul.f32 %v4408_v42, %v884_v23  ;;  %v2022_v6 = vmul.f32 %v4420_v55, %v4474_v50  ;;  %v1630_v54 = vrot.slane %v1534_v58, 1 }
 0x109   : > { %v4490_v3 = vmul.f32 %v4400_v30, %v4478_v56  ;;  %v4494_v4 = vmul.f32 %v4402_v31, %v4478_v56  ;;  %v2092_v5 = vmul.f32 %v4416_v51, %v4478_v56  ;;  %v836_v11 = vmax.f32 %v607_v0, 0.0 }
 0x10a   : > { %v4500_v9 = vmin.f32 %v837_v61, 6.0  ;;  %v1631_v12 = vrot.slane %v1535_v59, 1  ;;  %v1874_v20 = vrot.slane %v1778_v1, 2  ;;  %v1875_v39 = vrot.slane %v1779_v2, 2 }
 0x10b   : > { %v2189_v15 = vrot.slane %v2092_v5, 1  ;;  %v3652_v19 = vpop.f32.mrb[12].mxu0  ;;  %v2090_v40 = vmul.f32 %v4416_v51, %v4474_v50  ;;  %v4522_v57 = vmin.f32 %v836_v11, 6.0  ;;  %v2091_v58 = vmul.f32 %v4416_v51, %v4476_v53 }
 0x10c   : > { %v4506_v21 = vmul.f32 %v4400_v30, %v4500_v9  ;;  %v4510_v23 = vmul.f32 %v4402_v31, %v4500_v9  ;;  %v839_v24 = vmax.f32 %v3652_v19, 0.0  ;;  %v617_v27 = vpop.f32.mrb[13].mxu0  ;;  %v1632_v35 = vsel %vm1072_vm1, %v1630_v54, %v1631_v12 }
 0x10d   : > { %v838_v36 = vmax.f32 %v617_v27, 0.0  ;;  %v1742_v38 = vadd.f32 %v1632_v35, %v1498_v52  ;;  %v1876_v0 = vsel %vm1317_vm2, %v1874_v20, %v1875_v39  ;;  %v2186_v1 = vrot.slane %v2090_v40, 1 }
 0x10e   : > { %v4526_v59 = vmin.f32 %v839_v24, 6.0  ;;  %v2334_v52 = vmul.f32 %v4515_v34, %v4474_v50  ;;  %v2187_v19 = vrot.slane %v2091_v58, 1  ;;  %v2335_v11 = vmul.f32 %v4515_v34, %v4476_v53 }
 0x10f   : > { %v3655_v61 = vpop.f32.mrb[14].mxu0  ;;  %v4531_v2 = vmin.f32 %v838_v36, 6.0  ;;  %v1986_v54 = vadd.f32 %v1876_v0, %v1742_v38  ;;  %v1634_v24 = vsel %vm1072_vm1, %v1631_v12, %v1633_v28  ;;  %v1878_v20 = vsel %vm1317_vm2, %v1875_v39, %v1877_v29 }
 0x110   : > { %v627_v5 = vpop.f32.mrb[15].mxu0  ;;  %v2430_v35 = vrot.slane %v2334_v52, 2  ;;  %v841_v40 = vmax.f32 %v3655_v61, 0.0  ;;  %v2188_v36 = vsel %vm1072_vm1, %v2186_v1, %v2187_v19  ;;  %v2431_v45 = vrot.slane %v2335_v11, 2 }
 0x111   : > { %v840_v27 = vmax.f32 %v627_v5, 0.0  ;;  %v2054_v46 = vadd.f32 %v2022_v6, %v1986_v54  ;;  %v1743_v0 = vadd.f32 %v1634_v24, %v1499_v49  ;;  %v2023_v52 = vmul.f32 %v4420_v55, %v4476_v53 }
 0x112   : > { %v2190_v18 = vsel %vm1072_vm1, %v2187_v19, %v2189_v15  ;;  %v2432_v22 = vsel %vm1317_vm2, %v2430_v35, %v2431_v45  ;;  %v2336_v29 = vmul.f32 %v4515_v34, %v4478_v56  ;;  %v4565_v19 = vmin.f32 %v841_v40, 6.0 }
 0x113   : > { %v4542_v38 = vmin.f32 %v840_v27, 6.0  ;;  %v3658_v58 = vpop.f32.mrb[16].mxu0  ;;  %v2298_v12 = vadd.f32 %v2188_v36, %v2054_v46  ;;  %v1987_v61 = vadd.f32 %v1878_v20, %v1743_v0  ;;  %v1080_v46 = vsel %vm1072_vm1, %v1078_v8, %v1079_v44 }
 0x114   : > { %v843_v5 = vmax.f32 %v3658_v58, 0.0  ;;  %v637_v28 = vpop.f32.mrb[17].mxu0  ;;  %v2433_v54 = vrot.slane %v2336_v29, 2  ;;  %v1325_v29 = vsel %vm1317_vm2, %v1323_v10, %v6288_v48  ;;  %v1538_v63 = vmul.f32 %v4406_v41, %v4476_v53 }
 0x115   : > { %v4552_v6 = vmul.f32 %v4400_v30, %v4542_v38  ;;  %v4556_v49 = vmul.f32 %v4402_v31, %v4542_v38  ;;  %v842_v39 = vmax.f32 %v637_v28, 0.0  ;;  %v2542_v15 = vadd.f32 %v2432_v22, %v2298_v12 }
 0x116   : > { %v4558_v1 = vmin.f32 %v843_v5, 6.0  ;;  %v2055_v35 = vadd.f32 %v2023_v52, %v1987_v61  ;;  %v2434_v62 = vsel %vm1317_vm2, %v2431_v45, %v2433_v54  ;;  %v1187_v28 = vadd.f32 %v1080_v46, %v4438_v7 }
 0x117   : > { %v3661_v24 = vpop.f32.mrb[18].mxu0  ;;  %v2574_v58 = vmax.f32 %v2542_v15, 0.0  ;;  %v4580_v12 = vmin.f32 %v842_v39, 6.0  ;;  %v1468_v7 = vmul.f32 %v4412_v47, %v4474_v50  ;;  %v1537_v39 = vmul.f32 %v4406_v41, %v4474_v50 }
 0x118   : > { %v4571_v20 = vmul.f32 %v4400_v30, %v4558_v1  ;;  %v4575_v36 = vmul.f32 %v4402_v31, %v4558_v1  ;;  %v647_v8 = vpop.f32.mrb[19].mxu0  ;;  %v2299_v40 = vadd.f32 %v2190_v18, %v2055_v35  ;;  %v845_v0 = vmax.f32 %v3661_v24, 0.0 }
 0x119   : > { %v844_v5 = vmax.f32 %v647_v8, 0.0  ;;  %v4582_v22 = vmin.f32 %v2574_v58, 6.0  ;;  %v1432_v15 = vadd.f32 %v1325_v29, %v1187_v28  ;;  %v1781_v10 = vmul.f32 %v4408_v42, %v4474_v50 }
 0x11a   : > { %6336 = vst [vmem:[#allocation5_spill] sm:$0xff] %v4575_v36  ;;  %v2543_v61 = vadd.f32 %v2434_v62, %v2299_v40  ;;  %v4590_v18 = vmin.f32 %v845_v0, 6.0  ;;  %v1782_v58 = vmul.f32 %v4408_v42, %v4476_v53  ;;  %v2093_v62 = vmul.f32 %v4416_v51, %v4483_v60 }
 0x11b   : > { %6337 = vst [vmem:[#allocation6_spill] sm:$0xff] %v4582_v22  ;;  %v3664_v54 = vpop.f32.mrb[20].mxu0  ;;  %3745 = vmatprep.mubr.f32.mxu0 %v4582_v22  ;;  %v4601_v24 = vmin.f32 %v844_v5, 6.0  ;;  %v1500_v8 = vadd.f32 %v1468_v7, %v1432_v15  ;;  %v1635_v40 = vrot.slane %v1537_v39, 1  ;;  %v1636_v0 = vrot.slane %v1538_v63, 1 }
 0x11c   : > { %v657_v46 = vpop.f32.mrb[21].mxu0  ;;  %v2575_v35 = vmax.f32 %v2543_v61, 0.0  ;;  %v1879_v28 = vrot.slane %v1781_v10, 2  ;;  %v1880_v45 = vrot.slane %v1782_v58, 2  ;;  %v2024_v52 = vmul.f32 %v4420_v55, %v4483_v60 }
 0x11d   : > { %v2094_v5 = vmul.f32 %v4416_v51, %v4522_v57  ;;  %v1637_v27 = vsel %vm1072_vm1, %v1635_v40, %v1636_v0  ;;  %v2191_v11 = vrot.slane %v2093_v62, 1  ;;  %v2337_v14 = vmul.f32 %v4515_v34, %v4483_v60 }
 0x11e   : > { %v4607_v29 = vmin.f32 %v2575_v35, 6.0  ;;  %v2338_v15 = vmul.f32 %v4515_v34, %v4522_v57  ;;  %v1744_v39 = vadd.f32 %v1637_v27, %v1500_v8  ;;  %v1881_v63 = vsel %vm1317_vm2, %v1879_v28, %v1880_v45 }
 0x11f   : > { %v3667_v61 = vpop.f32.mrb[22].mxu0  ;;  %v2192_v10 = vrot.slane %v2094_v5, 1  ;;  %v846_v35 = vmax.f32 %v657_v46, 0.0  ;;  %v2435_v58 = vrot.slane %v2337_v14, 2  ;;  %v847_v48 = vmax.f32 %v3664_v54, 0.0 }
 0x120   : > { %6338 = vst [vmem:[#allocation7_spill] sm:$0xff] %v4607_v29  ;;  %v4618_v7 = vpop.f32.mrb[23].mxu0  ;;  %3746 = vmatmul.mubr.f32.vlgmr.msra.gmra.mrb[54].mxu0 %v4607_v29  ;;  %v2436_v13 = vrot.slane %v2338_v15, 2  ;;  %v1082_v62 = vsel %vm1072_vm1, %v1079_v44, %v1081_v25  ;;  %v1988_v40 = vadd.f32 %v1881_v63, %v1744_v39  ;;  %v6339_v14 = vrot.slane %v4446_v17, 2 }
 0x121   : > { %v2193_v26 = vsel %vm1072_vm1, %v2191_v11, %v2192_v10  ;;  %v4628_v22 = vmin.f32 %v846_v35, 6.0  ;;  %v1188_v27 = vadd.f32 %v1082_v62, %v4470_v43  ;;  %v6340_v54 = vrot.slane %v4466_v33, 2 }
 0x122   : > { %v2437_v46 = vsel %vm1317_vm2, %v2435_v58, %v2436_v13  ;;  %v1469_v25 = vmul.f32 %v4412_v47, %v4476_v53  ;;  %v1539_v32 = vmul.f32 %v4406_v41, %v4478_v56  ;;  %v2056_v11 = vadd.f32 %v2024_v52, %v1988_v40 }
 0x123   : > { %v4631_v8 = vpop.f32.mrb[24].mxu0  ;;  %v1327_v16 = vsel %vm1317_vm2, %v6340_v54, %v6339_v14  ;;  %v4647_v43 = vmul.f32 %v4400_v30, %v4628_v22  ;;  %v4651_v17 = vmul.f32 %v4402_v31, %v4628_v22  ;;  %v4653_v28 = vmin.f32 %v847_v48, 6.0 }
 0x124   : > { %v4643_v44 = vpop.f32.mrb[25].mxu0  ;;  %v1433_v33 = vadd.f32 %v1327_v16, %v1188_v27  ;;  %v1638_v5 = vrot.slane %v1539_v32, 1  ;;  %v1783_v15 = vmul.f32 %v4408_v42, %v4478_v56  ;;  %v2095_v39 = vmul.f32 %v4416_v51, %v4500_v9 }
 0x125   : > { %6341 = vst [vmem:[#allocation8_spill] sm:$0xff] %v4647_v43  ;;  %6342 = vst [vmem:[#allocation9_spill] sm:$0xff] %v4651_v17  ;;  %v2300_v63 = vadd.f32 %v2193_v26, %v2056_v11  ;;  %v2025_v58 = vmul.f32 %v4420_v55, %v4522_v57  ;;  %v2339_v14 = vmul.f32 %v4515_v34, %v4500_v9  ;;  %v849_v32 = vmax.f32 %v3667_v61, 0.0 }
 0x126   : > { %v1501_v35 = vadd.f32 %v1469_v25, %v1433_v33  ;;  %v1639_v40 = vsel %vm1072_vm1, %v1636_v0, %v1638_v5  ;;  %v1882_v48 = vrot.slane %v1783_v15, 2  ;;  %v2194_v27 = vrot.slane %v2095_v39, 1 }
 0x127   : > { %v4662_v62 = vpop.f32.mrb[26].mxu0  ;;  %v2544_v54 = vadd.f32 %v2437_v46, %v2300_v63  ;;  %v2438_v33 = vrot.slane %v2339_v14, 2  ;;  %v848_v52 = vmax.f32 %v4618_v7, 0.0  ;;  %v4673_v15 = vmin.f32 %v849_v32, 6.0 }
 0x128   : > { %v4667_v56 = vpop.f32.mrb[27].mxu0  ;;  %v1745_v16 = vadd.f32 %v1639_v40, %v1501_v35  ;;  %v1883_v25 = vsel %vm1317_vm2, %v1880_v45, %v1882_v48  ;;  %v2195_v11 = vsel %vm1072_vm1, %v2192_v10, %v2194_v27  ;;  %v944_v39 = vmul.f32 %v4404_v37, %v4474_v50 }
 0x129   : > { %v2576_v0 = vmax.f32 %v2544_v54, 0.0  ;;  %6343 = vst [vmem:[#allocation10_spill] sm:$0xff] %v4673_v15  ;;  %v2439_v46 = vsel %vm1317_vm2, %v2436_v13, %v2438_v33  ;;  %v982_v61 = vmul.f32 %v4400_v30, %v4474_v50  ;;  %v983_v45 = vmul.f32 %v4400_v30, %v4476_v53 }
 0x12a   : > { %v1989_v5 = vadd.f32 %v1883_v25, %v1745_v16  ;;  %v1227_v7 = vmul.f32 %v4402_v31, %v4474_v50  ;;  %v4692_v40 = vmul.f32 %v4400_v30, %v4673_v15  ;;  %v4696_v13 = vmul.f32 %v4402_v31, %v4673_v15 }
 0x12b   : > { %v4677_v29 = vpop.f32.mrb[28].mxu0  ;;  %v4688_v63 = vmin.f32 %v2576_v0, 6.0  ;;  %v1083_v48 = vrot.slane %v982_v61, 1  ;;  %v1084_v27 = vrot.slane %v983_v45, 1  ;;  %v1228_v14 = vmul.f32 %v4402_v31, %v4476_v53 }
 0x12c   : > { %v4686_v10 = vpop.f32.mrb[29].mxu0  ;;  %v2057_v35 = vadd.f32 %v2025_v58, %v1989_v5  ;;  %6345 = vst [vmem:[#allocation12_spill] sm:$0xff] %v4692_v40  ;;  %6346 = vst [vmem:[#allocation13_spill] sm:$0xff] %v4696_v13  ;;  %v1328_v54 = vrot.slane %v1227_v7, 2  ;;  %v4703_v32 = vmin.f32 %v848_v52, 6.0  ;;  %v1540_v5 = vmul.f32 %v4406_v41, %v4483_v60 }
 0x12d   : > { %6344 = vst [vmem:[#allocation11_spill] sm:$0xff] %v4688_v63  ;;  %3748 = vmatprep.mubr.f32.mxu0 %v4688_v63  ;;  %v1085_v33 = vsel %vm1072_vm1, %v1083_v48, %v1084_v27  ;;  %v1329_v0 = vrot.slane %v1228_v14, 2  ;;  %v1541_v61 = vmul.f32 %v4406_v41, %v4522_v57  ;;  %v1785_v52 = vmul.f32 %v4408_v42, %v4522_v57 }
 0x12e   : > { %v2301_v50 = vadd.f32 %v2195_v11, %v2057_v35  ;;  %v1189_v7 = vadd.f32 %v1085_v33, %v944_v39  ;;  %v1784_v35 = vmul.f32 %v4408_v42, %v4483_v60  ;;  %v1470_v48 = vmul.f32 %v4412_v47, %v4483_v60 }
 0x12f   : > { %v4705_v25 = vpop.f32.mrb[30].mxu0  ;;  %v1330_v58 = vsel %vm1317_vm2, %v1328_v54, %v1329_v0  ;;  %v1640_v14 = vrot.slane %v1540_v5, 1  ;;  %v1641_v16 = vrot.slane %v1541_v61, 1  ;;  %v1885_v40 = vrot.slane %v1785_v52, 2 }
 0x130   : > { %v4712_v45 = vpop.f32.mrb[31].mxu0  ;;  %v2545_v11 = vadd.f32 %v2439_v46, %v2301_v50  ;;  %v1434_v63 = vadd.f32 %v1330_v58, %v1189_v7  ;;  %v1884_v13 = vrot.slane %v1784_v35, 2  ;;  %v2096_v46 = vmul.f32 %v4416_v51, %v4531_v2 }
 0x131   : > { %v1642_v39 = vsel %vm1072_vm1, %v1640_v14, %v1641_v16  ;;  %v2097_v50 = vmul.f32 %v4416_v51, %v4526_v59  ;;  %v2340_v54 = vmul.f32 %v4515_v34, %v4531_v2  ;;  %v945_v14 = vmul.f32 %v4404_v37, %v4476_v53 }
 0x132   : > { %v2577_v26 = vmax.f32 %v2545_v11, 0.0  ;;  %v1502_v58 = vadd.f32 %v1470_v48, %v1434_v63  ;;  %v1886_v61 = vsel %vm1317_vm2, %v1884_v13, %v1885_v40  ;;  %v2341_v11 = vmul.f32 %v4515_v34, %v4526_v59 }
 0x133   : > { %v4721_v17 = vpop.f32.mrb[32].mxu0  ;;  %v2196_v7 = vrot.slane %v2096_v46, 1  ;;  %v2197_v35 = vrot.slane %v2097_v50, 1  ;;  %v2440_v52 = vrot.slane %v2340_v54, 2  ;;  %v6348_v36 = vrot.slane %v4490_v3, 1 }
 0x134   : > { %v4730_v33 = vpop.f32.mrb[33].mxu0  ;;  %v4732_v5 = vmin.f32 %v2577_v26, 6.0  ;;  %v1746_v43 = vadd.f32 %v1642_v39, %v1502_v58  ;;  %v2441_v15 = vrot.slane %v2341_v11, 2  ;;  %v6349_v63 = vrot.slane %v4494_v4, 2 }
 0x135   : > { %v1087_v26 = vsel %vm1072_vm1, %v1084_v27, %v6348_v36  ;;  %v2026_v46 = vmul.f32 %v4420_v55, %v4531_v2  ;;  %v2198_v50 = vsel %vm1072_vm1, %v2196_v7, %v2197_v35  ;;  %v1542_v39 = vmul.f32 %v4406_v41, %v4500_v9 }
 0x136   : > { %6347 = vst [vmem:[#allocation14_spill] sm:$0xff] %v4732_v5  ;;  %3749 = vmatmul.mubr.f32.gmra.mrb[56].mxu0 %v4732_v5  ;;  %v1332_v13 = vsel %vm1317_vm2, %v1329_v0, %v6349_v63  ;;  %v1190_v53 = vadd.f32 %v1087_v26, %v945_v14  ;;  %v1990_v3 = vadd.f32 %v1886_v61, %v1746_v43  ;;  %v851_v43 = vmax.f32 %v4631_v8, 0.0 }
 0x137   : > { %v4746_v48 = vpop.f32.mrb[34].mxu0  ;;  %v2442_v36 = vsel %vm1317_vm2, %v2440_v52, %v2441_v15  ;;  %v1471_v4 = vmul.f32 %v4412_v47, %v4522_v57  ;;  %v1786_v27 = vmul.f32 %v4408_v42, %v4500_v9  ;;  %v1643_v58 = vrot.slane %v1542_v39, 1 }
 0x138   : > { %v4753_v54 = vpop.f32.mrb[35].mxu0  ;;  %v1435_v0 = vadd.f32 %v1332_v13, %v1190_v53  ;;  %v2098_v11 = vmul.f32 %v4416_v51, %v4542_v38  ;;  %v2342_v7 = vmul.f32 %v4515_v34, %v4542_v38  ;;  %v2058_v14 = vadd.f32 %v2026_v46, %v1990_v3 }
 0x139   : > { %6350 = vst [vmem:[#allocation15_spill] sm:$0xff] %v4753_v54  ;;  %v1887_v26 = vrot.slane %v1786_v27, 2  ;;  %v850_v61 = vmax.f32 %v4643_v44, 0.0  ;;  %v1644_v5 = vsel %vm1072_vm1, %v1641_v16, %v1643_v58  ;;  %v2027_v46 = vmul.f32 %v4420_v55, %v4526_v59 }
 0x13a   : > { %v1503_v63 = vadd.f32 %v1471_v4, %v1435_v0  ;;  %v2199_v9 = vrot.slane %v2098_v11, 1  ;;  %v2443_v13 = vrot.slane %v2342_v7, 2  ;;  %v2302_v39 = vadd.f32 %v2198_v50, %v2058_v14 }
 0x13b   : > { %v4766_v52 = vpop.f32.mrb[36].mxu0  ;;  %v1888_v54 = vsel %vm1317_vm2, %v1885_v40, %v1887_v26  ;;  %v4774_v3 = vmin.f32 %v851_v43, 6.0  ;;  %v4778_v4 = vmin.f32 %v850_v61, 6.0  ;;  %v985_v0 = vmul.f32 %v4400_v30, %v4483_v60 }
 0x13c   : > { %v4769_v53 = vpop.f32.mrb[37].mxu0  ;;  %v1747_v8 = vadd.f32 %v1644_v5, %v1503_v63  ;;  %v2200_v44 = vsel %vm1072_vm1, %v2197_v35, %v2199_v9  ;;  %v2444_v27 = vsel %vm1317_vm2, %v2441_v15, %v2443_v13  ;;  %v2546_v16 = vadd.f32 %v2442_v36, %v2302_v39 }
 0x13d   : > { %6351 = vst [vmem:[#allocation16_spill] sm:$0xff] %v4769_v53  ;;  %v986_v50 = vmul.f32 %v4400_v30, %v4522_v57  ;;  %v1230_v40 = vmul.f32 %v4402_v31, %v4483_v60  ;;  %v946_v5 = vmul.f32 %v4404_v37, %v4483_v60  ;;  %v1231_v15 = vmul.f32 %v4402_v31, %v4522_v57 }
 0x13e   : > { %v1991_v11 = vadd.f32 %v1888_v54, %v1747_v8  ;;  %v1543_v35 = vmul.f32 %v4406_v41, %v4531_v2  ;;  %v2578_v7 = vmax.f32 %v2546_v16, 0.0  ;;  %v1088_v14 = vrot.slane %v985_v0, 1 }
 0x13f   : > { %v4786_v58 = vpop.f32.mrb[38].mxu0  ;;  %v1089_v26 = vrot.slane %v986_v50, 1  ;;  %v1333_v43 = vrot.slane %v1230_v40, 2  ;;  %v1334_v63 = vrot.slane %v1231_v15, 2  ;;  %v4798_v54 = vmul.f32 %v4406_v41, %v4526_v59 }
 0x140   : > { %6352 = vst [vmem:[#allocation17_spill] sm:$0xff] %v4786_v58  ;;  %v4794_v36 = vpop.f32.mrb[39].mxu0  ;;  %v2059_v61 = vadd.f32 %v2027_v46, %v1991_v11  ;;  %v1645_v9 = vrot.slane %v1543_v35, 1  ;;  %v4800_v60 = vmin.f32 %v2578_v7, 6.0  ;;  %v1787_v39 = vmul.f32 %v4408_v42, %v4531_v2 }
 0x141   : > { %6353 = vst [vmem:[#allocation18_spill] sm:$0xff] %v4794_v36  ;;  %v1090_v13 = vsel %vm1072_vm1, %v1088_v14, %v1089_v26  ;;  %v4807_v8 = vmul.f32 %v4408_v42, %v4526_v59  ;;  %v1335_v50 = vsel %vm1317_vm2, %v1333_v43, %v1334_v63  ;;  %v1646_v40 = vrot.slane %v4798_v54, 1 }
 0x142   : > { %6354 = vst [vmem:[#allocation19_spill] sm:$0xff] %v4800_v60  ;;  %v2303_v46 = vadd.f32 %v2200_v44, %v2059_v61  ;;  %v1191_v0 = vadd.f32 %v1090_v13, %v946_v5  ;;  %3751 = vmatprep.mubr.f32.mxu0 %v4800_v60  ;;  %v1472_v15 = vmul.f32 %v4412_v47, %v4531_v2  ;;  %v1889_v35 = vrot.slane %v1787_v39, 2 }
 0x143   : > { %v4809_v16 = vpop.f32.mrb[40].mxu0  ;;  %v1890_v7 = vrot.slane %v4807_v8, 2  ;;  %v2099_v14 = vmul.f32 %v4416_v51, %v4565_v19  ;;  %v1647_v5 = vsel %vm1072_vm1, %v1645_v9, %v1646_v40  ;;  %v2100_v43 = vmul.f32 %v4416_v51, %v4580_v12 }
 0x144   : > { %6355 = vst [vmem:[#allocation20_spill] sm:$0xff] %v4809_v16  ;;  %v4813_v11 = vpop.f32.mrb[41].mxu0  ;;  %v2547_v16 = vadd.f32 %v2444_v27, %v2303_v46  ;;  %v1436_v44 = vadd.f32 %v1335_v50, %v1191_v0  ;;  %v2343_v13 = vmul.f32 %v4515_v34, %v4565_v19  ;;  %v2344_v39 = vmul.f32 %v4515_v34, %v4580_v12 }
 0x145   : > { %6356 = vst [vmem:[#allocation21_spill] sm:$0xff] %v4813_v11  ;;  %v1891_v61 = vsel %vm1317_vm2, %v1889_v35, %v1890_v7  ;;  %v2201_v54 = vrot.slane %v2099_v14, 1  ;;  %v2202_v27 = vrot.slane %v2100_v43, 1  ;;  %v853_v46 = vmax.f32 %v4662_v62, 0.0 }
 0x146   : > { %v2579_v60 = vmax.f32 %v2547_v16, 0.0  ;;  %v1504_v11 = vadd.f32 %v1472_v15, %v1436_v44  ;;  %v2028_v0 = vmul.f32 %v4420_v55, %v4565_v19  ;;  %v2445_v50 = vrot.slane %v2343_v13, 2 }
 0x147   : > { %v4829_v8 = vpop.f32.mrb[42].mxu0  ;;  %v2446_v35 = vrot.slane %v2344_v39, 2  ;;  %v852_v14 = vmax.f32 %v4667_v56, 0.0  ;;  %v2203_v53 = vsel %vm1072_vm1, %v2201_v54, %v2202_v27  ;;  %v947_v16 = vmul.f32 %v4404_v37, %v4522_v57 }
 0x148   : > { %v4832_v9 = vpop.f32.mrb[43].mxu0  ;;  %v4837_v36 = vmin.f32 %v2579_v60, 6.0  ;;  %v1748_v58 = vadd.f32 %v1647_v5, %v1504_v11  ;;  %v6359_v44 = vrot.slane %v4506_v21, 1  ;;  %v6360_v13 = vrot.slane %v4510_v23, 2 }
 0x149   : > { %6357 = vst [vmem:[#allocation22_spill] sm:$0xff] %v4832_v9  ;;  %v2447_v15 = vsel %vm1317_vm2, %v2445_v50, %v2446_v35  ;;  %v4843_v62 = vmin.f32 %v852_v14, 6.0  ;;  %v4852_v11 = vmin.f32 %v853_v46, 6.0  ;;  %v1545_v57 = vmul.f32 %v4406_v41, %v4542_v38 }
 0x14a   : > { %6358 = vst [vmem:[#allocation23_spill] sm:$0xff] %v4837_v36  ;;  %v1092_v43 = vsel %vm1072_vm1, %v1089_v26, %v6359_v44  ;;  %v1337_v56 = vsel %vm1317_vm2, %v1334_v63, %v6360_v13  ;;  %3752 = vmatmul.mubr.f32.gmra.mrb[58].mxu0 %v4837_v36  ;;  %v1992_v60 = vadd.f32 %v1891_v61, %v1748_v58 }
 0x14b   : > { %v1192_v5 = vadd.f32 %v1092_v43, %v947_v16  ;;  %v4858_v54 = vmul.f32 %v4400_v30, %v4843_v62  ;;  %v4862_v21 = vmul.f32 %v4402_v31, %v4843_v62  ;;  %v1473_v23 = vmul.f32 %v4412_v47, %v4526_v59 }
 0x14c   : > { %v1789_v58 = vmul.f32 %v4408_v42, %v4542_v38  ;;  %v2060_v26 = vadd.f32 %v2028_v0, %v1992_v60  ;;  %v1648_v61 = vrot.slane %v1545_v57, 1  ;;  %v2101_v39 = vmul.f32 %v4416_v51, %v4558_v1  ;;  %v4876_v0 = vpop.f32.mrb[44].mxu0 }
 0x14d   : > { %v1437_v63 = vadd.f32 %v1337_v56, %v1192_v5  ;;  %v2029_v14 = vmul.f32 %v4420_v55, %v4580_v12  ;;  %v2345_v16 = vmul.f32 %v4515_v34, %v4558_v1  ;;  %v855_v57 = vmax.f32 %v4677_v29, 0.0 }
 0x14e   : > { %v1892_v50 = vrot.slane %v1789_v58, 2  ;;  %v2304_v44 = vadd.f32 %v2203_v53, %v2060_v26  ;;  %v1649_v13 = vsel %vm1072_vm1, %v1646_v40, %v1648_v61  ;;  %v2204_v38 = vrot.slane %v2101_v39, 1  ;;  %v4881_v58 = vpop.f32.mrb[45].mxu0 }
 0x14f   : > { %v1505_v43 = vadd.f32 %v1473_v23, %v1437_v63  ;;  %v2448_v5 = vrot.slane %v2345_v16, 2  ;;  %v854_v53 = vmax.f32 %v4686_v10, 0.0  ;;  %v4886_v23 = vmin.f32 %v855_v57, 6.0 }
 0x150   : > { %v1893_v60 = vsel %vm1317_vm2, %v1890_v7, %v1892_v50  ;;  %v2548_v46 = vadd.f32 %v2447_v15, %v2304_v44  ;;  %v2205_v9 = vsel %vm1072_vm1, %v2202_v27, %v2204_v38  ;;  %v948_v26 = vmul.f32 %v4404_v37, %v4531_v2 }
 0x151   : > { %v1749_v36 = vadd.f32 %v1649_v13, %v1505_v43  ;;  %v2449_v40 = vsel %vm1317_vm2, %v2446_v35, %v2448_v5  ;;  %v988_v7 = vmul.f32 %v4400_v30, %v4531_v2  ;;  %v989_v15 = vmul.f32 %v4400_v30, %v4526_v59 }
 0x152   : > { %v2580_v63 = vmax.f32 %v2548_v46, 0.0  ;;  %v1233_v27 = vmul.f32 %v4402_v31, %v4531_v2  ;;  %v4898_v10 = vmul.f32 %v4400_v30, %v4886_v23  ;;  %v4902_v35 = vmul.f32 %v4402_v31, %v4886_v23 }
 0x153   : > { %v1993_v29 = vadd.f32 %v1893_v60, %v1749_v36  ;;  %v1093_v61 = vrot.slane %v988_v7, 1  ;;  %v1234_v39 = vmul.f32 %v4402_v31, %v4526_v59  ;;  %v1094_v50 = vrot.slane %v989_v15, 1 }
 0x154   : > { %v4906_v46 = vmin.f32 %v2580_v63, 6.0  ;;  %v1338_v16 = vrot.slane %v1233_v27, 2  ;;  %v4910_v43 = vmin.f32 %v854_v53, 6.0  ;;  %v1546_v5 = vmul.f32 %v4406_v41, %v4565_v19 }
 0x155   : > { %v2061_v36 = vadd.f32 %v2029_v14, %v1993_v29  ;;  %v1339_v13 = vrot.slane %v1234_v39, 2  ;;  %v1095_v60 = vsel %vm1072_vm1, %v1093_v61, %v1094_v50  ;;  %v1547_v14 = vmul.f32 %v4406_v41, %v4580_v12  ;;  %v4923_v29 = vpop.f32.mrb[46].mxu0 }
 0x156   : > { %6361 = vst [vmem:[#allocation24_spill] sm:$0xff] %v4906_v46  ;;  %3754 = vmatprep.mubr.f32.mxu0 %v4906_v46  ;;  %v1193_v57 = vadd.f32 %v1095_v60, %v948_v26  ;;  %v1790_v63 = vmul.f32 %v4408_v42, %v4565_v19  ;;  %v1791_v53 = vmul.f32 %v4408_v42, %v4580_v12  ;;  %6362 = vst [vmem:[#allocation25_spill] sm:$0xff] %v4923_v29  ;;  %v4927_v39 = vpop.f32.mrb[47].mxu0 }
 0x157   : > { %v2305_v38 = vadd.f32 %v2205_v9, %v2061_v36  ;;  %v1340_v7 = vsel %vm1317_vm2, %v1338_v16, %v1339_v13  ;;  %v1474_v15 = vmul.f32 %v4412_v47, %v4565_v19  ;;  %v1650_v27 = vrot.slane %v1546_v5, 1  ;;  %6363 = vst [vmem:[#allocation26_spill] sm:$0xff] %v4927_v39 }
 0x158   : > { %v1651_v61 = vrot.slane %v1547_v14, 1  ;;  %v1438_v36 = vadd.f32 %v1340_v7, %v1193_v57  ;;  %v1894_v26 = vrot.slane %v1790_v63, 2  ;;  %v1895_v60 = vrot.slane %v1791_v53, 2 }
 0x159   : > { %v2549_v9 = vadd.f32 %v2449_v40, %v2305_v38  ;;  %v2102_v16 = vmul.f32 %v4416_v51, %v4601_v24  ;;  %v2103_v56 = vmul.f32 %v4416_v51, %v4590_v18  ;;  %v2346_v40 = vmul.f32 %v4515_v34, %v4601_v24 }
 0x15a   : > { %v1652_v44 = vsel %vm1072_vm1, %v1650_v27, %v1651_v61  ;;  %v1506_v38 = vadd.f32 %v1474_v15, %v1438_v36  ;;  %v1896_v5 = vsel %vm1317_vm2, %v1894_v26, %v1895_v60  ;;  %v2347_v57 = vmul.f32 %v4515_v34, %v4590_v18 }
 0x15b   : > { %v2581_v2 = vmax.f32 %v2549_v9, 0.0  ;;  %v2206_v14 = vrot.slane %v2102_v16, 1  ;;  %v2207_v63 = vrot.slane %v2103_v56, 1  ;;  %v2450_v53 = vrot.slane %v2346_v40, 2 }
 0x15c   : > { %v949_v9 = vmul.f32 %v4404_v37, %v4526_v59  ;;  %v1750_v27 = vadd.f32 %v1652_v44, %v1506_v38  ;;  %v2451_v46 = vrot.slane %v2347_v57, 2  ;;  %v6365_v39 = vrot.slane %v4552_v6, 1 }
 0x15d   : > { %v4939_v7 = vmin.f32 %v2581_v2, 6.0  ;;  %v6366_v15 = vrot.slane %v4556_v49, 2  ;;  %v2030_v2 = vmul.f32 %v4420_v55, %v4601_v24  ;;  %v2208_v56 = vsel %vm1072_vm1, %v2206_v14, %v2207_v63 }
 0x15e   : > { %v1097_v29 = vsel %vm1072_vm1, %v1094_v50, %v6365_v39  ;;  %v1548_v59 = vmul.f32 %v4406_v41, %v4558_v1  ;;  %v1994_v44 = vadd.f32 %v1896_v5, %v1750_v27  ;;  %v2452_v6 = vsel %vm1317_vm2, %v2450_v53, %v2451_v46 }
 0x15f   : > { %6364 = vst [vmem:[#allocation27_spill] sm:$0xff] %v4939_v7  ;;  %v1342_v36 = vsel %vm1317_vm2, %v1339_v13, %v6366_v15  ;;  %3755 = vmatmul.mubr.f32.gmra.mrb[60].mxu0 %v4939_v7  ;;  %v1194_v26 = vadd.f32 %v1097_v29, %v949_v9  ;;  %v1475_v50 = vmul.f32 %v4412_v47, %v4580_v12  ;;  %v857_v5 = vmax.f32 %v4705_v25, 0.0  ;;  %v6374_v7 = vld [vmem:[#allocation15_spill] sm:$0xff] }
 0x160   : > { %v1792_v49 = vmul.f32 %v4408_v42, %v4558_v1  ;;  %v1653_v39 = vrot.slane %v1548_v59, 1  ;;  %v2104_v16 = vmul.f32 %v4416_v51, %v4628_v22  ;;  %v2348_v29 = vmul.f32 %v4515_v34, %v4628_v22 }
 0x161   : > { %v1439_v13 = vadd.f32 %v1342_v36, %v1194_v26  ;;  %v2062_v40 = vadd.f32 %v2030_v2, %v1994_v44  ;;  %v856_v14 = vmax.f32 %v4712_v45, 0.0  ;;  %v2031_v36 = vmul.f32 %v4420_v55, %v4590_v18 }
 0x162   : > { %v1897_v38 = vrot.slane %v1792_v49, 2  ;;  %v1654_v53 = vsel %vm1072_vm1, %v1651_v61, %v1653_v39  ;;  %v2209_v9 = vrot.slane %v2104_v16, 1  ;;  %v2453_v27 = vrot.slane %v2348_v29, 2 }
 0x163   : > { %v1507_v57 = vadd.f32 %v1475_v50, %v1439_v13  ;;  %v2306_v1 = vadd.f32 %v2208_v56, %v2062_v40  ;;  %v4970_v26 = vmin.f32 %v857_v5, 6.0  ;;  %v4974_v44 = vmin.f32 %v856_v14, 6.0 }
 0x164   : > { %v1898_v15 = vsel %vm1317_vm2, %v1895_v60, %v1897_v38  ;;  %v2210_v2 = vsel %vm1072_vm1, %v2207_v63, %v2209_v9  ;;  %v2454_v25 = vsel %vm1317_vm2, %v2451_v46, %v2453_v27  ;;  %v991_v61 = vmul.f32 %v4400_v30, %v4565_v19 }
 0x165   : > { %v1751_v59 = vadd.f32 %v1654_v53, %v1507_v57  ;;  %v2550_v45 = vadd.f32 %v2452_v6, %v2306_v1  ;;  %v992_v56 = vmul.f32 %v4400_v30, %v4580_v12  ;;  %v1236_v60 = vmul.f32 %v4402_v31, %v4565_v19 }
 0x166   : > { %v950_v49 = vmul.f32 %v4404_v37, %v4565_v19  ;;  %v1237_v63 = vmul.f32 %v4402_v31, %v4580_v12  ;;  %v1549_v46 = vmul.f32 %v4406_v41, %v4601_v24  ;;  %v1098_v13 = vrot.slane %v991_v61, 1 }
 0x167   : > { %v1995_v50 = vadd.f32 %v1898_v15, %v1751_v59  ;;  %v2582_v6 = vmax.f32 %v2550_v45, 0.0  ;;  %v1099_v39 = vrot.slane %v992_v56, 1  ;;  %v1343_v16 = vrot.slane %v1236_v60, 2  ;;  %v5003_v56 = vpop.f32.mrb[48].mxu0 }
 0x168   : > { %v1344_v40 = vrot.slane %v1237_v63, 2  ;;  %v1550_v38 = vmul.f32 %v4406_v41, %v4590_v18  ;;  %v1655_v5 = vrot.slane %v1549_v46, 1  ;;  %v1793_v57 = vmul.f32 %v4408_v42, %v4601_v24  ;;  %v5008_v63 = vpop.f32.mrb[49].mxu0 }
 0x169   : > { %v2063_v29 = vadd.f32 %v2031_v36, %v1995_v50  ;;  %v4990_v14 = vmin.f32 %v2582_v6, 6.0  ;;  %v1100_v19 = vsel %vm1072_vm1, %v1098_v13, %v1099_v39  ;;  %v1794_v53 = vmul.f32 %v4408_v42, %v4590_v18 }
 0x16a   : > { %v1195_v27 = vadd.f32 %v1100_v19, %v950_v49  ;;  %v1345_v1 = vsel %vm1317_vm2, %v1343_v16, %v1344_v40  ;;  %v1656_v15 = vrot.slane %v1550_v38, 1  ;;  %v1476_v36 = vmul.f32 %v4412_v47, %v4601_v24 }
 0x16b   : > { %6367 = vst [vmem:[#allocation28_spill] sm:$0xff] %v4990_v14  ;;  %v2307_v9 = vadd.f32 %v2210_v2, %v2063_v29  ;;  %3757 = vmatprep.mubr.f32.mxu0 %v4990_v14  ;;  %v1899_v59 = vrot.slane %v1793_v57, 2  ;;  %v1900_v45 = vrot.slane %v1794_v53, 2  ;;  %v2105_v61 = vmul.f32 %v4416_v51, %v4653_v28 }
 0x16c   : > { %v1440_v50 = vadd.f32 %v1345_v1, %v1195_v27  ;;  %v1657_v2 = vsel %vm1072_vm1, %v1655_v5, %v1656_v15  ;;  %v2106_v49 = vmul.f32 %v4416_v51, %v4703_v32  ;;  %v2349_v13 = vmul.f32 %v4515_v34, %v4653_v28 }
 0x16d   : > { %v2551_v60 = vadd.f32 %v2454_v25, %v2307_v9  ;;  %v1901_v46 = vsel %vm1317_vm2, %v1899_v59, %v1900_v45  ;;  %v2211_v6 = vrot.slane %v2105_v61, 1  ;;  %v2350_v16 = vmul.f32 %v4515_v34, %v4703_v32 }
 0x16e   : > { %v1508_v38 = vadd.f32 %v1476_v36, %v1440_v50  ;;  %v2212_v25 = vrot.slane %v2106_v49, 1  ;;  %v859_v19 = vmax.f32 %v4721_v17, 0.0  ;;  %v2032_v5 = vmul.f32 %v4420_v55, %v4653_v28  ;;  %v6370_v49 = vld [vmem:[#allocation5_spill] sm:$0xff] }
 0x16f   : > { %v2583_v29 = vmax.f32 %v2551_v60, 0.0  ;;  %v2455_v57 = vrot.slane %v2349_v13, 2  ;;  %v2456_v53 = vrot.slane %v2350_v16, 2  ;;  %v858_v9 = vmax.f32 %v4730_v33, 0.0 }
 0x170   : > { %v1752_v1 = vadd.f32 %v1657_v2, %v1508_v38  ;;  %v2213_v59 = vsel %vm1072_vm1, %v2211_v6, %v2212_v25  ;;  %v951_v61 = vmul.f32 %v4404_v37, %v4580_v12  ;;  %v6369_v17 = vrot.slane %v4571_v20, 1 }
 0x171   : > { %v5019_v27 = vmin.f32 %v2583_v29, 6.0  ;;  %v2457_v36 = vsel %vm1317_vm2, %v2455_v57, %v2456_v53  ;;  %v5025_v60 = vmin.f32 %v858_v9, 6.0  ;;  %v6371_v13 = vrot.slane %v6370_v49, 2  ;;  %v6372_v57 = vld [vmem:[#allocation10_spill] sm:$0xff] }
 0x172   : > { %v1102_v50 = vsel %vm1072_vm1, %v1099_v39, %v6369_v17  ;;  %v1996_v2 = vadd.f32 %v1901_v46, %v1752_v1  ;;  %v5034_v16 = vmin.f32 %v859_v19, 6.0  ;;  %v1551_v12 = vmul.f32 %v4406_v41, %v4628_v22 }
 0x173   : > { %6368 = vst [vmem:[#allocation29_spill] sm:$0xff] %v5019_v27  ;;  %v1347_v33 = vsel %vm1317_vm2, %v1344_v40, %v6371_v13  ;;  %3758 = vmatmul.mubr.f32.gmra.mrb[62].mxu0 %v5019_v27  ;;  %v1196_v6 = vadd.f32 %v1102_v50, %v951_v61  ;;  %v5040_v29 = vmul.f32 %v4400_v30, %v5025_v60 }
 0x174   : > { %v5044_v20 = vmul.f32 %v4402_v31, %v5025_v60  ;;  %v1477_v39 = vmul.f32 %v4412_v47, %v4590_v18  ;;  %v1795_v40 = vmul.f32 %v4408_v42, %v4628_v22  ;;  %v2064_v46 = vadd.f32 %v2032_v5, %v1996_v2 }
 0x175   : > { %v1441_v38 = vadd.f32 %v1347_v33, %v1196_v6  ;;  %v1658_v19 = vrot.slane %v1551_v12, 1  ;;  %v2107_v9 = vmul.f32 %v4416_v51, %v6372_v57  ;;  %v2033_v17 = vmul.f32 %v4420_v55, %v4703_v32  ;;  %v5061_v12 = vpop.f32.mrb[50].mxu0 }
 0x176   : > { %v1902_v61 = vrot.slane %v1795_v40, 2  ;;  %v2351_v50 = vmul.f32 %v4515_v34, %v6372_v57  ;;  %v2308_v49 = vadd.f32 %v2213_v59, %v2064_v46  ;;  %v861_v6 = vmax.f32 %v4746_v48, 0.0  ;;  %6373 = vst [vmem:[#allocation5_spill] sm:$0xff] %v5061_v12  ;;  %v5065_v59 = vpop.f32.mrb[51].mxu0 }
 0x177   : > { %v1509_v13 = vadd.f32 %v1477_v39, %v1441_v38  ;;  %v1659_v27 = vsel %vm1072_vm1, %v1656_v15, %v1658_v19  ;;  %v2214_v22 = vrot.slane %v2107_v9, 1  ;;  %v860_v34 = vmax.f32 %v6374_v7, 0.0  ;;  %6375 = vst [vmem:[#allocation10_spill] sm:$0xff] %v5065_v59 }
 0x178   : > { %v1903_v33 = vsel %vm1317_vm2, %v1900_v45, %v1902_v61  ;;  %v2458_v2 = vrot.slane %v2351_v50, 2  ;;  %v2552_v40 = vadd.f32 %v2457_v36, %v2308_v49  ;;  %v5068_v39 = vmin.f32 %v861_v6, 6.0 }
 0x179   : > { %v1753_v1 = vadd.f32 %v1659_v27, %v1509_v13  ;;  %v2215_v14 = vsel %vm1072_vm1, %v2212_v25, %v2214_v22  ;;  %v952_v45 = vmul.f32 %v4404_v37, %v4601_v24  ;;  %v994_v48 = vmul.f32 %v4400_v30, %v4601_v24 }
 0x17a   : > { %v2459_v15 = vsel %vm1317_vm2, %v2456_v53, %v2458_v2  ;;  %v2584_v46 = vmax.f32 %v2552_v40, 0.0  ;;  %v995_v27 = vmul.f32 %v4400_v30, %v4590_v18  ;;  %v1239_v7 = vmul.f32 %v4402_v31, %v4601_v24 }
 0x17b   : > { %v1997_v38 = vadd.f32 %v1903_v33, %v1753_v1  ;;  %v5080_v25 = vmul.f32 %v4400_v30, %v5068_v39  ;;  %v5084_v53 = vmul.f32 %v4402_v31, %v5068_v39  ;;  %v1103_v36 = vrot.slane %v994_v48, 1 }
 0x17c   : > { %v1240_v19 = vmul.f32 %v4402_v31, %v4590_v18  ;;  %v5088_v9 = vmin.f32 %v2584_v46, 6.0  ;;  %v1104_v61 = vrot.slane %v995_v27, 1  ;;  %v1348_v50 = vrot.slane %v1239_v7, 2 }
 0x17d   : > { %6376 = vst [vmem:[#allocation15_spill] sm:$0xff] %v5080_v25  ;;  %6377 = vst [vmem:[#allocation30_spill] sm:$0xff] %v5084_v53  ;;  %v2065_v1 = vadd.f32 %v2033_v17, %v1997_v38  ;;  %v5092_v13 = vmin.f32 %v860_v34, 6.0  ;;  %v1552_v6 = vmul.f32 %v4406_v41, %v4653_v28  ;;  %v1553_v17 = vmul.f32 %v4406_v41, %v4703_v32 }
 0x17e   : > { %6378 = vst [vmem:[#allocation31_spill] sm:$0xff] %v5088_v9  ;;  %v1349_v22 = vrot.slane %v1240_v19, 2  ;;  %3760 = vmatprep.mubr.f32.mxu1 %v5088_v9  ;;  %v1105_v2 = vsel %vm1072_vm1, %v1103_v36, %v1104_v61  ;;  %v1796_v46 = vmul.f32 %v4408_v42, %v4653_v28  ;;  %v1797_v34 = vmul.f32 %v4408_v42, %v4703_v32  ;;  %v6380_v9 = vld [vmem:[#allocation8_spill] sm:$0xff] }
 0x17f   : > { %v2309_v33 = vadd.f32 %v2215_v14, %v2065_v1  ;;  %v1197_v40 = vadd.f32 %v1105_v2, %v952_v45  ;;  %v1478_v14 = vmul.f32 %v4412_v47, %v4653_v28  ;;  %v1660_v27 = vrot.slane %v1552_v6, 1 }
 0x180   : > { %v1350_v48 = vsel %vm1317_vm2, %v1348_v50, %v1349_v22  ;;  %v1661_v7 = vrot.slane %v1553_v17, 1  ;;  %v1904_v19 = vrot.slane %v1796_v46, 2  ;;  %v1905_v1 = vrot.slane %v1797_v34, 2 }
 0x181   : > { %v2553_v38 = vadd.f32 %v2459_v15, %v2309_v33  ;;  %v1442_v36 = vadd.f32 %v1350_v48, %v1197_v40  ;;  %v2108_v45 = vmul.f32 %v4416_v51, %v4778_v4  ;;  %v2109_v24 = vmul.f32 %v4416_v51, %v4774_v3  ;;  %v5115_v15 = vld [vmem:[%s6283_s2 + $0x8] ss:$0 sm:$0xff] }
 0x182   : > { %v1662_v50 = vsel %vm1072_vm1, %v1660_v27, %v1661_v7  ;;  %v2352_v33 = vmul.f32 %v5115_v15, %v4778_v4  ;;  %v1906_v17 = vsel %vm1317_vm2, %v1904_v19, %v1905_v1  ;;  %v2353_v48 = vmul.f32 %v5115_v15, %v4774_v3 }
 0x183   : > { %v2585_v2 = vmax.f32 %v2553_v38, 0.0  ;;  %v1510_v6 = vadd.f32 %v1478_v14, %v1442_v36  ;;  %v2216_v40 = vrot.slane %v2108_v45, 1  ;;  %v2217_v34 = vrot.slane %v2109_v24, 1  ;;  %v6382_v14 = vld [vmem:[#allocation9_spill] sm:$0xff] }
 0x184   : > { %v2460_v38 = vrot.slane %v2352_v33, 2  ;;  %v953_v27 = vmul.f32 %v4404_v37, %v4590_v18  ;;  %v2461_v5 = vrot.slane %v2353_v48, 2  ;;  %v6381_v53 = vrot.slane %v6380_v9, 1 }
 0x185   : > { %v5122_v46 = vmin.f32 %v2585_v2, 6.0  ;;  %v1754_v49 = vadd.f32 %v1662_v50, %v1510_v6  ;;  %v6383_v36 = vrot.slane %v6382_v14, 2  ;;  %v2034_v45 = vmul.f32 %v4420_v55, %v4778_v4 }
 0x186   : > { %v1107_v25 = vsel %vm1072_vm1, %v1104_v61, %v6381_v53  ;;  %v2218_v24 = vsel %vm1072_vm1, %v2216_v40, %v2217_v34  ;;  %v1554_v18 = vmul.f32 %v4406_v41, %v6372_v57  ;;  %v2462_v9 = vsel %vm1317_vm2, %v2460_v38, %v2461_v5  ;;  %v5147_v40 = vpop.f32.mrb[52].mxu0  ;;  %v6385_v38 = vld [vmem:[#allocation16_spill] sm:$0xff] }
 0x187   : > { %6379 = vst [vmem:[#allocation32_spill] sm:$0xff] %v5122_v46  ;;  %v1352_v19 = vsel %vm1317_vm2, %v1349_v22, %v6383_v36  ;;  %3761 = vmatmul.mubr.f32.vlgmr.msra.gmra.mrb[0].mxu1 %v5122_v46  ;;  %v1198_v2 = vadd.f32 %v1107_v25, %v953_v27  ;;  %v1998_v50 = vadd.f32 %v1906_v17, %v1754_v49  ;;  %6384 = vst [vmem:[#allocation8_spill] sm:$0xff] %v5147_v40  ;;  %v5151_v14 = vpop.f32.mrb[53].mxu0 }
 0x188   : > { %v1479_v53 = vmul.f32 %v4412_v47, %v4703_v32  ;;  %v1798_v61 = vmul.f32 %v4408_v42, %v6372_v57  ;;  %v1663_v33 = vrot.slane %v1554_v18, 1  ;;  %v2110_v6 = vmul.f32 %v4416_v51, %v4843_v62  ;;  %6386 = vst [vmem:[#allocation9_spill] sm:$0xff] %v5151_v14  ;;  %v6398_v14 = vld [vmem:[#allocation21_spill] sm:$0xff] }
 0x189   : > { %v1443_v22 = vadd.f32 %v1352_v19, %v1198_v2  ;;  %v2354_v25 = vmul.f32 %v5115_v15, %v4843_v62  ;;  %v2066_v48 = vadd.f32 %v2034_v45, %v1998_v50  ;;  %v863_v17 = vmax.f32 %v4766_v52, 0.0 }
 0x18a   : > { %v1907_v49 = vrot.slane %v1798_v61, 2  ;;  %v862_v27 = vmax.f32 %v6385_v38, 0.0  ;;  %v1664_v57 = vsel %vm1072_vm1, %v1661_v7, %v1663_v33  ;;  %v2219_v19 = vrot.slane %v2110_v6, 1 }
 0x18b   : > { %v1511_v36 = vadd.f32 %v1479_v53, %v1443_v22  ;;  %v2463_v2 = vrot.slane %v2354_v25, 2  ;;  %v2310_v18 = vadd.f32 %v2218_v24, %v2066_v48  ;;  %v2035_v59 = vmul.f32 %v4420_v55, %v4774_v3 }
 0x18c   : > { %v1908_v46 = vsel %vm1317_vm2, %v1905_v1, %v1907_v49  ;;  %v5157_v40 = vmin.f32 %v863_v17, 6.0  ;;  %v2220_v52 = vsel %vm1072_vm1, %v2217_v34, %v2219_v19  ;;  %v5161_v61 = vmin.f32 %v862_v27, 6.0 }
 0x18d   : > { %v1755_v45 = vadd.f32 %v1664_v57, %v1511_v36  ;;  %v2464_v50 = vsel %vm1317_vm2, %v2461_v5, %v2463_v2  ;;  %v2554_v53 = vadd.f32 %v2462_v9, %v2310_v18  ;;  %v997_v7 = vmul.f32 %v4400_v30, %v4653_v28 }
 0x18e   : > { %v998_v24 = vmul.f32 %v4400_v30, %v4703_v32  ;;  %v1242_v1 = vmul.f32 %v4402_v31, %v4653_v28  ;;  %v954_v33 = vmul.f32 %v4404_v37, %v4653_v28  ;;  %v1243_v34 = vmul.f32 %v4402_v31, %v4703_v32 }
 0x18f   : > { %v1999_v22 = vadd.f32 %v1908_v46, %v1755_v45  ;;  %v1555_v5 = vmul.f32 %v4406_v41, %v4778_v4  ;;  %v2586_v9 = vmax.f32 %v2554_v53, 0.0  ;;  %v1108_v6 = vrot.slane %v997_v7, 1 }
 0x190   : > { %v1109_v25 = vrot.slane %v998_v24, 1  ;;  %v1353_v48 = vrot.slane %v1242_v1, 2  ;;  %v1354_v17 = vrot.slane %v1243_v34, 2  ;;  %v1556_v38 = vmul.f32 %v4406_v41, %v4774_v3 }
 0x191   : > { %v2067_v49 = vadd.f32 %v2035_v59, %v1999_v22  ;;  %v1665_v27 = vrot.slane %v1555_v5, 1  ;;  %v5177_v46 = vmin.f32 %v2586_v9, 6.0  ;;  %v1799_v36 = vmul.f32 %v4408_v42, %v4778_v4 }
 0x192   : > { %v1110_v28 = vsel %vm1072_vm1, %v1108_v6, %v1109_v25  ;;  %v1800_v57 = vmul.f32 %v4408_v42, %v4774_v3  ;;  %v1355_v18 = vsel %vm1317_vm2, %v1353_v48, %v1354_v17  ;;  %v1666_v59 = vrot.slane %v1556_v38, 1 }
 0x193   : > { %6387 = vst [vmem:[#allocation16_spill] sm:$0xff] %v5177_v46  ;;  %v2311_v19 = vadd.f32 %v2220_v52, %v2067_v49  ;;  %v1199_v2 = vadd.f32 %v1110_v28, %v954_v33  ;;  %3763 = vmatprep.mubr.f32.mxu1 %v5177_v46  ;;  %v1480_v45 = vmul.f32 %v4412_v47, %v4778_v4  ;;  %v1909_v53 = vrot.slane %v1799_v36, 2  ;;  %v6388_v28 = vld [vmem:[#allocation17_spill] sm:$0xff] }
 0x194   : > { %v1910_v7 = vrot.slane %v1800_v57, 2  ;;  %v2111_v24 = vmul.f32 %v4416_v51, %v4852_v11  ;;  %v1667_v34 = vsel %vm1072_vm1, %v1665_v27, %v1666_v59  ;;  %v2112_v52 = vmul.f32 %v4416_v51, %v4910_v43 }
 0x195   : > { %v2555_v1 = vadd.f32 %v2464_v50, %v2311_v19  ;;  %v1444_v22 = vadd.f32 %v1355_v18, %v1199_v2  ;;  %v2355_v9 = vmul.f32 %v5115_v15, %v4852_v11  ;;  %v2356_v6 = vmul.f32 %v5115_v15, %v4910_v43  ;;  %v6389_v19 = vld [vmem:[#allocation18_spill] sm:$0xff] }
 0x196   : > { %v1911_v33 = vsel %vm1317_vm2, %v1909_v53, %v1910_v7  ;;  %v2221_v5 = vrot.slane %v2111_v24, 1  ;;  %v2222_v38 = vrot.slane %v2112_v52, 1  ;;  %v865_v50 = vmax.f32 %v6388_v28, 0.0 }
 0x197   : > { %v2587_v48 = vmax.f32 %v2555_v1, 0.0  ;;  %v1512_v49 = vadd.f32 %v1480_v45, %v1444_v22  ;;  %v2036_v27 = vmul.f32 %v4420_v55, %v4852_v11  ;;  %v2465_v36 = vrot.slane %v2355_v9, 2  ;;  %v6391_v22 = vld [vmem:[#allocation12_spill] sm:$0xff]  ;;  %v6393_v9 = vld [vmem:[#allocation13_spill] sm:$0xff] }
 0x198   : > { %v2466_v57 = vrot.slane %v2356_v6, 2  ;;  %v864_v2 = vmax.f32 %v6389_v19, 0.0  ;;  %v2223_v24 = vsel %vm1072_vm1, %v2221_v5, %v2222_v38  ;;  %v955_v46 = vmul.f32 %v4404_v37, %v4703_v32 }
 0x199   : > { %v5202_v18 = vmin.f32 %v2587_v48, 6.0  ;;  %v1756_v53 = vadd.f32 %v1667_v34, %v1512_v49  ;;  %v6392_v52 = vrot.slane %v6391_v22, 1  ;;  %v6394_v6 = vrot.slane %v6393_v9, 2 }
 0x19a   : > { %v2467_v45 = vsel %vm1317_vm2, %v2465_v36, %v2466_v57  ;;  %v5208_v1 = vmin.f32 %v864_v2, 6.0  ;;  %v5217_v48 = vmin.f32 %v865_v50, 6.0  ;;  %v1557_v32 = vmul.f32 %v4406_v41, %v4843_v62 }
 0x19b   : > { %6390 = vst [vmem:[#allocation17_spill] sm:$0xff] %v5202_v18  ;;  %v1112_v28 = vsel %vm1072_vm1, %v1109_v25, %v6392_v52  ;;  %v1357_v19 = vsel %vm1317_vm2, %v1354_v17, %v6394_v6  ;;  %3764 = vmatmul.mubr.f32.gmra.mrb[2].mxu1 %v5202_v18  ;;  %v2000_v34 = vadd.f32 %v1911_v33, %v1756_v53  ;;  %v866_v12 = vmax.f32 %v6398_v14, 0.0 }
 0x19c   : > { %6395 = vst [vmem:[#allocation18_spill] sm:$0xff] %v5217_v48  ;;  %v1200_v5 = vadd.f32 %v1112_v28, %v955_v46  ;;  %v5223_v49 = vmul.f32 %v4400_v30, %v5208_v1  ;;  %v5227_v25 = vmul.f32 %v4402_v31, %v5208_v1  ;;  %v1481_v17 = vmul.f32 %v4412_v47, %v4774_v3 }
 0x19d   : > { %v1801_v33 = vmul.f32 %v4408_v42, %v4843_v62  ;;  %v2068_v50 = vadd.f32 %v2036_v27, %v2000_v34  ;;  %v1668_v46 = vrot.slane %v1557_v32, 1  ;;  %v2113_v2 = vmul.f32 %v4416_v51, %v4886_v23 }
 0x19e   : > { %6396 = vst [vmem:[#allocation12_spill] sm:$0xff] %v5223_v49  ;;  %v1445_v36 = vadd.f32 %v1357_v19, %v1200_v5  ;;  %v2037_v52 = vmul.f32 %v4420_v55, %v4910_v43  ;;  %v2357_v28 = vmul.f32 %v5115_v15, %v4886_v23  ;;  %v6397_v5 = vld [vmem:[#allocation20_spill] sm:$0xff] }
 0x19f   : > { %v1912_v22 = vrot.slane %v1801_v33, 2  ;;  %v2312_v9 = vadd.f32 %v2223_v24, %v2068_v50  ;;  %v1669_v18 = vsel %vm1072_vm1, %v1666_v59, %v1668_v46  ;;  %v2224_v62 = vrot.slane %v2113_v2, 1 }
 0x1a0   : > { %v1513_v6 = vadd.f32 %v1481_v17, %v1445_v36  ;;  %v2468_v34 = vrot.slane %v2357_v28, 2  ;;  %v867_v32 = vmax.f32 %v6397_v5, 0.0  ;;  %v956_v59 = vmul.f32 %v4404_v37, %v4778_v4 }
 0x1a1   : > { %v1913_v19 = vsel %vm1317_vm2, %v1910_v7, %v1912_v22  ;;  %v2556_v53 = vadd.f32 %v2467_v45, %v2312_v9  ;;  %v2225_v49 = vsel %vm1072_vm1, %v2222_v38, %v2224_v62  ;;  %v1000_v17 = vmul.f32 %v4400_v30, %v4778_v4 }
 0x1a2   : > { %v1757_v33 = vadd.f32 %v1669_v18, %v1513_v6  ;;  %v2469_v48 = vsel %vm1317_vm2, %v2466_v57, %v2468_v34  ;;  %v5247_v24 = vmin.f32 %v867_v32, 6.0  ;;  %v1001_v45 = vmul.f32 %v4400_v30, %v4774_v3 }
 0x1a3   : > { %v2588_v7 = vmax.f32 %v2556_v53, 0.0  ;;  %v1245_v38 = vmul.f32 %v4402_v31, %v4778_v4  ;;  %v1113_v18 = vrot.slane %v1000_v17, 1  ;;  %v1246_v36 = vmul.f32 %v4402_v31, %v4774_v3 }
 0x1a4   : > { %v2001_v50 = vadd.f32 %v1913_v19, %v1757_v33  ;;  %v5259_v14 = vmul.f32 %v4400_v30, %v5247_v24  ;;  %v5263_v57 = vmul.f32 %v4402_v31, %v5247_v24  ;;  %v1114_v53 = vrot.slane %v1001_v45, 1 }
 0x1a5   : > { %v5267_v46 = vmin.f32 %v2588_v7, 6.0  ;;  %v1358_v22 = vrot.slane %v1245_v38, 2  ;;  %v5271_v9 = vmin.f32 %v866_v12, 6.0  ;;  %v1359_v6 = vrot.slane %v1246_v36, 2 }
 0x1a6   : > { %v2069_v2 = vadd.f32 %v2037_v52, %v2001_v50  ;;  %v1115_v19 = vsel %vm1072_vm1, %v1113_v18, %v1114_v53  ;;  %v1558_v34 = vmul.f32 %v4406_v41, %v4852_v11  ;;  %v1559_v52 = vmul.f32 %v4406_v41, %v4910_v43 }
 0x1a7   : > { %6399 = vst [vmem:[#allocation13_spill] sm:$0xff] %v5267_v46  ;;  %3766 = vmatprep.mubr.f32.mxu1 %v5267_v46  ;;  %v1201_v5 = vadd.f32 %v1115_v19, %v956_v59  ;;  %v1360_v32 = vsel %vm1317_vm2, %v1358_v22, %v1359_v6  ;;  %v1802_v33 = vmul.f32 %v4408_v42, %v4852_v11  ;;  %v6401_v4 = vrot.slane %v4858_v54, 1  ;;  %v2879_v54 = vld [vmem:[%s6285_s4] sm:$0xff] }
 0x1a8   : > { %v2313_v62 = vadd.f32 %v2225_v49, %v2069_v2  ;;  %v1803_v12 = vmul.f32 %v4408_v42, %v4910_v43  ;;  %v1482_v49 = vmul.f32 %v4412_v47, %v4852_v11  ;;  %v1670_v7 = vrot.slane %v1558_v34, 1 }
 0x1a9   : > { %v1671_v50 = vrot.slane %v1559_v52, 1  ;;  %v1446_v45 = vadd.f32 %v1360_v32, %v1201_v5  ;;  %v1914_v38 = vrot.slane %v1802_v33, 2  ;;  %v2114_v59 = vmul.f32 %v4416_v51, %v4974_v44 }
 0x1aa   : > { %v2557_v17 = vadd.f32 %v2469_v48, %v2313_v62  ;;  %v1915_v18 = vrot.slane %v1803_v12, 2  ;;  %v2115_v22 = vmul.f32 %v4416_v51, %v4970_v26  ;;  %v2358_v48 = vmul.f32 %v5115_v15, %v4974_v44 }
 0x1ab   : > { %v1672_v2 = vsel %vm1072_vm1, %v1670_v7, %v1671_v50  ;;  %v1514_v62 = vadd.f32 %v1482_v49, %v1446_v45  ;;  %v2226_v34 = vrot.slane %v2114_v59, 1  ;;  %v2359_v52 = vmul.f32 %v5115_v15, %v4970_v26 }
 0x1ac   : > { %v2589_v36 = vmax.f32 %v2557_v17, 0.0  ;;  %v1916_v19 = vsel %vm1317_vm2, %v1914_v38, %v1915_v18  ;;  %v2227_v32 = vrot.slane %v2115_v22, 1  ;;  %v2470_v33 = vrot.slane %v2358_v48, 2 }
 0x1ad   : > { %v957_v12 = vmul.f32 %v4404_v37, %v4774_v3  ;;  %v1758_v17 = vadd.f32 %v1672_v2, %v1514_v62  ;;  %v2471_v7 = vrot.slane %v2359_v52, 2  ;;  %v1117_v28 = vsel %vm1072_vm1, %v1114_v53, %v6401_v4 }
 0x1ae   : > { %v5296_v5 = vmin.f32 %v2589_v36, 6.0  ;;  %v6402_v49 = vrot.slane %v4862_v21, 2  ;;  %v2038_v38 = vmul.f32 %v4420_v55, %v4974_v44  ;;  %v2228_v59 = vsel %vm1072_vm1, %v2226_v34, %v2227_v32  ;;  %v2880_v21 = vld [vmem:[%s6285_s4 + $0x8] sm:$0xff] }
 0x1af   : > { %v1202_v36 = vadd.f32 %v1117_v28, %v957_v12  ;;  %v1560_v3 = vmul.f32 %v4406_v41, %v4886_v23  ;;  %v2002_v53 = vadd.f32 %v1916_v19, %v1758_v17  ;;  %v2472_v4 = vsel %vm1317_vm2, %v2470_v33, %v2471_v7 }
 0x1b0   : > { %6400 = vst [vmem:[#allocation20_spill] sm:$0xff] %v5296_v5  ;;  %v1362_v45 = vsel %vm1317_vm2, %v1359_v6, %v6402_v49  ;;  %3767 = vmatmul.mubr.f32.gmra.mrb[4].mxu1 %v5296_v5  ;;  %v1483_v6 = vmul.f32 %v4412_v47, %v4910_v43  ;;  %v1804_v28 = vmul.f32 %v4408_v42, %v4886_v23  ;;  %v869_v19 = vmax.f32 %v4829_v8, 0.0 }
 0x1b1   : > { %v1447_v2 = vadd.f32 %v1362_v45, %v1202_v36  ;;  %v1673_v22 = vrot.slane %v1560_v3, 1  ;;  %v2116_v48 = vmul.f32 %v4416_v51, %v5025_v60  ;;  %v2360_v62 = vmul.f32 %v5115_v15, %v5025_v60  ;;  %v6403_v36 = vld [vmem:[#allocation22_spill] sm:$0xff] }
 0x1b2   : > { %v2070_v34 = vadd.f32 %v2038_v38, %v2002_v53  ;;  %v1917_v52 = vrot.slane %v1804_v28, 2  ;;  %v3913_v12 = vpack.c.bf16 %v2880_v21, %v2879_v54  ;;  %v2039_v45 = vmul.f32 %v4420_v55, %v4970_v26 }
 0x1b3   : > { %v1515_v33 = vadd.f32 %v1483_v6, %v1447_v2  ;;  %v1674_v17 = vsel %vm1072_vm1, %v1671_v50, %v1673_v22  ;;  %v2229_v49 = vrot.slane %v2116_v48, 1  ;;  %v2473_v27 = vrot.slane %v2360_v62, 2 }
 0x1b4   : > { %v2314_v5 = vadd.f32 %v2228_v59, %v2070_v34  ;;  %v1918_v23 = vsel %vm1317_vm2, %v1915_v18, %v1917_v52  ;;  %3914 = vmatprep.subr.bf16.mxu1 %v3913_v12  ;;  %v868_v3 = vmax.f32 %v6403_v36, 0.0  ;;  %v5335_v54 = vmin.f32 %v869_v19, 6.0 }
 0x1b5   : > { %v1759_v46 = vadd.f32 %v1674_v17, %v1515_v33  ;;  %v2230_v38 = vsel %vm1072_vm1, %v2227_v32, %v2229_v49  ;;  %v2474_v8 = vsel %vm1317_vm2, %v2471_v7, %v2473_v27  ;;  %3916 = vmatpush3.bf16.msra.mxu1 %v3913_v12  ;;  %v958_v59 = vmul.f32 %v4404_v37, %v4852_v11 }
 0x1b6   : > { %v2558_v50 = vadd.f32 %v2472_v4, %v2314_v5  ;;  %v1003_v18 = vmul.f32 %v4400_v30, %v4852_v11  ;;  %v1004_v21 = vmul.f32 %v4400_v30, %v4910_v43  ;;  %v5343_v6 = vmin.f32 %v868_v3, 6.0 }
 0x1b7   : > { %v2003_v53 = vadd.f32 %v1918_v23, %v1759_v46  ;;  %v1248_v32 = vmul.f32 %v4402_v31, %v4852_v11  ;;  %v1249_v27 = vmul.f32 %v4402_v31, %v4910_v43  ;;  %v1561_v28 = vmul.f32 %v4406_v41, %v4974_v44 }
 0x1b8   : > { %v2590_v7 = vmax.f32 %v2558_v50, 0.0  ;;  %v1118_v5 = vrot.slane %v1003_v18, 1  ;;  %v1119_v4 = vrot.slane %v1004_v21, 1  ;;  %v1562_v46 = vmul.f32 %v4406_v41, %v4970_v26 }
 0x1b9   : > { %v2071_v2 = vadd.f32 %v2039_v45, %v2003_v53  ;;  %v1363_v22 = vrot.slane %v1248_v32, 2  ;;  %v1364_v48 = vrot.slane %v1249_v27, 2  ;;  %v1675_v11 = vrot.slane %v1561_v28, 1 }
 0x1ba   : > { %v5353_v62 = vmin.f32 %v2590_v7, 6.0  ;;  %v1120_v34 = vsel %vm1072_vm1, %v1118_v5, %v1119_v4  ;;  %v1805_v52 = vmul.f32 %v4408_v42, %v4974_v44  ;;  %v1676_v17 = vrot.slane %v1562_v46, 1 }
 0x1bb   : > { %v2315_v19 = vadd.f32 %v2230_v38, %v2071_v2  ;;  %v1203_v12 = vadd.f32 %v1120_v34, %v958_v59  ;;  %v1365_v33 = vsel %vm1317_vm2, %v1363_v22, %v1364_v48  ;;  %v1484_v49 = vmul.f32 %v4412_v47, %v4974_v44 }
 0x1bc   : > { %6404 = vst [vmem:[#allocation21_spill] sm:$0xff] %v5353_v62  ;;  %3769 = vmatprep.mubr.f32.mxu1 %v5353_v62  ;;  %v1806_v23 = vmul.f32 %v4408_v42, %v4970_v26  ;;  %v1919_v45 = vrot.slane %v1805_v52, 2  ;;  %v2117_v36 = vmul.f32 %v4416_v51, %v5034_v16  ;;  %v1677_v38 = vsel %vm1072_vm1, %v1675_v11, %v1676_v17 }
 0x1bd   : > { %v2559_v3 = vadd.f32 %v2474_v8, %v2315_v19  ;;  %v1448_v50 = vadd.f32 %v1365_v33, %v1203_v12  ;;  %v2118_v59 = vmul.f32 %v4416_v51, %v5092_v13  ;;  %v2361_v53 = vmul.f32 %v5115_v15, %v5034_v16 }
 0x1be   : > { %v1920_v18 = vrot.slane %v1806_v23, 2  ;;  %v2231_v21 = vrot.slane %v2117_v36, 1  ;;  %v2362_v32 = vmul.f32 %v5115_v15, %v5092_v13  ;;  %v871_v28 = vmax.f32 %v4876_v0, 0.0 }
 0x1bf   : > { %v2591_v27 = vmax.f32 %v2559_v3, 0.0  ;;  %v1516_v7 = vadd.f32 %v1484_v49, %v1448_v50  ;;  %v2232_v5 = vrot.slane %v2118_v59, 1  ;;  %v2475_v2 = vrot.slane %v2361_v53, 2  ;;  %v2881_v53 = vld [vmem:[%s6285_s4 + $0x10] sm:$0xff] }
 0x1c0   : > { %v1921_v8 = vsel %vm1317_vm2, %v1919_v45, %v1920_v18  ;;  %v2476_v22 = vrot.slane %v2362_v32, 2  ;;  %v870_v46 = vmax.f32 %v4881_v58, 0.0  ;;  %v2040_v52 = vmul.f32 %v4420_v55, %v5034_v16  ;;  %v2882_v32 = vld [vmem:[%s6285_s4 + $0x18] sm:$0xff] }
 0x1c1   : > { %v5376_v34 = vmin.f32 %v2591_v27, 6.0  ;;  %v1760_v11 = vadd.f32 %v1677_v38, %v1516_v7  ;;  %v2233_v19 = vsel %vm1072_vm1, %v2231_v21, %v2232_v5  ;;  %v959_v0 = vmul.f32 %v4404_v37, %v4910_v43 }
 0x1c2   : > { %v2477_v12 = vsel %vm1317_vm2, %v2475_v2, %v2476_v22  ;;  %v5382_v33 = vmin.f32 %v870_v46, 6.0  ;;  %v6406_v49 = vrot.slane %v4898_v10, 1  ;;  %v5390_v45 = vmin.f32 %v871_v28, 6.0 }
 0x1c3   : > { %6405 = vst [vmem:[#allocation22_spill] sm:$0xff] %v5376_v34  ;;  %3770 = vmatmul.mubr.f32.gmra.mrb[6].mxu1 %v5376_v34  ;;  %v2004_v58 = vadd.f32 %v1921_v8, %v1760_v11  ;;  %v6407_v36 = vrot.slane %v4902_v35, 2  ;;  %v1563_v50 = vmul.f32 %v4406_v41, %v5025_v60  ;;  %v1485_v10 = vmul.f32 %v4412_v47, %v4970_v26 }
 0x1c4   : > { %v1122_v23 = vsel %vm1072_vm1, %v1119_v4, %v6406_v49  ;;  %v5399_v38 = vmul.f32 %v4400_v30, %v5382_v33  ;;  %v1807_v4 = vmul.f32 %v4408_v42, %v5025_v60  ;;  %v5407_v35 = vmul.f32 %v4402_v31, %v5382_v33 }
 0x1c5   : > { %v1367_v3 = vsel %vm1317_vm2, %v1364_v48, %v6407_v36  ;;  %v1204_v43 = vadd.f32 %v1122_v23, %v959_v0  ;;  %v2072_v59 = vadd.f32 %v2040_v52, %v2004_v58  ;;  %v1678_v48 = vrot.slane %v1563_v50, 1  ;;  %v6408_v23 = vld [vmem:[#allocation25_spill] sm:$0xff] }
 0x1c6   : > { %v2119_v21 = vmul.f32 %v4416_v51, %v5068_v39  ;;  %v1922_v7 = vrot.slane %v1807_v4, 2  ;;  %v2041_v28 = vmul.f32 %v4420_v55, %v5092_v13  ;;  %v2363_v11 = vmul.f32 %v5115_v15, %v5068_v39 }
 0x1c7   : > { %v1449_v60 = vadd.f32 %v1367_v3, %v1204_v43  ;;  %v2316_v8 = vadd.f32 %v2233_v19, %v2072_v59  ;;  %v1679_v2 = vsel %vm1072_vm1, %v1676_v17, %v1678_v48  ;;  %v3917_v49 = vpack.c.bf16 %v2882_v32, %v2881_v53  ;;  %v6409_v17 = vld [vmem:[#allocation26_spill] sm:$0xff] }
 0x1c8   : > { %v2234_v46 = vrot.slane %v2119_v21, 1  ;;  %v1923_v0 = vsel %vm1317_vm2, %v1920_v18, %v1922_v7  ;;  %v873_v58 = vmax.f32 %v6408_v23, 0.0  ;;  %v2478_v43 = vrot.slane %v2363_v11, 2 }
 0x1c9   : > { %v1517_v52 = vadd.f32 %v1485_v10, %v1449_v60  ;;  %v2560_v36 = vadd.f32 %v2477_v12, %v2316_v8  ;;  %3918 = vmatprep.subr.bf16.mxu1 %v3917_v49  ;;  %v872_v59 = vmax.f32 %v6409_v17, 0.0  ;;  %v1006_v10 = vmul.f32 %v4400_v30, %v4974_v44 }
 0x1ca   : > { %v2235_v50 = vsel %vm1072_vm1, %v2232_v5, %v2234_v46  ;;  %v5427_v19 = vmin.f32 %v873_v58, 6.0  ;;  %v2479_v18 = vsel %vm1317_vm2, %v2476_v22, %v2478_v43  ;;  %3920 = vmatpush3.bf16.msra.mxu1 %v3917_v49  ;;  %v960_v12 = vmul.f32 %v4404_v37, %v4974_v44 }
 0x1cb   : > { %v1761_v4 = vadd.f32 %v1679_v2, %v1517_v52  ;;  %v2592_v48 = vmax.f32 %v2560_v36, 0.0  ;;  %v1007_v5 = vmul.f32 %v4400_v30, %v4970_v26  ;;  %v1123_v60 = vrot.slane %v1006_v10, 1 }
 0x1cc   : > { %v5439_v53 = vmul.f32 %v4400_v30, %v5427_v19  ;;  %v5443_v32 = vmul.f32 %v4402_v31, %v5427_v19  ;;  %v1251_v8 = vmul.f32 %v4402_v31, %v4974_v44  ;;  %v1252_v2 = vmul.f32 %v4402_v31, %v4970_v26 }
 0x1cd   : > { %v2005_v21 = vadd.f32 %v1923_v0, %v1761_v4  ;;  %v5445_v7 = vmin.f32 %v2592_v48, 6.0  ;;  %v1124_v22 = vrot.slane %v1007_v5, 1  ;;  %v5453_v0 = vmin.f32 %v872_v59, 6.0 }
 0x1ce   : > { %v1368_v23 = vrot.slane %v1251_v8, 2  ;;  %v1369_v58 = vrot.slane %v1252_v2, 2  ;;  %v1564_v36 = vmul.f32 %v4406_v41, %v5034_v16  ;;  %v1808_v4 = vmul.f32 %v4408_v42, %v5034_v16 }
 0x1cf   : > { %6410 = vst [vmem:[#allocation25_spill] sm:$0xff] %v5445_v7  ;;  %v2073_v46 = vadd.f32 %v2041_v28, %v2005_v21  ;;  %3772 = vmatprep.mubr.f32.mxu1 %v5445_v7  ;;  %v1125_v49 = vsel %vm1072_vm1, %v1123_v60, %v1124_v22  ;;  %v1565_v28 = vmul.f32 %v4406_v41, %v5092_v13 }
 0x1d0   : > { %v1205_v43 = vadd.f32 %v1125_v49, %v960_v12  ;;  %v1370_v17 = vsel %vm1317_vm2, %v1368_v23, %v1369_v58  ;;  %v1486_v59 = vmul.f32 %v4412_v47, %v5034_v16  ;;  %v1680_v10 = vrot.slane %v1564_v36, 1 }
 0x1d1   : > { %v2317_v44 = vadd.f32 %v2235_v50, %v2073_v46  ;;  %v1809_v48 = vmul.f32 %v4408_v42, %v5092_v13  ;;  %v1681_v60 = vrot.slane %v1565_v28, 1  ;;  %v1924_v50 = vrot.slane %v1808_v4, 2 }
 0x1d2   : > { %v1450_v21 = vadd.f32 %v1370_v17, %v1205_v43  ;;  %v2120_v8 = vmul.f32 %v4416_v51, %v5161_v61  ;;  %v2121_v2 = vmul.f32 %v4416_v51, %v5157_v40  ;;  %v2364_v46 = vmul.f32 %v5115_v15, %v5161_v61 }
 0x1d3   : > { %v2561_v5 = vadd.f32 %v2479_v18, %v2317_v44  ;;  %v1925_v12 = vrot.slane %v1809_v48, 2  ;;  %v1682_v36 = vsel %vm1072_vm1, %v1680_v10, %v1681_v60  ;;  %v2365_v18 = vmul.f32 %v5115_v15, %v5157_v40 }
 0x1d4   : > { %v1518_v23 = vadd.f32 %v1486_v59, %v1450_v21  ;;  %v2236_v43 = vrot.slane %v2120_v8, 1  ;;  %v2237_v28 = vrot.slane %v2121_v2, 1  ;;  %v2480_v4 = vrot.slane %v2364_v46, 2  ;;  %v2883_v2 = vld [vmem:[%s6285_s4 + $0x20] sm:$0xff] }
 0x1d5   : > { %v2593_v49 = vmax.f32 %v2561_v5, 0.0  ;;  %v1926_v44 = vsel %vm1317_vm2, %v1924_v50, %v1925_v12  ;;  %v2481_v3 = vrot.slane %v2365_v18, 2  ;;  %v961_v27 = vmul.f32 %v4404_v37, %v4970_v26  ;;  %v2884_v26 = vld [vmem:[%s6285_s4 + $0x28] sm:$0xff] }
 0x1d6   : > { %v1762_v48 = vadd.f32 %v1682_v36, %v1518_v23  ;;  %v2042_v59 = vmul.f32 %v4420_v55, %v5161_v61  ;;  %v2238_v10 = vsel %vm1072_vm1, %v2236_v43, %v2237_v28  ;;  %v6412_v5 = vrot.slane %v5040_v29, 1 }
 0x1d7   : > { %v5478_v17 = vmin.f32 %v2593_v49, 6.0  ;;  %v6413_v50 = vrot.slane %v5044_v20, 2  ;;  %v2482_v49 = vsel %vm1317_vm2, %v2480_v4, %v2481_v3  ;;  %v1487_v20 = vmul.f32 %v4412_v47, %v5092_v13 }
 0x1d8   : > { %v1127_v21 = vsel %vm1072_vm1, %v1124_v22, %v6412_v5  ;;  %v2006_v46 = vadd.f32 %v1926_v44, %v1762_v48  ;;  %v1566_v22 = vmul.f32 %v4406_v41, %v5068_v39  ;;  %v2122_v23 = vmul.f32 %v4416_v51, %v5208_v1 }
 0x1d9   : > { %6411 = vst [vmem:[#allocation26_spill] sm:$0xff] %v5478_v17  ;;  %v1372_v8 = vsel %vm1317_vm2, %v1369_v58, %v6413_v50  ;;  %3773 = vmatmul.mubr.f32.gmra.mrb[8].mxu1 %v5478_v17  ;;  %v1206_v29 = vadd.f32 %v1127_v21, %v961_v27  ;;  %v1810_v58 = vmul.f32 %v4408_v42, %v5068_v39  ;;  %v875_v21 = vmax.f32 %v5003_v56, 0.0 }
 0x1da   : > { %v2366_v36 = vmul.f32 %v5115_v15, %v5208_v1  ;;  %v2074_v18 = vadd.f32 %v2042_v59, %v2006_v46  ;;  %v1683_v43 = vrot.slane %v1566_v22, 1  ;;  %v3921_v4 = vpack.c.bf16 %v2884_v26, %v2883_v2 }
 0x1db   : > { %v1451_v44 = vadd.f32 %v1372_v8, %v1206_v29  ;;  %v1927_v27 = vrot.slane %v1810_v58, 2  ;;  %v2239_v48 = vrot.slane %v2122_v23, 1  ;;  %v874_v39 = vmax.f32 %v5008_v63, 0.0 }
 0x1dc   : > { %v2483_v5 = vrot.slane %v2366_v36, 2  ;;  %v2318_v50 = vadd.f32 %v2238_v10, %v2074_v18  ;;  %v1684_v11 = vsel %vm1072_vm1, %v1681_v60, %v1683_v43  ;;  %3922 = vmatprep.subr.bf16.mxu1 %v3921_v4  ;;  %v2043_v59 = vmul.f32 %v4420_v55, %v5157_v40 }
 0x1dd   : > { %v1519_v52 = vadd.f32 %v1487_v20, %v1451_v44  ;;  %v1928_v17 = vsel %vm1317_vm2, %v1925_v12, %v1927_v27  ;;  %v2240_v8 = vsel %vm1072_vm1, %v2237_v28, %v2239_v48  ;;  %3924 = vmatpush3.bf16.msra.mxu1 %v3921_v4  ;;  %v5517_v56 = vmin.f32 %v875_v21, 6.0 }
 0x1de   : > { %v2484_v2 = vsel %vm1317_vm2, %v2481_v3, %v2483_v5  ;;  %v2562_v26 = vadd.f32 %v2482_v49, %v2318_v50  ;;  %v5519_v10 = vmin.f32 %v874_v39, 6.0  ;;  %v1009_v60 = vmul.f32 %v4400_v30, %v5034_v16 }
 0x1df   : > { %v1763_v46 = vadd.f32 %v1684_v11, %v1519_v52  ;;  %v5525_v63 = vmul.f32 %v4400_v30, %v5092_v13  ;;  %v1254_v12 = vmul.f32 %v4402_v31, %v5034_v16  ;;  %v5531_v3 = vmul.f32 %v4402_v31, %v5092_v13 }
 0x1e0   : > { %v2594_v28 = vmax.f32 %v2562_v26, 0.0  ;;  %v962_v52 = vmul.f32 %v4404_v37, %v5034_v16  ;;  %v1567_v49 = vmul.f32 %v4406_v41, %v5161_v61  ;;  %v1128_v29 = vrot.slane %v1009_v60, 1 }
 0x1e1   : > { %v2007_v11 = vadd.f32 %v1928_v17, %v1763_v46  ;;  %v6322_v22 = vrot.slane %v5525_v63, 1  ;;  %v1373_v20 = vrot.slane %v1254_v12, 2  ;;  %v6321_v58 = vrot.slane %v5531_v3, 2 }
 0x1e2   : > { %v5539_v23 = vmin.f32 %v2594_v28, 6.0  ;;  %v5543_v18 = vmul.f32 %v4406_v41, %v5157_v40  ;;  %v1685_v17 = vrot.slane %v1567_v49, 1  ;;  %v1811_v43 = vmul.f32 %v4408_v42, %v5161_v61 }
 0x1e3   : > { %v2075_v36 = vadd.f32 %v2043_v59, %v2007_v11  ;;  %v1130_v16 = vsel %vm1072_vm1, %v1128_v29, %v6322_v22  ;;  %v1375_v44 = vsel %vm1317_vm2, %v1373_v20, %v6321_v58  ;;  %v5555_v4 = vmul.f32 %v4408_v42, %v5157_v40  ;;  %v6415_v59 = vld [vmem:[#allocation18_spill] sm:$0xff] }
 0x1e4   : > { %6414 = vst [vmem:[#allocation33_spill] sm:$0xff] %v5539_v23  ;;  %3775 = vmatprep.mubr.f32.mxu1 %v5539_v23  ;;  %v1207_v48 = vadd.f32 %v1130_v16, %v962_v52  ;;  %v1488_v5 = vmul.f32 %v4412_v47, %v5161_v61  ;;  %v6320_v21 = vrot.slane %v5543_v18, 1  ;;  %v1929_v50 = vrot.slane %v1811_v43, 2 }
 0x1e5   : > { %v2319_v27 = vadd.f32 %v2240_v8, %v2075_v36  ;;  %v6318_v39 = vrot.slane %v5555_v4, 2  ;;  %v2123_v26 = vmul.f32 %v4416_v51, %v6415_v59  ;;  %v5566_v46 = vmul.f32 %v4416_v51, %v5271_v9 }
 0x1e6   : > { %v1452_v12 = vadd.f32 %v1375_v44, %v1207_v48  ;;  %v1687_v8 = vsel %vm1072_vm1, %v1685_v17, %v6320_v21  ;;  %v2367_v28 = vmul.f32 %v5115_v15, %v6415_v59  ;;  %v5579_v29 = vmul.f32 %v5115_v15, %v5271_v9  ;;  %v6416_v17 = vld [vmem:[#allocation5_spill] sm:$0xff] }
 0x1e7   : > { %v2563_v60 = vadd.f32 %v2484_v2, %v2319_v27  ;;  %v1931_v11 = vsel %vm1317_vm2, %v1929_v50, %v6318_v39  ;;  %v2241_v52 = vrot.slane %v2123_v26, 1  ;;  %v6317_v49 = vrot.slane %v5566_v46, 1 }
 0x1e8   : > { %v1520_v20 = vadd.f32 %v1488_v5, %v1452_v12  ;;  %v2044_v36 = vmul.f32 %v4420_v55, %v6415_v59  ;;  %v877_v16 = vmax.f32 %v6416_v17, 0.0  ;;  %v2485_v43 = vrot.slane %v2367_v28, 2 }
 0x1e9   : > { %v2595_v2 = vmax.f32 %v2563_v60, 0.0  ;;  %v2243_v44 = vsel %vm1072_vm1, %v2241_v52, %v6317_v49  ;;  %v6319_v27 = vrot.slane %v5579_v29, 2  ;;  %v1021_v48 = vmul.f32 %v4400_v30, %v5390_v45 }
 0x1ea   : > { %v1764_v26 = vadd.f32 %v1687_v8, %v1520_v20  ;;  %v970_v5 = vmul.f32 %v4404_v37, %v5390_v45  ;;  %v5596_v60 = vmul.f32 %v4400_v30, %v5453_v0  ;;  %v931_v28 = vmin.f32 %v877_v16, 6.0 }
 0x1eb   : > { %v5590_v50 = vmin.f32 %v2595_v2, 6.0  ;;  %v2487_v12 = vsel %vm1317_vm2, %v2485_v43, %v6319_v27  ;;  %v1266_v52 = vmul.f32 %v4402_v31, %v5390_v45  ;;  %v5605_v2 = vmul.f32 %v4402_v31, %v5453_v0 }
 0x1ec   : > { %v2008_v8 = vadd.f32 %v1931_v11, %v1764_v26  ;;  %v1148_v20 = vrot.slane %v1021_v48, 1  ;;  %v6326_v17 = vrot.slane %v5596_v60, 1  ;;  %v1579_v49 = vmul.f32 %v4406_v41, %v5519_v10 }
 0x1ed   : > { %6417 = vst [vmem:[#allocation18_spill] sm:$0xff] %v5590_v50  ;;  %3776 = vmatmul.mubr.f32.gmra.mrb[10].mxu1 %v5590_v50  ;;  %v1393_v39 = vrot.slane %v1266_v52, 2  ;;  %v6325_v43 = vrot.slane %v5605_v2, 2  ;;  %v5614_v16 = vmul.f32 %v4406_v41, %v5517_v56  ;;  %v1823_v27 = vmul.f32 %v4408_v42, %v5519_v10 }
 0x1ee   : > { %v2076_v21 = vadd.f32 %v2044_v36, %v2008_v8  ;;  %v1150_v11 = vsel %vm1072_vm1, %v1148_v20, %v6326_v17  ;;  %v1705_v48 = vrot.slane %v1579_v49, 1  ;;  %v5623_v26 = vmul.f32 %v4408_v42, %v5517_v56 }
 0x1ef   : > { %v1215_v52 = vadd.f32 %v1150_v11, %v970_v5  ;;  %v1395_v58 = vsel %vm1317_vm2, %v1393_v39, %v6325_v43  ;;  %v6328_v22 = vrot.slane %v5614_v16, 1  ;;  %v1949_v50 = vrot.slane %v1823_v27, 2  ;;  %v6419_v39 = vld [vmem:[#allocation10_spill] sm:$0xff] }
 0x1f0   : > { %v2320_v23 = vadd.f32 %v2243_v44, %v2076_v21  ;;  %v1496_v36 = vmul.f32 %v4412_v47, %v5519_v10  ;;  %v6331_v8 = vrot.slane %v5623_v26, 2  ;;  %v5633_v49 = vmul.f32 %v4416_v51, %v931_v28 }
 0x1f1   : > { %v1460_v20 = vadd.f32 %v1395_v58, %v1215_v52  ;;  %v1707_v5 = vsel %vm1072_vm1, %v1705_v48, %v6328_v22  ;;  %v5639_v11 = vmul.f32 %v5115_v15, %v931_v28  ;;  %v876_v43 = vmax.f32 %v6419_v39, 0.0  ;;  %v6420_v48 = vld [vmem:[#allocation15_spill] sm:$0xff]  ;;  %v6430_v52 = vld [vmem:[#allocation9_spill] sm:$0xff] }
 0x1f2   : > { %v2564_v27 = vadd.f32 %v2487_v12, %v2320_v23  ;;  %v1951_v21 = vsel %vm1317_vm2, %v1949_v50, %v6331_v8  ;;  %v2052_v44 = vmul.f32 %v4420_v55, %v931_v28  ;;  %v963_v17 = vmul.f32 %v4404_v37, %v5092_v13  ;;  %v6423_v50 = vld [vmem:[#allocation30_spill] sm:$0xff] }
 0x1f3   : > { %6418 = vst [vmem:[#allocation5_spill] sm:$0xff] %v5639_v11  ;;  %v1528_v58 = vadd.f32 %v1496_v36, %v1460_v20  ;;  %v930_v7 = vmin.f32 %v876_v43, 6.0  ;;  %v6421_v22 = vrot.slane %v6420_v48, 1  ;;  %v6422_v34 = vrot.slane %v5525_v63, 1 }
 0x1f4   : > { %v2596_v23 = vmax.f32 %v2564_v27, 0.0  ;;  %v6424_v8 = vrot.slane %v6423_v50, 2  ;;  %v6425_v28 = vrot.slane %v5531_v3, 2 }
 0x1f5   : > { %v1132_v39 = vsel %vm1072_vm1, %v6422_v34, %v6421_v22  ;;  %v1772_v36 = vadd.f32 %v1707_v5, %v1528_v58  ;;  %v1581_v20 = vmul.f32 %v4406_v41, %v930_v7  ;;  %v1825_v43 = vmul.f32 %v4408_v42, %v930_v7  ;;  %v2885_v58 = vld [vmem:[%s6285_s4 + $0x30] sm:$0xff] }
 0x1f6   : > { %v1208_v62 = vadd.f32 %v1132_v39, %v963_v17  ;;  %v1377_v13 = vsel %vm1317_vm2, %v6425_v28, %v6424_v8  ;;  %v5663_v48 = vmul.f32 %v4416_v51, %v930_v7  ;;  %v5665_v63 = vmin.f32 %v2596_v23, 6.0 }
 0x1f7   : > { %v1489_v22 = vmul.f32 %v4412_v47, %v5157_v40  ;;  %v1569_v17 = vmul.f32 %v4406_v41, %v5208_v1  ;;  %v2016_v3 = vadd.f32 %v1951_v21, %v1772_v36  ;;  %v1708_v27 = vrot.slane %v1581_v20, 1 }
 0x1f8   : > { %6426 = vst [vmem:[#allocation10_spill] sm:$0xff] %v5665_v63  ;;  %v1453_v34 = vadd.f32 %v1377_v13, %v1208_v62  ;;  %v1952_v8 = vrot.slane %v1825_v43, 2  ;;  %v5672_v5 = vmul.f32 %v5115_v15, %v930_v7  ;;  %v2886_v62 = vld [vmem:[%s6285_s4 + $0x38] sm:$0xff]  ;;  %3778 = vmatprep.mubr.f32.mxu1 %v5665_v63  ;;  %v1813_v21 = vmul.f32 %v4408_v42, %v5208_v1 }
 0x1f9   : > { %v1688_v50 = vrot.slane %v1569_v17, 1  ;;  %v5684_v28 = vadd.f32 %v2052_v44, %v2016_v3  ;;  %v2045_v7 = vmul.f32 %v4420_v55, %v5271_v9  ;;  %v2125_v13 = vmul.f32 %v4416_v51, %v5247_v24  ;;  %v6429_v17 = vld [vmem:[#allocation8_spill] sm:$0xff] }
 0x1fa   : > { %v1521_v23 = vadd.f32 %v1489_v22, %v1453_v34  ;;  %v2369_v36 = vmul.f32 %v5115_v15, %v5247_v24  ;;  %v6428_v20 = vrot.slane %v5543_v18, 1  ;;  %v1932_v34 = vrot.slane %v1813_v21, 2 }
 0x1fb   : > { %6427 = vst [vmem:[#allocation15_spill] sm:$0xff] %v5684_v28  ;;  %v3925_v22 = vpack.c.bf16 %v2886_v62, %v2885_v58  ;;  %v879_v12 = vmax.f32 %v6429_v17, 0.0  ;;  %v2244_v44 = vrot.slane %v2125_v13, 1  ;;  %v878_v39 = vmax.f32 %v6430_v52, 0.0 }
 0x1fc   : > { %v1689_v43 = vsel %vm1072_vm1, %v6428_v20, %v1688_v50  ;;  %v2488_v3 = vrot.slane %v2369_v36, 2  ;;  %v6431_v63 = vrot.slane %v5555_v4, 2  ;;  %v971_v15 = vmul.f32 %v4404_v37, %v5453_v0 }
 0x1fd   : > { %v1765_v1 = vadd.f32 %v1689_v43, %v1521_v23  ;;  %3926 = vmatprep.subr.bf16.mxu1 %v3925_v22  ;;  %v933_v28 = vmin.f32 %v879_v12, 6.0  ;;  %v6432_v18 = vrot.slane %v5439_v53, 1  ;;  %v6433_v58 = vrot.slane %v5596_v60, 1  ;;  %v5719_v53 = vld [vmem:[%s6283_s2 + $0x8] ss:$0 sm:$0xff] }
 0x1fe   : > { %v1933_v11 = vsel %vm1317_vm2, %v6431_v63, %v1932_v34  ;;  %v6434_v50 = vrot.slane %v5566_v46, 1  ;;  %v6435_v4 = vrot.slane %v5579_v29, 2  ;;  %3928 = vmatpush3.bf16.msra.mxu1 %v3925_v22  ;;  %v932_v12 = vmin.f32 %v878_v39, 6.0  ;;  %v6440_v39 = vld [vmem:[#allocation12_spill] sm:$0xff] }
 0x1ff   : > { %v1152_v62 = vsel %vm1072_vm1, %v6433_v58, %v6432_v18  ;;  %v2009_v23 = vadd.f32 %v1933_v11, %v1765_v1  ;;  %v5714_v21 = vmul.f32 %v4416_v51, %v933_v28  ;;  %v5722_v60 = vmul.f32 %v5719_v53, %v933_v28 }
 0x200   : > { %v2245_v52 = vsel %vm1072_vm1, %v6434_v50, %v2244_v44  ;;  %v2489_v63 = vsel %vm1317_vm2, %v6435_v4, %v2488_v3  ;;  %v1216_v46 = vadd.f32 %v1152_v62, %v971_v15  ;;  %v6436_v11 = vrot.slane %v5443_v32, 2 }
 0x201   : > { %v6437_v29 = vrot.slane %v5605_v2, 2  ;;  %v2077_v36 = vadd.f32 %v2045_v7, %v2009_v23  ;;  %v6438_v20 = vrot.slane %v5614_v16, 1  ;;  %v6439_v34 = vrot.slane %v5623_v26, 2 }
 0x202   : > { %v1497_v2 = vmul.f32 %v4412_v47, %v5517_v56  ;;  %v2053_v44 = vmul.f32 %v4420_v55, %v932_v12  ;;  %v5742_v7 = vmul.f32 %v4416_v51, %v932_v12  ;;  %v5745_v16 = vmul.f32 %v5719_v53, %v932_v12 }
 0x203   : > { %v1397_v13 = vsel %vm1317_vm2, %v6437_v29, %v6436_v11  ;;  %v1709_v43 = vsel %vm1072_vm1, %v6438_v20, %v1708_v27  ;;  %v1953_v22 = vsel %vm1317_vm2, %v6439_v34, %v1952_v8  ;;  %v2321_v1 = vadd.f32 %v2245_v52, %v2077_v36 }
 0x204   : > { %v1461_v32 = vadd.f32 %v1397_v13, %v1216_v46  ;;  %v1012_v27 = vmul.f32 %v4400_v30, %v5161_v61  ;;  %v1013_v8 = vmul.f32 %v4400_v30, %v5157_v40  ;;  %v1257_v3 = vmul.f32 %v4402_v31, %v5161_v61 }
 0x205   : > { %v2565_v15 = vadd.f32 %v2489_v63, %v2321_v1  ;;  %v964_v58 = vmul.f32 %v4404_v37, %v5161_v61  ;;  %v1258_v62 = vmul.f32 %v4402_v31, %v5157_v40  ;;  %v1570_v29 = vmul.f32 %v4406_v41, %v6415_v59 }
 0x206   : > { %v1529_v26 = vadd.f32 %v1497_v2, %v1461_v32  ;;  %v1133_v50 = vrot.slane %v1012_v27, 1  ;;  %v1134_v52 = vrot.slane %v1013_v8, 1  ;;  %v1378_v4 = vrot.slane %v1257_v3, 2  ;;  %v2887_v27 = vld [vmem:[%s6285_s4 + $0x40] sm:$0xff]  ;;  %v2888_v8 = vld [vmem:[%s6285_s4 + $0x48] sm:$0xff] }
 0x207   : > { %v2597_v12 = vmax.f32 %v2565_v15, 0.0  ;;  %v1379_v11 = vrot.slane %v1258_v62, 2  ;;  %v1571_v61 = vmul.f32 %v4406_v41, %v5271_v9  ;;  %v1814_v36 = vmul.f32 %v4408_v42, %v6415_v59  ;;  %v5786_v62 = vpop.f32.mrb[54].mxu0 }
 0x208   : > { %v1773_v23 = vadd.f32 %v1709_v43, %v1529_v26  ;;  %v1135_v13 = vsel %vm1072_vm1, %v1133_v50, %v1134_v52  ;;  %v1490_v32 = vmul.f32 %v4412_v47, %v6415_v59  ;;  %v1690_v1 = vrot.slane %v1570_v29, 1  ;;  %v5793_v29 = vpop.f32.mrb[55].mxu0 }
 0x209   : > { %v5766_v20 = vmin.f32 %v2597_v12, 6.0  ;;  %v1209_v43 = vadd.f32 %v1135_v13, %v964_v58  ;;  %v1380_v34 = vsel %vm1317_vm2, %v1378_v4, %v1379_v11  ;;  %v1815_v26 = vmul.f32 %v4408_v42, %v5271_v9 }
 0x20a   : > { %v2017_v63 = vadd.f32 %v1953_v22, %v1773_v23  ;;  %v1691_v22 = vrot.slane %v1571_v61, 1  ;;  %v1934_v15 = vrot.slane %v1814_v36, 2  ;;  %v2127_v58 = vmul.f32 %v4416_v51, %v5335_v54 }
 0x20b   : > { %3779 = vmatmul.mubr.f32.gmra.mrb[12].mxu1 %v5766_v20  ;;  %v1454_v3 = vadd.f32 %v1380_v34, %v1209_v43  ;;  %v1935_v50 = vrot.slane %v1815_v26, 2  ;;  %v2370_v4 = vmul.f32 %v5719_v53, %v5343_v6  ;;  %v2371_v12 = vmul.f32 %v5719_v53, %v5335_v54  ;;  %v5795_v43 = vpop.f32.mrb[56].mxu0 }
 0x20c   : > { %v5771_v2 = vadd.f32 %v2053_v44, %v2017_v63  ;;  %v2126_v44 = vmul.f32 %v4416_v51, %v5343_v6  ;;  %v1692_v23 = vsel %vm1072_vm1, %v1690_v1, %v1691_v22  ;;  %v2247_v61 = vrot.slane %v2127_v58, 1  ;;  %v5800_v26 = vpop.f32.mrb[57].mxu0 }
 0x20d   : > { %v1522_v63 = vadd.f32 %v1490_v32, %v1454_v3  ;;  %v3929_v36 = vpack.c.bf16 %v2888_v8, %v2887_v27  ;;  %v1936_v34 = vsel %vm1317_vm2, %v1934_v15, %v1935_v50  ;;  %v2490_v17 = vrot.slane %v2370_v4, 2 }
 0x20e   : > { %v2246_v13 = vrot.slane %v2126_v44, 1  ;;  %v2491_v28 = vrot.slane %v2371_v12, 2  ;;  %v965_v1 = vmul.f32 %v4404_v37, %v5157_v40  ;;  %v6441_v32 = vrot.slane %v6440_v39, 1 }
 0x20f   : > { %v1766_v46 = vadd.f32 %v1692_v23, %v1522_v63  ;;  %3930 = vmatprep.subr.bf16.mxu1 %v3929_v36  ;;  %v6442_v27 = vrot.slane %v5227_v25, 2  ;;  %v2046_v15 = vmul.f32 %v4420_v55, %v5343_v6  ;;  %v1572_v58 = vmul.f32 %v4406_v41, %v5247_v24 }
 0x210   : > { %v2248_v18 = vsel %vm1072_vm1, %v2246_v13, %v2247_v61  ;;  %v1137_v3 = vsel %vm1072_vm1, %v1134_v52, %v6441_v32  ;;  %v2492_v44 = vsel %vm1317_vm2, %v2490_v17, %v2491_v28  ;;  %3932 = vmatpush3.bf16.msra.mxu1 %v3929_v36  ;;  %v1491_v39 = vmul.f32 %v4412_v47, %v5271_v9 }
 0x211   : > { %v1382_v8 = vsel %vm1317_vm2, %v1379_v11, %v6442_v27  ;;  %v1210_v40 = vadd.f32 %v1137_v3, %v965_v1  ;;  %v2010_v23 = vadd.f32 %v1936_v34, %v1766_v46  ;;  %v1816_v52 = vmul.f32 %v4408_v42, %v5247_v24 }
 0x212   : > { %v2128_v25 = vmul.f32 %v4416_v51, %v5382_v33  ;;  %v1693_v4 = vrot.slane %v1572_v58, 1  ;;  %v2047_v17 = vmul.f32 %v4420_v55, %v5335_v54  ;;  %v2372_v12 = vmul.f32 %v5719_v53, %v5382_v33 }
 0x213   : > { %v1455_v11 = vadd.f32 %v1382_v8, %v1210_v40  ;;  %v2078_v63 = vadd.f32 %v2046_v15, %v2010_v23  ;;  %v1937_v13 = vrot.slane %v1816_v52, 2  ;;  %v1015_v36 = vmul.f32 %v4400_v30, %v6415_v59 }
 0x214   : > { %v2249_v46 = vrot.slane %v2128_v25, 1  ;;  %v1694_v24 = vsel %vm1072_vm1, %v1691_v22, %v1693_v4  ;;  %v2493_v1 = vrot.slane %v2372_v12, 2  ;;  %v1016_v32 = vmul.f32 %v4400_v30, %v5271_v9 }
 0x215   : > { %v1523_v34 = vadd.f32 %v1491_v39, %v1455_v11  ;;  %v2322_v3 = vadd.f32 %v2248_v18, %v2078_v63  ;;  %v1938_v27 = vsel %vm1317_vm2, %v1935_v50, %v1937_v13  ;;  %v1138_v40 = vrot.slane %v1015_v36, 1 }
 0x216   : > { %v2250_v8 = vsel %vm1072_vm1, %v2247_v61, %v2249_v46  ;;  %v2494_v15 = vsel %vm1317_vm2, %v2491_v28, %v2493_v1  ;;  %v1139_v23 = vrot.slane %v1016_v32, 1  ;;  %v1260_v52 = vmul.f32 %v4402_v31, %v6415_v59 }
 0x217   : > { %v1767_v58 = vadd.f32 %v1694_v24, %v1523_v34  ;;  %v2566_v39 = vadd.f32 %v2492_v44, %v2322_v3  ;;  %v966_v22 = vmul.f32 %v4404_v37, %v6415_v59  ;;  %v1261_v25 = vmul.f32 %v4402_v31, %v5271_v9  ;;  %v2890_v3 = vld [vmem:[%s6285_s4 + $0x58] sm:$0xff] }
 0x218   : > { %v1573_v18 = vmul.f32 %v4406_v41, %v5343_v6  ;;  %v1140_v61 = vsel %vm1072_vm1, %v1138_v40, %v1139_v23  ;;  %v1383_v11 = vrot.slane %v1260_v52, 2  ;;  %v5843_v28 = vmul.f32 %v4406_v41, %v5335_v54 }
 0x219   : > { %v2011_v50 = vadd.f32 %v1938_v27, %v1767_v58  ;;  %v2598_v4 = vmax.f32 %v2566_v39, 0.0  ;;  %v1211_v12 = vadd.f32 %v1140_v61, %v966_v22  ;;  %v1384_v44 = vrot.slane %v1261_v25, 2 }
 0x21a   : > { %v1695_v63 = vrot.slane %v1573_v18, 1  ;;  %v1696_v59 = vrot.slane %v5843_v28, 1  ;;  %v1817_v46 = vmul.f32 %v4408_v42, %v5343_v6  ;;  %v1818_v36 = vmul.f32 %v4408_v42, %v5335_v54 }
 0x21b   : > { %v2079_v13 = vadd.f32 %v2047_v17, %v2011_v50  ;;  %v5850_v34 = vmin.f32 %v2598_v4, 6.0  ;;  %v1385_v24 = vsel %vm1317_vm2, %v1383_v11, %v1384_v44  ;;  %v1492_v1 = vmul.f32 %v4412_v47, %v5343_v6  ;;  %v2889_v17 = vld [vmem:[%s6285_s4 + $0x50] sm:$0xff] }
 0x21c   : > { %v2129_v32 = vmul.f32 %v4416_v51, %v5390_v45  ;;  %v1456_v40 = vadd.f32 %v1385_v24, %v1211_v12  ;;  %v1697_v58 = vsel %vm1072_vm1, %v1695_v63, %v1696_v59  ;;  %v1939_v52 = vrot.slane %v1817_v46, 2 }
 0x21d   : > { %v2323_v27 = vadd.f32 %v2250_v8, %v2079_v13  ;;  %3781 = vmatprep.mubr.f32.mxu1 %v5850_v34  ;;  %v1940_v39 = vrot.slane %v1818_v36, 2  ;;  %v2130_v22 = vmul.f32 %v4416_v51, %v5453_v0  ;;  %v2373_v18 = vmul.f32 %v5719_v53, %v5390_v45 }
 0x21e   : > { %v2251_v25 = vrot.slane %v2129_v32, 1  ;;  %v1524_v61 = vadd.f32 %v1492_v1, %v1456_v40  ;;  %v2374_v11 = vmul.f32 %v5719_v53, %v5453_v0  ;;  %v3933_v8 = vpack.c.bf16 %v2890_v3, %v2889_v17  ;;  %v5877_v1 = vpop.f32.mrb[58].mxu0 }
 0x21f   : > { %v2567_v50 = vadd.f32 %v2494_v15, %v2323_v27  ;;  %v1941_v28 = vsel %vm1317_vm2, %v1939_v52, %v1940_v39  ;;  %v2252_v4 = vrot.slane %v2130_v22, 1  ;;  %v2495_v12 = vrot.slane %v2373_v18, 2  ;;  %v5885_v40 = vpop.f32.mrb[59].mxu0 }
 0x220   : > { %v967_v63 = vmul.f32 %v4404_v37, %v5271_v9  ;;  %v1768_v46 = vadd.f32 %v1697_v58, %v1524_v61  ;;  %v2496_v36 = vrot.slane %v2374_v11, 2  ;;  %3934 = vmatprep.subr.bf16.mxu1 %v3933_v8  ;;  %v6443_v24 = vrot.slane %v5259_v14, 1 }
 0x221   : > { %v2599_v13 = vmax.f32 %v2567_v50, 0.0  ;;  %v2048_v32 = vmul.f32 %v4420_v55, %v5390_v45  ;;  %v2253_v17 = vsel %vm1072_vm1, %v2251_v25, %v2252_v4  ;;  %v6444_v27 = vrot.slane %v5263_v57, 2  ;;  %3936 = vmatpush3.bf16.msra.mxu1 %v3933_v8 }
 0x222   : > { %v1142_v15 = vsel %vm1072_vm1, %v1139_v23, %v6443_v24  ;;  %v2012_v14 = vadd.f32 %v1941_v28, %v1768_v46  ;;  %v2497_v23 = vsel %vm1317_vm2, %v2495_v12, %v2496_v36  ;;  %v1575_v52 = vmul.f32 %v4406_v41, %v5382_v33 }
 0x223   : > { %v1212_v3 = vadd.f32 %v1142_v15, %v967_v63  ;;  %v1387_v9 = vsel %vm1317_vm2, %v1384_v44, %v6444_v27  ;;  %v5887_v58 = vmin.f32 %v2599_v13, 6.0  ;;  %v1493_v25 = vmul.f32 %v4412_v47, %v5335_v54 }
 0x224   : > { %v1819_v57 = vmul.f32 %v4408_v42, %v5382_v33  ;;  %v2131_v44 = vmul.f32 %v4416_v51, %v5427_v19  ;;  %v2080_v18 = vadd.f32 %v2048_v32, %v2012_v14  ;;  %v1698_v50 = vrot.slane %v1575_v52, 1 }
 0x225   : > { %v1457_v22 = vadd.f32 %v1387_v9, %v1212_v3  ;;  %3782 = vmatmul.mubr.f32.gmra.mrb[14].mxu1 %v5887_v58  ;;  %v2049_v61 = vmul.f32 %v4420_v55, %v5453_v0  ;;  %v2375_v11 = vmul.f32 %v5719_v53, %v5427_v19  ;;  %v1018_v63 = vmul.f32 %v4400_v30, %v5343_v6 }
 0x226   : > { %v1942_v28 = vrot.slane %v1819_v57, 2  ;;  %v2254_v12 = vrot.slane %v2131_v44, 1  ;;  %v2324_v33 = vadd.f32 %v2253_v17, %v2080_v18  ;;  %v1699_v13 = vsel %vm1072_vm1, %v1696_v59, %v1698_v50 }
 0x227   : > { %v1525_v8 = vadd.f32 %v1493_v25, %v1457_v22  ;;  %v2498_v46 = vrot.slane %v2375_v11, 2  ;;  %v1019_v24 = vmul.f32 %v4400_v30, %v5335_v54  ;;  %v1143_v27 = vrot.slane %v1018_v63, 1 }
 0x228   : > { %v1943_v32 = vsel %vm1317_vm2, %v1940_v39, %v1942_v28  ;;  %v2255_v3 = vsel %vm1072_vm1, %v2252_v4, %v2254_v12  ;;  %v2568_v9 = vadd.f32 %v2497_v23, %v2324_v33  ;;  %v1263_v22 = vmul.f32 %v4402_v31, %v5343_v6  ;;  %v2891_v33 = vld [vmem:[%s6285_s4 + $0x60] sm:$0xff] }
 0x229   : > { %v1769_v15 = vadd.f32 %v1699_v13, %v1525_v8  ;;  %v2499_v14 = vsel %vm1317_vm2, %v2496_v36, %v2498_v46  ;;  %v1144_v52 = vrot.slane %v1019_v24, 1  ;;  %v968_v59 = vmul.f32 %v4404_v37, %v5343_v6  ;;  %v2892_v13 = vld [vmem:[%s6285_s4 + $0x68] sm:$0xff] }
 0x22a   : > { %v1264_v30 = vmul.f32 %v4402_v31, %v5335_v54  ;;  %v1576_v39 = vmul.f32 %v4406_v41, %v5390_v45  ;;  %v2600_v25 = vmax.f32 %v2568_v9, 0.0  ;;  %v1388_v23 = vrot.slane %v1263_v22, 2 }
 0x22b   : > { %v2013_v17 = vadd.f32 %v1943_v32, %v1769_v15  ;;  %v1145_v4 = vsel %vm1072_vm1, %v1143_v27, %v1144_v52  ;;  %v5922_v36 = vmul.f32 %v4406_v41, %v5453_v0  ;;  %v1820_v31 = vmul.f32 %v4408_v42, %v5390_v45 }
 0x22c   : > { %v1213_v44 = vadd.f32 %v1145_v4, %v968_v59  ;;  %v1389_v18 = vrot.slane %v1264_v30, 2  ;;  %v1700_v50 = vrot.slane %v1576_v39, 1  ;;  %v5924_v11 = vmin.f32 %v2600_v25, 6.0 }
 0x22d   : > { %v2081_v57 = vadd.f32 %v2049_v61, %v2013_v17  ;;  %v1701_v6 = vrot.slane %v5922_v36, 1  ;;  %v1821_v8 = vmul.f32 %v4408_v42, %v5453_v0  ;;  %v1494_v63 = vmul.f32 %v4412_v47, %v5390_v45 }
 0x22e   : > { %v1390_v12 = vsel %vm1317_vm2, %v1388_v23, %v1389_v18  ;;  %v2132_v61 = vmul.f32 %v4416_v51, %v5519_v10  ;;  %3784 = vmatprep.mubr.f32.mxu1 %v5924_v11  ;;  %v1944_v15 = vrot.slane %v1820_v31, 2  ;;  %v2133_v45 = vmul.f32 %v4416_v51, %v5517_v56 }
 0x22f   : > { %v2325_v28 = vadd.f32 %v2255_v3, %v2081_v57  ;;  %v1458_v46 = vadd.f32 %v1390_v12, %v1213_v44  ;;  %v1702_v24 = vsel %vm1072_vm1, %v1700_v50, %v1701_v6  ;;  %v1945_v32 = vrot.slane %v1821_v8, 2 }
 0x230   : > { %v2256_v27 = vrot.slane %v2132_v61, 1  ;;  %v2376_v9 = vmul.f32 %v5719_v53, %v5519_v10  ;;  %v2377_v59 = vmul.f32 %v5719_v53, %v5517_v56  ;;  %v3937_v30 = vpack.c.bf16 %v2892_v13, %v2891_v33 }
 0x231   : > { %v2569_v3 = vadd.f32 %v2499_v14, %v2325_v28  ;;  %v1526_v22 = vadd.f32 %v1494_v63, %v1458_v46  ;;  %v1946_v17 = vsel %vm1317_vm2, %v1944_v15, %v1945_v32  ;;  %v2257_v25 = vrot.slane %v2133_v45, 1 }
 0x232   : > { %v2500_v4 = vrot.slane %v2376_v9, 2  ;;  %v969_v14 = vmul.f32 %v4404_v37, %v5335_v54  ;;  %v2501_v36 = vrot.slane %v2377_v59, 2  ;;  %3938 = vmatprep.subr.bf16.mxu1 %v3937_v30  ;;  %v6445_v51 = vrot.slane %v5399_v38, 1  ;;  %v6453_v9 = vld [vmem:[#allocation5_spill] sm:$0xff] }
 0x233   : > { %v2601_v39 = vmax.f32 %v2569_v3, 0.0  ;;  %v1770_v23 = vadd.f32 %v1702_v24, %v1526_v22  ;;  %v6446_v44 = vrot.slane %v5407_v35, 2  ;;  %v2050_v53 = vmul.f32 %v4420_v55, %v5519_v10  ;;  %3940 = vmatpush3.bf16.msra.mxu1 %v3937_v30  ;;  %v2894_v10 = vld [vmem:[%s6285_s4 + $0x78] sm:$0xff] }
 0x234   : > { %v1147_v57 = vsel %vm1072_vm1, %v1144_v52, %v6445_v51  ;;  %v2258_v8 = vsel %vm1072_vm1, %v2256_v27, %v2257_v25  ;;  %v2502_v28 = vsel %vm1317_vm2, %v2500_v4, %v2501_v36  ;;  %v1578_v38 = vmul.f32 %v4406_v41, %v5427_v19  ;;  %v2893_v52 = vld [vmem:[%s6285_s4 + $0x70] sm:$0xff] }
 0x235   : > { %v1392_v50 = vsel %vm1317_vm2, %v1389_v18, %v6446_v44  ;;  %v5959_v31 = vmin.f32 %v2601_v39, 6.0  ;;  %v1214_v37 = vadd.f32 %v1147_v57, %v969_v14  ;;  %v2014_v54 = vadd.f32 %v1946_v17, %v1770_v23  ;;  %v5975_v18 = vpop.f32.mrb[60].mxu0 }
 0x236   : > { %v1822_v35 = vmul.f32 %v4408_v42, %v5427_v19  ;;  %v1495_v63 = vmul.f32 %v4412_v47, %v5453_v0  ;;  %v6447_v41 = vrot.slane %v5663_v48, 1  ;;  %v6448_v19 = vrot.slane %v5672_v5, 2  ;;  %v5986_v33 = vpop.f32.mrb[61].mxu0  ;;  %v6451_v0 = vld [vmem:[#allocation15_spill] sm:$0xff] }
 0x237   : > { %3785 = vmatmul.mubr.f32.gmra.mrb[16].mxu1 %v5959_v31  ;;  %v1459_v12 = vadd.f32 %v1392_v50, %v1214_v37  ;;  %v2082_v13 = vadd.f32 %v2050_v53, %v2014_v54  ;;  %v1703_v46 = vrot.slane %v1578_v38, 1  ;;  %v6449_v15 = vrot.slane %v5742_v7, 1 }
 0x238   : > { %v2260_v42 = vsel %vm1072_vm1, %v2257_v25, %v6447_v41  ;;  %v2504_v61 = vsel %vm1317_vm2, %v2501_v36, %v6448_v19  ;;  %v1947_v24 = vrot.slane %v1822_v35, 2  ;;  %v6450_v3 = vrot.slane %v5633_v49, 1  ;;  %v6463_v41 = vld [vmem:[#allocation19_spill] sm:$0xff]  ;;  %v6465_v19 = vld [vmem:[#allocation24_spill] sm:$0xff] }
 0x239   : > { %v1527_v47 = vadd.f32 %v1495_v63, %v1459_v12  ;;  %v6452_v27 = vrot.slane %v5745_v16, 2  ;;  %v6454_v5 = vrot.slane %v6453_v9, 2  ;;  %v3941_v17 = vpack.c.bf16 %v2894_v10, %v2893_v52  ;;  %v6461_v12 = vld [vmem:[#allocation11_spill] sm:$0xff]  ;;  %v6462_v63 = vld [vmem:[#allocation14_spill] sm:$0xff]  ;;  %v6475_v9 = vld [vmem:[#allocation21_spill] sm:$0xff] }
 0x23a   : > { %v2263_v45 = vsel %vm1072_vm1, %v6450_v3, %v6449_v15  ;;  %v2326_v59 = vadd.f32 %v2258_v8, %v2082_v13  ;;  %v1704_v30 = vsel %vm1072_vm1, %v1701_v6, %v1703_v46  ;;  %v1948_v39 = vsel %vm1317_vm2, %v1945_v32, %v1947_v24  ;;  %v6467_v13 = vld [vmem:[#allocation28_spill] sm:$0xff]  ;;  %v6469_v3 = vld [vmem:[#allocation31_spill] sm:$0xff] }
 0x23b   : > { %v2328_v48 = vadd.f32 %v2263_v45, %v6451_v0  ;;  %v2507_v22 = vsel %vm1317_vm2, %v6454_v5, %v6452_v27  ;;  %v6455_v25 = vrot.slane %v5714_v21, 1  ;;  %v6456_v49 = vmov %v6449_v15  ;;  %3942 = vmatprep.subr.bf16.mxu1 %v3941_v17  ;;  %v6468_v15 = vld [vmem:[#allocation29_spill] sm:$0xff]  ;;  %v6470_v45 = vld [vmem:[#allocation32_spill] sm:$0xff]  ;;  %v6476_v5 = vld [vmem:[#allocation22_spill] sm:$0xff] }
 0x23c   : > { %v1771_v14 = vadd.f32 %v1704_v30, %v1527_v47  ;;  %v6457_v51 = vrot.slane %v5722_v60, 2  ;;  %v6458_v57 = vmov %v6452_v27  ;;  %v2570_v6 = vadd.f32 %v2502_v28, %v2326_v59  ;;  %3944 = vmatpush3.bf16.msra.mxu1 %v3941_v17  ;;  %v6471_v47 = vld [vmem:[#allocation16_spill] sm:$0xff]  ;;  %v6472_v0 = vld [vmem:[#allocation17_spill] sm:$0xff]  ;;  %v6478_v30 = vld [vmem:[#allocation26_spill] sm:$0xff] }
 0x23d   : > { %v2265_v4 = vsel %vm1072_vm1, %v6456_v49, %v6455_v25  ;;  %v2572_v23 = vadd.f32 %v2507_v22, %v2328_v48  ;;  %v2051_v21 = vmul.f32 %v4420_v55, %v5517_v56  ;;  %v6459_v55 = vld [vmem:[#allocation6_spill] sm:$0xff]  ;;  %v6460_v56 = vld [vmem:[#allocation7_spill] sm:$0xff]  ;;  %v6473_v48 = vld [vmem:[#allocation13_spill] sm:$0xff] }
 0x23e   : > { %v2329_v36 = vadd.f32 %v2265_v4, %v5771_v2  ;;  %v2509_v44 = vsel %vm1317_vm2, %v6458_v57, %v6457_v51  ;;  %v2015_v32 = vadd.f32 %v1948_v39, %v1771_v14  ;;  %v2602_v50 = vmax.f32 %v2570_v6, 0.0  ;;  %v6474_v27 = vld [vmem:[#allocation20_spill] sm:$0xff]  ;;  %v6477_v22 = vld [vmem:[#allocation25_spill] sm:$0xff]  ;;  %v6480_v25 = vld [vmem:[#allocation18_spill] sm:$0xff] }
 0x23f   : > { %v2604_v54 = vmax.f32 %v2572_v23, 0.0  ;;  %v6479_v39 = vld [vmem:[#allocation33_spill] sm:$0xff]  ;;  %v6481_v49 = vld [vmem:[#allocation10_spill] sm:$0xff] }
 0x240   : > { %v2573_v7 = vadd.f32 %v2509_v44, %v2329_v36  ;;  %v2083_v53 = vadd.f32 %v2051_v21, %v2015_v32  ;;  %v2634_v8 = vmin.f32 %v2602_v50, 6.0  ;;  %v3154_v21 = vmul.f32 1.442695, %v5786_v62 }
 0x241   : > { %v2636_v35 = vmin.f32 %v2604_v54, 6.0  ;;  %v3158_v50 = vmul.f32 1.442695, %v5795_v43  ;;  %v3164_v43 = vmul.f32 1.442695, %v5986_v33 }
 0x242   : > { %v2327_v37 = vadd.f32 %v2260_v42, %v2083_v53  ;;  %3787 = vmatprep.mubr.f32.mxu1 %v2634_v8  ;;  %v2605_v60 = vmax.f32 %v2573_v7, 0.0  ;;  %v6464_v42 = vld [vmem:[#allocation23_spill] sm:$0xff]  ;;  %v3152_v7 = vmul.f32 1.442695, %v5793_v29  ;;  %4003 = vpow2.f32 %v3154_v21 }
 0x243   : > { %v3156_v53 = vmul.f32 1.442695, %v5800_v26  ;;  %v3166_v29 = vmul.f32 1.442695, %v5975_v18 }
 0x244   : > { %v2571_v2 = vadd.f32 %v2504_v61, %v2327_v37  ;;  %v2637_v52 = vmin.f32 %v2605_v60, 6.0  ;;  %v6466_v61 = vld [vmem:[#allocation27_spill] sm:$0xff]  ;;  %4005 = vpow2.f32 %v3152_v7  ;;  %v3160_v37 = vmul.f32 1.442695, %v5885_v40  ;;  %v3121_v40 = vld [vmem:[%s6096_s13 + $0x8] sm:$0xff]  ;;  %v3120_v60 = vld [vmem:[%s6096_s13] sm:$0xff] }
 0x245   : > { %4007 = vpow2.f32 %v3158_v50 }
 0x246   : > { %v2603_v38 = vmax.f32 %v2571_v2, 0.0  ;;  %v6014_v28 = vpop.f32.mrb[62].mxu0  ;;  %4009 = vpow2.f32 %v3156_v53 }
 0x247   : > { %v6016_v10 = vpop.f32.mrb[63].mxu0 }
 0x248   : > { %v2635_v16 = vmin.f32 %v2603_v38, 6.0  ;;  %v3168_v18 = vmul.f32 1.442695, %v6016_v10 }
 0x24a   : > { %3788 = vmatmul.mubr.f32.gmra.mrb[18].mxu1 %v2635_v16 }
 0x24b   : > { %3790 = vmatprep.mubr.f32.mxu1 %v2636_v35 }
 0x24c   : > { %v4004_v26 = vpop.eup %4003 }
 0x24e   : > { %3791 = vmatmul.mubr.f32.gmra.mrb[20].mxu1 %v2637_v52  ;;  %v4006_v2 = vpop.eup %4005 }
 0x24f   : > { %3825 = vmatprep.mubr.f32.mxu1 %v6459_v55  ;;  %v4008_v33 = vpop.eup %4007  ;;  %v3216_v55 = vmul.f32 %v4006_v2, %v3120_v60 }
 0x252   : > { %3826 = vmatmul.mubr.f32.vlgmr.msra.gmra.mrb[22].mxu1 %v6460_v56  ;;  %v3123_v56 = vld [vmem:[%s6096_s13 + $0x18] sm:$0xff] }
 0x253   : > { %3828 = vmatprep.mubr.f32.mxu1 %v6461_v12  ;;  %v4010_v12 = vpop.eup %4009  ;;  %v3219_v10 = vmul.f32 %v4008_v33, %v3123_v56  ;;  %v3131_v56 = vld [vmem:[%s6096_s13 + $0x58] sm:$0xff] }
 0x256   : > { %3829 = vmatmul.mubr.f32.gmra.mrb[24].mxu1 %v6462_v63 }
 0x257   : > { %3831 = vmatprep.mubr.f32.mxu1 %v6463_v41 }
 0x25a   : > { %3832 = vmatmul.mubr.f32.gmra.mrb[26].mxu1 %v6464_v42  ;;  %v6027_v46 = vpop.f32.mrb[0].mxu1  ;;  %v3122_v42 = vld [vmem:[%s6096_s13 + $0x10] sm:$0xff] }
 0x25b   : > { %3834 = vmatprep.mubr.f32.mxu1 %v6465_v19  ;;  %v6029_v24 = vpop.f32.mrb[1].mxu1  ;;  %v3174_v19 = vmul.f32 1.442695, %v6027_v46 }
 0x25e   : > { %3835 = vmatmul.mubr.f32.gmra.mrb[28].mxu1 %v6466_v61 }
 0x25f   : > { %3837 = vmatprep.mubr.f32.mxu1 %v6467_v13 }
 0x262   : > { %3838 = vmatmul.mubr.f32.gmra.mrb[30].mxu1 %v6468_v15 }
 0x263   : > { %3840 = vmatprep.mubr.f32.mxu1 %v6469_v3  ;;  %v3218_v3 = vmul.f32 %v4010_v12, %v3122_v42 }
 0x266   : > { %3841 = vmatmul.mubr.f32.gmra.mrb[32].mxu1 %v6470_v45  ;;  %v3125_v45 = vld [vmem:[%s6096_s13 + $0x28] sm:$0xff] }
 0x267   : > { %3843 = vmatprep.mubr.f32.mxu1 %v6471_v47 }
 0x26a   : > { %3844 = vmatmul.mubr.f32.gmra.mrb[34].mxu1 %v6472_v0 }
 0x26b   : > { %3846 = vmatprep.mubr.f32.mxu1 %v6473_v48 }
 0x26e   : > { %3847 = vmatmul.mubr.f32.gmra.mrb[36].mxu1 %v6474_v27  ;;  %v6041_v17 = vpop.f32.mrb[2].mxu1 }
 0x26f   : > { %3849 = vmatprep.mubr.f32.mxu1 %v6475_v9  ;;  %v6043_v59 = vpop.f32.mrb[3].mxu1  ;;  %v3178_v48 = vmul.f32 1.442695, %v6041_v17  ;;  %v3126_v17 = vld [vmem:[%s6096_s13 + $0x30] sm:$0xff] }
 0x270   : > { %v3176_v9 = vmul.f32 1.442695, %v6043_v59 }
 0x272   : > { %3850 = vmatmul.mubr.f32.gmra.mrb[38].mxu1 %v6476_v5 }
 0x273   : > { %3852 = vmatprep.mubr.f32.mxu1 %v6477_v22 }
 0x276   : > { %3853 = vmatmul.mubr.f32.gmra.mrb[40].mxu1 %v6478_v30 }
 0x277   : > { %3855 = vmatprep.mubr.f32.mxu1 %v6479_v39 }
 0x27a   : > { %3856 = vmatmul.mubr.f32.gmra.mrb[42].mxu1 %v6480_v25  ;;  %v3127_v25 = vld [vmem:[%s6096_s13 + $0x38] sm:$0xff] }
 0x27b   : > { %3858 = vmatprep.mubr.f32.mxu1 %v6481_v49 }
 0x27e   : > { %3859 = vmatmul.mubr.f32.gmra.mrb[44].mxu1 %v5766_v20 }
 0x27f   : > { %3861 = vmatprep.mubr.f32.mxu1 %v5850_v34 }
 0x282   : > { %3862 = vmatmul.mubr.f32.gmra.mrb[46].mxu1 %v5887_v58 }
 0x283   : > { %3864 = vmatprep.mubr.f32.mxu1 %v5924_v11  ;;  %v6054_v4 = vpop.f32.mrb[4].mxu1 }
 0x284   : > { %v6056_v14 = vpop.f32.mrb[5].mxu1  ;;  %v3182_v59 = vmul.f32 1.442695, %v6054_v4  ;;  %v3128_v4 = vld [vmem:[%s6096_s13 + $0x40] sm:$0xff] }
 0x285   : > { %v3180_v53 = vmul.f32 1.442695, %v6056_v14 }
 0x286   : > { %3865 = vmatmul.mubr.f32.gmra.mrb[48].mxu1 %v5959_v31 }
 0x287   : > { %3867 = vmatprep.mubr.f32.mxu1 %v2634_v8  ;;  %v3162_v8 = vmul.f32 1.442695, %v5877_v1 }
 0x289   : > { %4011 = vpow2.f32 %v3162_v8 }
 0x28a   : > { %3868 = vmatmul.mubr.f32.gmra.mrb[50].mxu1 %v2635_v16  ;;  %4013 = vpow2.f32 %v3160_v37  ;;  %v3217_v16 = vmul.f32 %v4004_v26, %v3121_v40  ;;  %v3129_v26 = vld [vmem:[%s6096_s13 + $0x48] sm:$0xff] }
 0x28b   : > { %3870 = vmatprep.mubr.f32.mxu1 %v2636_v35  ;;  %4015 = vpow2.f32 %v3166_v29  ;;  %v3170_v35 = vmul.f32 1.442695, %v6014_v28  ;;  %v3172_v28 = vmul.f32 1.442695, %v6029_v24  ;;  %v3124_v24 = vld [vmem:[%s6096_s13 + $0x20] sm:$0xff] }
 0x28c   : > { %4017 = vpow2.f32 %v3164_v43 }
 0x28d   : > { %4019 = vpow2.f32 %v3170_v35 }
 0x28e   : > { %3871 = vmatmul.mubr.f32.gmra.mrb[52].mxu1 %v2637_v52  ;;  %4021 = vpow2.f32 %v3168_v18 }
 0x28f   : > { %4023 = vpow2.f32 %v3174_v19 }
 0x290   : > { %4025 = vpow2.f32 %v3172_v28 }
 0x291   : > { %4027 = vpow2.f32 %v3178_v48 }
 0x292   : > { %4029 = vpow2.f32 %v3176_v9 }
 0x293   : > { %v4012_v13 = vpop.eup %4011  ;;  %4031 = vpow2.f32 %v3182_v59 }
 0x294   : > { %v4014_v46 = vpop.eup %4013  ;;  %v3221_v5 = vmul.f32 %v4012_v13, %v3125_v45  ;;  %4033 = vpow2.f32 %v3180_v53 }
 0x295   : > { %v4016_v22 = vpop.eup %4015  ;;  %v3220_v39 = vmul.f32 %v4014_v46, %v3124_v24 }
 0x296   : > { %v6058_v23 = vpop.f32.mrb[6].mxu1  ;;  %v4018_v49 = vpop.eup %4017  ;;  %v3223_v8 = vmul.f32 %v4016_v22, %v3127_v25 }
 0x297   : > { %v6060_v36 = vpop.f32.mrb[7].mxu1  ;;  %v4020_v37 = vpop.eup %4019  ;;  %v3222_v43 = vmul.f32 %v4018_v49, %v3126_v17  ;;  %v3186_v14 = vmul.f32 1.442695, %v6058_v23  ;;  %v3130_v23 = vld [vmem:[%s6096_s13 + $0x50] sm:$0xff] }
 0x298   : > { %v4022_v40 = vpop.eup %4021  ;;  %v3184_v18 = vmul.f32 1.442695, %v6060_v36 }
 0x299   : > { %v4024_v33 = vpop.eup %4023  ;;  %4035 = vpow2.f32 %v3186_v14 }
 0x29a   : > { %v4026_v12 = vpop.eup %4025  ;;  %4037 = vpow2.f32 %v3184_v18 }
 0x29b   : > { %v4028_v28 = vpop.eup %4027  ;;  %v3226_v13 = vmul.f32 %v4026_v12, %v3130_v23 }
 0x2ac   : > { %v6062_v20 = vpop.f32.mrb[8].mxu1 }
 0x2ad   : > { %v6064_v34 = vpop.f32.mrb[9].mxu1  ;;  %v3190_v36 = vmul.f32 1.442695, %v6062_v20  ;;  %v3132_v20 = vld [vmem:[%s6096_s13 + $0x60] sm:$0xff] }
 0x2ae   : > { %v3188_v19 = vmul.f32 1.442695, %v6064_v34 }
 0x2af   : > { %4039 = vpow2.f32 %v3190_v36 }
 0x2b0   : > { %4041 = vpow2.f32 %v3188_v19 }
 0x2c0   : > { %v6066_v58 = vpop.f32.mrb[10].mxu1 }
 0x2c1   : > { %v6068_v11 = vpop.f32.mrb[11].mxu1  ;;  %v3194_v34 = vmul.f32 1.442695, %v6066_v58  ;;  %v3134_v58 = vld [vmem:[%s6096_s13 + $0x70] sm:$0xff] }
 0x2c3   : > { %4043 = vpow2.f32 %v3194_v34 }
 0x2de   : > { %v6070_v31 = vpop.f32.mrb[12].mxu1 }
 0x2df   : > { %v6072_v51 = vpop.f32.mrb[13].mxu1 }
 0x2e0   : > { %v3196_v49 = vmul.f32 1.442695, %v6072_v51 }
 0x2f8   : > { %v6074_v57 = vpop.f32.mrb[14].mxu1 }
 0x2f9   : > { %v6076_v44 = vpop.f32.mrb[15].mxu1  ;;  %v3202_v51 = vmul.f32 1.442695, %v6074_v57  ;;  %v3138_v57 = vld [vmem:[%s6096_s13 + $0x90] sm:$0xff] }
 0x30a   : > { %v6078_v6 = vpop.f32.mrb[16].mxu1 }
 0x30b   : > { %v6080_v32 = vpop.f32.mrb[17].mxu1 }
 0x31d   : > { %v6089_v54 = vpop.f32.mrb[18].mxu1 }
 0x31e   : > { %v6091_v62 = vpop.f32.mrb[19].mxu1 }
 0x31f   : > { %v3208_v19 = vmul.f32 1.442695, %v6091_v62 }
 0x321   : > { %v6101_v1 = vpop.f32.mrb[20].mxu1 }
 0x322   : > { %v6104_v38 = vpop.f32.mrb[21].mxu1  ;;  %v3214_v62 = vmul.f32 1.442695, %v6101_v1 }
 0x323   : > { %v3212_v34 = vmul.f32 1.442695, %v6104_v38 }
 0x325   : > { %v3827_v52 = vpop.f32.mrb[22].mxu1 }
 0x326   : > { %v3249_v63 = vadd.f32 %v3827_v52, %v3217_v16  ;;  %v2961_v41 = vpop.f32.mrb[23].mxu1  ;;  %v3225_v16 = vmul.f32 %v4020_v37, %v3129_v26 }
 0x327   : > { %v3248_v61 = vadd.f32 %v3216_v55, %v2961_v41  ;;  %v3224_v55 = vmul.f32 %v4022_v40, %v3128_v4  ;;  %v3139_v4 = vld [vmem:[%s6096_s13 + $0x98] sm:$0xff] }
 0x328   : > { %3281 = vst.msk [vmem:[%s6115_s26 + $0x8] sm:$0xff] %vm328_vm0, %v3249_v63 }
 0x329   : > { %3280 = vst.msk [vmem:[%s6115_s26] sm:$0xff] %vm328_vm0, %v3248_v61  ;;  %v3830_v15 = vpop.f32.mrb[24].mxu1  ;;  %v3227_v61 = vmul.f32 %v4024_v33, %v3131_v56  ;;  %v3204_v33 = vmul.f32 1.442695, %v6080_v32  ;;  %v3210_v32 = vmul.f32 1.442695, %v6089_v54 }
 0x32a   : > { %v3251_v47 = vadd.f32 %v3830_v15, %v3219_v10  ;;  %v2971_v0 = vpop.f32.mrb[25].mxu1  ;;  %v3133_v15 = vld [vmem:[%s6096_s13 + $0x68] sm:$0xff]  ;;  %v3142_v54 = vld [vmem:[%s6096_s13 + $0xb0] sm:$0xff] }
 0x32b   : > { %v3250_v27 = vadd.f32 %v3218_v3, %v2971_v0  ;;  %v4030_v3 = vpop.eup %4029  ;;  %v3192_v0 = vmul.f32 1.442695, %v6068_v11  ;;  %v3229_v24 = vmul.f32 %v4028_v28, %v3133_v15  ;;  %v3198_v11 = vmul.f32 1.442695, %v6070_v31  ;;  %v3136_v31 = vld [vmem:[%s6096_s13 + $0x80] sm:$0xff]  ;;  %v3143_v15 = vld [vmem:[%s6096_s13 + $0xb8] sm:$0xff] }
 0x32c   : > { %3283 = vst.msk [vmem:[%s6115_s26 + $0x18] sm:$0xff] %vm328_vm0, %v3251_v47  ;;  %v4032_v48 = vpop.eup %4031  ;;  %v3228_v9 = vmul.f32 %v4030_v3, %v3132_v20 }
 0x32d   : > { %3282 = vst.msk [vmem:[%s6115_s26 + $0x10] sm:$0xff] %vm328_vm0, %v3250_v27  ;;  %v3833_v30 = vpop.f32.mrb[26].mxu1  ;;  %v4034_v22 = vpop.eup %4033  ;;  %4045 = vpow2.f32 %v3192_v0 }
 0x32e   : > { %v3253_v21 = vadd.f32 %v3833_v30, %v3221_v5  ;;  %v2981_v7 = vpop.f32.mrb[27].mxu1  ;;  %v3135_v5 = vld [vmem:[%s6096_s13 + $0x78] sm:$0xff]  ;;  %v3230_v59 = vmul.f32 %v4034_v22, %v3134_v58  ;;  %4047 = vpow2.f32 %v3198_v11  ;;  %v3144_v22 = vld [vmem:[%s6096_s13 + $0xc0] sm:$0xff] }
 0x32f   : > { %v3252_v50 = vadd.f32 %v3220_v39, %v2981_v7  ;;  %v4036_v7 = vpop.eup %4035  ;;  %4049 = vpow2.f32 %v3196_v49 }
 0x330   : > { %3285 = vst.msk [vmem:[%s6115_s26 + $0x28] sm:$0xff] %vm328_vm0, %v3253_v21  ;;  %v3231_v21 = vmul.f32 %v4032_v48, %v3135_v5  ;;  %v4038_v53 = vpop.eup %4037  ;;  %4051 = vpow2.f32 %v3202_v51 }
 0x331   : > { %3284 = vst.msk [vmem:[%s6115_s26 + $0x20] sm:$0xff] %vm328_vm0, %v3252_v50  ;;  %v3836_v29 = vpop.f32.mrb[28].mxu1  ;;  %v3137_v50 = vld [vmem:[%s6096_s13 + $0x88] sm:$0xff]  ;;  %v4040_v40 = vpop.eup %4039 }
 0x332   : > { %v3255_v2 = vadd.f32 %v3836_v29, %v3223_v8  ;;  %v2991_v60 = vpop.f32.mrb[29].mxu1  ;;  %v3233_v26 = vmul.f32 %v4036_v7, %v3137_v50  ;;  %v4042_v14 = vpop.eup %4041 }
 0x333   : > { %v3254_v35 = vadd.f32 %v3222_v43, %v2991_v60  ;;  %v3200_v43 = vmul.f32 1.442695, %v6076_v44  ;;  %v3232_v60 = vmul.f32 %v4038_v53, %v3136_v31  ;;  %v3206_v44 = vmul.f32 1.442695, %v6078_v6  ;;  %v3140_v6 = vld [vmem:[%s6096_s13 + $0xa0] sm:$0xff]  ;;  %v3149_v31 = vld [vmem:[%s6096_s13 + $0xe8] sm:$0xff] }
 0x334   : > { %3287 = vst.msk [vmem:[%s6115_s26 + $0x38] sm:$0xff] %vm328_vm0, %v3255_v2  ;;  %v3234_v12 = vmul.f32 %v4042_v14, %v3138_v57 }
 0x335   : > { %3286 = vst.msk [vmem:[%s6115_s26 + $0x30] sm:$0xff] %vm328_vm0, %v3254_v35  ;;  %v3839_v52 = vpop.f32.mrb[30].mxu1  ;;  %4053 = vpow2.f32 %v3200_v43 }
 0x336   : > { %v3257_v63 = vadd.f32 %v3839_v52, %v3225_v16  ;;  %v3001_v41 = vpop.f32.mrb[31].mxu1  ;;  %v3235_v52 = vmul.f32 %v4040_v40, %v3139_v4  ;;  %4055 = vpow2.f32 %v3206_v44 }
 0x337   : > { %v3256_v42 = vadd.f32 %v3224_v55, %v3001_v41  ;;  %v4044_v55 = vpop.eup %4043  ;;  %4057 = vpow2.f32 %v3204_v33 }
 0x338   : > { %3289 = vst.msk [vmem:[%s6115_s26 + $0x48] sm:$0xff] %vm328_vm0, %v3257_v63  ;;  %v3141_v63 = vld [vmem:[%s6096_s13 + $0xa8] sm:$0xff]  ;;  %v4046_v41 = vpop.eup %4045  ;;  %4059 = vpow2.f32 %v3210_v32 }
 0x339   : > { %3288 = vst.msk [vmem:[%s6115_s26 + $0x40] sm:$0xff] %vm328_vm0, %v3256_v42  ;;  %v3842_v10 = vpop.f32.mrb[32].mxu1  ;;  %v4048_v28 = vpop.eup %4047  ;;  %4061 = vpow2.f32 %v3208_v19 }
 0x33a   : > { %v3259_v45 = vadd.f32 %v3842_v10, %v3227_v61  ;;  %v3011_v46 = vpop.f32.mrb[33].mxu1  ;;  %v3237_v61 = vmul.f32 %v4044_v55, %v3141_v63  ;;  %v4050_v3 = vpop.eup %4049  ;;  %4063 = vpow2.f32 %v3214_v62 }
 0x33b   : > { %v3258_v47 = vadd.f32 %v3226_v13, %v3011_v46  ;;  %v3236_v13 = vmul.f32 %v4046_v41, %v3140_v6  ;;  %v4052_v0 = vpop.eup %4051  ;;  %v3238_v48 = vmul.f32 %v4050_v3, %v3142_v54  ;;  %4065 = vpow2.f32 %v3212_v34 }
 0x33c   : > { %3291 = vst.msk [vmem:[%s6115_s26 + $0x58] sm:$0xff] %vm328_vm0, %v3259_v45 }
 0x33d   : > { %3290 = vst.msk [vmem:[%s6115_s26 + $0x50] sm:$0xff] %vm328_vm0, %v3258_v47  ;;  %v3845_v27 = vpop.f32.mrb[34].mxu1  ;;  %v3239_v47 = vmul.f32 %v4048_v28, %v3143_v15 }
 0x33e   : > { %v3261_v30 = vadd.f32 %v3845_v27, %v3229_v24  ;;  %v3021_v39 = vpop.f32.mrb[35].mxu1  ;;  %v3145_v27 = vld [vmem:[%s6096_s13 + $0xc8] sm:$0xff] }
 0x33f   : > { %v3260_v25 = vadd.f32 %v3228_v9, %v3021_v39  ;;  %v4054_v9 = vpop.eup %4053  ;;  %v3241_v38 = vmul.f32 %v4052_v0, %v3145_v27 }
 0x340   : > { %3293 = vst.msk [vmem:[%s6115_s26 + $0x68] sm:$0xff] %vm328_vm0, %v3261_v30  ;;  %v4056_v39 = vpop.eup %4055  ;;  %v3240_v11 = vmul.f32 %v4054_v9, %v3144_v22 }
 0x341   : > { %3292 = vst.msk [vmem:[%s6115_s26 + $0x60] sm:$0xff] %vm328_vm0, %v3260_v25  ;;  %v3848_v17 = vpop.f32.mrb[36].mxu1  ;;  %v3147_v25 = vld [vmem:[%s6096_s13 + $0xd8] sm:$0xff]  ;;  %v4058_v49 = vpop.eup %4057 }
 0x342   : > { %v3263_v8 = vadd.f32 %v3848_v17, %v3231_v21  ;;  %v3031_v37 = vpop.f32.mrb[37].mxu1  ;;  %v3146_v17 = vld [vmem:[%s6096_s13 + $0xd0] sm:$0xff]  ;;  %v3243_v50 = vmul.f32 %v4056_v39, %v3147_v25  ;;  %v4060_v53 = vpop.eup %4059 }
 0x343   : > { %v3262_v29 = vadd.f32 %v3230_v59, %v3031_v37  ;;  %v3242_v37 = vmul.f32 %v4058_v49, %v3146_v17  ;;  %v4062_v51 = vpop.eup %4061 }
 0x344   : > { %3295 = vst.msk [vmem:[%s6115_s26 + $0x78] sm:$0xff] %vm328_vm0, %v3263_v8 }
 0x345   : > { %3294 = vst.msk [vmem:[%s6115_s26 + $0x70] sm:$0xff] %vm328_vm0, %v3262_v29  ;;  %v3851_v2 = vpop.f32.mrb[38].mxu1 }
 0x346   : > { %v3265_v35 = vadd.f32 %v3851_v2, %v3233_v26  ;;  %v3041_v18 = vpop.f32.mrb[39].mxu1  ;;  %v3148_v26 = vld [vmem:[%s6096_s13 + $0xe0] sm:$0xff]  ;;  %v3245_v2 = vmul.f32 %v4060_v53, %v3149_v31 }
 0x347   : > { %v3264_v16 = vadd.f32 %v3232_v60, %v3041_v18  ;;  %v4064_v60 = vpop.eup %4063  ;;  %v3244_v14 = vmul.f32 %v4062_v51, %v3148_v26 }
 0x348   : > { %3297 = vst.msk [vmem:[%s6115_s26 + $0x88] sm:$0xff] %vm328_vm0, %v3265_v35  ;;  %v3151_v35 = vld [vmem:[%s6096_s13 + $0xf8] sm:$0xff]  ;;  %v4066_v18 = vpop.eup %4065 }
 0x349   : > { %3296 = vst.msk [vmem:[%s6115_s26 + $0x80] sm:$0xff] %vm328_vm0, %v3264_v16  ;;  %v3854_v56 = vpop.f32.mrb[40].mxu1  ;;  %v3150_v16 = vld [vmem:[%s6096_s13 + $0xf0] sm:$0xff] }
 0x34a   : > { %v3267_v23 = vadd.f32 %v3854_v56, %v3235_v52  ;;  %v3051_v36 = vpop.f32.mrb[41].mxu1  ;;  %v3247_v52 = vmul.f32 %v4064_v60, %v3151_v35  ;;  %v3246_v56 = vmul.f32 %v4066_v18, %v3150_v16 }
 0x34b   : > { %v3266_v42 = vadd.f32 %v3234_v12, %v3051_v36 }
 0x34c   : > { %3299 = vst.msk [vmem:[%s6115_s26 + $0x98] sm:$0xff] %vm328_vm0, %v3267_v23 }
 0x34d   : > { %3298 = vst.msk [vmem:[%s6115_s26 + $0x90] sm:$0xff] %vm328_vm0, %v3266_v42  ;;  %v3857_v10 = vpop.f32.mrb[42].mxu1 }
 0x34e   : > { %v3269_v45 = vadd.f32 %v3857_v10, %v3237_v61  ;;  %v3061_v46 = vpop.f32.mrb[43].mxu1 }
 0x34f   : > { %v3268_v20 = vadd.f32 %v3236_v13, %v3061_v46 }
 0x350   : > { %3301 = vst.msk [vmem:[%s6115_s26 + $0xa8] sm:$0xff] %vm328_vm0, %v3269_v45 }
 0x351   : > { %3300 = vst.msk [vmem:[%s6115_s26 + $0xa0] sm:$0xff] %vm328_vm0, %v3268_v20  ;;  %v3860_v24 = vpop.f32.mrb[44].mxu1 }
 0x352   : > { %v3271_v5 = vadd.f32 %v3860_v24, %v3239_v47  ;;  %v3071_v1 = vpop.f32.mrb[45].mxu1 }
 0x353   : > { %v3270_v30 = vadd.f32 %v3238_v48, %v3071_v1 }
 0x354   : > { %3303 = vst.msk [vmem:[%s6115_s26 + $0xb8] sm:$0xff] %vm328_vm0, %v3271_v5 }
 0x355   : > { %3302 = vst.msk [vmem:[%s6115_s26 + $0xb0] sm:$0xff] %vm328_vm0, %v3270_v30  ;;  %v3863_v58 = vpop.f32.mrb[46].mxu1 }
 0x356   : > { %v3273_v21 = vadd.f32 %v3863_v58, %v3241_v38  ;;  %v3081_v7 = vpop.f32.mrb[47].mxu1 }
 0x357   : > { %v3272_v59 = vadd.f32 %v3240_v11, %v3081_v7 }
 0x358   : > { %3305 = vst.msk [vmem:[%s6115_s26 + $0xc8] sm:$0xff] %vm328_vm0, %v3273_v21 }
 0x359   : > { %3304 = vst.msk [vmem:[%s6115_s26 + $0xc0] sm:$0xff] %vm328_vm0, %v3272_v59  ;;  %v3866_v8 = vpop.f32.mrb[48].mxu1 }
 0x35a   : > { %v3275_v29 = vadd.f32 %v3866_v8, %v3243_v50  ;;  %v3091_v43 = vpop.f32.mrb[49].mxu1 }
 0x35b   : > { %v3274_v40 = vadd.f32 %v3242_v37, %v3091_v43 }
 0x35c   : > { %3307 = vst.msk [vmem:[%s6115_s26 + $0xd8] sm:$0xff] %vm328_vm0, %v3275_v29 }
 0x35d   : > { %3306 = vst.msk [vmem:[%s6115_s26 + $0xd0] sm:$0xff] %vm328_vm0, %v3274_v40  ;;  %v3869_v4 = vpop.f32.mrb[50].mxu1 }
 0x35e   : > { %v3277_v57 = vadd.f32 %v3869_v4, %v3245_v2  ;;  %v3101_v44 = vpop.f32.mrb[51].mxu1 }
 0x35f   : > { %v3276_v33 = vadd.f32 %v3244_v14, %v3101_v44 }
 0x360   : > { %3309 = vst.msk [vmem:[%s6115_s26 + $0xe8] sm:$0xff] %vm328_vm0, %v3277_v57 }
 0x361   : > { %3308 = vst.msk [vmem:[%s6115_s26 + $0xe0] sm:$0xff] %vm328_vm0, %v3276_v33  ;;  %v3872_v55 = vpop.f32.mrb[52].mxu1 }
 0x362   : > { %v3279_v12 = vadd.f32 %v3872_v55, %v3247_v52  ;;  %v3111_v63 = vpop.f32.mrb[53].mxu1 }
 0x363   : > { %v3278_v41 = vadd.f32 %v3246_v56, %v3111_v63 }
 0x364   : > { %3311 = vst.msk [vmem:[%s6115_s26 + $0xf8] sm:$0xff] %vm328_vm0, %v3279_v12 }
 0x365   : > { %3310 = vst.msk [vmem:[%s6115_s26 + $0xf0] sm:$0xff] %vm328_vm0, %v3278_v41 }
 0x366   : > { %4082 = shalt.err (!%p4079_p3)
}
 0x367   : > { %s4083_s11 = scalar_lea.hbm %s6230_s20, 4096  ;;  %s4087_s14 = scalar_lea.hbm %s6287_s6, 8192 }
 0x368   : > { %p4084_p4 = scmp.ne.s32.totalorder %s6230_s20, %s4083_s11  ;;  %p4088_p9 = scmp.lt.u32.totalorder %s6230_s20, %s6287_s6 }
 0x369   : > { %p4089_p10 = scmp.lt.u32.totalorder %s4087_s14, %s4083_s11  ;;  %p4091_p12 = scmp.lt.u32.totalorder %s4083_s11, %s6230_s20 }
 0x36a   : > { %p4085_p7 = pnand %p4084_p4, %p4209_p5 }
 0x36b   : > { %p4090_p11 = por %p4089_p10, %p4088_p9 }
 0x36c   : > { %p4086_p8 = pneg %p4085_p7 }
 0x36d   : > { %p4092_p13 = por %p4091_p12, %p4090_p11 }
 0x36f   : > { %p4093_p0 = pnand %p4092_p13, %p4086_p8 }
 0x371   : > { %4096 = shalt.err (!%p4093_p0)
}
 0x372   : > { %s4134_s15 = smov 128   ;;  %s4135_s18 = smov 8  }
 0x373   : > { %3962 = dma.vmem_to_hbm [thread:$0]  (%p4209_p5), %s6232_s16, 4096, %s6230_s20, %s6240_s25, %s4134_s15, %s4134_s15, %s4135_s18  }
 0x374 PF: > { %p3968_p1 = scmp.ge.s32.totalorder %s4131_s24, 2  ;;  %s3341_s19 = sand.u32 1, %s4119_s21  }
 0x375   : > { %s3342_s28 = scalar_lea.sflag [#allocation3], %s3341_s19 }
 0x376   : > { %p3965_p2 = pnand %p3968_p1, %p4213_p6 }
 0x378   : > { %4114 = dma.done.wait (!%p3965_p2), %s3342_s28, 4096  }
 0x379   : > { %4116 = vsyncadd (!%p3965_p2), %s3342_s28, 4294963200  ;;  %p16_p3 = scmp.ge.s32.totalorder %s4196_s27, 4   ;;  %s6482_s21 = smov %s4123_s22 }
 0x37a   : > { %s6483_s22 = smov %s4127_s23  ;;  %s6484_s23 = smov %s4207_s30 }
 0x37b   : > { %s6485_s24 = smov %s4196_s27  ;;  %18 = sbr.rel (!%p16_p3) target bundleno = 3 (0x3), region = 82 }
 0x382   :  { %3347 = vsyncpa [#allocation3], 1 }
 0x383   :  { %3349 = vsyncpa [#allocation3 + $0x1], 1 }

</bundles_post_ra>
